<compile_context>
chip_gen: v7x
topology: tpu7x:2x2x1
jax: 0.10.0
libtpu: 0.0.40
codegen_flags: <defaults>
</compile_context>

<pallas_src>
import jax
import jax.numpy as jnp
from jax.experimental import pallas as pl
from jax.experimental.pallas import tpu as pltpu

EPS = 1e-5
LANE = 128   # MXU / vreg lane width (optimal on v5e; see TODO for 256 on v6e/v7x)


def _round_up(x, m):
    return (x + m - 1) // m * m


def _vmem_f32_bytes(shape):
    """f32 VMEM footprint with (8, 128) tile padding on the last two dims."""
    s = (1, 1) + tuple(int(d) for d in shape)
    lead = 1
    for d in s[:-2]:
        lead *= d
    return lead * _round_up(s[-2], 8) * _round_up(s[-1], 128) * 4


def resblock_kernel(x_ref, w1_ref, w2_ref, g1_ref, b1_ref, g2_ref, b2_ref,
                    out_ref, pad_ref, conv_ref):
    """Fused conv3x3 -> BN -> ReLU -> conv3x3 -> BN -> +x  (NHWC, real C)."""
    N, H, W, C = x_ref.shape
    Hp, Wp = H + 2, W + 2
    M = N * H * W
    inv_m = 1.0 / float(M)

    # ---- zero ONLY the 1-pixel halo of the padded scratch (written once;
    # the buffer is reused for conv2's input, so the halo stays zero) ----
    pad_ref[:, 0:1, :, :] = jnp.zeros((N, 1, Wp, C), jnp.float32)
    pad_ref[:, Hp - 1:Hp, :, :] = jnp.zeros((N, 1, Wp, C), jnp.float32)
    pad_ref[:, :, 0:1, :] = jnp.zeros((N, Hp, 1, C), jnp.float32)
    pad_ref[:, :, Wp - 1:Wp, :] = jnp.zeros((N, Hp, 1, C), jnp.float32)

    # interior <- x (written exactly once)
    pad_ref[:, 1:H + 1, 1:W + 1, :] = x_ref[...]

    def conv3x3(w_ref):
        # 9 accumulating MXU dots, each with the real contraction width K = C
        # (no padded-K lanes, no im2col slab).  Result: (M, Cp) f32 in conv_ref.
        for ky in range(3):
            for kx in range(3):
                t = ky * 3 + kx
                lhs = pad_ref[:, ky:ky + H, kx:kx + W, :].reshape(M, C)
                part = jnp.dot(lhs, w_ref[t],
                               preferred_element_type=jnp.float32)
                if t == 0:
                    conv_ref[...] = part
                else:
                    conv_ref[...] += part

    def bn_scale_shift(y, g, b):
        # Two-pass batch statistics (biased variance, like the PyTorch fwd),
        # all in f32, folded into one per-channel scale/shift.
        mean = jnp.sum(y, axis=0, keepdims=True) * inv_m
        d = y - mean
        var = jnp.sum(d * d, axis=0, keepdims=True) * inv_m
        scale = jax.lax.rsqrt(var + EPS) * g
        shift = b - mean * scale
        return scale, shift

    # ================= conv1 + bn1 + relu =================
    conv3x3(w1_ref)
    y1 = conv_ref[...]
    scale1, shift1 = bn_scale_shift(y1, g1_ref[...], b1_ref[...])
    act1 = jnp.maximum(y1 * scale1 + shift1, 0.0)
    # BN+ReLU result written straight into the padded scratch (halo stays 0).
    pad_ref[:, 1:H + 1, 1:W + 1, :] = act1[:, :C].reshape(N, H, W, C)

    # ================= conv2 + bn2 + residual =================
    conv3x3(w2_ref)
    y2 = conv_ref[...]
    scale2, shift2 = bn_scale_shift(y2, g2_ref[...], b2_ref[...])
    out = (y2 * scale2 + shift2)[:, :C].reshape(N, H, W, C) + x_ref[...]
    out_ref[...] = out


def residual_block_pallas(x_nchw, w1_oihw, w2_oihw, g1, b1, g2, b2):
    """x_nchw: (N, C, H, W) float32.  Returns (N, C, H, W) float32."""
    N, C, H, W = x_nchw.shape
    Cp = _round_up(C, LANE)   # lane-dense MXU output / BN scratch width (VMEM only)

    # NCHW -> NHWC with the REAL channel count: no channel padding in HBM.
    x_nhwc = jnp.transpose(x_nchw, (0, 2, 3, 1)).astype(jnp.float32)

    def prep_w(w):
        # OIHW -> (ky*3+kx, Cin, Cout); pad only Cout (the MXU output lanes).
        w = jnp.transpose(w, (2, 3, 1, 0)).astype(jnp.float32)  # (3,3,Cin,Cout)
        w = w.reshape(9, C, C)
        return jnp.pad(w, ((0, 0), (0, 0), (0, Cp - C)))

    def prep_affine(p):
        # Zero-pad: dead output lanes get scale == shift == 0 and stay 0.
        return jnp.pad(p.astype(jnp.float32), (0, Cp - C)).reshape(1, Cp)

    w1f, w2f = prep_w(w1_oihw), prep_w(w2_oihw)
    g1r, b1r = prep_affine(g1), prep_affine(b1)
    g2r, b2r = prep_affine(g2), prep_affine(b2)

    M = N * H * W
    scratch = [
        pltpu.VMEM((N, H + 2, W + 2, C), jnp.float32),  # zero-halo padded x / act1
        pltpu.VMEM((M, Cp), jnp.float32),               # conv accumulator (MXU out)
    ]

    # VMEM budget derived from the actual tile-padded buffer footprints.
    need = (2 * _vmem_f32_bytes((N, H, W, C))          # x in + out
            + 2 * _vmem_f32_bytes((9, C, Cp))          # weights
            + 4 * _vmem_f32_bytes((1, Cp))             # gamma / beta
            + _vmem_f32_bytes((N, H + 2, W + 2, C))    # padded scratch
            + _vmem_f32_bytes((M, Cp)))                # conv accumulator
    vmem_cap = 48 * 1024 * 1024                        # headroom under v7x's 64 MiB
    if need > vmem_cap:
        # TODO(synk): row-banded multi-pass pipeline for shapes that exceed VMEM.
        raise ValueError(
            f"ResidualBlock shape needs ~{need} bytes of VMEM; "
            "row-band tiling not implemented.")
    vmem_limit = int(min(max(2 * need, 8 * 1024 * 1024), vmem_cap))

    vmem = pl.BlockSpec(memory_space=pltpu.MemorySpace.VMEM)
    out_nhwc = pl.pallas_call(
        resblock_kernel,
        out_shape=jax.ShapeDtypeStruct((N, H, W, C), jnp.float32),
        in_specs=[vmem] * 7,
        out_specs=vmem,
        scratch_shapes=scratch,
        compiler_params=pltpu.CompilerParams(vmem_limit_bytes=vmem_limit),
    )(x_nhwc, w1f, w2f, g1r, b1r, g2r, b2r)

    return jnp.transpose(out_nhwc, (0, 3, 1, 2))        # back to NCHW


def residual_block_ref(x, w1, w2, g1, b1, g2, b2):
    """Pure-JAX reference (NCHW, same semantics as the PyTorch module in train())."""
    def conv(inp, w):
        return jax.lax.conv_general_dilated(
            inp, w, window_strides=(1, 1), padding=((1, 1), (1, 1)),
            dimension_numbers=('NCHW', 'OIHW', 'NCHW'))

    def bn(inp, g, b):
        mean = inp.mean(axis=(0, 2, 3), keepdims=True)
        var = inp.var(axis=(0, 2, 3), keepdims=True)  # biased, like PyTorch fwd
        return ((inp - mean) / jnp.sqrt(var + EPS)
                * g.reshape(1, -1, 1, 1) + b.reshape(1, -1, 1, 1))

    out = jax.nn.relu(bn(conv(x, w1), g1, b1))
    out = bn(conv(out, w2), g2, b2)
    return out + x


if __name__ == "__main__":
    key = jax.random.PRNGKey(0)
    N, C, H, W = 2, 4, 16, 16
    k_x, k_w1, k_w2, k_g1, k_b1, k_g2, k_b2 = jax.random.split(key, 7)

    x = jax.random.normal(k_x, (N, C, H, W), jnp.float32)
    # Conv2d(C, C, 3, bias=False) weights: (Cout, Cin, 3, 3)
    fan_in = C * 3 * 3
    w1 = jax.random.normal(k_w1, (C, C, 3, 3), jnp.float32) / jnp.sqrt(fan_in)
    w2 = jax.random.normal(k_w2, (C, C, 3, 3), jnp.float32) / jnp.sqrt(fan_in)
    # BatchNorm affine params (perturbed so the affine path is exercised).
    g1 = 1.0 + 0.1 * jax.random.normal(k_g1, (C,), jnp.float32)
    b1 = 0.1 * jax.random.normal(k_b1, (C,), jnp.float32)
    g2 = 1.0 + 0.1 * jax.random.normal(k_g2, (C,), jnp.float32)
    b2 = 0.1 * jax.random.normal(k_b2, (C,), jnp.float32)

    out = residual_block_pallas(x, w1, w2, g1, b1, g2, b2)
    out = jax.block_until_ready(out)

    ref = residual_block_ref(x, w1, w2, g1, b1, g2, b2)
    assert out.shape == (N, C, H, W)
    assert jnp.allclose(out, ref, atol=1e-4, rtol=1e-4), \
        f"max abs err {jnp.max(jnp.abs(out - ref))}"

    print("KERNEL_OK")
</pallas_src>

<mosaic_0001>
module attributes {stable_mosaic.version = 11 : i64} {
  func.func @resblock_kernel(%arg0: memref<2x16x16x4xf32, #tpu.memory_space<vmem>>, %arg1: memref<9x4x128xf32, #tpu.memory_space<vmem>>, %arg2: memref<9x4x128xf32, #tpu.memory_space<vmem>>, %arg3: memref<1x128xf32, #tpu.memory_space<vmem>>, %arg4: memref<1x128xf32, #tpu.memory_space<vmem>>, %arg5: memref<1x128xf32, #tpu.memory_space<vmem>>, %arg6: memref<1x128xf32, #tpu.memory_space<vmem>>, %arg7: memref<2x16x16x4xf32, #tpu.memory_space<vmem>>, %arg8: memref<2x18x18x4xf32, #tpu.memory_space<vmem>>, %arg9: memref<512x128xf32, #tpu.memory_space<vmem>>) attributes {dimension_semantics = [], scalar_prefetch = 0 : i64, scratch_operands = 2 : i64, tpu.core_type = #tpu.core_type<tc>} {
    %cst = arith.constant 0.000000e+00 : f32
    %0 = vector.broadcast %cst : f32 to vector<2x1x18x4xf32>
    %c0 = arith.constant 0 : index
    %c0_0 = arith.constant 0 : index
    %c0_1 = arith.constant 0 : index
    %c0_2 = arith.constant 0 : index
    %1 = vector.load %arg8[%c0, %c0_0, %c0_1, %c0_2] : memref<2x18x18x4xf32, #tpu.memory_space<vmem>>, vector<2x1x18x4xf32>
    tpu.vector_store %arg8[%c0, %c0_0, %c0_1, %c0_2], %0 {strides = array<i32>} : memref<2x18x18x4xf32, #tpu.memory_space<vmem>>, vector<2x1x18x4xf32>,
    %cst_3 = arith.constant 0.000000e+00 : f32
    %2 = vector.broadcast %cst_3 : f32 to vector<2x1x18x4xf32>
    %c0_4 = arith.constant 0 : index
    %c17 = arith.constant 17 : index
    %c0_5 = arith.constant 0 : index
    %c0_6 = arith.constant 0 : index
    %3 = vector.load %arg8[%c0_4, %c17, %c0_5, %c0_6] : memref<2x18x18x4xf32, #tpu.memory_space<vmem>>, vector<2x1x18x4xf32>
    tpu.vector_store %arg8[%c0_4, %c17, %c0_5, %c0_6], %2 {strides = array<i32>} : memref<2x18x18x4xf32, #tpu.memory_space<vmem>>, vector<2x1x18x4xf32>,
    %cst_7 = arith.constant 0.000000e+00 : f32
    %4 = vector.broadcast %cst_7 : f32 to vector<2x18x1x4xf32>
    %c0_8 = arith.constant 0 : index
    %c0_9 = arith.constant 0 : index
    %c0_10 = arith.constant 0 : index
    %c0_11 = arith.constant 0 : index
    %5 = vector.load %arg8[%c0_8, %c0_9, %c0_10, %c0_11] : memref<2x18x18x4xf32, #tpu.memory_space<vmem>>, vector<2x18x1x4xf32>
    tpu.vector_store %arg8[%c0_8, %c0_9, %c0_10, %c0_11], %4 {strides = array<i32>} : memref<2x18x18x4xf32, #tpu.memory_space<vmem>>, vector<2x18x1x4xf32>,
    %cst_12 = arith.constant 0.000000e+00 : f32
    %6 = vector.broadcast %cst_12 : f32 to vector<2x18x1x4xf32>
    %c0_13 = arith.constant 0 : index
    %c0_14 = arith.constant 0 : index
    %c17_15 = arith.constant 17 : index
    %c0_16 = arith.constant 0 : index
    %7 = vector.load %arg8[%c0_13, %c0_14, %c17_15, %c0_16] : memref<2x18x18x4xf32, #tpu.memory_space<vmem>>, vector<2x18x1x4xf32>
    tpu.vector_store %arg8[%c0_13, %c0_14, %c17_15, %c0_16], %6 {strides = array<i32>} : memref<2x18x18x4xf32, #tpu.memory_space<vmem>>, vector<2x18x1x4xf32>,
    %c0_17 = arith.constant 0 : index
    %c0_18 = arith.constant 0 : index
    %c0_19 = arith.constant 0 : index
    %c0_20 = arith.constant 0 : index
    %8 = vector.load %arg0[%c0_17, %c0_18, %c0_19, %c0_20] : memref<2x16x16x4xf32, #tpu.memory_space<vmem>>, vector<2x16x16x4xf32>
    %c0_21 = arith.constant 0 : index
    %c1 = arith.constant 1 : index
    %c1_22 = arith.constant 1 : index
    %c0_23 = arith.constant 0 : index
    %9 = vector.load %arg8[%c0_21, %c1, %c1_22, %c0_23] : memref<2x18x18x4xf32, #tpu.memory_space<vmem>>, vector<2x16x16x4xf32>
    tpu.vector_store %arg8[%c0_21, %c1, %c1_22, %c0_23], %8 {strides = array<i32>} : memref<2x18x18x4xf32, #tpu.memory_space<vmem>>, vector<2x16x16x4xf32>,
    %c0_24 = arith.constant 0 : index
    %c0_25 = arith.constant 0 : index
    %c0_26 = arith.constant 0 : index
    %c0_27 = arith.constant 0 : index
    %10 = vector.load %arg8[%c0_24, %c0_25, %c0_26, %c0_27] : memref<2x18x18x4xf32, #tpu.memory_space<vmem>>, vector<2x16x16x4xf32>
    %11 = vector.shape_cast %10 : vector<2x16x16x4xf32> to vector<512x4xf32>
    %c0_28 = arith.constant 0 : index
    %c0_29 = arith.constant 0 : index
    %c0_30 = arith.constant 0 : index
    %12 = vector.load %arg1[%c0_28, %c0_29, %c0_30] : memref<9x4x128xf32, #tpu.memory_space<vmem>>, vector<1x4x128xf32>
    %13 = vector.shape_cast %12 : vector<1x4x128xf32> to vector<4x128xf32>
    %cst_31 = arith.constant dense<0.000000e+00> : vector<512x128xf32>
    %14 = tpu.matmul %11, %13, %cst_31 {dimension_numbers = #tpu.dot_dimension_numbers<[1], [0], [0], [1], [0, 0, 1, 1], [], []>} : vector<512x4xf32>, vector<4x128xf32>, vector<512x128xf32> -> vector<512x128xf32>
    %c0_32 = arith.constant 0 : index
    %c0_33 = arith.constant 0 : index
    %15 = vector.load %arg9[%c0_32, %c0_33] : memref<512x128xf32, #tpu.memory_space<vmem>>, vector<512x128xf32>
    tpu.vector_store %arg9[%c0_32, %c0_33], %14 {strides = array<i32>} : memref<512x128xf32, #tpu.memory_space<vmem>>, vector<512x128xf32>,
    %c0_34 = arith.constant 0 : index
    %c0_35 = arith.constant 0 : index
    %c1_36 = arith.constant 1 : index
    %c0_37 = arith.constant 0 : index
    %16 = vector.load %arg8[%c0_34, %c0_35, %c1_36, %c0_37] : memref<2x18x18x4xf32, #tpu.memory_space<vmem>>, vector<2x16x16x4xf32>
    %17 = vector.shape_cast %16 : vector<2x16x16x4xf32> to vector<512x4xf32>
    %c1_38 = arith.constant 1 : index
    %c0_39 = arith.constant 0 : index
    %c0_40 = arith.constant 0 : index
    %18 = vector.load %arg1[%c1_38, %c0_39, %c0_40] : memref<9x4x128xf32, #tpu.memory_space<vmem>>, vector<1x4x128xf32>
    %19 = vector.shape_cast %18 : vector<1x4x128xf32> to vector<4x128xf32>
    %cst_41 = arith.constant dense<0.000000e+00> : vector<512x128xf32>
    %20 = tpu.matmul %17, %19, %cst_41 {dimension_numbers = #tpu.dot_dimension_numbers<[1], [0], [0], [1], [0, 0, 1, 1], [], []>} : vector<512x4xf32>, vector<4x128xf32>, vector<512x128xf32> -> vector<512x128xf32>
    %c0_42 = arith.constant 0 : index
    %c0_43 = arith.constant 0 : index
    %21 = vector.load %arg9[%c0_42, %c0_43] : memref<512x128xf32, #tpu.memory_space<vmem>>, vector<512x128xf32>
    %22 = arith.addf %21, %20 : vector<512x128xf32>
    %c0_44 = arith.constant 0 : index
    %c0_45 = arith.constant 0 : index
    %23 = vector.load %arg9[%c0_44, %c0_45] : memref<512x128xf32, #tpu.memory_space<vmem>>, vector<512x128xf32>
    tpu.vector_store %arg9[%c0_44, %c0_45], %22 {strides = array<i32>} : memref<512x128xf32, #tpu.memory_space<vmem>>, vector<512x128xf32>,
    %c0_46 = arith.constant 0 : index
    %c0_47 = arith.constant 0 : index
    %c2 = arith.constant 2 : index
    %c0_48 = arith.constant 0 : index
    %24 = vector.load %arg8[%c0_46, %c0_47, %c2, %c0_48] : memref<2x18x18x4xf32, #tpu.memory_space<vmem>>, vector<2x16x16x4xf32>
    %25 = vector.shape_cast %24 : vector<2x16x16x4xf32> to vector<512x4xf32>
    %c2_49 = arith.constant 2 : index
    %c0_50 = arith.constant 0 : index
    %c0_51 = arith.constant 0 : index
    %26 = vector.load %arg1[%c2_49, %c0_50, %c0_51] : memref<9x4x128xf32, #tpu.memory_space<vmem>>, vector<1x4x128xf32>
    %27 = vector.shape_cast %26 : vector<1x4x128xf32> to vector<4x128xf32>
    %cst_52 = arith.constant dense<0.000000e+00> : vector<512x128xf32>
    %28 = tpu.matmul %25, %27, %cst_52 {dimension_numbers = #tpu.dot_dimension_numbers<[1], [0], [0], [1], [0, 0, 1, 1], [], []>} : vector<512x4xf32>, vector<4x128xf32>, vector<512x128xf32> -> vector<512x128xf32>
    %c0_53 = arith.constant 0 : index
    %c0_54 = arith.constant 0 : index
    %29 = vector.load %arg9[%c0_53, %c0_54] : memref<512x128xf32, #tpu.memory_space<vmem>>, vector<512x128xf32>
    %30 = arith.addf %29, %28 : vector<512x128xf32>
    %c0_55 = arith.constant 0 : index
    %c0_56 = arith.constant 0 : index
    %31 = vector.load %arg9[%c0_55, %c0_56] : memref<512x128xf32, #tpu.memory_space<vmem>>, vector<512x128xf32>
    tpu.vector_store %arg9[%c0_55, %c0_56], %30 {strides = array<i32>} : memref<512x128xf32, #tpu.memory_space<vmem>>, vector<512x128xf32>,
    %c0_57 = arith.constant 0 : index
    %c1_58 = arith.constant 1 : index
    %c0_59 = arith.constant 0 : index
    %c0_60 = arith.constant 0 : index
    %32 = vector.load %arg8[%c0_57, %c1_58, %c0_59, %c0_60] : memref<2x18x18x4xf32, #tpu.memory_space<vmem>>, vector<2x16x16x4xf32>
    %33 = vector.shape_cast %32 : vector<2x16x16x4xf32> to vector<512x4xf32>
    %c3 = arith.constant 3 : index
    %c0_61 = arith.constant 0 : index
    %c0_62 = arith.constant 0 : index
    %34 = vector.load %arg1[%c3, %c0_61, %c0_62] : memref<9x4x128xf32, #tpu.memory_space<vmem>>, vector<1x4x128xf32>
    %35 = vector.shape_cast %34 : vector<1x4x128xf32> to vector<4x128xf32>
    %cst_63 = arith.constant dense<0.000000e+00> : vector<512x128xf32>
    %36 = tpu.matmul %33, %35, %cst_63 {dimension_numbers = #tpu.dot_dimension_numbers<[1], [0], [0], [1], [0, 0, 1, 1], [], []>} : vector<512x4xf32>, vector<4x128xf32>, vector<512x128xf32> -> vector<512x128xf32>
    %c0_64 = arith.constant 0 : index
    %c0_65 = arith.constant 0 : index
    %37 = vector.load %arg9[%c0_64, %c0_65] : memref<512x128xf32, #tpu.memory_space<vmem>>, vector<512x128xf32>
    %38 = arith.addf %37, %36 : vector<512x128xf32>
    %c0_66 = arith.constant 0 : index
    %c0_67 = arith.constant 0 : index
    %39 = vector.load %arg9[%c0_66, %c0_67] : memref<512x128xf32, #tpu.memory_space<vmem>>, vector<512x128xf32>
    tpu.vector_store %arg9[%c0_66, %c0_67], %38 {strides = array<i32>} : memref<512x128xf32, #tpu.memory_space<vmem>>, vector<512x128xf32>,
    %c0_68 = arith.constant 0 : index
    %c1_69 = arith.constant 1 : index
    %c1_70 = arith.constant 1 : index
    %c0_71 = arith.constant 0 : index
    %40 = vector.load %arg8[%c0_68, %c1_69, %c1_70, %c0_71] : memref<2x18x18x4xf32, #tpu.memory_space<vmem>>, vector<2x16x16x4xf32>
    %41 = vector.shape_cast %40 : vector<2x16x16x4xf32> to vector<512x4xf32>
    %c4 = arith.constant 4 : index
    %c0_72 = arith.constant 0 : index
    %c0_73 = arith.constant 0 : index
    %42 = vector.load %arg1[%c4, %c0_72, %c0_73] : memref<9x4x128xf32, #tpu.memory_space<vmem>>, vector<1x4x128xf32>
    %43 = vector.shape_cast %42 : vector<1x4x128xf32> to vector<4x128xf32>
    %cst_74 = arith.constant dense<0.000000e+00> : vector<512x128xf32>
    %44 = tpu.matmul %41, %43, %cst_74 {dimension_numbers = #tpu.dot_dimension_numbers<[1], [0], [0], [1], [0, 0, 1, 1], [], []>} : vector<512x4xf32>, vector<4x128xf32>, vector<512x128xf32> -> vector<512x128xf32>
    %c0_75 = arith.constant 0 : index
    %c0_76 = arith.constant 0 : index
    %45 = vector.load %arg9[%c0_75, %c0_76] : memref<512x128xf32, #tpu.memory_space<vmem>>, vector<512x128xf32>
    %46 = arith.addf %45, %44 : vector<512x128xf32>
    %c0_77 = arith.constant 0 : index
    %c0_78 = arith.constant 0 : index
    %47 = vector.load %arg9[%c0_77, %c0_78] : memref<512x128xf32, #tpu.memory_space<vmem>>, vector<512x128xf32>
    tpu.vector_store %arg9[%c0_77, %c0_78], %46 {strides = array<i32>} : memref<512x128xf32, #tpu.memory_space<vmem>>, vector<512x128xf32>,
    %c0_79 = arith.constant 0 : index
    %c1_80 = arith.constant 1 : index
    %c2_81 = arith.constant 2 : index
    %c0_82 = arith.constant 0 : index
    %48 = vector.load %arg8[%c0_79, %c1_80, %c2_81, %c0_82] : memref<2x18x18x4xf32, #tpu.memory_space<vmem>>, vector<2x16x16x4xf32>
    %49 = vector.shape_cast %48 : vector<2x16x16x4xf32> to vector<512x4xf32>
    %c5 = arith.constant 5 : index
    %c0_83 = arith.constant 0 : index
    %c0_84 = arith.constant 0 : index
    %50 = vector.load %arg1[%c5, %c0_83, %c0_84] : memref<9x4x128xf32, #tpu.memory_space<vmem>>, vector<1x4x128xf32>
    %51 = vector.shape_cast %50 : vector<1x4x128xf32> to vector<4x128xf32>
    %cst_85 = arith.constant dense<0.000000e+00> : vector<512x128xf32>
    %52 = tpu.matmul %49, %51, %cst_85 {dimension_numbers = #tpu.dot_dimension_numbers<[1], [0], [0], [1], [0, 0, 1, 1], [], []>} : vector<512x4xf32>, vector<4x128xf32>, vector<512x128xf32> -> vector<512x128xf32>
    %c0_86 = arith.constant 0 : index
    %c0_87 = arith.constant 0 : index
    %53 = vector.load %arg9[%c0_86, %c0_87] : memref<512x128xf32, #tpu.memory_space<vmem>>, vector<512x128xf32>
    %54 = arith.addf %53, %52 : vector<512x128xf32>
    %c0_88 = arith.constant 0 : index
    %c0_89 = arith.constant 0 : index
    %55 = vector.load %arg9[%c0_88, %c0_89] : memref<512x128xf32, #tpu.memory_space<vmem>>, vector<512x128xf32>
    tpu.vector_store %arg9[%c0_88, %c0_89], %54 {strides = array<i32>} : memref<512x128xf32, #tpu.memory_space<vmem>>, vector<512x128xf32>,
    %c0_90 = arith.constant 0 : index
    %c2_91 = arith.constant 2 : index
    %c0_92 = arith.constant 0 : index
    %c0_93 = arith.constant 0 : index
    %56 = vector.load %arg8[%c0_90, %c2_91, %c0_92, %c0_93] : memref<2x18x18x4xf32, #tpu.memory_space<vmem>>, vector<2x16x16x4xf32>
    %57 = vector.shape_cast %56 : vector<2x16x16x4xf32> to vector<512x4xf32>
    %c6 = arith.constant 6 : index
    %c0_94 = arith.constant 0 : index
    %c0_95 = arith.constant 0 : index
    %58 = vector.load %arg1[%c6, %c0_94, %c0_95] : memref<9x4x128xf32, #tpu.memory_space<vmem>>, vector<1x4x128xf32>
    %59 = vector.shape_cast %58 : vector<1x4x128xf32> to vector<4x128xf32>
    %cst_96 = arith.constant dense<0.000000e+00> : vector<512x128xf32>
    %60 = tpu.matmul %57, %59, %cst_96 {dimension_numbers = #tpu.dot_dimension_numbers<[1], [0], [0], [1], [0, 0, 1, 1], [], []>} : vector<512x4xf32>, vector<4x128xf32>, vector<512x128xf32> -> vector<512x128xf32>
    %c0_97 = arith.constant 0 : index
    %c0_98 = arith.constant 0 : index
    %61 = vector.load %arg9[%c0_97, %c0_98] : memref<512x128xf32, #tpu.memory_space<vmem>>, vector<512x128xf32>
    %62 = arith.addf %61, %60 : vector<512x128xf32>
    %c0_99 = arith.constant 0 : index
    %c0_100 = arith.constant 0 : index
    %63 = vector.load %arg9[%c0_99, %c0_100] : memref<512x128xf32, #tpu.memory_space<vmem>>, vector<512x128xf32>
    tpu.vector_store %arg9[%c0_99, %c0_100], %62 {strides = array<i32>} : memref<512x128xf32, #tpu.memory_space<vmem>>, vector<512x128xf32>,
    %c0_101 = arith.constant 0 : index
    %c2_102 = arith.constant 2 : index
    %c1_103 = arith.constant 1 : index
    %c0_104 = arith.constant 0 : index
    %64 = vector.load %arg8[%c0_101, %c2_102, %c1_103, %c0_104] : memref<2x18x18x4xf32, #tpu.memory_space<vmem>>, vector<2x16x16x4xf32>
    %65 = vector.shape_cast %64 : vector<2x16x16x4xf32> to vector<512x4xf32>
    %c7 = arith.constant 7 : index
    %c0_105 = arith.constant 0 : index
    %c0_106 = arith.constant 0 : index
    %66 = vector.load %arg1[%c7, %c0_105, %c0_106] : memref<9x4x128xf32, #tpu.memory_space<vmem>>, vector<1x4x128xf32>
    %67 = vector.shape_cast %66 : vector<1x4x128xf32> to vector<4x128xf32>
    %cst_107 = arith.constant dense<0.000000e+00> : vector<512x128xf32>
    %68 = tpu.matmul %65, %67, %cst_107 {dimension_numbers = #tpu.dot_dimension_numbers<[1], [0], [0], [1], [0, 0, 1, 1], [], []>} : vector<512x4xf32>, vector<4x128xf32>, vector<512x128xf32> -> vector<512x128xf32>
    %c0_108 = arith.constant 0 : index
    %c0_109 = arith.constant 0 : index
    %69 = vector.load %arg9[%c0_108, %c0_109] : memref<512x128xf32, #tpu.memory_space<vmem>>, vector<512x128xf32>
    %70 = arith.addf %69, %68 : vector<512x128xf32>
    %c0_110 = arith.constant 0 : index
    %c0_111 = arith.constant 0 : index
    %71 = vector.load %arg9[%c0_110, %c0_111] : memref<512x128xf32, #tpu.memory_space<vmem>>, vector<512x128xf32>
    tpu.vector_store %arg9[%c0_110, %c0_111], %70 {strides = array<i32>} : memref<512x128xf32, #tpu.memory_space<vmem>>, vector<512x128xf32>,
    %c0_112 = arith.constant 0 : index
    %c2_113 = arith.constant 2 : index
    %c2_114 = arith.constant 2 : index
    %c0_115 = arith.constant 0 : index
    %72 = vector.load %arg8[%c0_112, %c2_113, %c2_114, %c0_115] : memref<2x18x18x4xf32, #tpu.memory_space<vmem>>, vector<2x16x16x4xf32>
    %73 = vector.shape_cast %72 : vector<2x16x16x4xf32> to vector<512x4xf32>
    %c8 = arith.constant 8 : index
    %c0_116 = arith.constant 0 : index
    %c0_117 = arith.constant 0 : index
    %74 = vector.load %arg1[%c8, %c0_116, %c0_117] : memref<9x4x128xf32, #tpu.memory_space<vmem>>, vector<1x4x128xf32>
    %75 = vector.shape_cast %74 : vector<1x4x128xf32> to vector<4x128xf32>
    %cst_118 = arith.constant dense<0.000000e+00> : vector<512x128xf32>
    %76 = tpu.matmul %73, %75, %cst_118 {dimension_numbers = #tpu.dot_dimension_numbers<[1], [0], [0], [1], [0, 0, 1, 1], [], []>} : vector<512x4xf32>, vector<4x128xf32>, vector<512x128xf32> -> vector<512x128xf32>
    %c0_119 = arith.constant 0 : index
    %c0_120 = arith.constant 0 : index
    %77 = vector.load %arg9[%c0_119, %c0_120] : memref<512x128xf32, #tpu.memory_space<vmem>>, vector<512x128xf32>
    %78 = arith.addf %77, %76 : vector<512x128xf32>
    %c0_121 = arith.constant 0 : index
    %c0_122 = arith.constant 0 : index
    %79 = vector.load %arg9[%c0_121, %c0_122] : memref<512x128xf32, #tpu.memory_space<vmem>>, vector<512x128xf32>
    tpu.vector_store %arg9[%c0_121, %c0_122], %78 {strides = array<i32>} : memref<512x128xf32, #tpu.memory_space<vmem>>, vector<512x128xf32>,
    %c0_123 = arith.constant 0 : index
    %c0_124 = arith.constant 0 : index
    %80 = vector.load %arg9[%c0_123, %c0_124] : memref<512x128xf32, #tpu.memory_space<vmem>>, vector<512x128xf32>
    %c0_125 = arith.constant 0 : index
    %c0_126 = arith.constant 0 : index
    %81 = vector.load %arg3[%c0_125, %c0_126] : memref<1x128xf32, #tpu.memory_space<vmem>>, vector<1x128xf32>
    %c0_127 = arith.constant 0 : index
    %c0_128 = arith.constant 0 : index
    %82 = vector.load %arg4[%c0_127, %c0_128] : memref<1x128xf32, #tpu.memory_space<vmem>>, vector<1x128xf32>
    %cst_129 = arith.constant dense<0.000000e+00> : vector<128xf32>
    %83 = vector.multi_reduction <add>, %80, %cst_129 [0] : vector<512x128xf32> to vector<128xf32>
    %84 = vector.shape_cast %83 : vector<128xf32> to vector<1x128xf32>
    %cst_130 = arith.constant 0.001953125 : f32
    %85 = vector.broadcast %cst_130 : f32 to vector<1x128xf32>
    %86 = arith.mulf %84, %85 : vector<1x128xf32>
    %87 = vector.broadcast %86 : vector<1x128xf32> to vector<512x128xf32>
    %88 = arith.subf %80, %87 : vector<512x128xf32>
    %89 = arith.mulf %88, %88 : vector<512x128xf32>
    %cst_131 = arith.constant dense<0.000000e+00> : vector<128xf32>
    %90 = vector.multi_reduction <add>, %89, %cst_131 [0] : vector<512x128xf32> to vector<128xf32>
    %91 = vector.shape_cast %90 : vector<128xf32> to vector<1x128xf32>
    %cst_132 = arith.constant 0.001953125 : f32
    %92 = vector.broadcast %cst_132 : f32 to vector<1x128xf32>
    %93 = arith.mulf %91, %92 : vector<1x128xf32>
    %cst_133 = arith.constant 9.99999974E-6 : f32
    %94 = vector.broadcast %cst_133 : f32 to vector<1x128xf32>
    %95 = arith.addf %93, %94 : vector<1x128xf32>
    %96 = math.rsqrt %95 : vector<1x128xf32>
    %97 = arith.mulf %96, %81 : vector<1x128xf32>
    %98 = arith.mulf %86, %97 : vector<1x128xf32>
    %99 = arith.subf %82, %98 : vector<1x128xf32>
    %100 = vector.broadcast %97 : vector<1x128xf32> to vector<512x128xf32>
    %101 = arith.mulf %80, %100 : vector<512x128xf32>
    %102 = vector.broadcast %99 : vector<1x128xf32> to vector<512x128xf32>
    %103 = arith.addf %101, %102 : vector<512x128xf32>
    %cst_134 = arith.constant 0.000000e+00 : f32
    %104 = vector.broadcast %cst_134 : f32 to vector<512x128xf32>
    %105 = arith.maximumf %103, %104 : vector<512x128xf32>
    %106 = vector.extract_strided_slice %105 {offsets = [0, 0], sizes = [512, 4], strides = [1, 1]} : vector<512x128xf32> to vector<512x4xf32>
    %107 = vector.shape_cast %106 : vector<512x4xf32> to vector<2x16x16x4xf32>
    %c0_135 = arith.constant 0 : index
    %c1_136 = arith.constant 1 : index
    %c1_137 = arith.constant 1 : index
    %c0_138 = arith.constant 0 : index
    %108 = vector.load %arg8[%c0_135, %c1_136, %c1_137, %c0_138] : memref<2x18x18x4xf32, #tpu.memory_space<vmem>>, vector<2x16x16x4xf32>
    tpu.vector_store %arg8[%c0_135, %c1_136, %c1_137, %c0_138], %107 {strides = array<i32>} : memref<2x18x18x4xf32, #tpu.memory_space<vmem>>, vector<2x16x16x4xf32>,
    %c0_139 = arith.constant 0 : index
    %c0_140 = arith.constant 0 : index
    %c0_141 = arith.constant 0 : index
    %c0_142 = arith.constant 0 : index
    %109 = vector.load %arg8[%c0_139, %c0_140, %c0_141, %c0_142] : memref<2x18x18x4xf32, #tpu.memory_space<vmem>>, vector<2x16x16x4xf32>
    %110 = vector.shape_cast %109 : vector<2x16x16x4xf32> to vector<512x4xf32>
    %c0_143 = arith.constant 0 : index
    %c0_144 = arith.constant 0 : index
    %c0_145 = arith.constant 0 : index
    %111 = vector.load %arg2[%c0_143, %c0_144, %c0_145] : memref<9x4x128xf32, #tpu.memory_space<vmem>>, vector<1x4x128xf32>
    %112 = vector.shape_cast %111 : vector<1x4x128xf32> to vector<4x128xf32>
    %cst_146 = arith.constant dense<0.000000e+00> : vector<512x128xf32>
    %113 = tpu.matmul %110, %112, %cst_146 {dimension_numbers = #tpu.dot_dimension_numbers<[1], [0], [0], [1], [0, 0, 1, 1], [], []>} : vector<512x4xf32>, vector<4x128xf32>, vector<512x128xf32> -> vector<512x128xf32>
    %c0_147 = arith.constant 0 : index
    %c0_148 = arith.constant 0 : index
    %114 = vector.load %arg9[%c0_147, %c0_148] : memref<512x128xf32, #tpu.memory_space<vmem>>, vector<512x128xf32>
    tpu.vector_store %arg9[%c0_147, %c0_148], %113 {strides = array<i32>} : memref<512x128xf32, #tpu.memory_space<vmem>>, vector<512x128xf32>,
    %c0_149 = arith.constant 0 : index
    %c0_150 = arith.constant 0 : index
    %c1_151 = arith.constant 1 : index
    %c0_152 = arith.constant 0 : index
    %115 = vector.load %arg8[%c0_149, %c0_150, %c1_151, %c0_152] : memref<2x18x18x4xf32, #tpu.memory_space<vmem>>, vector<2x16x16x4xf32>
    %116 = vector.shape_cast %115 : vector<2x16x16x4xf32> to vector<512x4xf32>
    %c1_153 = arith.constant 1 : index
    %c0_154 = arith.constant 0 : index
    %c0_155 = arith.constant 0 : index
    %117 = vector.load %arg2[%c1_153, %c0_154, %c0_155] : memref<9x4x128xf32, #tpu.memory_space<vmem>>, vector<1x4x128xf32>
    %118 = vector.shape_cast %117 : vector<1x4x128xf32> to vector<4x128xf32>
    %cst_156 = arith.constant dense<0.000000e+00> : vector<512x128xf32>
    %119 = tpu.matmul %116, %118, %cst_156 {dimension_numbers = #tpu.dot_dimension_numbers<[1], [0], [0], [1], [0, 0, 1, 1], [], []>} : vector<512x4xf32>, vector<4x128xf32>, vector<512x128xf32> -> vector<512x128xf32>
    %c0_157 = arith.constant 0 : index
    %c0_158 = arith.constant 0 : index
    %120 = vector.load %arg9[%c0_157, %c0_158] : memref<512x128xf32, #tpu.memory_space<vmem>>, vector<512x128xf32>
    %121 = arith.addf %120, %119 : vector<512x128xf32>
    %c0_159 = arith.constant 0 : index
    %c0_160 = arith.constant 0 : index
    %122 = vector.load %arg9[%c0_159, %c0_160] : memref<512x128xf32, #tpu.memory_space<vmem>>, vector<512x128xf32>
    tpu.vector_store %arg9[%c0_159, %c0_160], %121 {strides = array<i32>} : memref<512x128xf32, #tpu.memory_space<vmem>>, vector<512x128xf32>,
    %c0_161 = arith.constant 0 : index
    %c0_162 = arith.constant 0 : index
    %c2_163 = arith.constant 2 : index
    %c0_164 = arith.constant 0 : index
    %123 = vector.load %arg8[%c0_161, %c0_162, %c2_163, %c0_164] : memref<2x18x18x4xf32, #tpu.memory_space<vmem>>, vector<2x16x16x4xf32>
    %124 = vector.shape_cast %123 : vector<2x16x16x4xf32> to vector<512x4xf32>
    %c2_165 = arith.constant 2 : index
    %c0_166 = arith.constant 0 : index
    %c0_167 = arith.constant 0 : index
    %125 = vector.load %arg2[%c2_165, %c0_166, %c0_167] : memref<9x4x128xf32, #tpu.memory_space<vmem>>, vector<1x4x128xf32>
    %126 = vector.shape_cast %125 : vector<1x4x128xf32> to vector<4x128xf32>
    %cst_168 = arith.constant dense<0.000000e+00> : vector<512x128xf32>
    %127 = tpu.matmul %124, %126, %cst_168 {dimension_numbers = #tpu.dot_dimension_numbers<[1], [0], [0], [1], [0, 0, 1, 1], [], []>} : vector<512x4xf32>, vector<4x128xf32>, vector<512x128xf32> -> vector<512x128xf32>
    %c0_169 = arith.constant 0 : index
    %c0_170 = arith.constant 0 : index
    %128 = vector.load %arg9[%c0_169, %c0_170] : memref<512x128xf32, #tpu.memory_space<vmem>>, vector<512x128xf32>
    %129 = arith.addf %128, %127 : vector<512x128xf32>
    %c0_171 = arith.constant 0 : index
    %c0_172 = arith.constant 0 : index
    %130 = vector.load %arg9[%c0_171, %c0_172] : memref<512x128xf32, #tpu.memory_space<vmem>>, vector<512x128xf32>
    tpu.vector_store %arg9[%c0_171, %c0_172], %129 {strides = array<i32>} : memref<512x128xf32, #tpu.memory_space<vmem>>, vector<512x128xf32>,
    %c0_173 = arith.constant 0 : index
    %c1_174 = arith.constant 1 : index
    %c0_175 = arith.constant 0 : index
    %c0_176 = arith.constant 0 : index
    %131 = vector.load %arg8[%c0_173, %c1_174, %c0_175, %c0_176] : memref<2x18x18x4xf32, #tpu.memory_space<vmem>>, vector<2x16x16x4xf32>
    %132 = vector.shape_cast %131 : vector<2x16x16x4xf32> to vector<512x4xf32>
    %c3_177 = arith.constant 3 : index
    %c0_178 = arith.constant 0 : index
    %c0_179 = arith.constant 0 : index
    %133 = vector.load %arg2[%c3_177, %c0_178, %c0_179] : memref<9x4x128xf32, #tpu.memory_space<vmem>>, vector<1x4x128xf32>
    %134 = vector.shape_cast %133 : vector<1x4x128xf32> to vector<4x128xf32>
    %cst_180 = arith.constant dense<0.000000e+00> : vector<512x128xf32>
    %135 = tpu.matmul %132, %134, %cst_180 {dimension_numbers = #tpu.dot_dimension_numbers<[1], [0], [0], [1], [0, 0, 1, 1], [], []>} : vector<512x4xf32>, vector<4x128xf32>, vector<512x128xf32> -> vector<512x128xf32>
    %c0_181 = arith.constant 0 : index
    %c0_182 = arith.constant 0 : index
    %136 = vector.load %arg9[%c0_181, %c0_182] : memref<512x128xf32, #tpu.memory_space<vmem>>, vector<512x128xf32>
    %137 = arith.addf %136, %135 : vector<512x128xf32>
    %c0_183 = arith.constant 0 : index
    %c0_184 = arith.constant 0 : index
    %138 = vector.load %arg9[%c0_183, %c0_184] : memref<512x128xf32, #tpu.memory_space<vmem>>, vector<512x128xf32>
    tpu.vector_store %arg9[%c0_183, %c0_184], %137 {strides = array<i32>} : memref<512x128xf32, #tpu.memory_space<vmem>>, vector<512x128xf32>,
    %c0_185 = arith.constant 0 : index
    %c1_186 = arith.constant 1 : index
    %c1_187 = arith.constant 1 : index
    %c0_188 = arith.constant 0 : index
    %139 = vector.load %arg8[%c0_185, %c1_186, %c1_187, %c0_188] : memref<2x18x18x4xf32, #tpu.memory_space<vmem>>, vector<2x16x16x4xf32>
    %140 = vector.shape_cast %139 : vector<2x16x16x4xf32> to vector<512x4xf32>
    %c4_189 = arith.constant 4 : index
    %c0_190 = arith.constant 0 : index
    %c0_191 = arith.constant 0 : index
    %141 = vector.load %arg2[%c4_189, %c0_190, %c0_191] : memref<9x4x128xf32, #tpu.memory_space<vmem>>, vector<1x4x128xf32>
    %142 = vector.shape_cast %141 : vector<1x4x128xf32> to vector<4x128xf32>
    %cst_192 = arith.constant dense<0.000000e+00> : vector<512x128xf32>
    %143 = tpu.matmul %140, %142, %cst_192 {dimension_numbers = #tpu.dot_dimension_numbers<[1], [0], [0], [1], [0, 0, 1, 1], [], []>} : vector<512x4xf32>, vector<4x128xf32>, vector<512x128xf32> -> vector<512x128xf32>
    %c0_193 = arith.constant 0 : index
    %c0_194 = arith.constant 0 : index
    %144 = vector.load %arg9[%c0_193, %c0_194] : memref<512x128xf32, #tpu.memory_space<vmem>>, vector<512x128xf32>
    %145 = arith.addf %144, %143 : vector<512x128xf32>
    %c0_195 = arith.constant 0 : index
    %c0_196 = arith.constant 0 : index
    %146 = vector.load %arg9[%c0_195, %c0_196] : memref<512x128xf32, #tpu.memory_space<vmem>>, vector<512x128xf32>
    tpu.vector_store %arg9[%c0_195, %c0_196], %145 {strides = array<i32>} : memref<512x128xf32, #tpu.memory_space<vmem>>, vector<512x128xf32>,
    %c0_197 = arith.constant 0 : index
    %c1_198 = arith.constant 1 : index
    %c2_199 = arith.constant 2 : index
    %c0_200 = arith.constant 0 : index
    %147 = vector.load %arg8[%c0_197, %c1_198, %c2_199, %c0_200] : memref<2x18x18x4xf32, #tpu.memory_space<vmem>>, vector<2x16x16x4xf32>
    %148 = vector.shape_cast %147 : vector<2x16x16x4xf32> to vector<512x4xf32>
    %c5_201 = arith.constant 5 : index
    %c0_202 = arith.constant 0 : index
    %c0_203 = arith.constant 0 : index
    %149 = vector.load %arg2[%c5_201, %c0_202, %c0_203] : memref<9x4x128xf32, #tpu.memory_space<vmem>>, vector<1x4x128xf32>
    %150 = vector.shape_cast %149 : vector<1x4x128xf32> to vector<4x128xf32>
    %cst_204 = arith.constant dense<0.000000e+00> : vector<512x128xf32>
    %151 = tpu.matmul %148, %150, %cst_204 {dimension_numbers = #tpu.dot_dimension_numbers<[1], [0], [0], [1], [0, 0, 1, 1], [], []>} : vector<512x4xf32>, vector<4x128xf32>, vector<512x128xf32> -> vector<512x128xf32>
    %c0_205 = arith.constant 0 : index
    %c0_206 = arith.constant 0 : index
    %152 = vector.load %arg9[%c0_205, %c0_206] : memref<512x128xf32, #tpu.memory_space<vmem>>, vector<512x128xf32>
    %153 = arith.addf %152, %151 : vector<512x128xf32>
    %c0_207 = arith.constant 0 : index
    %c0_208 = arith.constant 0 : index
    %154 = vector.load %arg9[%c0_207, %c0_208] : memref<512x128xf32, #tpu.memory_space<vmem>>, vector<512x128xf32>
    tpu.vector_store %arg9[%c0_207, %c0_208], %153 {strides = array<i32>} : memref<512x128xf32, #tpu.memory_space<vmem>>, vector<512x128xf32>,
    %c0_209 = arith.constant 0 : index
    %c2_210 = arith.constant 2 : index
    %c0_211 = arith.constant 0 : index
    %c0_212 = arith.constant 0 : index
    %155 = vector.load %arg8[%c0_209, %c2_210, %c0_211, %c0_212] : memref<2x18x18x4xf32, #tpu.memory_space<vmem>>, vector<2x16x16x4xf32>
    %156 = vector.shape_cast %155 : vector<2x16x16x4xf32> to vector<512x4xf32>
    %c6_213 = arith.constant 6 : index
    %c0_214 = arith.constant 0 : index
    %c0_215 = arith.constant 0 : index
    %157 = vector.load %arg2[%c6_213, %c0_214, %c0_215] : memref<9x4x128xf32, #tpu.memory_space<vmem>>, vector<1x4x128xf32>
    %158 = vector.shape_cast %157 : vector<1x4x128xf32> to vector<4x128xf32>
    %cst_216 = arith.constant dense<0.000000e+00> : vector<512x128xf32>
    %159 = tpu.matmul %156, %158, %cst_216 {dimension_numbers = #tpu.dot_dimension_numbers<[1], [0], [0], [1], [0, 0, 1, 1], [], []>} : vector<512x4xf32>, vector<4x128xf32>, vector<512x128xf32> -> vector<512x128xf32>
    %c0_217 = arith.constant 0 : index
    %c0_218 = arith.constant 0 : index
    %160 = vector.load %arg9[%c0_217, %c0_218] : memref<512x128xf32, #tpu.memory_space<vmem>>, vector<512x128xf32>
    %161 = arith.addf %160, %159 : vector<512x128xf32>
    %c0_219 = arith.constant 0 : index
    %c0_220 = arith.constant 0 : index
    %162 = vector.load %arg9[%c0_219, %c0_220] : memref<512x128xf32, #tpu.memory_space<vmem>>, vector<512x128xf32>
    tpu.vector_store %arg9[%c0_219, %c0_220], %161 {strides = array<i32>} : memref<512x128xf32, #tpu.memory_space<vmem>>, vector<512x128xf32>,
    %c0_221 = arith.constant 0 : index
    %c2_222 = arith.constant 2 : index
    %c1_223 = arith.constant 1 : index
    %c0_224 = arith.constant 0 : index
    %163 = vector.load %arg8[%c0_221, %c2_222, %c1_223, %c0_224] : memref<2x18x18x4xf32, #tpu.memory_space<vmem>>, vector<2x16x16x4xf32>
    %164 = vector.shape_cast %163 : vector<2x16x16x4xf32> to vector<512x4xf32>
    %c7_225 = arith.constant 7 : index
    %c0_226 = arith.constant 0 : index
    %c0_227 = arith.constant 0 : index
    %165 = vector.load %arg2[%c7_225, %c0_226, %c0_227] : memref<9x4x128xf32, #tpu.memory_space<vmem>>, vector<1x4x128xf32>
    %166 = vector.shape_cast %165 : vector<1x4x128xf32> to vector<4x128xf32>
    %cst_228 = arith.constant dense<0.000000e+00> : vector<512x128xf32>
    %167 = tpu.matmul %164, %166, %cst_228 {dimension_numbers = #tpu.dot_dimension_numbers<[1], [0], [0], [1], [0, 0, 1, 1], [], []>} : vector<512x4xf32>, vector<4x128xf32>, vector<512x128xf32> -> vector<512x128xf32>
    %c0_229 = arith.constant 0 : index
    %c0_230 = arith.constant 0 : index
    %168 = vector.load %arg9[%c0_229, %c0_230] : memref<512x128xf32, #tpu.memory_space<vmem>>, vector<512x128xf32>
    %169 = arith.addf %168, %167 : vector<512x128xf32>
    %c0_231 = arith.constant 0 : index
    %c0_232 = arith.constant 0 : index
    %170 = vector.load %arg9[%c0_231, %c0_232] : memref<512x128xf32, #tpu.memory_space<vmem>>, vector<512x128xf32>
    tpu.vector_store %arg9[%c0_231, %c0_232], %169 {strides = array<i32>} : memref<512x128xf32, #tpu.memory_space<vmem>>, vector<512x128xf32>,
    %c0_233 = arith.constant 0 : index
    %c2_234 = arith.constant 2 : index
    %c2_235 = arith.constant 2 : index
    %c0_236 = arith.constant 0 : index
    %171 = vector.load %arg8[%c0_233, %c2_234, %c2_235, %c0_236] : memref<2x18x18x4xf32, #tpu.memory_space<vmem>>, vector<2x16x16x4xf32>
    %172 = vector.shape_cast %171 : vector<2x16x16x4xf32> to vector<512x4xf32>
    %c8_237 = arith.constant 8 : index
    %c0_238 = arith.constant 0 : index
    %c0_239 = arith.constant 0 : index
    %173 = vector.load %arg2[%c8_237, %c0_238, %c0_239] : memref<9x4x128xf32, #tpu.memory_space<vmem>>, vector<1x4x128xf32>
    %174 = vector.shape_cast %173 : vector<1x4x128xf32> to vector<4x128xf32>
    %cst_240 = arith.constant dense<0.000000e+00> : vector<512x128xf32>
    %175 = tpu.matmul %172, %174, %cst_240 {dimension_numbers = #tpu.dot_dimension_numbers<[1], [0], [0], [1], [0, 0, 1, 1], [], []>} : vector<512x4xf32>, vector<4x128xf32>, vector<512x128xf32> -> vector<512x128xf32>
    %c0_241 = arith.constant 0 : index
    %c0_242 = arith.constant 0 : index
    %176 = vector.load %arg9[%c0_241, %c0_242] : memref<512x128xf32, #tpu.memory_space<vmem>>, vector<512x128xf32>
    %177 = arith.addf %176, %175 : vector<512x128xf32>
    %c0_243 = arith.constant 0 : index
    %c0_244 = arith.constant 0 : index
    %178 = vector.load %arg9[%c0_243, %c0_244] : memref<512x128xf32, #tpu.memory_space<vmem>>, vector<512x128xf32>
    tpu.vector_store %arg9[%c0_243, %c0_244], %177 {strides = array<i32>} : memref<512x128xf32, #tpu.memory_space<vmem>>, vector<512x128xf32>,
    %c0_245 = arith.constant 0 : index
    %c0_246 = arith.constant 0 : index
    %179 = vector.load %arg9[%c0_245, %c0_246] : memref<512x128xf32, #tpu.memory_space<vmem>>, vector<512x128xf32>
    %c0_247 = arith.constant 0 : index
    %c0_248 = arith.constant 0 : index
    %180 = vector.load %arg5[%c0_247, %c0_248] : memref<1x128xf32, #tpu.memory_space<vmem>>, vector<1x128xf32>
    %c0_249 = arith.constant 0 : index
    %c0_250 = arith.constant 0 : index
    %181 = vector.load %arg6[%c0_249, %c0_250] : memref<1x128xf32, #tpu.memory_space<vmem>>, vector<1x128xf32>
    %cst_251 = arith.constant dense<0.000000e+00> : vector<128xf32>
    %182 = vector.multi_reduction <add>, %179, %cst_251 [0] : vector<512x128xf32> to vector<128xf32>
    %183 = vector.shape_cast %182 : vector<128xf32> to vector<1x128xf32>
    %cst_252 = arith.constant 0.001953125 : f32
    %184 = vector.broadcast %cst_252 : f32 to vector<1x128xf32>
    %185 = arith.mulf %183, %184 : vector<1x128xf32>
    %186 = vector.broadcast %185 : vector<1x128xf32> to vector<512x128xf32>
    %187 = arith.subf %179, %186 : vector<512x128xf32>
    %188 = arith.mulf %187, %187 : vector<512x128xf32>
    %cst_253 = arith.constant dense<0.000000e+00> : vector<128xf32>
    %189 = vector.multi_reduction <add>, %188, %cst_253 [0] : vector<512x128xf32> to vector<128xf32>
    %190 = vector.shape_cast %189 : vector<128xf32> to vector<1x128xf32>
    %cst_254 = arith.constant 0.001953125 : f32
    %191 = vector.broadcast %cst_254 : f32 to vector<1x128xf32>
    %192 = arith.mulf %190, %191 : vector<1x128xf32>
    %cst_255 = arith.constant 9.99999974E-6 : f32
    %193 = vector.broadcast %cst_255 : f32 to vector<1x128xf32>
    %194 = arith.addf %192, %193 : vector<1x128xf32>
    %195 = math.rsqrt %194 : vector<1x128xf32>
    %196 = arith.mulf %195, %180 : vector<1x128xf32>
    %197 = arith.mulf %185, %196 : vector<1x128xf32>
    %198 = arith.subf %181, %197 : vector<1x128xf32>
    %199 = vector.broadcast %196 : vector<1x128xf32> to vector<512x128xf32>
    %200 = arith.mulf %179, %199 : vector<512x128xf32>
    %201 = vector.broadcast %198 : vector<1x128xf32> to vector<512x128xf32>
    %202 = arith.addf %200, %201 : vector<512x128xf32>
    %203 = vector.extract_strided_slice %202 {offsets = [0, 0], sizes = [512, 4], strides = [1, 1]} : vector<512x128xf32> to vector<512x4xf32>
    %204 = vector.shape_cast %203 : vector<512x4xf32> to vector<2x16x16x4xf32>
    %c0_256 = arith.constant 0 : index
    %c0_257 = arith.constant 0 : index
    %c0_258 = arith.constant 0 : index
    %c0_259 = arith.constant 0 : index
    %205 = vector.load %arg0[%c0_256, %c0_257, %c0_258, %c0_259] : memref<2x16x16x4xf32, #tpu.memory_space<vmem>>, vector<2x16x16x4xf32>
    %206 = arith.addf %204, %205 : vector<2x16x16x4xf32>
    %c0_260 = arith.constant 0 : index
    %c0_261 = arith.constant 0 : index
    %c0_262 = arith.constant 0 : index
    %c0_263 = arith.constant 0 : index
    %207 = vector.load %arg7[%c0_260, %c0_261, %c0_262, %c0_263] : memref<2x16x16x4xf32, #tpu.memory_space<vmem>>, vector<2x16x16x4xf32>
    tpu.vector_store %arg7[%c0_260, %c0_261, %c0_262, %c0_263], %206 {strides = array<i32>} : memref<2x16x16x4xf32, #tpu.memory_space<vmem>>, vector<2x16x16x4xf32>,
    return
  }
}

</mosaic_0001>

<bundles_post_ra>
// kernel: tpu_custom_call.1
= control target key start
LH: loop header
LB: loop body
LE: loop exit
PB: predicated region body
PF: predicated region fallthrough
CT: control target
= control target key end

     0   :  { %vm500_vm0 = vcmask 1043456   ;;  %vm26_vm1 = vcmask 31744   ;;  %vm41_vm2 = vcmask 24576   ;;  %v21498_v1 = vmov 0.0   ;;  %s27132_s1 = inlined_call_operand.vmem [shape: f32[9,4,128], index: 1, kind: input, shape index: {}]   ;;  %s27133_s0 = inlined_call_operand.vmem [shape: f32[2,16,16,4], index: 0, kind: input, shape index: {}]   ;;  %s27134_s2 = inlined_call_operand.vmem [shape: f32[9,4,128], index: 2, kind: input, shape index: {}]   ;;  %s27135_s3 = inlined_call_operand.vmem [shape: f32[1,128], index: 3, kind: input, shape index: {}]   ;;  %s27136_s4 = inlined_call_operand.vmem [shape: f32[1,128], index: 4, kind: input, shape index: {}]   ;;  %s27137_s5 = inlined_call_operand.vmem [shape: f32[1,128], index: 5, kind: input, shape index: {}]   ;;  %s27138_s6 = inlined_call_operand.vmem [shape: f32[1,128], index: 6, kind: input, shape index: {}]   ;;  %s27139_s7 = inlined_call_operand.vmem [shape: f32[2,16,16,4], index: 7, kind: output, shape index: {}]  }
   0x1   :  { %v21542_v0 = vld [vmem:[%s27132_s1] sm:$0xf]  ;;  %27 = vst.msk [vmem:[#allocation2] sm:$0xff] %vm26_vm1, %v21498_v1  ;;  %28 = vst.msk [vmem:[#allocation2 + $0x8] sm:$0xff] %vm26_vm1, %v21498_v1  ;;  %v21691_v2 = vld [vmem:[%s27132_s1 + $0x4] sm:$0xf] }
   0x2   :  { %31 = vst.msk [vmem:[#allocation2 + $0x1b0] sm:$0xff] %vm26_vm1, %v21498_v1  ;;  %32 = vst.msk [vmem:[#allocation2 + $0x1b8] sm:$0xff] %vm26_vm1, %v21498_v1  ;;  %v114_v3 = vld [vmem:[%s27133_s0] sm:$0xff]  ;;  %18705 = vmatprep.subr.msk.mxu0 %vm500_vm0, %v21542_v0  ;;  %v115_v4 = vld [vmem:[%s27133_s0 + $0x8] sm:$0xff]  ;;  %vm29_vm3 = vcmask 25600  }
   0x3   :  { %35 = vst.msk [vmem:[#allocation2 + $0x198] sm:$0xff] %vm26_vm1, %v21498_v1  ;;  %36 = vst.msk [vmem:[#allocation2 + $0x1a0] sm:$0xff] %vm26_vm1, %v21498_v1  ;;  %v116_v5 = vld [vmem:[%s27133_s0 + $0x10] sm:$0xff]  ;;  %v117_v6 = vld [vmem:[%s27133_s0 + $0x18] sm:$0xff]  ;;  %18706 = vmatpush3.msk.msra.mxu0 %vm500_vm0, %v21542_v0 }
   0x4   :  { %38 = vst.msk [vmem:[#allocation2 + $0x348] sm:$0xff] %vm26_vm1, %v21498_v1  ;;  %39 = vst.msk [vmem:[#allocation2 + $0x350] sm:$0xff] %vm26_vm1, %v21498_v1  ;;  %v118_v7 = vld [vmem:[%s27133_s0 + $0x20] sm:$0xff]  ;;  %v119_v8 = vld [vmem:[%s27133_s0 + $0x28] sm:$0xff]  ;;  %18803 = vmatprep.subr.msk.mxu0 %vm500_vm0, %v21691_v2 }
   0x5   :  { %43 = vst.msk [vmem:[#allocation2 + $0x18] sm:$0x1] %vm41_vm2, %v21498_v1  ;;  %44 = vst.msk [vmem:[#allocation2 + $0x30] sm:$0x1] %vm41_vm2, %v21498_v1  ;;  %v120_v9 = vld [vmem:[%s27133_s0 + $0x30] sm:$0xff]  ;;  %v121_v10 = vld [vmem:[%s27133_s0 + $0x38] sm:$0xff] }
   0x6   :  { %45 = vst.msk [vmem:[#allocation2 + $0x48] sm:$0x1] %vm41_vm2, %v21498_v1  ;;  %46 = vst.msk [vmem:[#allocation2 + $0x60] sm:$0x1] %vm41_vm2, %v21498_v1  ;;  %v122_v11 = vld [vmem:[%s27133_s0 + $0x40] sm:$0xff]  ;;  %v123_v12 = vld [vmem:[%s27133_s0 + $0x48] sm:$0xff] }
   0x7   :  { %47 = vst.msk [vmem:[#allocation2 + $0x78] sm:$0x1] %vm41_vm2, %v21498_v1  ;;  %48 = vst.msk [vmem:[#allocation2 + $0x90] sm:$0x1] %vm41_vm2, %v21498_v1  ;;  %v124_v13 = vld [vmem:[%s27133_s0 + $0x50] sm:$0xff]  ;;  %v125_v14 = vld [vmem:[%s27133_s0 + $0x58] sm:$0xff] }
   0x8   :  { %49 = vst.msk [vmem:[#allocation2 + $0xa8] sm:$0x1] %vm41_vm2, %v21498_v1  ;;  %50 = vst.msk [vmem:[#allocation2 + $0xc0] sm:$0x1] %vm41_vm2, %v21498_v1  ;;  %v126_v15 = vld [vmem:[%s27133_s0 + $0x60] sm:$0xff]  ;;  %v127_v16 = vld [vmem:[%s27133_s0 + $0x68] sm:$0xff] }
   0x9   :  { %51 = vst.msk [vmem:[#allocation2 + $0xd8] sm:$0x1] %vm41_vm2, %v21498_v1  ;;  %52 = vst.msk [vmem:[#allocation2 + $0xf0] sm:$0x1] %vm41_vm2, %v21498_v1  ;;  %v128_v17 = vld [vmem:[%s27133_s0 + $0x70] sm:$0xff]  ;;  %v129_v18 = vld [vmem:[%s27133_s0 + $0x78] sm:$0xff] }
   0xa   :  { %53 = vst.msk [vmem:[#allocation2 + $0x108] sm:$0x1] %vm41_vm2, %v21498_v1  ;;  %54 = vst.msk [vmem:[#allocation2 + $0x120] sm:$0x1] %vm41_vm2, %v21498_v1  ;;  %v130_v19 = vld [vmem:[%s27133_s0 + $0x80] sm:$0xff]  ;;  %v131_v20 = vld [vmem:[%s27133_s0 + $0x88] sm:$0xff] }
   0xb   :  { %55 = vst.msk [vmem:[#allocation2 + $0x138] sm:$0x1] %vm41_vm2, %v21498_v1  ;;  %56 = vst.msk [vmem:[#allocation2 + $0x150] sm:$0x1] %vm41_vm2, %v21498_v1  ;;  %v132_v21 = vld [vmem:[%s27133_s0 + $0x90] sm:$0xff]  ;;  %v244_v22 = vld [vmem:[#allocation2 + $0x8] sm:$0xff] }
   0xc   :  { %57 = vst.msk [vmem:[#allocation2 + $0x168] sm:$0x1] %vm41_vm2, %v21498_v1  ;;  %58 = vst.msk [vmem:[#allocation2 + $0x180] sm:$0x1] %vm41_vm2, %v21498_v1  ;;  %v133_v23 = vld [vmem:[%s27133_s0 + $0x98] sm:$0xff]  ;;  %v134_v24 = vld [vmem:[%s27133_s0 + $0xa0] sm:$0xff] }
   0xd   :  { %61 = vst.msk [vmem:[#allocation2 + $0x1c8] sm:$0x1] %vm41_vm2, %v21498_v1  ;;  %62 = vst.msk [vmem:[#allocation2 + $0x1e0] sm:$0x1] %vm41_vm2, %v21498_v1  ;;  %v135_v27 = vld [vmem:[%s27133_s0 + $0xa8] sm:$0xff]  ;;  %v136_v31 = vld [vmem:[%s27133_s0 + $0xb0] sm:$0xff] }
   0xe   :  { %63 = vst.msk [vmem:[#allocation2 + $0x1f8] sm:$0x1] %vm41_vm2, %v21498_v1  ;;  %64 = vst.msk [vmem:[#allocation2 + $0x210] sm:$0x1] %vm41_vm2, %v21498_v1  ;;  %v137_v33 = vld [vmem:[%s27133_s0 + $0xb8] sm:$0xff]  ;;  %v138_v34 = vld [vmem:[%s27133_s0 + $0xc0] sm:$0xff] }
   0xf   :  { %65 = vst.msk [vmem:[#allocation2 + $0x228] sm:$0x1] %vm41_vm2, %v21498_v1  ;;  %66 = vst.msk [vmem:[#allocation2 + $0x240] sm:$0x1] %vm41_vm2, %v21498_v1  ;;  %v139_v35 = vld [vmem:[%s27133_s0 + $0xc8] sm:$0xff]  ;;  %v140_v36 = vld [vmem:[%s27133_s0 + $0xd0] sm:$0xff] }
  0x10   :  { %67 = vst.msk [vmem:[#allocation2 + $0x258] sm:$0x1] %vm41_vm2, %v21498_v1  ;;  %68 = vst.msk [vmem:[#allocation2 + $0x270] sm:$0x1] %vm41_vm2, %v21498_v1  ;;  %v141_v37 = vld [vmem:[%s27133_s0 + $0xd8] sm:$0xff]  ;;  %v142_v39 = vld [vmem:[%s27133_s0 + $0xe0] sm:$0xff] }
  0x11   :  { %69 = vst.msk [vmem:[#allocation2 + $0x288] sm:$0x1] %vm41_vm2, %v21498_v1  ;;  %70 = vst.msk [vmem:[#allocation2 + $0x2a0] sm:$0x1] %vm41_vm2, %v21498_v1  ;;  %v143_v40 = vld [vmem:[%s27133_s0 + $0xe8] sm:$0xff]  ;;  %v146_v42 = vld [vmem:[%s27133_s0 + $0x100] sm:$0xff] }
  0x12   :  { %71 = vst.msk [vmem:[#allocation2 + $0x2b8] sm:$0x1] %vm41_vm2, %v21498_v1  ;;  %72 = vst.msk [vmem:[#allocation2 + $0x2d0] sm:$0x1] %vm41_vm2, %v21498_v1  ;;  %v147_v43 = vld [vmem:[%s27133_s0 + $0x108] sm:$0xff]  ;;  %v148_v44 = vld [vmem:[%s27133_s0 + $0x110] sm:$0xff] }
  0x13   :  { %73 = vst.msk [vmem:[#allocation2 + $0x2e8] sm:$0x1] %vm41_vm2, %v21498_v1  ;;  %74 = vst.msk [vmem:[#allocation2 + $0x300] sm:$0x1] %vm41_vm2, %v21498_v1  ;;  %v149_v45 = vld [vmem:[%s27133_s0 + $0x118] sm:$0xff]  ;;  %v150_v46 = vld [vmem:[%s27133_s0 + $0x120] sm:$0xff] }
  0x14   :  { %75 = vst.msk [vmem:[#allocation2 + $0x318] sm:$0x1] %vm41_vm2, %v21498_v1  ;;  %76 = vst.msk [vmem:[#allocation2 + $0x330] sm:$0x1] %vm41_vm2, %v21498_v1  ;;  %v151_v47 = vld [vmem:[%s27133_s0 + $0x128] sm:$0xff]  ;;  %v152_v48 = vld [vmem:[%s27133_s0 + $0x130] sm:$0xff] }
  0x15   :  { %79 = vst.msk [vmem:[#allocation2 + $0x29] sm:$0x1] %vm41_vm2, %v21498_v1  ;;  %80 = vst.msk [vmem:[#allocation2 + $0x41] sm:$0x1] %vm41_vm2, %v21498_v1  ;;  %v153_v49 = vld [vmem:[%s27133_s0 + $0x138] sm:$0xff]  ;;  %v154_v50 = vld [vmem:[%s27133_s0 + $0x140] sm:$0xff] }
  0x16   :  { %81 = vst.msk [vmem:[#allocation2 + $0x59] sm:$0x1] %vm41_vm2, %v21498_v1  ;;  %82 = vst.msk [vmem:[#allocation2 + $0x71] sm:$0x1] %vm41_vm2, %v21498_v1  ;;  %v155_v51 = vld [vmem:[%s27133_s0 + $0x148] sm:$0xff]  ;;  %v156_v52 = vld [vmem:[%s27133_s0 + $0x150] sm:$0xff] }
  0x17   :  { %83 = vst.msk [vmem:[#allocation2 + $0x89] sm:$0x1] %vm41_vm2, %v21498_v1  ;;  %84 = vst.msk [vmem:[#allocation2 + $0xa1] sm:$0x1] %vm41_vm2, %v21498_v1  ;;  %v157_v54 = vld [vmem:[%s27133_s0 + $0x158] sm:$0xff]  ;;  %v158_v55 = vld [vmem:[%s27133_s0 + $0x160] sm:$0xff] }
  0x18   :  { %85 = vst.msk [vmem:[#allocation2 + $0xb9] sm:$0x1] %vm41_vm2, %v21498_v1  ;;  %86 = vst.msk [vmem:[#allocation2 + $0xd1] sm:$0x1] %vm41_vm2, %v21498_v1  ;;  %v159_v57 = vld [vmem:[%s27133_s0 + $0x168] sm:$0xff]  ;;  %v160_v58 = vld [vmem:[%s27133_s0 + $0x170] sm:$0xff] }
  0x19   :  { %87 = vst.msk [vmem:[#allocation2 + $0xe9] sm:$0x1] %vm41_vm2, %v21498_v1  ;;  %88 = vst.msk [vmem:[#allocation2 + $0x101] sm:$0x1] %vm41_vm2, %v21498_v1  ;;  %v161_v60 = vld [vmem:[%s27133_s0 + $0x178] sm:$0xff]  ;;  %v162_v63 = vld [vmem:[%s27133_s0 + $0x180] sm:$0xff] }
  0x1a   :  { %89 = vst.msk [vmem:[#allocation2 + $0x119] sm:$0x1] %vm41_vm2, %v21498_v1  ;;  %90 = vst.msk [vmem:[#allocation2 + $0x131] sm:$0x1] %vm41_vm2, %v21498_v1 }
  0x1b   :  { %91 = vst.msk [vmem:[#allocation2 + $0x149] sm:$0x1] %vm41_vm2, %v21498_v1  ;;  %92 = vst.msk [vmem:[#allocation2 + $0x161] sm:$0x1] %vm41_vm2, %v21498_v1 }
  0x1c   :  { %93 = vst.msk [vmem:[#allocation2 + $0x179] sm:$0x1] %vm41_vm2, %v21498_v1  ;;  %94 = vst.msk [vmem:[#allocation2 + $0x191] sm:$0x1] %vm41_vm2, %v21498_v1 }
  0x1d   :  { %97 = vst.msk [vmem:[#allocation2 + $0x1d9] sm:$0x1] %vm41_vm2, %v21498_v1  ;;  %98 = vst.msk [vmem:[#allocation2 + $0x1f1] sm:$0x1] %vm41_vm2, %v21498_v1 }
  0x1e   :  { %99 = vst.msk [vmem:[#allocation2 + $0x209] sm:$0x1] %vm41_vm2, %v21498_v1  ;;  %100 = vst.msk [vmem:[#allocation2 + $0x221] sm:$0x1] %vm41_vm2, %v21498_v1 }
  0x1f   :  { %101 = vst.msk [vmem:[#allocation2 + $0x239] sm:$0x1] %vm41_vm2, %v21498_v1  ;;  %102 = vst.msk [vmem:[#allocation2 + $0x251] sm:$0x1] %vm41_vm2, %v21498_v1 }
  0x20   :  { %103 = vst.msk [vmem:[#allocation2 + $0x269] sm:$0x1] %vm41_vm2, %v21498_v1  ;;  %104 = vst.msk [vmem:[#allocation2 + $0x281] sm:$0x1] %vm41_vm2, %v21498_v1 }
  0x21   :  { %105 = vst.msk [vmem:[#allocation2 + $0x299] sm:$0x1] %vm41_vm2, %v21498_v1  ;;  %106 = vst.msk [vmem:[#allocation2 + $0x2b1] sm:$0x1] %vm41_vm2, %v21498_v1 }
  0x22   :  { %107 = vst.msk [vmem:[#allocation2 + $0x2c9] sm:$0x1] %vm41_vm2, %v21498_v1  ;;  %108 = vst.msk [vmem:[#allocation2 + $0x2e1] sm:$0x1] %vm41_vm2, %v21498_v1 }
  0x23   :  { %109 = vst.msk [vmem:[#allocation2 + $0x2f9] sm:$0x1] %vm41_vm2, %v21498_v1  ;;  %110 = vst.msk [vmem:[#allocation2 + $0x311] sm:$0x1] %vm41_vm2, %v21498_v1 }
  0x24   :  { %111 = vst.msk [vmem:[#allocation2 + $0x329] sm:$0x1] %vm41_vm2, %v21498_v1  ;;  %112 = vst.msk [vmem:[#allocation2 + $0x341] sm:$0x1] %vm41_vm2, %v21498_v1 }
  0x25   :  { %42 = vst.msk [vmem:[#allocation2] sm:$0x1] %vm41_vm2, %v21498_v1  ;;  %59 = vst.msk [vmem:[#allocation2 + $0x198] sm:$0x1] %vm41_vm2, %v21498_v1 }
  0x26   :  { %60 = vst.msk [vmem:[#allocation2 + $0x1b0] sm:$0x1] %vm41_vm2, %v21498_v1  ;;  %77 = vst.msk [vmem:[#allocation2 + $0x348] sm:$0x1] %vm41_vm2, %v21498_v1 }
  0x27   :  { %179 = vst.msk [vmem:[#allocation2 + $0x19] sm:$0xff] %vm26_vm1, %v114_v3  ;;  %180 = vst.msk [vmem:[#allocation2 + $0x21] sm:$0xff] %vm26_vm1, %v115_v4  ;;  %v165_v3 = vld [vmem:[%s27133_s0 + $0x198] sm:$0xff]  ;;  %v166_v4 = vld [vmem:[%s27133_s0 + $0x1a0] sm:$0xff] }
  0x28   :  { %181 = vst.msk [vmem:[#allocation2 + $0x31] sm:$0xff] %vm26_vm1, %v116_v5  ;;  %182 = vst.msk [vmem:[#allocation2 + $0x39] sm:$0xff] %vm26_vm1, %v117_v6  ;;  %v167_v5 = vld [vmem:[%s27133_s0 + $0x1a8] sm:$0xff] }
  0x29   :  { %30 = vst.msk [vmem:[#allocation2 + $0x10] sm:$0x3] %vm29_vm3, %v21498_v1  ;;  %33 = vst.msk [vmem:[#allocation2 + $0x1c0] sm:$0x3] %vm29_vm3, %v21498_v1 }
  0x2a   :  { %37 = vst.msk [vmem:[#allocation2 + $0x1a8] sm:$0x3] %vm29_vm3, %v21498_v1  ;;  %40 = vst.msk [vmem:[#allocation2 + $0x358] sm:$0x3] %vm29_vm3, %v21498_v1 }
  0x2b   :  { %183 = vst.msk [vmem:[#allocation2 + $0x49] sm:$0xff] %vm26_vm1, %v118_v7  ;;  %184 = vst.msk [vmem:[#allocation2 + $0x51] sm:$0xff] %vm26_vm1, %v119_v8  ;;  %v168_v7 = vld [vmem:[%s27133_s0 + $0x1b0] sm:$0xff]  ;;  %v169_v8 = vld [vmem:[%s27133_s0 + $0x1b8] sm:$0xff] }
  0x2c   :  { %185 = vst.msk [vmem:[#allocation2 + $0x61] sm:$0xff] %vm26_vm1, %v120_v9  ;;  %186 = vst.msk [vmem:[#allocation2 + $0x69] sm:$0xff] %vm26_vm1, %v121_v10  ;;  %v243_v25 = vld [vmem:[#allocation2] sm:$0xff] }
  0x2d   :  { %78 = vst.msk [vmem:[#allocation2 + $0x11] sm:$0x1] %vm41_vm2, %v21498_v1  ;;  %95 = vst.msk [vmem:[#allocation2 + $0x1a9] sm:$0x1] %vm41_vm2, %v21498_v1  ;;  %18707 = vmatprep.mubr.msk.f32.mxu0 %vm26_vm1, %v243_v25  ;;  %v170_v10 = vld [vmem:[%s27133_s0 + $0x1c0] sm:$0xff] }
  0x2e   :  { %96 = vst.msk [vmem:[#allocation2 + $0x1c1] sm:$0x1] %vm41_vm2, %v21498_v1  ;;  %113 = vst.msk [vmem:[#allocation2 + $0x359] sm:$0x1] %vm41_vm2, %v21498_v1  ;;  %v245_v26 = vld [vmem:[#allocation2 + $0x18] sm:$0xff]  ;;  %18708 = vmatmul.mubr.msk.f32.vlgmr.msra.gmra.mrb[0].mxu0 %vm26_vm1, %v244_v22  ;;  %v246_v28 = vld [vmem:[#allocation2 + $0x20] sm:$0xff] }
  0x2f   :  { %187 = vst.msk [vmem:[#allocation2 + $0x79] sm:$0xff] %vm26_vm1, %v122_v11  ;;  %188 = vst.msk [vmem:[#allocation2 + $0x81] sm:$0xff] %vm26_vm1, %v123_v12  ;;  %18804 = vmatpush3.msk.msra.mxu0 %vm500_vm0, %v21691_v2  ;;  %18710 = vmatprep.mubr.msk.f32.mxu0 %vm26_vm1, %v245_v26  ;;  %v21812_v29 = vld [vmem:[#allocation2 + $0x30] sm:$0xff]  ;;  %v21817_v30 = vld [vmem:[#allocation2 + $0x38] sm:$0xff] }
  0x30   :  { %189 = vst.msk [vmem:[#allocation2 + $0x91] sm:$0xff] %vm26_vm1, %v124_v13  ;;  %190 = vst.msk [vmem:[#allocation2 + $0x99] sm:$0xff] %vm26_vm1, %v125_v14  ;;  %v163_v1 = vld [vmem:[%s27133_s0 + $0x188] sm:$0xff]  ;;  %v164_v2 = vld [vmem:[%s27133_s0 + $0x190] sm:$0xff] }
  0x31   :  { %191 = vst.msk [vmem:[#allocation2 + $0xa9] sm:$0xff] %vm26_vm1, %v126_v15  ;;  %192 = vst.msk [vmem:[#allocation2 + $0xb1] sm:$0xff] %vm26_vm1, %v127_v16  ;;  %v171_v11 = vld [vmem:[%s27133_s0 + $0x1c8] sm:$0xff]  ;;  %v172_v12 = vld [vmem:[%s27133_s0 + $0x1d0] sm:$0xff] }
  0x32   :  { %193 = vst.msk [vmem:[#allocation2 + $0xc1] sm:$0xff] %vm26_vm1, %v128_v17  ;;  %194 = vst.msk [vmem:[#allocation2 + $0xc9] sm:$0xff] %vm26_vm1, %v129_v18  ;;  %18711 = vmatmul.mubr.msk.f32.gmra.mrb[2].mxu0 %vm26_vm1, %v246_v28  ;;  %v21822_v32 = vld [vmem:[#allocation2 + $0x48] sm:$0xff]  ;;  %v21844_v38 = vld [vmem:[#allocation2 + $0x50] sm:$0xff] }
  0x33   :  { %195 = vst.msk [vmem:[#allocation2 + $0xd9] sm:$0xff] %vm26_vm1, %v130_v19  ;;  %196 = vst.msk [vmem:[#allocation2 + $0xe1] sm:$0xff] %vm26_vm1, %v131_v20  ;;  %18713 = vmatprep.mubr.msk.f32.mxu0 %vm26_vm1, %v21812_v29  ;;  %v21857_v41 = vld [vmem:[#allocation2 + $0x60] sm:$0xff]  ;;  %v21906_v53 = vld [vmem:[#allocation2 + $0x68] sm:$0xff] }
  0x34   :  { %197 = vst.msk [vmem:[#allocation2 + $0xf1] sm:$0xff] %vm26_vm1, %v132_v21  ;;  %198 = vst.msk [vmem:[#allocation2 + $0xf9] sm:$0xff] %vm26_vm1, %v133_v23  ;;  %v173_v13 = vld [vmem:[%s27133_s0 + $0x1d8] sm:$0xff]  ;;  %v174_v14 = vld [vmem:[%s27133_s0 + $0x1e0] sm:$0xff] }
  0x35   :  { %199 = vst.msk [vmem:[#allocation2 + $0x109] sm:$0xff] %vm26_vm1, %v134_v24  ;;  %200 = vst.msk [vmem:[#allocation2 + $0x111] sm:$0xff] %vm26_vm1, %v135_v27  ;;  %v175_v15 = vld [vmem:[%s27133_s0 + $0x1e8] sm:$0xff] }
  0x36   :  { %201 = vst.msk [vmem:[#allocation2 + $0x121] sm:$0xff] %vm26_vm1, %v136_v31  ;;  %202 = vst.msk [vmem:[#allocation2 + $0x129] sm:$0xff] %vm26_vm1, %v137_v33  ;;  %18714 = vmatmul.mubr.msk.f32.gmra.mrb[4].mxu0 %vm26_vm1, %v21817_v30  ;;  %v21917_v56 = vld [vmem:[#allocation2 + $0x78] sm:$0xff]  ;;  %v21932_v59 = vld [vmem:[#allocation2 + $0x80] sm:$0xff] }
  0x37   :  { %203 = vst.msk [vmem:[#allocation2 + $0x139] sm:$0xff] %vm26_vm1, %v138_v34  ;;  %204 = vst.msk [vmem:[#allocation2 + $0x141] sm:$0xff] %vm26_vm1, %v139_v35  ;;  %18716 = vmatprep.mubr.msk.f32.mxu0 %vm26_vm1, %v21822_v32  ;;  %v21938_v61 = vld [vmem:[#allocation2 + $0x90] sm:$0xff]  ;;  %v21945_v62 = vld [vmem:[#allocation2 + $0x98] sm:$0xff] }
  0x38   :  { %205 = vst.msk [vmem:[#allocation2 + $0x151] sm:$0xff] %vm26_vm1, %v140_v36  ;;  %206 = vst.msk [vmem:[#allocation2 + $0x159] sm:$0xff] %vm26_vm1, %v141_v37  ;;  %v21950_v0 = vld [vmem:[#allocation2 + $0xa8] sm:$0xff]  ;;  %v21972_v6 = vld [vmem:[#allocation2 + $0xb0] sm:$0xff] }
  0x39   :  { %207 = vst.msk [vmem:[#allocation2 + $0x169] sm:$0xff] %vm26_vm1, %v142_v39  ;;  %208 = vst.msk [vmem:[#allocation2 + $0x171] sm:$0xff] %vm26_vm1, %v143_v40  ;;  %v21985_v9 = vld [vmem:[#allocation2 + $0xc0] sm:$0xff]  ;;  %v22015_v16 = vld [vmem:[%s27132_s1 + $0x8] sm:$0xf] }
  0x3a   :  { %211 = vst.msk [vmem:[#allocation2 + $0x1c9] sm:$0xff] %vm26_vm1, %v146_v42  ;;  %212 = vst.msk [vmem:[#allocation2 + $0x1d1] sm:$0xff] %vm26_vm1, %v147_v43  ;;  %18717 = vmatmul.mubr.msk.f32.gmra.mrb[6].mxu0 %vm26_vm1, %v21844_v38  ;;  %18901 = vmatprep.subr.msk.mxu0 %vm500_vm0, %v22015_v16  ;;  %v22024_v17 = vld [vmem:[#allocation2 + $0xc8] sm:$0xff]  ;;  %v22026_v18 = vld [vmem:[#allocation2 + $0xd8] sm:$0xff] }
  0x3b   :  { %213 = vst.msk [vmem:[#allocation2 + $0x1e1] sm:$0xff] %vm26_vm1, %v148_v44  ;;  %214 = vst.msk [vmem:[#allocation2 + $0x1e9] sm:$0xff] %vm26_vm1, %v149_v45  ;;  %18719 = vmatprep.mubr.msk.f32.mxu0 %vm26_vm1, %v21857_v41  ;;  %v22032_v19 = vld [vmem:[#allocation2 + $0xe0] sm:$0xff]  ;;  %v22034_v20 = vld [vmem:[#allocation2 + $0xf0] sm:$0xff] }
  0x3c   :  { %215 = vst.msk [vmem:[#allocation2 + $0x1f9] sm:$0xff] %vm26_vm1, %v150_v46  ;;  %216 = vst.msk [vmem:[#allocation2 + $0x201] sm:$0xff] %vm26_vm1, %v151_v47  ;;  %v22040_v21 = vld [vmem:[#allocation2 + $0xf8] sm:$0xff]  ;;  %v22042_v22 = vld [vmem:[#allocation2 + $0x108] sm:$0xff] }
  0x3d   :  { %217 = vst.msk [vmem:[#allocation2 + $0x211] sm:$0xff] %vm26_vm1, %v152_v48  ;;  %218 = vst.msk [vmem:[#allocation2 + $0x219] sm:$0xff] %vm26_vm1, %v153_v49  ;;  %v22048_v23 = vld [vmem:[#allocation2 + $0x110] sm:$0xff]  ;;  %v22050_v24 = vld [vmem:[#allocation2 + $0x120] sm:$0xff] }
  0x3e   :  { %219 = vst.msk [vmem:[#allocation2 + $0x229] sm:$0xff] %vm26_vm1, %v154_v50  ;;  %220 = vst.msk [vmem:[#allocation2 + $0x231] sm:$0xff] %vm26_vm1, %v155_v51  ;;  %18720 = vmatmul.mubr.msk.f32.gmra.mrb[8].mxu0 %vm26_vm1, %v21906_v53  ;;  %v22056_v25 = vld [vmem:[#allocation2 + $0x128] sm:$0xff]  ;;  %v22058_v26 = vld [vmem:[#allocation2 + $0x138] sm:$0xff] }
  0x3f   :  { %221 = vst.msk [vmem:[#allocation2 + $0x241] sm:$0xff] %vm26_vm1, %v156_v52  ;;  %222 = vst.msk [vmem:[#allocation2 + $0x249] sm:$0xff] %vm26_vm1, %v157_v54  ;;  %18722 = vmatprep.mubr.msk.f32.mxu0 %vm26_vm1, %v21917_v56  ;;  %v22064_v27 = vld [vmem:[#allocation2 + $0x140] sm:$0xff]  ;;  %v22066_v28 = vld [vmem:[#allocation2 + $0x150] sm:$0xff] }
  0x40   :  { %223 = vst.msk [vmem:[#allocation2 + $0x259] sm:$0xff] %vm26_vm1, %v158_v55  ;;  %224 = vst.msk [vmem:[#allocation2 + $0x261] sm:$0xff] %vm26_vm1, %v159_v57  ;;  %v22072_v31 = vld [vmem:[#allocation2 + $0x158] sm:$0xff]  ;;  %v22074_v33 = vld [vmem:[#allocation2 + $0x168] sm:$0xff] }
  0x41   :  { %225 = vst.msk [vmem:[#allocation2 + $0x271] sm:$0xff] %vm26_vm1, %v160_v58  ;;  %226 = vst.msk [vmem:[#allocation2 + $0x279] sm:$0xff] %vm26_vm1, %v161_v60  ;;  %v22080_v34 = vld [vmem:[#allocation2 + $0x170] sm:$0xff]  ;;  %v276_v36 = vld [vmem:[#allocation2 + $0x1b8] sm:$0xff] }
  0x42   :  { %18723 = vmatmul.mubr.msk.f32.gmra.mrb[10].mxu0 %vm26_vm1, %v21932_v59  ;;  %227 = vst.msk [vmem:[#allocation2 + $0x289] sm:$0xff] %vm26_vm1, %v162_v63  ;;  %228 = vst.msk [vmem:[#allocation2 + $0x291] sm:$0xff] %vm26_vm1, %v163_v1  ;;  %v275_v35 = vld [vmem:[#allocation2 + $0x1b0] sm:$0xff]  ;;  %v22085_v37 = vld [vmem:[#allocation2 + $0x1c8] sm:$0xff] }
  0x43   :  { %18725 = vmatprep.mubr.msk.f32.mxu0 %vm26_vm1, %v21938_v61  ;;  %229 = vst.msk [vmem:[#allocation2 + $0x2a1] sm:$0xff] %vm26_vm1, %v164_v2  ;;  %230 = vst.msk [vmem:[#allocation2 + $0x2a9] sm:$0xff] %vm26_vm1, %v165_v3  ;;  %v22090_v39 = vld [vmem:[#allocation2 + $0x1d0] sm:$0xff]  ;;  %v22092_v40 = vld [vmem:[#allocation2 + $0x1e0] sm:$0xff] }
  0x44   :  { %231 = vst.msk [vmem:[#allocation2 + $0x2b9] sm:$0xff] %vm26_vm1, %v166_v4  ;;  %232 = vst.msk [vmem:[#allocation2 + $0x2c1] sm:$0xff] %vm26_vm1, %v167_v5  ;;  %v22098_v42 = vld [vmem:[#allocation2 + $0x1e8] sm:$0xff]  ;;  %v22100_v43 = vld [vmem:[#allocation2 + $0x1f8] sm:$0xff] }
  0x45   :  { %233 = vst.msk [vmem:[#allocation2 + $0x2d1] sm:$0xff] %vm26_vm1, %v168_v7  ;;  %234 = vst.msk [vmem:[#allocation2 + $0x2d9] sm:$0xff] %vm26_vm1, %v169_v8  ;;  %v22106_v44 = vld [vmem:[#allocation2 + $0x200] sm:$0xff]  ;;  %v22108_v45 = vld [vmem:[#allocation2 + $0x210] sm:$0xff] }
  0x46   :  { %18726 = vmatmul.mubr.msk.f32.gmra.mrb[12].mxu0 %vm26_vm1, %v21945_v62  ;;  %235 = vst.msk [vmem:[#allocation2 + $0x2e9] sm:$0xff] %vm26_vm1, %v170_v10  ;;  %236 = vst.msk [vmem:[#allocation2 + $0x2f1] sm:$0xff] %vm26_vm1, %v171_v11  ;;  %v22114_v46 = vld [vmem:[#allocation2 + $0x218] sm:$0xff]  ;;  %v22116_v47 = vld [vmem:[#allocation2 + $0x228] sm:$0xff] }
  0x47   :  { %18728 = vmatprep.mubr.msk.f32.mxu0 %vm26_vm1, %v21950_v0  ;;  %237 = vst.msk [vmem:[#allocation2 + $0x301] sm:$0xff] %vm26_vm1, %v172_v12  ;;  %238 = vst.msk [vmem:[#allocation2 + $0x309] sm:$0xff] %vm26_vm1, %v173_v13  ;;  %v22122_v48 = vld [vmem:[#allocation2 + $0x230] sm:$0xff]  ;;  %v22124_v49 = vld [vmem:[#allocation2 + $0x240] sm:$0xff] }
  0x48   :  { %239 = vst.msk [vmem:[#allocation2 + $0x319] sm:$0xff] %vm26_vm1, %v174_v14  ;;  %240 = vst.msk [vmem:[#allocation2 + $0x321] sm:$0xff] %vm26_vm1, %v175_v15  ;;  %v22130_v50 = vld [vmem:[#allocation2 + $0x248] sm:$0xff]  ;;  %v22132_v51 = vld [vmem:[#allocation2 + $0x258] sm:$0xff] }
  0x49   :  { %v22138_v52 = vld [vmem:[#allocation2 + $0x260] sm:$0xff]  ;;  %v22140_v54 = vld [vmem:[#allocation2 + $0x270] sm:$0xff]  ;;  %v22146_v55 = vld [vmem:[#allocation2 + $0x278] sm:$0xff] }
  0x4a   :  { %18729 = vmatmul.mubr.msk.f32.gmra.mrb[14].mxu0 %vm26_vm1, %v21972_v6  ;;  %v22148_v57 = vld [vmem:[#allocation2 + $0x288] sm:$0xff]  ;;  %v22154_v58 = vld [vmem:[#allocation2 + $0x290] sm:$0xff]  ;;  %v22156_v60 = vld [vmem:[#allocation2 + $0x2a0] sm:$0xff] }
  0x4b   :  { %18731 = vmatprep.mubr.msk.f32.mxu0 %vm26_vm1, %v21985_v9  ;;  %v22162_v63 = vld [vmem:[#allocation2 + $0x2a8] sm:$0xff]  ;;  %v22164_v1 = vld [vmem:[#allocation2 + $0x2b8] sm:$0xff]  ;;  %v22170_v2 = vld [vmem:[#allocation2 + $0x2c0] sm:$0xff] }
  0x4c   :  { %v22172_v3 = vld [vmem:[#allocation2 + $0x2d0] sm:$0xff]  ;;  %v22178_v4 = vld [vmem:[#allocation2 + $0x2d8] sm:$0xff]  ;;  %v953_v13 = vld [vmem:[#allocation2 + $0x1] sm:$0xff] }
  0x4d   :  { %v22180_v5 = vld [vmem:[#allocation2 + $0x2e8] sm:$0xff]  ;;  %v22186_v7 = vld [vmem:[#allocation2 + $0x2f0] sm:$0xff]  ;;  %v22207_v15 = vld [vmem:[#allocation2 + $0x19] sm:$0xff] }
  0x4e   :  { %18732 = vmatmul.mubr.msk.f32.gmra.mrb[16].mxu0 %vm26_vm1, %v22024_v17  ;;  %v22188_v8 = vld [vmem:[#allocation2 + $0x300] sm:$0xff]  ;;  %v22194_v10 = vld [vmem:[#allocation2 + $0x308] sm:$0xff]  ;;  %27457 = vst [vmem:[#allocation6_spill] sm:$0xff] %v22207_v15 }
  0x4f   :  { %18734 = vmatprep.mubr.msk.f32.mxu0 %vm26_vm1, %v22026_v18  ;;  %v22196_v11 = vld [vmem:[#allocation2 + $0x318] sm:$0xff]  ;;  %v22202_v12 = vld [vmem:[#allocation2 + $0x320] sm:$0xff]  ;;  %v954_v14 = vld [vmem:[#allocation2 + $0x9] sm:$0xff] }
  0x50   :  { %27455 = vst [vmem:[#allocation4_spill] sm:$0xff] %v22196_v11  ;;  %27456 = vst [vmem:[#allocation5_spill] sm:$0xff] %v22202_v12 }
  0x52   :  { %18735 = vmatmul.mubr.msk.f32.gmra.mrb[18].mxu0 %vm26_vm1, %v22032_v19 }
  0x53   :  { %18737 = vmatprep.mubr.msk.f32.mxu0 %vm26_vm1, %v22034_v20 }
  0x56   :  { %18738 = vmatmul.mubr.msk.f32.gmra.mrb[20].mxu0 %vm26_vm1, %v22040_v21 }
  0x57   :  { %18740 = vmatprep.mubr.msk.f32.mxu0 %vm26_vm1, %v22042_v22 }
  0x5a   :  { %18741 = vmatmul.mubr.msk.f32.gmra.mrb[22].mxu0 %vm26_vm1, %v22048_v23 }
  0x5b   :  { %18743 = vmatprep.mubr.msk.f32.mxu0 %vm26_vm1, %v22050_v24 }
  0x5e   :  { %18744 = vmatmul.mubr.msk.f32.gmra.mrb[24].mxu0 %vm26_vm1, %v22056_v25 }
  0x5f   :  { %18746 = vmatprep.mubr.msk.f32.mxu0 %vm26_vm1, %v22058_v26 }
  0x62   :  { %18747 = vmatmul.mubr.msk.f32.gmra.mrb[26].mxu0 %vm26_vm1, %v22064_v27 }
  0x63   :  { %18749 = vmatprep.mubr.msk.f32.mxu0 %vm26_vm1, %v22066_v28 }
  0x66   :  { %18750 = vmatmul.mubr.msk.f32.gmra.mrb[28].mxu0 %vm26_vm1, %v22072_v31 }
  0x67   :  { %18752 = vmatprep.mubr.msk.f32.mxu0 %vm26_vm1, %v22074_v33 }
  0x6a   :  { %18753 = vmatmul.mubr.msk.f32.gmra.mrb[30].mxu0 %vm26_vm1, %v22080_v34 }
  0x6b   :  { %18755 = vmatprep.mubr.msk.f32.mxu0 %vm26_vm1, %v275_v35  ;;  %v22212_v35 = vld [vmem:[%s27132_s1 + $0xc] sm:$0xf] }
  0x6e   :  { %18756 = vmatmul.mubr.msk.f32.gmra.mrb[32].mxu0 %vm26_vm1, %v276_v36  ;;  %v22219_v36 = vld [vmem:[#allocation2 + $0x21] sm:$0xff] }
  0x6f   :  { %18758 = vmatprep.mubr.msk.f32.mxu0 %vm26_vm1, %v22085_v37  ;;  %27458 = vst [vmem:[#allocation7_spill] sm:$0xff] %v22219_v36 }
  0x72   :  { %18759 = vmatmul.mubr.msk.f32.gmra.mrb[34].mxu0 %vm26_vm1, %v22090_v39 }
  0x73   :  { %18761 = vmatprep.mubr.msk.f32.mxu0 %vm26_vm1, %v22092_v40 }
  0x76   :  { %18762 = vmatmul.mubr.msk.f32.gmra.mrb[36].mxu0 %vm26_vm1, %v22098_v42 }
  0x77   :  { %18764 = vmatprep.mubr.msk.f32.mxu0 %vm26_vm1, %v22100_v43 }
  0x7a   :  { %18765 = vmatmul.mubr.msk.f32.gmra.mrb[38].mxu0 %vm26_vm1, %v22106_v44 }
  0x7b   :  { %18767 = vmatprep.mubr.msk.f32.mxu0 %vm26_vm1, %v22108_v45 }
  0x7e   :  { %18768 = vmatmul.mubr.msk.f32.gmra.mrb[40].mxu0 %vm26_vm1, %v22114_v46 }
  0x7f   :  { %18770 = vmatprep.mubr.msk.f32.mxu0 %vm26_vm1, %v22116_v47 }
  0x82   :  { %18771 = vmatmul.mubr.msk.f32.gmra.mrb[42].mxu0 %vm26_vm1, %v22122_v48 }
  0x83   :  { %18773 = vmatprep.mubr.msk.f32.mxu0 %vm26_vm1, %v22124_v49 }
  0x86   :  { %18774 = vmatmul.mubr.msk.f32.gmra.mrb[44].mxu0 %vm26_vm1, %v22130_v50 }
  0x87   :  { %18776 = vmatprep.mubr.msk.f32.mxu0 %vm26_vm1, %v22132_v51 }
  0x8a   :  { %18777 = vmatmul.mubr.msk.f32.gmra.mrb[46].mxu0 %vm26_vm1, %v22138_v52 }
  0x8b   :  { %18779 = vmatprep.mubr.msk.f32.mxu0 %vm26_vm1, %v22140_v54 }
  0x8e   :  { %18780 = vmatmul.mubr.msk.f32.gmra.mrb[48].mxu0 %vm26_vm1, %v22146_v55 }
  0x8f   :  { %18782 = vmatprep.mubr.msk.f32.mxu0 %vm26_vm1, %v22148_v57 }
  0x92   :  { %18783 = vmatmul.mubr.msk.f32.gmra.mrb[50].mxu0 %vm26_vm1, %v22154_v58 }
  0x93   :  { %18785 = vmatprep.mubr.msk.f32.mxu0 %vm26_vm1, %v22156_v60 }
  0x96   :  { %18786 = vmatmul.mubr.msk.f32.gmra.mrb[52].mxu0 %vm26_vm1, %v22162_v63 }
  0x97   :  { %18788 = vmatprep.mubr.msk.f32.mxu0 %vm26_vm1, %v22164_v1 }
  0x9a   :  { %18789 = vmatmul.mubr.msk.f32.gmra.mrb[54].mxu0 %vm26_vm1, %v22170_v2 }
  0x9b   :  { %18791 = vmatprep.mubr.msk.f32.mxu0 %vm26_vm1, %v22172_v3 }
  0x9e   :  { %18792 = vmatmul.mubr.msk.f32.gmra.mrb[56].mxu0 %vm26_vm1, %v22178_v4 }
  0x9f   :  { %18794 = vmatprep.mubr.msk.f32.mxu0 %vm26_vm1, %v22180_v5 }
  0xa2   :  { %18795 = vmatmul.mubr.msk.f32.gmra.mrb[58].mxu0 %vm26_vm1, %v22186_v7 }
  0xa3   :  { %18797 = vmatprep.mubr.msk.f32.mxu0 %vm26_vm1, %v22188_v8 }
  0xa6   :  { %18798 = vmatmul.mubr.msk.f32.gmra.mrb[60].mxu0 %vm26_vm1, %v22194_v10 }
  0xa7   :  { %18800 = vmatprep.mubr.msk.f32.mxu0 %vm26_vm1, %v22196_v11  ;;  %v22345_v11 = vld [vmem:[#allocation2 + $0x1e1] sm:$0xff] }
  0xa8   :  { %27489 = vst [vmem:[#allocation38_spill] sm:$0xff] %v22345_v11 }
  0xaa   :  { %18801 = vmatmul.mubr.msk.f32.gmra.mrb[62].mxu0 %vm26_vm1, %v22202_v12  ;;  %v22221_v12 = vld [vmem:[#allocation2 + $0x31] sm:$0xff] }
  0xab   :  { %18805 = vmatprep.mubr.msk.f32.mxu0 %vm26_vm1, %v953_v13  ;;  %27459 = vst [vmem:[#allocation8_spill] sm:$0xff] %v22221_v12  ;;  %v22229_v13 = vld [vmem:[#allocation2 + $0x39] sm:$0xff] }
  0xac   :  { %27460 = vst [vmem:[#allocation9_spill] sm:$0xff] %v22229_v13 }
  0xae   :  { %18806 = vmatmul.mubr.msk.f32.vlgmr.msra.gmra.mrb[0].mxu0 %vm26_vm1, %v954_v14  ;;  %v22231_v14 = vld [vmem:[#allocation2 + $0x49] sm:$0xff] }
  0xaf   :  { %18902 = vmatpush3.msk.msra.mxu0 %vm500_vm0, %v22015_v16  ;;  %18808 = vmatprep.mubr.msk.f32.mxu0 %vm26_vm1, %v22207_v15  ;;  %27461 = vst [vmem:[#allocation10_spill] sm:$0xff] %v22231_v14  ;;  %v22237_v16 = vld [vmem:[#allocation2 + $0x51] sm:$0xff]  ;;  %v22239_v15 = vld [vmem:[#allocation2 + $0x61] sm:$0xff] }
  0xb0   :  { %18999 = vmatprep.subr.msk.mxu0 %vm500_vm0, %v22212_v35  ;;  %27462 = vst [vmem:[#allocation11_spill] sm:$0xff] %v22237_v16  ;;  %27463 = vst [vmem:[#allocation12_spill] sm:$0xff] %v22239_v15 }
  0xb2   :  { %18809 = vmatmul.mubr.msk.f32.gmra.mrb[2].mxu0 %vm26_vm1, %v22219_v36  ;;  %v22247_v36 = vld [vmem:[#allocation2 + $0x79] sm:$0xff] }
  0xb3   :  { %18811 = vmatprep.mubr.msk.f32.mxu0 %vm26_vm1, %v22221_v12  ;;  %v22245_v12 = vld [vmem:[#allocation2 + $0x69] sm:$0xff]  ;;  %27465 = vst [vmem:[#allocation14_spill] sm:$0xff] %v22247_v36 }
  0xb4   :  { %27464 = vst [vmem:[#allocation13_spill] sm:$0xff] %v22245_v12 }
  0xb6   :  { %18812 = vmatmul.mubr.msk.f32.gmra.mrb[4].mxu0 %vm26_vm1, %v22229_v13  ;;  %v22255_v13 = vld [vmem:[#allocation2 + $0x91] sm:$0xff] }
  0xb7   :  { %18814 = vmatprep.mubr.msk.f32.mxu0 %vm26_vm1, %v22231_v14  ;;  %v22253_v14 = vld [vmem:[#allocation2 + $0x81] sm:$0xff]  ;;  %27467 = vst [vmem:[#allocation16_spill] sm:$0xff] %v22255_v13 }
  0xb8   :  { %27466 = vst [vmem:[#allocation15_spill] sm:$0xff] %v22253_v14 }
  0xba   :  { %18815 = vmatmul.mubr.msk.f32.gmra.mrb[6].mxu0 %vm26_vm1, %v22237_v16  ;;  %v22263_v16 = vld [vmem:[#allocation2 + $0xa9] sm:$0xff] }
  0xbb   :  { %18817 = vmatprep.mubr.msk.f32.mxu0 %vm26_vm1, %v22239_v15  ;;  %v22261_v15 = vld [vmem:[#allocation2 + $0x99] sm:$0xff]  ;;  %27469 = vst [vmem:[#allocation18_spill] sm:$0xff] %v22263_v16 }
  0xbc   :  { %27468 = vst [vmem:[#allocation17_spill] sm:$0xff] %v22261_v15 }
  0xbe   :  { %18818 = vmatmul.mubr.msk.f32.gmra.mrb[8].mxu0 %vm26_vm1, %v22245_v12  ;;  %v22271_v12 = vld [vmem:[#allocation2 + $0xc1] sm:$0xff] }
  0xbf   :  { %18820 = vmatprep.mubr.msk.f32.mxu0 %vm26_vm1, %v22247_v36  ;;  %v22269_v36 = vld [vmem:[#allocation2 + $0xb1] sm:$0xff]  ;;  %27471 = vst [vmem:[#allocation20_spill] sm:$0xff] %v22271_v12 }
  0xc0   :  { %27470 = vst [vmem:[#allocation19_spill] sm:$0xff] %v22269_v36 }
  0xc2   :  { %18821 = vmatmul.mubr.msk.f32.gmra.mrb[10].mxu0 %vm26_vm1, %v22253_v14  ;;  %v22279_v14 = vld [vmem:[#allocation2 + $0xd9] sm:$0xff] }
  0xc3   :  { %18823 = vmatprep.mubr.msk.f32.mxu0 %vm26_vm1, %v22255_v13  ;;  %v22277_v13 = vld [vmem:[#allocation2 + $0xc9] sm:$0xff]  ;;  %27473 = vst [vmem:[#allocation22_spill] sm:$0xff] %v22279_v14 }
  0xc4   :  { %27472 = vst [vmem:[#allocation21_spill] sm:$0xff] %v22277_v13 }
  0xc6   :  { %18824 = vmatmul.mubr.msk.f32.gmra.mrb[12].mxu0 %vm26_vm1, %v22261_v15  ;;  %v22287_v15 = vld [vmem:[#allocation2 + $0xf1] sm:$0xff] }
  0xc7   :  { %18826 = vmatprep.mubr.msk.f32.mxu0 %vm26_vm1, %v22263_v16  ;;  %v22285_v16 = vld [vmem:[#allocation2 + $0xe1] sm:$0xff]  ;;  %27475 = vst [vmem:[#allocation24_spill] sm:$0xff] %v22287_v15 }
  0xc8   :  { %27474 = vst [vmem:[#allocation23_spill] sm:$0xff] %v22285_v16 }
  0xca   :  { %18827 = vmatmul.mubr.msk.f32.gmra.mrb[14].mxu0 %vm26_vm1, %v22269_v36  ;;  %v22295_v36 = vld [vmem:[#allocation2 + $0x109] sm:$0xff] }
  0xcb   :  { %18829 = vmatprep.mubr.msk.f32.mxu0 %vm26_vm1, %v22271_v12  ;;  %v22293_v12 = vld [vmem:[#allocation2 + $0xf9] sm:$0xff]  ;;  %27477 = vst [vmem:[#allocation26_spill] sm:$0xff] %v22295_v36 }
  0xcc   :  { %27476 = vst [vmem:[#allocation25_spill] sm:$0xff] %v22293_v12 }
  0xce   :  { %18830 = vmatmul.mubr.msk.f32.gmra.mrb[16].mxu0 %vm26_vm1, %v22277_v13  ;;  %v22303_v13 = vld [vmem:[#allocation2 + $0x121] sm:$0xff] }
  0xcf   :  { %18832 = vmatprep.mubr.msk.f32.mxu0 %vm26_vm1, %v22279_v14  ;;  %v22301_v14 = vld [vmem:[#allocation2 + $0x111] sm:$0xff]  ;;  %27479 = vst [vmem:[#allocation28_spill] sm:$0xff] %v22303_v13 }
  0xd0   :  { %27478 = vst [vmem:[#allocation27_spill] sm:$0xff] %v22301_v14 }
  0xd2   :  { %18833 = vmatmul.mubr.msk.f32.gmra.mrb[18].mxu0 %vm26_vm1, %v22285_v16  ;;  %v22311_v16 = vld [vmem:[#allocation2 + $0x139] sm:$0xff] }
  0xd3   :  { %18835 = vmatprep.mubr.msk.f32.mxu0 %vm26_vm1, %v22287_v15  ;;  %v22309_v15 = vld [vmem:[#allocation2 + $0x129] sm:$0xff]  ;;  %27481 = vst [vmem:[#allocation30_spill] sm:$0xff] %v22311_v16 }
  0xd4   :  { %27480 = vst [vmem:[#allocation29_spill] sm:$0xff] %v22309_v15 }
  0xd6   :  { %18836 = vmatmul.mubr.msk.f32.gmra.mrb[20].mxu0 %vm26_vm1, %v22293_v12  ;;  %v22319_v12 = vld [vmem:[#allocation2 + $0x151] sm:$0xff] }
  0xd7   :  { %18838 = vmatprep.mubr.msk.f32.mxu0 %vm26_vm1, %v22295_v36  ;;  %v22317_v36 = vld [vmem:[#allocation2 + $0x141] sm:$0xff]  ;;  %27483 = vst [vmem:[#allocation32_spill] sm:$0xff] %v22319_v12 }
  0xd8   :  { %27482 = vst [vmem:[#allocation31_spill] sm:$0xff] %v22317_v36 }
  0xda   :  { %18839 = vmatmul.mubr.msk.f32.gmra.mrb[22].mxu0 %vm26_vm1, %v22301_v14  ;;  %v22327_v14 = vld [vmem:[#allocation2 + $0x169] sm:$0xff] }
  0xdb   :  { %18841 = vmatprep.mubr.msk.f32.mxu0 %vm26_vm1, %v22303_v13  ;;  %v22325_v13 = vld [vmem:[#allocation2 + $0x159] sm:$0xff]  ;;  %27485 = vst [vmem:[#allocation34_spill] sm:$0xff] %v22327_v14 }
  0xdc   :  { %27484 = vst [vmem:[#allocation33_spill] sm:$0xff] %v22325_v13 }
  0xde   :  { %18842 = vmatmul.mubr.msk.f32.gmra.mrb[24].mxu0 %vm26_vm1, %v22309_v15  ;;  %v985_v15 = vld [vmem:[#allocation2 + $0x1b1] sm:$0xff] }
  0xdf   :  { %18844 = vmatprep.mubr.msk.f32.mxu0 %vm26_vm1, %v22311_v16  ;;  %v22333_v16 = vld [vmem:[#allocation2 + $0x171] sm:$0xff] }
  0xe0   :  { %27486 = vst [vmem:[#allocation35_spill] sm:$0xff] %v22333_v16 }
  0xe2   :  { %18845 = vmatmul.mubr.msk.f32.gmra.mrb[26].mxu0 %vm26_vm1, %v22317_v36  ;;  %v986_v36 = vld [vmem:[#allocation2 + $0x1b9] sm:$0xff] }
  0xe3   :  { %18847 = vmatprep.mubr.msk.f32.mxu0 %vm26_vm1, %v22319_v12  ;;  %v22338_v12 = vld [vmem:[#allocation2 + $0x1c9] sm:$0xff] }
  0xe4   :  { %27487 = vst [vmem:[#allocation36_spill] sm:$0xff] %v22338_v12 }
  0xe6   :  { %18848 = vmatmul.mubr.msk.f32.gmra.mrb[28].mxu0 %vm26_vm1, %v22325_v13  ;;  %v22343_v13 = vld [vmem:[#allocation2 + $0x1d1] sm:$0xff] }
  0xe7   :  { %18850 = vmatprep.mubr.msk.f32.mxu0 %vm26_vm1, %v22327_v14  ;;  %27488 = vst [vmem:[#allocation37_spill] sm:$0xff] %v22343_v13  ;;  %v22465_v14 = vld [vmem:[%s27132_s1 + $0x10] sm:$0xf] }
  0xea   :  { %18851 = vmatmul.mubr.msk.f32.gmra.mrb[30].mxu0 %vm26_vm1, %v22333_v16  ;;  %v22351_v16 = vld [vmem:[#allocation2 + $0x1e9] sm:$0xff] }
  0xeb   :  { %18853 = vmatprep.mubr.msk.f32.mxu0 %vm26_vm1, %v985_v15  ;;  %27490 = vst [vmem:[#allocation39_spill] sm:$0xff] %v22351_v16  ;;  %v22353_v15 = vld [vmem:[#allocation2 + $0x1f9] sm:$0xff] }
  0xec   :  { %27491 = vst [vmem:[#allocation40_spill] sm:$0xff] %v22353_v15 }
  0xee   :  { %18854 = vmatmul.mubr.msk.f32.gmra.mrb[32].mxu0 %vm26_vm1, %v986_v36  ;;  %v22359_v36 = vld [vmem:[#allocation2 + $0x201] sm:$0xff] }
  0xef   :  { %18856 = vmatprep.mubr.msk.f32.mxu0 %vm26_vm1, %v22338_v12  ;;  %27492 = vst [vmem:[#allocation41_spill] sm:$0xff] %v22359_v36  ;;  %v22361_v12 = vld [vmem:[#allocation2 + $0x211] sm:$0xff] }
  0xf0   :  { %27493 = vst [vmem:[#allocation42_spill] sm:$0xff] %v22361_v12 }
  0xf2   :  { %18857 = vmatmul.mubr.msk.f32.gmra.mrb[34].mxu0 %vm26_vm1, %v22343_v13  ;;  %v22369_v13 = vld [vmem:[#allocation2 + $0x229] sm:$0xff] }
  0xf3   :  { %18859 = vmatprep.mubr.msk.f32.mxu0 %vm26_vm1, %v22345_v11  ;;  %v22367_v11 = vld [vmem:[#allocation2 + $0x219] sm:$0xff]  ;;  %27495 = vst [vmem:[#allocation44_spill] sm:$0xff] %v22369_v13 }
  0xf4   :  { %27494 = vst [vmem:[#allocation43_spill] sm:$0xff] %v22367_v11 }
  0xf6   :  { %18860 = vmatmul.mubr.msk.f32.gmra.mrb[36].mxu0 %vm26_vm1, %v22351_v16  ;;  %v22377_v16 = vld [vmem:[#allocation2 + $0x241] sm:$0xff] }
  0xf7   :  { %18862 = vmatprep.mubr.msk.f32.mxu0 %vm26_vm1, %v22353_v15  ;;  %v22375_v15 = vld [vmem:[#allocation2 + $0x231] sm:$0xff]  ;;  %27497 = vst [vmem:[#allocation46_spill] sm:$0xff] %v22377_v16 }
  0xf8   :  { %27496 = vst [vmem:[#allocation45_spill] sm:$0xff] %v22375_v15 }
  0xfa   :  { %18863 = vmatmul.mubr.msk.f32.gmra.mrb[38].mxu0 %vm26_vm1, %v22359_v36  ;;  %v22385_v36 = vld [vmem:[#allocation2 + $0x259] sm:$0xff] }
  0xfb   :  { %18865 = vmatprep.mubr.msk.f32.mxu0 %vm26_vm1, %v22361_v12  ;;  %v22383_v12 = vld [vmem:[#allocation2 + $0x249] sm:$0xff]  ;;  %27499 = vst [vmem:[#allocation48_spill] sm:$0xff] %v22385_v36 }
  0xfc   :  { %27498 = vst [vmem:[#allocation47_spill] sm:$0xff] %v22383_v12 }
  0xfe   :  { %18866 = vmatmul.mubr.msk.f32.gmra.mrb[40].mxu0 %vm26_vm1, %v22367_v11  ;;  %v22393_v11 = vld [vmem:[#allocation2 + $0x271] sm:$0xff] }
  0xff   :  { %18868 = vmatprep.mubr.msk.f32.mxu0 %vm26_vm1, %v22369_v13  ;;  %v22391_v13 = vld [vmem:[#allocation2 + $0x261] sm:$0xff]  ;;  %27501 = vst [vmem:[#allocation50_spill] sm:$0xff] %v22393_v11 }
 0x100   :  { %27500 = vst [vmem:[#allocation49_spill] sm:$0xff] %v22391_v13 }
 0x102   :  { %18869 = vmatmul.mubr.msk.f32.gmra.mrb[42].mxu0 %vm26_vm1, %v22375_v15  ;;  %v22401_v15 = vld [vmem:[#allocation2 + $0x289] sm:$0xff] }
 0x103   :  { %18871 = vmatprep.mubr.msk.f32.mxu0 %vm26_vm1, %v22377_v16  ;;  %v22399_v16 = vld [vmem:[#allocation2 + $0x279] sm:$0xff]  ;;  %27503 = vst [vmem:[#allocation52_spill] sm:$0xff] %v22401_v15 }
 0x104   :  { %27502 = vst [vmem:[#allocation51_spill] sm:$0xff] %v22399_v16 }
 0x106   :  { %18872 = vmatmul.mubr.msk.f32.gmra.mrb[44].mxu0 %vm26_vm1, %v22383_v12  ;;  %v22409_v12 = vld [vmem:[#allocation2 + $0x2a1] sm:$0xff] }
 0x107   :  { %18874 = vmatprep.mubr.msk.f32.mxu0 %vm26_vm1, %v22385_v36  ;;  %v22407_v36 = vld [vmem:[#allocation2 + $0x291] sm:$0xff]  ;;  %27505 = vst [vmem:[#allocation54_spill] sm:$0xff] %v22409_v12 }
 0x108   :  { %27504 = vst [vmem:[#allocation53_spill] sm:$0xff] %v22407_v36 }
 0x10a   :  { %18875 = vmatmul.mubr.msk.f32.gmra.mrb[46].mxu0 %vm26_vm1, %v22391_v13  ;;  %v22417_v13 = vld [vmem:[#allocation2 + $0x2b9] sm:$0xff] }
 0x10b   :  { %18877 = vmatprep.mubr.msk.f32.mxu0 %vm26_vm1, %v22393_v11  ;;  %v22415_v11 = vld [vmem:[#allocation2 + $0x2a9] sm:$0xff]  ;;  %27507 = vst [vmem:[#allocation56_spill] sm:$0xff] %v22417_v13 }
 0x10c   :  { %27506 = vst [vmem:[#allocation55_spill] sm:$0xff] %v22415_v11 }
 0x10e   :  { %18878 = vmatmul.mubr.msk.f32.gmra.mrb[48].mxu0 %vm26_vm1, %v22399_v16  ;;  %v22425_v16 = vld [vmem:[#allocation2 + $0x2d1] sm:$0xff] }
 0x10f   :  { %18880 = vmatprep.mubr.msk.f32.mxu0 %vm26_vm1, %v22401_v15  ;;  %v22423_v15 = vld [vmem:[#allocation2 + $0x2c1] sm:$0xff]  ;;  %27509 = vst [vmem:[#allocation58_spill] sm:$0xff] %v22425_v16 }
 0x110   :  { %27508 = vst [vmem:[#allocation57_spill] sm:$0xff] %v22423_v15 }
 0x112   :  { %18881 = vmatmul.mubr.msk.f32.gmra.mrb[50].mxu0 %vm26_vm1, %v22407_v36  ;;  %v22433_v36 = vld [vmem:[#allocation2 + $0x2e9] sm:$0xff] }
 0x113   :  { %18883 = vmatprep.mubr.msk.f32.mxu0 %vm26_vm1, %v22409_v12  ;;  %v22431_v12 = vld [vmem:[#allocation2 + $0x2d9] sm:$0xff]  ;;  %27511 = vst [vmem:[#allocation60_spill] sm:$0xff] %v22433_v36 }
 0x114   :  { %27510 = vst [vmem:[#allocation59_spill] sm:$0xff] %v22431_v12 }
 0x116   :  { %18884 = vmatmul.mubr.msk.f32.gmra.mrb[52].mxu0 %vm26_vm1, %v22415_v11  ;;  %v22441_v11 = vld [vmem:[#allocation2 + $0x301] sm:$0xff] }
 0x117   :  { %18886 = vmatprep.mubr.msk.f32.mxu0 %vm26_vm1, %v22417_v13  ;;  %v22439_v13 = vld [vmem:[#allocation2 + $0x2f1] sm:$0xff]  ;;  %27513 = vst [vmem:[#allocation62_spill] sm:$0xff] %v22441_v11 }
 0x118   :  { %27512 = vst [vmem:[#allocation61_spill] sm:$0xff] %v22439_v13 }
 0x11a   :  { %18887 = vmatmul.mubr.msk.f32.gmra.mrb[54].mxu0 %vm26_vm1, %v22423_v15  ;;  %v22449_v15 = vld [vmem:[#allocation2 + $0x319] sm:$0xff] }
 0x11b   :  { %18889 = vmatprep.mubr.msk.f32.mxu0 %vm26_vm1, %v22425_v16  ;;  %v22447_v16 = vld [vmem:[#allocation2 + $0x309] sm:$0xff]  ;;  %27515 = vst [vmem:[#allocation64_spill] sm:$0xff] %v22449_v15 }
 0x11c   :  { %27514 = vst [vmem:[#allocation63_spill] sm:$0xff] %v22447_v16 }
 0x11e   :  { %18890 = vmatmul.mubr.msk.f32.gmra.mrb[56].mxu0 %vm26_vm1, %v22431_v12  ;;  %v1791_v12 = vld [vmem:[#allocation2 + $0x2] sm:$0xff] }
 0x11f   :  { %18892 = vmatprep.mubr.msk.f32.mxu0 %vm26_vm1, %v22433_v36  ;;  %v22455_v36 = vld [vmem:[#allocation2 + $0x321] sm:$0xff] }
 0x120   :  { %27516 = vst [vmem:[#allocation65_spill] sm:$0xff] %v22455_v36 }
 0x122   :  { %18893 = vmatmul.mubr.msk.f32.gmra.mrb[58].mxu0 %vm26_vm1, %v22439_v13  ;;  %v1792_v13 = vld [vmem:[#allocation2 + $0xa] sm:$0xff] }
 0x123   :  { %18895 = vmatprep.mubr.msk.f32.mxu0 %vm26_vm1, %v22441_v11  ;;  %v22460_v11 = vld [vmem:[#allocation2 + $0x1a] sm:$0xff] }
 0x124   :  { %27517 = vst [vmem:[#allocation66_spill] sm:$0xff] %v22460_v11 }
 0x126   :  { %18896 = vmatmul.mubr.msk.f32.gmra.mrb[60].mxu0 %vm26_vm1, %v22447_v16  ;;  %v1823_v16 = vld [vmem:[#allocation2 + $0x1b2] sm:$0xff] }
 0x127   :  { %18898 = vmatprep.mubr.msk.f32.mxu0 %vm26_vm1, %v22449_v15  ;;  %v22472_v15 = vld [vmem:[#allocation2 + $0x22] sm:$0xff] }
 0x128   :  { %27518 = vst [vmem:[#allocation67_spill] sm:$0xff] %v22472_v15 }
 0x12a   :  { %18899 = vmatmul.mubr.msk.f32.gmra.mrb[62].mxu0 %vm26_vm1, %v22455_v36  ;;  %v22474_v36 = vld [vmem:[#allocation2 + $0x32] sm:$0xff] }
 0x12b   :  { %18903 = vmatprep.mubr.msk.f32.mxu0 %vm26_vm1, %v1791_v12  ;;  %27519 = vst [vmem:[#allocation68_spill] sm:$0xff] %v22474_v36  ;;  %v22482_v12 = vld [vmem:[#allocation2 + $0x3a] sm:$0xff] }
 0x12c   :  { %27520 = vst [vmem:[#allocation69_spill] sm:$0xff] %v22482_v12 }
 0x12e   :  { %18904 = vmatmul.mubr.msk.f32.vlgmr.msra.gmra.mrb[0].mxu0 %vm26_vm1, %v1792_v13  ;;  %v22484_v13 = vld [vmem:[#allocation2 + $0x4a] sm:$0xff] }
 0x12f   :  { %19000 = vmatpush3.msk.msra.mxu0 %vm500_vm0, %v22212_v35  ;;  %18906 = vmatprep.mubr.msk.f32.mxu0 %vm26_vm1, %v22460_v11  ;;  %27521 = vst [vmem:[#allocation70_spill] sm:$0xff] %v22484_v13  ;;  %v22490_v35 = vld [vmem:[#allocation2 + $0x52] sm:$0xff]  ;;  %v22492_v11 = vld [vmem:[#allocation2 + $0x62] sm:$0xff] }
 0x130   :  { %19097 = vmatprep.subr.msk.mxu0 %vm500_vm0, %v22465_v14  ;;  %27522 = vst [vmem:[#allocation71_spill] sm:$0xff] %v22490_v35  ;;  %27523 = vst [vmem:[#allocation72_spill] sm:$0xff] %v22492_v11 }
 0x132   :  { %18907 = vmatmul.mubr.msk.f32.gmra.mrb[2].mxu0 %vm26_vm1, %v22472_v15  ;;  %v22500_v15 = vld [vmem:[#allocation2 + $0x7a] sm:$0xff] }
 0x133   :  { %18909 = vmatprep.mubr.msk.f32.mxu0 %vm26_vm1, %v22474_v36  ;;  %v22498_v36 = vld [vmem:[#allocation2 + $0x6a] sm:$0xff]  ;;  %27525 = vst [vmem:[#allocation74_spill] sm:$0xff] %v22500_v15 }
 0x134   :  { %27524 = vst [vmem:[#allocation73_spill] sm:$0xff] %v22498_v36 }
 0x136   :  { %18910 = vmatmul.mubr.msk.f32.gmra.mrb[4].mxu0 %vm26_vm1, %v22482_v12  ;;  %v22508_v12 = vld [vmem:[#allocation2 + $0x92] sm:$0xff] }
 0x137   :  { %18912 = vmatprep.mubr.msk.f32.mxu0 %vm26_vm1, %v22484_v13  ;;  %v22506_v13 = vld [vmem:[#allocation2 + $0x82] sm:$0xff]  ;;  %27527 = vst [vmem:[#allocation76_spill] sm:$0xff] %v22508_v12 }
 0x138   :  { %27526 = vst [vmem:[#allocation75_spill] sm:$0xff] %v22506_v13 }
 0x13a   :  { %18913 = vmatmul.mubr.msk.f32.gmra.mrb[6].mxu0 %vm26_vm1, %v22490_v35  ;;  %v22516_v35 = vld [vmem:[#allocation2 + $0xaa] sm:$0xff] }
 0x13b   :  { %18915 = vmatprep.mubr.msk.f32.mxu0 %vm26_vm1, %v22492_v11  ;;  %v22514_v11 = vld [vmem:[#allocation2 + $0x9a] sm:$0xff]  ;;  %27529 = vst [vmem:[#allocation78_spill] sm:$0xff] %v22516_v35 }
 0x13c   :  { %27528 = vst [vmem:[#allocation77_spill] sm:$0xff] %v22514_v11 }
 0x13e   :  { %18916 = vmatmul.mubr.msk.f32.gmra.mrb[8].mxu0 %vm26_vm1, %v22498_v36  ;;  %v22524_v36 = vld [vmem:[#allocation2 + $0xc2] sm:$0xff] }
 0x13f   :  { %18918 = vmatprep.mubr.msk.f32.mxu0 %vm26_vm1, %v22500_v15  ;;  %v22522_v15 = vld [vmem:[#allocation2 + $0xb2] sm:$0xff]  ;;  %27531 = vst [vmem:[#allocation80_spill] sm:$0xff] %v22524_v36 }
 0x140   :  { %27530 = vst [vmem:[#allocation79_spill] sm:$0xff] %v22522_v15 }
 0x142   :  { %18919 = vmatmul.mubr.msk.f32.gmra.mrb[10].mxu0 %vm26_vm1, %v22506_v13  ;;  %v22532_v13 = vld [vmem:[#allocation2 + $0xda] sm:$0xff] }
 0x143   :  { %18921 = vmatprep.mubr.msk.f32.mxu0 %vm26_vm1, %v22508_v12  ;;  %v22530_v12 = vld [vmem:[#allocation2 + $0xca] sm:$0xff]  ;;  %27533 = vst [vmem:[#allocation82_spill] sm:$0xff] %v22532_v13 }
 0x144   :  { %27532 = vst [vmem:[#allocation81_spill] sm:$0xff] %v22530_v12 }
 0x146   :  { %18922 = vmatmul.mubr.msk.f32.gmra.mrb[12].mxu0 %vm26_vm1, %v22514_v11  ;;  %v22540_v11 = vld [vmem:[#allocation2 + $0xf2] sm:$0xff] }
 0x147   :  { %18924 = vmatprep.mubr.msk.f32.mxu0 %vm26_vm1, %v22516_v35  ;;  %v22538_v35 = vld [vmem:[#allocation2 + $0xe2] sm:$0xff]  ;;  %27535 = vst [vmem:[#allocation84_spill] sm:$0xff] %v22540_v11 }
 0x148   :  { %27534 = vst [vmem:[#allocation83_spill] sm:$0xff] %v22538_v35 }
 0x14a   :  { %18925 = vmatmul.mubr.msk.f32.gmra.mrb[14].mxu0 %vm26_vm1, %v22522_v15  ;;  %v22548_v15 = vld [vmem:[#allocation2 + $0x10a] sm:$0xff] }
 0x14b   :  { %18927 = vmatprep.mubr.msk.f32.mxu0 %vm26_vm1, %v22524_v36  ;;  %v22546_v36 = vld [vmem:[#allocation2 + $0xfa] sm:$0xff]  ;;  %27537 = vst [vmem:[#allocation86_spill] sm:$0xff] %v22548_v15 }
 0x14c   :  { %27536 = vst [vmem:[#allocation85_spill] sm:$0xff] %v22546_v36 }
 0x14e   :  { %18928 = vmatmul.mubr.msk.f32.gmra.mrb[16].mxu0 %vm26_vm1, %v22530_v12  ;;  %v22556_v12 = vld [vmem:[#allocation2 + $0x122] sm:$0xff] }
 0x14f   :  { %18930 = vmatprep.mubr.msk.f32.mxu0 %vm26_vm1, %v22532_v13  ;;  %v22554_v13 = vld [vmem:[#allocation2 + $0x112] sm:$0xff]  ;;  %27539 = vst [vmem:[#allocation88_spill] sm:$0xff] %v22556_v12 }
 0x150   :  { %27538 = vst [vmem:[#allocation87_spill] sm:$0xff] %v22554_v13 }
 0x152   :  { %18931 = vmatmul.mubr.msk.f32.gmra.mrb[18].mxu0 %vm26_vm1, %v22538_v35  ;;  %v22564_v35 = vld [vmem:[#allocation2 + $0x13a] sm:$0xff] }
 0x153   :  { %18933 = vmatprep.mubr.msk.f32.mxu0 %vm26_vm1, %v22540_v11  ;;  %v22562_v11 = vld [vmem:[#allocation2 + $0x12a] sm:$0xff]  ;;  %27541 = vst [vmem:[#allocation90_spill] sm:$0xff] %v22564_v35 }
 0x154   :  { %27540 = vst [vmem:[#allocation89_spill] sm:$0xff] %v22562_v11 }
 0x156   :  { %18934 = vmatmul.mubr.msk.f32.gmra.mrb[20].mxu0 %vm26_vm1, %v22546_v36  ;;  %v22572_v36 = vld [vmem:[#allocation2 + $0x152] sm:$0xff] }
 0x157   :  { %18936 = vmatprep.mubr.msk.f32.mxu0 %vm26_vm1, %v22548_v15  ;;  %v22570_v15 = vld [vmem:[#allocation2 + $0x142] sm:$0xff]  ;;  %27543 = vst [vmem:[#allocation92_spill] sm:$0xff] %v22572_v36 }
 0x158   :  { %27542 = vst [vmem:[#allocation91_spill] sm:$0xff] %v22570_v15 }
 0x15a   :  { %18937 = vmatmul.mubr.msk.f32.gmra.mrb[22].mxu0 %vm26_vm1, %v22554_v13  ;;  %v144_v13 = vld [vmem:[%s27133_s0 + $0xf0] sm:$0xff] }
 0x15b   :  { %18939 = vmatprep.mubr.msk.f32.mxu0 %vm26_vm1, %v22556_v12  ;;  %209 = vst.msk [vmem:[#allocation2 + $0x181] sm:$0xff] %vm26_vm1, %v144_v13  ;;  %v145_v12 = vld [vmem:[%s27133_s0 + $0xf8] sm:$0xff] }
 0x15c   :  { %210 = vst.msk [vmem:[#allocation2 + $0x189] sm:$0xff] %vm26_vm1, %v145_v12  ;;  %v22594_v13 = vld [vmem:[#allocation2 + $0x172] sm:$0xff]  ;;  %v1824_v12 = vld [vmem:[#allocation2 + $0x1ba] sm:$0xff] }
 0x15d   :  { %27546 = vst [vmem:[#allocation95_spill] sm:$0xff] %v22594_v13 }
 0x15e   :  { %18940 = vmatmul.mubr.msk.f32.gmra.mrb[24].mxu0 %vm26_vm1, %v22562_v11  ;;  %v22588_v11 = vld [vmem:[#allocation2 + $0x16a] sm:$0xff] }
 0x15f   :  { %18942 = vmatprep.mubr.msk.f32.mxu0 %vm26_vm1, %v22564_v35  ;;  %v22586_v35 = vld [vmem:[#allocation2 + $0x15a] sm:$0xff]  ;;  %27545 = vst [vmem:[#allocation94_spill] sm:$0xff] %v22588_v11 }
 0x160   :  { %27544 = vst [vmem:[#allocation93_spill] sm:$0xff] %v22586_v35 }
 0x162   :  { %18943 = vmatmul.mubr.msk.f32.gmra.mrb[26].mxu0 %vm26_vm1, %v22570_v15  ;;  %v22606_v15 = vld [vmem:[#allocation2 + $0x1e2] sm:$0xff] }
 0x163   :  { %18945 = vmatprep.mubr.msk.f32.mxu0 %vm26_vm1, %v22572_v36  ;;  %v22599_v36 = vld [vmem:[#allocation2 + $0x1ca] sm:$0xff]  ;;  %27549 = vst [vmem:[#allocation98_spill] sm:$0xff] %v22606_v15 }
 0x164   :  { %27547 = vst [vmem:[#allocation96_spill] sm:$0xff] %v22599_v36 }
 0x166   :  { %18946 = vmatmul.mubr.msk.f32.gmra.mrb[28].mxu0 %vm26_vm1, %v22586_v35  ;;  %v22604_v35 = vld [vmem:[#allocation2 + $0x1d2] sm:$0xff] }
 0x167   :  { %18948 = vmatprep.mubr.msk.f32.mxu0 %vm26_vm1, %v22588_v11  ;;  %27548 = vst [vmem:[#allocation97_spill] sm:$0xff] %v22604_v35  ;;  %v2629_v11 = vld [vmem:[#allocation2 + $0x18] sm:$0xff] }
 0x16a   :  { %18949 = vmatmul.mubr.msk.f32.gmra.mrb[30].mxu0 %vm26_vm1, %v22594_v13  ;;  %v22612_v13 = vld [vmem:[#allocation2 + $0x1ea] sm:$0xff] }
 0x16b   :  { %18951 = vmatprep.mubr.msk.f32.mxu0 %vm26_vm1, %v1823_v16  ;;  %27550 = vst [vmem:[#allocation99_spill] sm:$0xff] %v22612_v13  ;;  %v22614_v16 = vld [vmem:[#allocation2 + $0x1fa] sm:$0xff] }
 0x16c   :  { %27551 = vst [vmem:[#allocation100_spill] sm:$0xff] %v22614_v16 }
 0x16e   :  { %18952 = vmatmul.mubr.msk.f32.gmra.mrb[32].mxu0 %vm26_vm1, %v1824_v12  ;;  %v22620_v12 = vld [vmem:[#allocation2 + $0x202] sm:$0xff] }
 0x16f   :  { %18954 = vmatprep.mubr.msk.f32.mxu0 %vm26_vm1, %v22599_v36  ;;  %27552 = vst [vmem:[#allocation101_spill] sm:$0xff] %v22620_v12  ;;  %v22622_v36 = vld [vmem:[#allocation2 + $0x212] sm:$0xff] }
 0x170   :  { %27553 = vst [vmem:[#allocation102_spill] sm:$0xff] %v22622_v36 }
 0x172   :  { %18955 = vmatmul.mubr.msk.f32.gmra.mrb[34].mxu0 %vm26_vm1, %v22604_v35  ;;  %v22630_v35 = vld [vmem:[#allocation2 + $0x22a] sm:$0xff] }
 0x173   :  { %18957 = vmatprep.mubr.msk.f32.mxu0 %vm26_vm1, %v22606_v15  ;;  %v22628_v15 = vld [vmem:[#allocation2 + $0x21a] sm:$0xff]  ;;  %27555 = vst [vmem:[#allocation104_spill] sm:$0xff] %v22630_v35 }
 0x174   :  { %27554 = vst [vmem:[#allocation103_spill] sm:$0xff] %v22628_v15 }
 0x176   :  { %18958 = vmatmul.mubr.msk.f32.gmra.mrb[36].mxu0 %vm26_vm1, %v22612_v13  ;;  %v22638_v13 = vld [vmem:[#allocation2 + $0x242] sm:$0xff] }
 0x177   :  { %18960 = vmatprep.mubr.msk.f32.mxu0 %vm26_vm1, %v22614_v16  ;;  %v22636_v16 = vld [vmem:[#allocation2 + $0x232] sm:$0xff]  ;;  %27557 = vst [vmem:[#allocation106_spill] sm:$0xff] %v22638_v13 }
 0x178   :  { %27556 = vst [vmem:[#allocation105_spill] sm:$0xff] %v22636_v16 }
 0x17a   :  { %18961 = vmatmul.mubr.msk.f32.gmra.mrb[38].mxu0 %vm26_vm1, %v22620_v12  ;;  %v22646_v12 = vld [vmem:[#allocation2 + $0x25a] sm:$0xff] }
 0x17b   :  { %18963 = vmatprep.mubr.msk.f32.mxu0 %vm26_vm1, %v22622_v36  ;;  %v22644_v36 = vld [vmem:[#allocation2 + $0x24a] sm:$0xff]  ;;  %27559 = vst [vmem:[#allocation108_spill] sm:$0xff] %v22646_v12 }
 0x17c   :  { %27558 = vst [vmem:[#allocation107_spill] sm:$0xff] %v22644_v36 }
 0x17e   :  { %18964 = vmatmul.mubr.msk.f32.gmra.mrb[40].mxu0 %vm26_vm1, %v22628_v15  ;;  %v22654_v15 = vld [vmem:[#allocation2 + $0x272] sm:$0xff] }
 0x17f   :  { %18966 = vmatprep.mubr.msk.f32.mxu0 %vm26_vm1, %v22630_v35  ;;  %v22652_v35 = vld [vmem:[#allocation2 + $0x262] sm:$0xff]  ;;  %27561 = vst [vmem:[#allocation110_spill] sm:$0xff] %v22654_v15 }
 0x180   :  { %27560 = vst [vmem:[#allocation109_spill] sm:$0xff] %v22652_v35 }
 0x182   :  { %18967 = vmatmul.mubr.msk.f32.gmra.mrb[42].mxu0 %vm26_vm1, %v22636_v16  ;;  %v22662_v16 = vld [vmem:[#allocation2 + $0x28a] sm:$0xff] }
 0x183   :  { %18969 = vmatprep.mubr.msk.f32.mxu0 %vm26_vm1, %v22638_v13  ;;  %v22660_v13 = vld [vmem:[#allocation2 + $0x27a] sm:$0xff]  ;;  %27563 = vst [vmem:[#allocation112_spill] sm:$0xff] %v22662_v16 }
 0x184   :  { %27562 = vst [vmem:[#allocation111_spill] sm:$0xff] %v22660_v13 }
 0x186   :  { %18970 = vmatmul.mubr.msk.f32.gmra.mrb[44].mxu0 %vm26_vm1, %v22644_v36  ;;  %v22670_v36 = vld [vmem:[#allocation2 + $0x2a2] sm:$0xff] }
 0x187   :  { %18972 = vmatprep.mubr.msk.f32.mxu0 %vm26_vm1, %v22646_v12  ;;  %v22668_v12 = vld [vmem:[#allocation2 + $0x292] sm:$0xff]  ;;  %27565 = vst [vmem:[#allocation114_spill] sm:$0xff] %v22670_v36 }
 0x188   :  { %27564 = vst [vmem:[#allocation113_spill] sm:$0xff] %v22668_v12 }
 0x18a   :  { %18973 = vmatmul.mubr.msk.f32.gmra.mrb[46].mxu0 %vm26_vm1, %v22652_v35  ;;  %v22678_v35 = vld [vmem:[#allocation2 + $0x2ba] sm:$0xff] }
 0x18b   :  { %18975 = vmatprep.mubr.msk.f32.mxu0 %vm26_vm1, %v22654_v15  ;;  %v22676_v15 = vld [vmem:[#allocation2 + $0x2aa] sm:$0xff]  ;;  %27567 = vst [vmem:[#allocation116_spill] sm:$0xff] %v22678_v35 }
 0x18c   :  { %27566 = vst [vmem:[#allocation115_spill] sm:$0xff] %v22676_v15 }
 0x18e   :  { %18976 = vmatmul.mubr.msk.f32.gmra.mrb[48].mxu0 %vm26_vm1, %v22660_v13  ;;  %v22686_v13 = vld [vmem:[#allocation2 + $0x2d2] sm:$0xff] }
 0x18f   :  { %18978 = vmatprep.mubr.msk.f32.mxu0 %vm26_vm1, %v22662_v16  ;;  %v22684_v16 = vld [vmem:[#allocation2 + $0x2c2] sm:$0xff]  ;;  %27569 = vst [vmem:[#allocation118_spill] sm:$0xff] %v22686_v13 }
 0x190   :  { %27568 = vst [vmem:[#allocation117_spill] sm:$0xff] %v22684_v16 }
 0x192   :  { %18979 = vmatmul.mubr.msk.f32.gmra.mrb[50].mxu0 %vm26_vm1, %v22668_v12  ;;  %v22694_v12 = vld [vmem:[#allocation2 + $0x2ea] sm:$0xff] }
 0x193   :  { %18981 = vmatprep.mubr.msk.f32.mxu0 %vm26_vm1, %v22670_v36  ;;  %v22692_v36 = vld [vmem:[#allocation2 + $0x2da] sm:$0xff]  ;;  %27571 = vst [vmem:[#allocation120_spill] sm:$0xff] %v22694_v12 }
 0x194   :  { %27570 = vst [vmem:[#allocation119_spill] sm:$0xff] %v22692_v36 }
 0x196   :  { %18982 = vmatmul.mubr.msk.f32.gmra.mrb[52].mxu0 %vm26_vm1, %v22676_v15  ;;  %v22702_v15 = vld [vmem:[#allocation2 + $0x302] sm:$0xff] }
 0x197   :  { %18984 = vmatprep.mubr.msk.f32.mxu0 %vm26_vm1, %v22678_v35  ;;  %v22700_v35 = vld [vmem:[#allocation2 + $0x2f2] sm:$0xff]  ;;  %27572 = vst [vmem:[#allocation121_spill] sm:$0xff] %v22702_v15 }
 0x19a   :  { %18985 = vmatmul.mubr.msk.f32.gmra.mrb[54].mxu0 %vm26_vm1, %v22684_v16  ;;  %v176_v16 = vld [vmem:[%s27133_s0 + $0x1f0] sm:$0xff] }
 0x19b   :  { %18987 = vmatprep.mubr.msk.f32.mxu0 %vm26_vm1, %v22686_v13  ;;  %241 = vst.msk [vmem:[#allocation2 + $0x331] sm:$0xff] %vm26_vm1, %v176_v16  ;;  %v177_v13 = vld [vmem:[%s27133_s0 + $0x1f8] sm:$0xff]  ;;  %v22724_v16 = vld [vmem:[#allocation2 + $0x322] sm:$0xff] }
 0x19c   :  { %242 = vst.msk [vmem:[#allocation2 + $0x339] sm:$0xff] %vm26_vm1, %v177_v13  ;;  %v2630_v13 = vld [vmem:[#allocation2 + $0x20] sm:$0xff] }
 0x19e   :  { %18988 = vmatmul.mubr.msk.f32.gmra.mrb[56].mxu0 %vm26_vm1, %v22692_v36  ;;  %v22718_v36 = vld [vmem:[#allocation2 + $0x31a] sm:$0xff] }
 0x19f   :  { %18990 = vmatprep.mubr.msk.f32.mxu0 %vm26_vm1, %v22694_v12  ;;  %v22716_v12 = vld [vmem:[#allocation2 + $0x30a] sm:$0xff] }
 0x1a2   :  { %18991 = vmatmul.mubr.msk.f32.gmra.mrb[58].mxu0 %vm26_vm1, %v22700_v35 }
 0x1a3   :  { %18993 = vmatprep.mubr.msk.f32.mxu0 %vm26_vm1, %v22702_v15  ;;  %v22732_v15 = vld [vmem:[%s27132_s1 + $0x14] sm:$0xf] }
 0x1a6   :  { %18994 = vmatmul.mubr.msk.f32.gmra.mrb[60].mxu0 %vm26_vm1, %v22716_v12 }
 0x1a7   :  { %18996 = vmatprep.mubr.msk.f32.mxu0 %vm26_vm1, %v22718_v36 }
 0x1aa   :  { %18997 = vmatmul.mubr.msk.f32.gmra.mrb[62].mxu0 %vm26_vm1, %v22724_v16 }
 0x1ab   :  { %19001 = vmatprep.mubr.msk.f32.mxu0 %vm26_vm1, %v2629_v11  ;;  %v27622_v11 = vld [vmem:[#allocation53_spill] sm:$0xff] }
 0x1ae   :  { %19002 = vmatmul.mubr.msk.f32.vlgmr.msra.gmra.mrb[0].mxu0 %vm26_vm1, %v2630_v13  ;;  %v27625_v13 = vld [vmem:[#allocation56_spill] sm:$0xff] }
 0x1af   :  { %19098 = vmatpush3.msk.msra.mxu0 %vm500_vm0, %v22465_v14  ;;  %19004 = vmatprep.mubr.msk.f32.mxu0 %vm26_vm1, %v21812_v29  ;;  %v22793_v29 = vld [vmem:[#allocation2 + $0x180] sm:$0xff]  ;;  %v27623_v14 = vld [vmem:[#allocation54_spill] sm:$0xff] }
 0x1b0   :  { %19195 = vmatprep.subr.msk.mxu0 %vm500_vm0, %v22732_v15 }
 0x1b2   :  { %19005 = vmatmul.mubr.msk.f32.gmra.mrb[2].mxu0 %vm26_vm1, %v21817_v30  ;;  %v22799_v30 = vld [vmem:[#allocation2 + $0x188] sm:$0xff] }
 0x1b3   :  { %19007 = vmatprep.mubr.msk.f32.mxu0 %vm26_vm1, %v21822_v32  ;;  %v27573_v32 = vld [vmem:[#allocation4_spill] sm:$0xff] }
 0x1b6   :  { %19008 = vmatmul.mubr.msk.f32.gmra.mrb[4].mxu0 %vm26_vm1, %v21844_v38  ;;  %v22861_v38 = vld [vmem:[#allocation2 + $0x330] sm:$0xff] }
 0x1b7   :  { %19010 = vmatprep.mubr.msk.f32.mxu0 %vm26_vm1, %v21857_v41  ;;  %v27574_v41 = vld [vmem:[#allocation5_spill] sm:$0xff] }
 0x1ba   :  { %19011 = vmatmul.mubr.msk.f32.gmra.mrb[6].mxu0 %vm26_vm1, %v21906_v53  ;;  %v22867_v53 = vld [vmem:[#allocation2 + $0x338] sm:$0xff] }
 0x1bb   :  { %19013 = vmatprep.mubr.msk.f32.mxu0 %vm26_vm1, %v21917_v56  ;;  %v27575_v56 = vld [vmem:[#allocation6_spill] sm:$0xff] }
 0x1be   :  { %19014 = vmatmul.mubr.msk.f32.gmra.mrb[8].mxu0 %vm26_vm1, %v21932_v59  ;;  %v22876_v59 = vld [vmem:[%s27132_s1 + $0x18] sm:$0xf] }
 0x1bf   :  { %19016 = vmatprep.mubr.msk.f32.mxu0 %vm26_vm1, %v21938_v61  ;;  %v27576_v61 = vld [vmem:[#allocation7_spill] sm:$0xff] }
 0x1c2   :  { %19017 = vmatmul.mubr.msk.f32.gmra.mrb[10].mxu0 %vm26_vm1, %v21945_v62  ;;  %v27577_v62 = vld [vmem:[#allocation8_spill] sm:$0xff] }
 0x1c3   :  { %19019 = vmatprep.mubr.msk.f32.mxu0 %vm26_vm1, %v21950_v0  ;;  %v27578_v0 = vld [vmem:[#allocation9_spill] sm:$0xff] }
 0x1c6   :  { %19020 = vmatmul.mubr.msk.f32.gmra.mrb[12].mxu0 %vm26_vm1, %v21972_v6  ;;  %v27579_v6 = vld [vmem:[#allocation10_spill] sm:$0xff] }
 0x1c7   :  { %19022 = vmatprep.mubr.msk.f32.mxu0 %vm26_vm1, %v21985_v9  ;;  %v27580_v9 = vld [vmem:[#allocation11_spill] sm:$0xff] }
 0x1ca   :  { %19023 = vmatmul.mubr.msk.f32.gmra.mrb[14].mxu0 %vm26_vm1, %v22024_v17  ;;  %v27581_v17 = vld [vmem:[#allocation12_spill] sm:$0xff] }
 0x1cb   :  { %19025 = vmatprep.mubr.msk.f32.mxu0 %vm26_vm1, %v22026_v18  ;;  %v27582_v18 = vld [vmem:[#allocation13_spill] sm:$0xff] }
 0x1ce   :  { %19026 = vmatmul.mubr.msk.f32.gmra.mrb[16].mxu0 %vm26_vm1, %v22032_v19  ;;  %v27583_v19 = vld [vmem:[#allocation14_spill] sm:$0xff] }
 0x1cf   :  { %19028 = vmatprep.mubr.msk.f32.mxu0 %vm26_vm1, %v22034_v20  ;;  %v27584_v20 = vld [vmem:[#allocation15_spill] sm:$0xff] }
 0x1d2   :  { %19029 = vmatmul.mubr.msk.f32.gmra.mrb[18].mxu0 %vm26_vm1, %v22040_v21  ;;  %v27585_v21 = vld [vmem:[#allocation16_spill] sm:$0xff] }
 0x1d3   :  { %19031 = vmatprep.mubr.msk.f32.mxu0 %vm26_vm1, %v22042_v22  ;;  %v27586_v22 = vld [vmem:[#allocation17_spill] sm:$0xff] }
 0x1d6   :  { %19032 = vmatmul.mubr.msk.f32.gmra.mrb[20].mxu0 %vm26_vm1, %v22048_v23  ;;  %v27587_v23 = vld [vmem:[#allocation18_spill] sm:$0xff] }
 0x1d7   :  { %19034 = vmatprep.mubr.msk.f32.mxu0 %vm26_vm1, %v22050_v24  ;;  %v27588_v24 = vld [vmem:[#allocation19_spill] sm:$0xff] }
 0x1da   :  { %19035 = vmatmul.mubr.msk.f32.gmra.mrb[22].mxu0 %vm26_vm1, %v22056_v25  ;;  %v27589_v25 = vld [vmem:[#allocation20_spill] sm:$0xff] }
 0x1db   :  { %19037 = vmatprep.mubr.msk.f32.mxu0 %vm26_vm1, %v22058_v26  ;;  %v27590_v26 = vld [vmem:[#allocation21_spill] sm:$0xff] }
 0x1de   :  { %19038 = vmatmul.mubr.msk.f32.gmra.mrb[24].mxu0 %vm26_vm1, %v22064_v27  ;;  %v27591_v27 = vld [vmem:[#allocation22_spill] sm:$0xff] }
 0x1df   :  { %19040 = vmatprep.mubr.msk.f32.mxu0 %vm26_vm1, %v22066_v28  ;;  %v27592_v28 = vld [vmem:[#allocation23_spill] sm:$0xff] }
 0x1e2   :  { %19041 = vmatmul.mubr.msk.f32.gmra.mrb[26].mxu0 %vm26_vm1, %v22072_v31  ;;  %v27593_v31 = vld [vmem:[#allocation24_spill] sm:$0xff] }
 0x1e3   :  { %19043 = vmatprep.mubr.msk.f32.mxu0 %vm26_vm1, %v22074_v33  ;;  %v27594_v33 = vld [vmem:[#allocation25_spill] sm:$0xff] }
 0x1e6   :  { %19044 = vmatmul.mubr.msk.f32.gmra.mrb[28].mxu0 %vm26_vm1, %v22080_v34  ;;  %v27595_v34 = vld [vmem:[#allocation26_spill] sm:$0xff] }
 0x1e7   :  { %19046 = vmatprep.mubr.msk.f32.mxu0 %vm26_vm1, %v22793_v29 }
 0x1ea   :  { %19047 = vmatmul.mubr.msk.f32.gmra.mrb[30].mxu0 %vm26_vm1, %v22799_v30 }
 0x1eb   :  { %19049 = vmatprep.mubr.msk.f32.mxu0 %vm26_vm1, %v22085_v37  ;;  %v27596_v37 = vld [vmem:[#allocation27_spill] sm:$0xff] }
 0x1ee   :  { %19050 = vmatmul.mubr.msk.f32.gmra.mrb[32].mxu0 %vm26_vm1, %v22090_v39  ;;  %v27597_v39 = vld [vmem:[#allocation28_spill] sm:$0xff] }
 0x1ef   :  { %19052 = vmatprep.mubr.msk.f32.mxu0 %vm26_vm1, %v22092_v40  ;;  %v27598_v40 = vld [vmem:[#allocation29_spill] sm:$0xff] }
 0x1f2   :  { %19053 = vmatmul.mubr.msk.f32.gmra.mrb[34].mxu0 %vm26_vm1, %v22098_v42  ;;  %v27599_v42 = vld [vmem:[#allocation30_spill] sm:$0xff] }
 0x1f3   :  { %19055 = vmatprep.mubr.msk.f32.mxu0 %vm26_vm1, %v22100_v43  ;;  %v27600_v43 = vld [vmem:[#allocation31_spill] sm:$0xff] }
 0x1f6   :  { %19056 = vmatmul.mubr.msk.f32.gmra.mrb[36].mxu0 %vm26_vm1, %v22106_v44  ;;  %v27601_v44 = vld [vmem:[#allocation32_spill] sm:$0xff] }
 0x1f7   :  { %19058 = vmatprep.mubr.msk.f32.mxu0 %vm26_vm1, %v22108_v45  ;;  %v27602_v45 = vld [vmem:[#allocation33_spill] sm:$0xff] }
 0x1fa   :  { %19059 = vmatmul.mubr.msk.f32.gmra.mrb[38].mxu0 %vm26_vm1, %v22114_v46  ;;  %v27603_v46 = vld [vmem:[#allocation34_spill] sm:$0xff] }
 0x1fb   :  { %19061 = vmatprep.mubr.msk.f32.mxu0 %vm26_vm1, %v22116_v47  ;;  %v22938_v47 = vld [vmem:[#allocation2 + $0x181] sm:$0xff] }
 0x1fe   :  { %19062 = vmatmul.mubr.msk.f32.gmra.mrb[40].mxu0 %vm26_vm1, %v22122_v48  ;;  %v27604_v48 = vld [vmem:[#allocation35_spill] sm:$0xff] }
 0x1ff   :  { %19064 = vmatprep.mubr.msk.f32.mxu0 %vm26_vm1, %v22124_v49  ;;  %v22944_v49 = vld [vmem:[#allocation2 + $0x189] sm:$0xff] }
 0x202   :  { %19065 = vmatmul.mubr.msk.f32.gmra.mrb[42].mxu0 %vm26_vm1, %v22130_v50  ;;  %v27605_v50 = vld [vmem:[#allocation36_spill] sm:$0xff] }
 0x203   :  { %19067 = vmatprep.mubr.msk.f32.mxu0 %vm26_vm1, %v22132_v51  ;;  %v27606_v51 = vld [vmem:[#allocation37_spill] sm:$0xff] }
 0x206   :  { %19068 = vmatmul.mubr.msk.f32.gmra.mrb[44].mxu0 %vm26_vm1, %v22138_v52  ;;  %v27607_v52 = vld [vmem:[#allocation38_spill] sm:$0xff] }
 0x207   :  { %19070 = vmatprep.mubr.msk.f32.mxu0 %vm26_vm1, %v22140_v54  ;;  %v27608_v54 = vld [vmem:[#allocation39_spill] sm:$0xff] }
 0x20a   :  { %19071 = vmatmul.mubr.msk.f32.gmra.mrb[46].mxu0 %vm26_vm1, %v22146_v55  ;;  %v27609_v55 = vld [vmem:[#allocation40_spill] sm:$0xff] }
 0x20b   :  { %19073 = vmatprep.mubr.msk.f32.mxu0 %vm26_vm1, %v22148_v57  ;;  %v27610_v57 = vld [vmem:[#allocation41_spill] sm:$0xff] }
 0x20e   :  { %19074 = vmatmul.mubr.msk.f32.gmra.mrb[48].mxu0 %vm26_vm1, %v22154_v58  ;;  %v27611_v58 = vld [vmem:[#allocation42_spill] sm:$0xff] }
 0x20f   :  { %19076 = vmatprep.mubr.msk.f32.mxu0 %vm26_vm1, %v22156_v60  ;;  %v27612_v60 = vld [vmem:[#allocation43_spill] sm:$0xff] }
 0x212   :  { %19077 = vmatmul.mubr.msk.f32.gmra.mrb[50].mxu0 %vm26_vm1, %v22162_v63  ;;  %v27613_v63 = vld [vmem:[#allocation44_spill] sm:$0xff] }
 0x213   :  { %19079 = vmatprep.mubr.msk.f32.mxu0 %vm26_vm1, %v22164_v1  ;;  %v27614_v1 = vld [vmem:[#allocation45_spill] sm:$0xff] }
 0x216   :  { %19080 = vmatmul.mubr.msk.f32.gmra.mrb[52].mxu0 %vm26_vm1, %v22170_v2  ;;  %v27615_v2 = vld [vmem:[#allocation46_spill] sm:$0xff] }
 0x217   :  { %19082 = vmatprep.mubr.msk.f32.mxu0 %vm26_vm1, %v22172_v3  ;;  %v27616_v3 = vld [vmem:[#allocation47_spill] sm:$0xff] }
 0x21a   :  { %19083 = vmatmul.mubr.msk.f32.gmra.mrb[54].mxu0 %vm26_vm1, %v22178_v4  ;;  %v27617_v4 = vld [vmem:[#allocation48_spill] sm:$0xff] }
 0x21b   :  { %19085 = vmatprep.mubr.msk.f32.mxu0 %vm26_vm1, %v22180_v5  ;;  %v27618_v5 = vld [vmem:[#allocation49_spill] sm:$0xff] }
 0x21e   :  { %19086 = vmatmul.mubr.msk.f32.gmra.mrb[56].mxu0 %vm26_vm1, %v22186_v7  ;;  %v27619_v7 = vld [vmem:[#allocation50_spill] sm:$0xff] }
 0x21f   :  { %19088 = vmatprep.mubr.msk.f32.mxu0 %vm26_vm1, %v22188_v8  ;;  %v27620_v8 = vld [vmem:[#allocation51_spill] sm:$0xff] }
 0x222   :  { %19089 = vmatmul.mubr.msk.f32.gmra.mrb[58].mxu0 %vm26_vm1, %v22194_v10  ;;  %v27621_v10 = vld [vmem:[#allocation52_spill] sm:$0xff] }
 0x223   :  { %19091 = vmatprep.mubr.msk.f32.mxu0 %vm26_vm1, %v27573_v32  ;;  %v27626_v32 = vld [vmem:[#allocation57_spill] sm:$0xff] }
 0x226   :  { %19092 = vmatmul.mubr.msk.f32.gmra.mrb[60].mxu0 %vm26_vm1, %v27574_v41  ;;  %v27627_v41 = vld [vmem:[#allocation58_spill] sm:$0xff] }
 0x227   :  { %19094 = vmatprep.mubr.msk.f32.mxu0 %vm26_vm1, %v22861_v38 }
 0x22a   :  { %19095 = vmatmul.mubr.msk.f32.gmra.mrb[62].mxu0 %vm26_vm1, %v22867_v53 }
 0x22b   :  { %19099 = vmatprep.mubr.msk.f32.mxu0 %vm26_vm1, %v27575_v56  ;;  %v27628_v56 = vld [vmem:[#allocation59_spill] sm:$0xff] }
 0x22e   :  { %19100 = vmatmul.mubr.msk.f32.vlgmr.msra.gmra.mrb[0].mxu0 %vm26_vm1, %v27576_v61  ;;  %v27629_v61 = vld [vmem:[#allocation60_spill] sm:$0xff] }
 0x22f   :  { %19196 = vmatpush3.msk.msra.mxu0 %vm500_vm0, %v22732_v15  ;;  %19102 = vmatprep.mubr.msk.f32.mxu0 %vm26_vm1, %v27577_v62  ;;  %v27624_v15 = vld [vmem:[#allocation55_spill] sm:$0xff]  ;;  %v27630_v62 = vld [vmem:[#allocation61_spill] sm:$0xff] }
 0x230   :  { %19293 = vmatprep.subr.msk.mxu0 %vm500_vm0, %v22876_v59 }
 0x232   :  { %19103 = vmatmul.mubr.msk.f32.gmra.mrb[2].mxu0 %vm26_vm1, %v27578_v0  ;;  %v27631_v0 = vld [vmem:[#allocation62_spill] sm:$0xff] }
 0x233   :  { %19105 = vmatprep.mubr.msk.f32.mxu0 %vm26_vm1, %v27579_v6  ;;  %v27632_v6 = vld [vmem:[#allocation63_spill] sm:$0xff] }
 0x236   :  { %19106 = vmatmul.mubr.msk.f32.gmra.mrb[4].mxu0 %vm26_vm1, %v27580_v9  ;;  %v27633_v9 = vld [vmem:[#allocation64_spill] sm:$0xff] }
 0x237   :  { %19108 = vmatprep.mubr.msk.f32.mxu0 %vm26_vm1, %v27581_v17  ;;  %v23006_v17 = vld [vmem:[#allocation2 + $0x331] sm:$0xff] }
 0x23a   :  { %19109 = vmatmul.mubr.msk.f32.gmra.mrb[6].mxu0 %vm26_vm1, %v27582_v18  ;;  %v27634_v18 = vld [vmem:[#allocation65_spill] sm:$0xff] }
 0x23b   :  { %19111 = vmatprep.mubr.msk.f32.mxu0 %vm26_vm1, %v27583_v19  ;;  %v23012_v19 = vld [vmem:[#allocation2 + $0x339] sm:$0xff] }
 0x23e   :  { %19112 = vmatmul.mubr.msk.f32.gmra.mrb[8].mxu0 %vm26_vm1, %v27584_v20  ;;  %v27635_v20 = vld [vmem:[#allocation66_spill] sm:$0xff] }
 0x23f   :  { %19114 = vmatprep.mubr.msk.f32.mxu0 %vm26_vm1, %v27585_v21  ;;  %v23021_v21 = vld [vmem:[%s27132_s1 + $0x1c] sm:$0xf] }
 0x242   :  { %19115 = vmatmul.mubr.msk.f32.gmra.mrb[10].mxu0 %vm26_vm1, %v27586_v22  ;;  %v27636_v22 = vld [vmem:[#allocation67_spill] sm:$0xff] }
 0x243   :  { %19117 = vmatprep.mubr.msk.f32.mxu0 %vm26_vm1, %v27587_v23  ;;  %v27637_v23 = vld [vmem:[#allocation68_spill] sm:$0xff] }
 0x246   :  { %19118 = vmatmul.mubr.msk.f32.gmra.mrb[12].mxu0 %vm26_vm1, %v27588_v24  ;;  %v27638_v24 = vld [vmem:[#allocation69_spill] sm:$0xff] }
 0x247   :  { %19120 = vmatprep.mubr.msk.f32.mxu0 %vm26_vm1, %v27589_v25  ;;  %v27639_v25 = vld [vmem:[#allocation70_spill] sm:$0xff] }
 0x24a   :  { %19121 = vmatmul.mubr.msk.f32.gmra.mrb[14].mxu0 %vm26_vm1, %v27590_v26  ;;  %v27640_v26 = vld [vmem:[#allocation71_spill] sm:$0xff] }
 0x24b   :  { %19123 = vmatprep.mubr.msk.f32.mxu0 %vm26_vm1, %v27591_v27  ;;  %v27641_v27 = vld [vmem:[#allocation72_spill] sm:$0xff] }
 0x24e   :  { %19124 = vmatmul.mubr.msk.f32.gmra.mrb[16].mxu0 %vm26_vm1, %v27592_v28  ;;  %v27642_v28 = vld [vmem:[#allocation73_spill] sm:$0xff] }
 0x24f   :  { %19126 = vmatprep.mubr.msk.f32.mxu0 %vm26_vm1, %v27593_v31  ;;  %v27644_v31 = vld [vmem:[#allocation75_spill] sm:$0xff] }
 0x252   :  { %19127 = vmatmul.mubr.msk.f32.gmra.mrb[18].mxu0 %vm26_vm1, %v27594_v33  ;;  %v27645_v33 = vld [vmem:[#allocation76_spill] sm:$0xff] }
 0x253   :  { %19129 = vmatprep.mubr.msk.f32.mxu0 %vm26_vm1, %v27595_v34  ;;  %v27646_v34 = vld [vmem:[#allocation77_spill] sm:$0xff] }
 0x256   :  { %19130 = vmatmul.mubr.msk.f32.gmra.mrb[20].mxu0 %vm26_vm1, %v27596_v37  ;;  %v27647_v37 = vld [vmem:[#allocation78_spill] sm:$0xff] }
 0x257   :  { %19132 = vmatprep.mubr.msk.f32.mxu0 %vm26_vm1, %v27597_v39  ;;  %v27648_v39 = vld [vmem:[#allocation79_spill] sm:$0xff] }
 0x25a   :  { %19133 = vmatmul.mubr.msk.f32.gmra.mrb[22].mxu0 %vm26_vm1, %v27598_v40  ;;  %v27649_v40 = vld [vmem:[#allocation80_spill] sm:$0xff] }
 0x25b   :  { %19135 = vmatprep.mubr.msk.f32.mxu0 %vm26_vm1, %v27599_v42  ;;  %v27650_v42 = vld [vmem:[#allocation81_spill] sm:$0xff] }
 0x25e   :  { %19136 = vmatmul.mubr.msk.f32.gmra.mrb[24].mxu0 %vm26_vm1, %v27600_v43  ;;  %v27651_v43 = vld [vmem:[#allocation82_spill] sm:$0xff] }
 0x25f   :  { %19138 = vmatprep.mubr.msk.f32.mxu0 %vm26_vm1, %v27601_v44  ;;  %v27652_v44 = vld [vmem:[#allocation83_spill] sm:$0xff] }
 0x262   :  { %19139 = vmatmul.mubr.msk.f32.gmra.mrb[26].mxu0 %vm26_vm1, %v27602_v45  ;;  %v27653_v45 = vld [vmem:[#allocation84_spill] sm:$0xff] }
 0x263   :  { %19141 = vmatprep.mubr.msk.f32.mxu0 %vm26_vm1, %v27603_v46  ;;  %v27654_v46 = vld [vmem:[#allocation85_spill] sm:$0xff] }
 0x266   :  { %19142 = vmatmul.mubr.msk.f32.gmra.mrb[28].mxu0 %vm26_vm1, %v27604_v48  ;;  %v27655_v48 = vld [vmem:[#allocation86_spill] sm:$0xff] }
 0x267   :  { %19144 = vmatprep.mubr.msk.f32.mxu0 %vm26_vm1, %v22938_v47 }
 0x26a   :  { %19145 = vmatmul.mubr.msk.f32.gmra.mrb[30].mxu0 %vm26_vm1, %v22944_v49 }
 0x26b   :  { %19147 = vmatprep.mubr.msk.f32.mxu0 %vm26_vm1, %v27605_v50  ;;  %v27656_v50 = vld [vmem:[#allocation87_spill] sm:$0xff] }
 0x26e   :  { %19148 = vmatmul.mubr.msk.f32.gmra.mrb[32].mxu0 %vm26_vm1, %v27606_v51  ;;  %v27657_v51 = vld [vmem:[#allocation88_spill] sm:$0xff] }
 0x26f   :  { %19150 = vmatprep.mubr.msk.f32.mxu0 %vm26_vm1, %v27607_v52  ;;  %v27658_v52 = vld [vmem:[#allocation89_spill] sm:$0xff] }
 0x272   :  { %19151 = vmatmul.mubr.msk.f32.gmra.mrb[34].mxu0 %vm26_vm1, %v27608_v54  ;;  %v27659_v54 = vld [vmem:[#allocation90_spill] sm:$0xff] }
 0x273   :  { %19153 = vmatprep.mubr.msk.f32.mxu0 %vm26_vm1, %v27609_v55  ;;  %v27660_v55 = vld [vmem:[#allocation91_spill] sm:$0xff] }
 0x276   :  { %19154 = vmatmul.mubr.msk.f32.gmra.mrb[36].mxu0 %vm26_vm1, %v27610_v57  ;;  %v27661_v57 = vld [vmem:[#allocation92_spill] sm:$0xff] }
 0x277   :  { %19156 = vmatprep.mubr.msk.f32.mxu0 %vm26_vm1, %v27611_v58  ;;  %v27662_v58 = vld [vmem:[#allocation93_spill] sm:$0xff] }
 0x27a   :  { %19157 = vmatmul.mubr.msk.f32.gmra.mrb[38].mxu0 %vm26_vm1, %v27612_v60  ;;  %v27663_v60 = vld [vmem:[#allocation94_spill] sm:$0xff] }
 0x27b   :  { %19159 = vmatprep.mubr.msk.f32.mxu0 %vm26_vm1, %v27613_v63  ;;  %v23083_v63 = vld [vmem:[#allocation2 + $0x182] sm:$0xff] }
 0x27e   :  { %19160 = vmatmul.mubr.msk.f32.gmra.mrb[40].mxu0 %vm26_vm1, %v27614_v1  ;;  %v27664_v1 = vld [vmem:[#allocation95_spill] sm:$0xff] }
 0x27f   :  { %19162 = vmatprep.mubr.msk.f32.mxu0 %vm26_vm1, %v27615_v2  ;;  %v23089_v2 = vld [vmem:[#allocation2 + $0x18a] sm:$0xff] }
 0x282   :  { %19163 = vmatmul.mubr.msk.f32.gmra.mrb[42].mxu0 %vm26_vm1, %v27616_v3  ;;  %v27665_v3 = vld [vmem:[#allocation96_spill] sm:$0xff] }
 0x283   :  { %19165 = vmatprep.mubr.msk.f32.mxu0 %vm26_vm1, %v27617_v4  ;;  %v27666_v4 = vld [vmem:[#allocation97_spill] sm:$0xff] }
 0x286   :  { %19166 = vmatmul.mubr.msk.f32.gmra.mrb[44].mxu0 %vm26_vm1, %v27618_v5  ;;  %v27667_v5 = vld [vmem:[#allocation98_spill] sm:$0xff] }
 0x287   :  { %19168 = vmatprep.mubr.msk.f32.mxu0 %vm26_vm1, %v27619_v7  ;;  %v27668_v7 = vld [vmem:[#allocation99_spill] sm:$0xff] }
 0x28a   :  { %19169 = vmatmul.mubr.msk.f32.gmra.mrb[46].mxu0 %vm26_vm1, %v27620_v8  ;;  %v27669_v8 = vld [vmem:[#allocation100_spill] sm:$0xff] }
 0x28b   :  { %19171 = vmatprep.mubr.msk.f32.mxu0 %vm26_vm1, %v27621_v10  ;;  %v27670_v10 = vld [vmem:[#allocation101_spill] sm:$0xff] }
 0x28e   :  { %19172 = vmatmul.mubr.msk.f32.gmra.mrb[48].mxu0 %vm26_vm1, %v27622_v11  ;;  %v27671_v11 = vld [vmem:[#allocation102_spill] sm:$0xff] }
 0x28f   :  { %19174 = vmatprep.mubr.msk.f32.mxu0 %vm26_vm1, %v27623_v14  ;;  %v27672_v14 = vld [vmem:[#allocation103_spill] sm:$0xff] }
 0x292   :  { %19175 = vmatmul.mubr.msk.f32.gmra.mrb[50].mxu0 %vm26_vm1, %v27624_v15  ;;  %v27673_v15 = vld [vmem:[#allocation104_spill] sm:$0xff] }
 0x293   :  { %19177 = vmatprep.mubr.msk.f32.mxu0 %vm26_vm1, %v27625_v13  ;;  %v27674_v13 = vld [vmem:[#allocation105_spill] sm:$0xff] }
 0x296   :  { %19178 = vmatmul.mubr.msk.f32.gmra.mrb[52].mxu0 %vm26_vm1, %v27626_v32  ;;  %v27675_v32 = vld [vmem:[#allocation106_spill] sm:$0xff] }
 0x297   :  { %19180 = vmatprep.mubr.msk.f32.mxu0 %vm26_vm1, %v27627_v41  ;;  %v27676_v41 = vld [vmem:[#allocation107_spill] sm:$0xff] }
 0x29a   :  { %19181 = vmatmul.mubr.msk.f32.gmra.mrb[54].mxu0 %vm26_vm1, %v27628_v56  ;;  %v27677_v56 = vld [vmem:[#allocation108_spill] sm:$0xff] }
 0x29b   :  { %19183 = vmatprep.mubr.msk.f32.mxu0 %vm26_vm1, %v27629_v61  ;;  %v27678_v61 = vld [vmem:[#allocation109_spill] sm:$0xff] }
 0x29e   :  { %19184 = vmatmul.mubr.msk.f32.gmra.mrb[56].mxu0 %vm26_vm1, %v27630_v62  ;;  %v27679_v62 = vld [vmem:[#allocation110_spill] sm:$0xff] }
 0x29f   :  { %19186 = vmatprep.mubr.msk.f32.mxu0 %vm26_vm1, %v27631_v0  ;;  %v27680_v0 = vld [vmem:[#allocation111_spill] sm:$0xff] }
 0x2a2   :  { %19187 = vmatmul.mubr.msk.f32.gmra.mrb[58].mxu0 %vm26_vm1, %v27632_v6  ;;  %v27681_v6 = vld [vmem:[#allocation112_spill] sm:$0xff] }
 0x2a3   :  { %19189 = vmatprep.mubr.msk.f32.mxu0 %vm26_vm1, %v27633_v9  ;;  %v27682_v9 = vld [vmem:[#allocation113_spill] sm:$0xff] }
 0x2a6   :  { %19190 = vmatmul.mubr.msk.f32.gmra.mrb[60].mxu0 %vm26_vm1, %v27634_v18  ;;  %v27683_v18 = vld [vmem:[#allocation114_spill] sm:$0xff] }
 0x2a7   :  { %19192 = vmatprep.mubr.msk.f32.mxu0 %vm26_vm1, %v23006_v17 }
 0x2aa   :  { %19193 = vmatmul.mubr.msk.f32.gmra.mrb[62].mxu0 %vm26_vm1, %v23012_v19 }
 0x2ab   :  { %19197 = vmatprep.mubr.msk.f32.mxu0 %vm26_vm1, %v27635_v20  ;;  %v27684_v20 = vld [vmem:[#allocation115_spill] sm:$0xff] }
 0x2ae   :  { %19198 = vmatmul.mubr.msk.f32.vlgmr.msra.gmra.mrb[0].mxu0 %vm26_vm1, %v27636_v22  ;;  %v27685_v22 = vld [vmem:[#allocation116_spill] sm:$0xff] }
 0x2af   :  { %19294 = vmatpush3.msk.msra.mxu0 %vm500_vm0, %v22876_v59  ;;  %19200 = vmatprep.mubr.msk.f32.mxu0 %vm26_vm1, %v27637_v23  ;;  %v27643_v59 = vld [vmem:[#allocation74_spill] sm:$0xff]  ;;  %v27686_v23 = vld [vmem:[#allocation117_spill] sm:$0xff] }
 0x2b0   :  { %19391 = vmatprep.subr.msk.mxu0 %vm500_vm0, %v23021_v21 }
 0x2b2   :  { %19201 = vmatmul.mubr.msk.f32.gmra.mrb[2].mxu0 %vm26_vm1, %v27638_v24  ;;  %v27687_v24 = vld [vmem:[#allocation118_spill] sm:$0xff] }
 0x2b3   :  { %19203 = vmatprep.mubr.msk.f32.mxu0 %vm26_vm1, %v27639_v25  ;;  %v27688_v25 = vld [vmem:[#allocation119_spill] sm:$0xff] }
 0x2b6   :  { %19204 = vmatmul.mubr.msk.f32.gmra.mrb[4].mxu0 %vm26_vm1, %v27640_v26  ;;  %v27689_v26 = vld [vmem:[#allocation120_spill] sm:$0xff] }
 0x2b7   :  { %19206 = vmatprep.mubr.msk.f32.mxu0 %vm26_vm1, %v27641_v27  ;;  %v27690_v27 = vld [vmem:[#allocation121_spill] sm:$0xff] }
 0x2ba   :  { %19207 = vmatmul.mubr.msk.f32.gmra.mrb[6].mxu0 %vm26_vm1, %v27642_v28  ;;  %v23151_v28 = vld [vmem:[#allocation2 + $0x332] sm:$0xff] }
 0x2bb   :  { %19209 = vmatprep.mubr.msk.f32.mxu0 %vm26_vm1, %v27643_v59  ;;  %v23157_v59 = vld [vmem:[#allocation2 + $0x33a] sm:$0xff] }
 0x2be   :  { %19210 = vmatmul.mubr.msk.f32.gmra.mrb[8].mxu0 %vm26_vm1, %v27644_v31  ;;  %v5146_v31 = vld [vmem:[#allocation2 + $0x48] sm:$0xff] }
 0x2bf   :  { %19212 = vmatprep.mubr.msk.f32.mxu0 %vm26_vm1, %v27645_v33  ;;  %v5148_v33 = vld [vmem:[#allocation2 + $0x60] sm:$0xff] }
 0x2c2   :  { %19213 = vmatmul.mubr.msk.f32.gmra.mrb[10].mxu0 %vm26_vm1, %v27646_v34  ;;  %v5149_v34 = vld [vmem:[#allocation2 + $0x68] sm:$0xff] }
 0x2c3   :  { %19215 = vmatprep.mubr.msk.f32.mxu0 %vm26_vm1, %v27647_v37  ;;  %v5150_v37 = vld [vmem:[#allocation2 + $0x78] sm:$0xff] }
 0x2c6   :  { %19216 = vmatmul.mubr.msk.f32.gmra.mrb[12].mxu0 %vm26_vm1, %v27648_v39  ;;  %v5151_v39 = vld [vmem:[#allocation2 + $0x80] sm:$0xff] }
 0x2c7   :  { %19218 = vmatprep.mubr.msk.f32.mxu0 %vm26_vm1, %v27649_v40  ;;  %v5152_v40 = vld [vmem:[#allocation2 + $0x90] sm:$0xff] }
 0x2ca   :  { %19219 = vmatmul.mubr.msk.f32.gmra.mrb[14].mxu0 %vm26_vm1, %v27650_v42  ;;  %v5154_v42 = vld [vmem:[#allocation2 + $0xa8] sm:$0xff] }
 0x2cb   :  { %19221 = vmatprep.mubr.msk.f32.mxu0 %vm26_vm1, %v27651_v43  ;;  %v5155_v43 = vld [vmem:[#allocation2 + $0xb0] sm:$0xff] }
 0x2ce   :  { %19222 = vmatmul.mubr.msk.f32.gmra.mrb[16].mxu0 %vm26_vm1, %v27652_v44  ;;  %v5156_v44 = vld [vmem:[#allocation2 + $0xc0] sm:$0xff] }
 0x2cf   :  { %19224 = vmatprep.mubr.msk.f32.mxu0 %vm26_vm1, %v27653_v45  ;;  %v5157_v45 = vld [vmem:[#allocation2 + $0xc8] sm:$0xff] }
 0x2d2   :  { %19225 = vmatmul.mubr.msk.f32.gmra.mrb[18].mxu0 %vm26_vm1, %v27654_v46  ;;  %v5158_v46 = vld [vmem:[#allocation2 + $0xd8] sm:$0xff] }
 0x2d3   :  { %19227 = vmatprep.mubr.msk.f32.mxu0 %vm26_vm1, %v27655_v48  ;;  %v5159_v48 = vld [vmem:[#allocation2 + $0xe0] sm:$0xff] }
 0x2d6   :  { %19228 = vmatmul.mubr.msk.f32.gmra.mrb[20].mxu0 %vm26_vm1, %v27656_v50  ;;  %v5160_v50 = vld [vmem:[#allocation2 + $0xf0] sm:$0xff] }
 0x2d7   :  { %19230 = vmatprep.mubr.msk.f32.mxu0 %vm26_vm1, %v27657_v51  ;;  %v5161_v51 = vld [vmem:[#allocation2 + $0xf8] sm:$0xff] }
 0x2da   :  { %19231 = vmatmul.mubr.msk.f32.gmra.mrb[22].mxu0 %vm26_vm1, %v27658_v52  ;;  %v5162_v52 = vld [vmem:[#allocation2 + $0x108] sm:$0xff] }
 0x2db   :  { %19233 = vmatprep.mubr.msk.f32.mxu0 %vm26_vm1, %v27659_v54  ;;  %v5163_v54 = vld [vmem:[#allocation2 + $0x110] sm:$0xff] }
 0x2de   :  { %19234 = vmatmul.mubr.msk.f32.gmra.mrb[24].mxu0 %vm26_vm1, %v27660_v55  ;;  %v5164_v55 = vld [vmem:[#allocation2 + $0x120] sm:$0xff] }
 0x2df   :  { %19236 = vmatprep.mubr.msk.f32.mxu0 %vm26_vm1, %v27661_v57  ;;  %v5165_v57 = vld [vmem:[#allocation2 + $0x128] sm:$0xff] }
 0x2e2   :  { %19237 = vmatmul.mubr.msk.f32.gmra.mrb[26].mxu0 %vm26_vm1, %v27662_v58  ;;  %v5166_v58 = vld [vmem:[#allocation2 + $0x138] sm:$0xff] }
 0x2e3   :  { %19239 = vmatprep.mubr.msk.f32.mxu0 %vm26_vm1, %v27663_v60  ;;  %v5167_v60 = vld [vmem:[#allocation2 + $0x140] sm:$0xff] }
 0x2e6   :  { %19240 = vmatmul.mubr.msk.f32.gmra.mrb[28].mxu0 %vm26_vm1, %v27664_v1  ;;  %v5168_v1 = vld [vmem:[#allocation2 + $0x150] sm:$0xff] }
 0x2e7   :  { %19242 = vmatprep.mubr.msk.f32.mxu0 %vm26_vm1, %v23083_v63 }
 0x2ea   :  { %19243 = vmatmul.mubr.msk.f32.gmra.mrb[30].mxu0 %vm26_vm1, %v23089_v2 }
 0x2eb   :  { %19245 = vmatprep.mubr.msk.f32.mxu0 %vm26_vm1, %v27665_v3  ;;  %v5169_v3 = vld [vmem:[#allocation2 + $0x158] sm:$0xff] }
 0x2ee   :  { %19246 = vmatmul.mubr.msk.f32.gmra.mrb[32].mxu0 %vm26_vm1, %v27666_v4  ;;  %v5170_v4 = vld [vmem:[#allocation2 + $0x168] sm:$0xff] }
 0x2ef   :  { %19248 = vmatprep.mubr.msk.f32.mxu0 %vm26_vm1, %v27667_v5  ;;  %v5171_v5 = vld [vmem:[#allocation2 + $0x170] sm:$0xff] }
 0x2f2   :  { %19249 = vmatmul.mubr.msk.f32.gmra.mrb[34].mxu0 %vm26_vm1, %v27668_v7  ;;  %v5174_v7 = vld [vmem:[#allocation2 + $0x198] sm:$0xff] }
 0x2f3   :  { %19251 = vmatprep.mubr.msk.f32.mxu0 %vm26_vm1, %v27669_v8  ;;  %v5175_v8 = vld [vmem:[#allocation2 + $0x1a0] sm:$0xff] }
 0x2f6   :  { %19252 = vmatmul.mubr.msk.f32.gmra.mrb[36].mxu0 %vm26_vm1, %v27670_v10  ;;  %v5176_v10 = vld [vmem:[#allocation2 + $0x1e0] sm:$0xff] }
 0x2f7   :  { %19254 = vmatprep.mubr.msk.f32.mxu0 %vm26_vm1, %v27671_v11  ;;  %v5177_v11 = vld [vmem:[#allocation2 + $0x1e8] sm:$0xff] }
 0x2fa   :  { %19255 = vmatmul.mubr.msk.f32.gmra.mrb[38].mxu0 %vm26_vm1, %v27672_v14  ;;  %v5178_v14 = vld [vmem:[#allocation2 + $0x1f8] sm:$0xff] }
 0x2fb   :  { %19257 = vmatprep.mubr.msk.f32.mxu0 %vm26_vm1, %v27673_v15  ;;  %v5179_v15 = vld [vmem:[#allocation2 + $0x200] sm:$0xff] }
 0x2fe   :  { %19258 = vmatmul.mubr.msk.f32.gmra.mrb[40].mxu0 %vm26_vm1, %v27674_v13  ;;  %v5182_v13 = vld [vmem:[#allocation2 + $0x228] sm:$0xff] }
 0x2ff   :  { %19260 = vmatprep.mubr.msk.f32.mxu0 %vm26_vm1, %v27675_v32  ;;  %v5183_v32 = vld [vmem:[#allocation2 + $0x230] sm:$0xff] }
 0x302   :  { %19261 = vmatmul.mubr.msk.f32.gmra.mrb[42].mxu0 %vm26_vm1, %v27676_v41  ;;  %v5184_v41 = vld [vmem:[#allocation2 + $0x240] sm:$0xff] }
 0x303   :  { %19263 = vmatprep.mubr.msk.f32.mxu0 %vm26_vm1, %v27677_v56  ;;  %v5185_v56 = vld [vmem:[#allocation2 + $0x248] sm:$0xff] }
 0x306   :  { %19264 = vmatmul.mubr.msk.f32.gmra.mrb[44].mxu0 %vm26_vm1, %v27678_v61  ;;  %v5186_v61 = vld [vmem:[#allocation2 + $0x258] sm:$0xff] }
 0x307   :  { %19266 = vmatprep.mubr.msk.f32.mxu0 %vm26_vm1, %v27679_v62  ;;  %v5187_v62 = vld [vmem:[#allocation2 + $0x260] sm:$0xff] }
 0x30a   :  { %19267 = vmatmul.mubr.msk.f32.gmra.mrb[46].mxu0 %vm26_vm1, %v27680_v0  ;;  %v5188_v0 = vld [vmem:[#allocation2 + $0x270] sm:$0xff] }
 0x30b   :  { %19269 = vmatprep.mubr.msk.f32.mxu0 %vm26_vm1, %v27681_v6  ;;  %v5189_v6 = vld [vmem:[#allocation2 + $0x278] sm:$0xff] }
 0x30e   :  { %19270 = vmatmul.mubr.msk.f32.gmra.mrb[48].mxu0 %vm26_vm1, %v27682_v9  ;;  %v5190_v9 = vld [vmem:[#allocation2 + $0x288] sm:$0xff] }
 0x30f   :  { %19272 = vmatprep.mubr.msk.f32.mxu0 %vm26_vm1, %v27683_v18  ;;  %v5191_v18 = vld [vmem:[#allocation2 + $0x290] sm:$0xff] }
 0x312   :  { %19273 = vmatmul.mubr.msk.f32.gmra.mrb[50].mxu0 %vm26_vm1, %v27684_v20  ;;  %v5192_v20 = vld [vmem:[#allocation2 + $0x2a0] sm:$0xff] }
 0x313   :  { %19275 = vmatprep.mubr.msk.f32.mxu0 %vm26_vm1, %v27685_v22  ;;  %v5193_v22 = vld [vmem:[#allocation2 + $0x2a8] sm:$0xff] }
 0x316   :  { %19276 = vmatmul.mubr.msk.f32.gmra.mrb[52].mxu0 %vm26_vm1, %v27686_v23  ;;  %v5194_v23 = vld [vmem:[#allocation2 + $0x2b8] sm:$0xff] }
 0x317   :  { %19278 = vmatprep.mubr.msk.f32.mxu0 %vm26_vm1, %v27687_v24  ;;  %v5195_v24 = vld [vmem:[#allocation2 + $0x2c0] sm:$0xff] }
 0x31a   :  { %19279 = vmatmul.mubr.msk.f32.gmra.mrb[54].mxu0 %vm26_vm1, %v27688_v25  ;;  %v5196_v25 = vld [vmem:[#allocation2 + $0x2d0] sm:$0xff] }
 0x31b   :  { %19281 = vmatprep.mubr.msk.f32.mxu0 %vm26_vm1, %v27689_v26  ;;  %v5197_v26 = vld [vmem:[#allocation2 + $0x2d8] sm:$0xff] }
 0x31e   :  { %19282 = vmatmul.mubr.msk.f32.gmra.mrb[56].mxu0 %vm26_vm1, %v22700_v35  ;;  %v5144_v35 = vld [vmem:[#allocation2 + $0x30] sm:$0xff] }
 0x31f   :  { %19284 = vmatprep.mubr.msk.f32.mxu0 %vm26_vm1, %v27690_v27  ;;  %v5198_v27 = vld [vmem:[#allocation2 + $0x2e8] sm:$0xff] }
 0x322   :  { %19285 = vmatmul.mubr.msk.f32.gmra.mrb[58].mxu0 %vm26_vm1, %v22716_v12  ;;  %v5145_v12 = vld [vmem:[#allocation2 + $0x38] sm:$0xff] }
 0x323   :  { %19287 = vmatprep.mubr.msk.f32.mxu0 %vm26_vm1, %v22718_v36  ;;  %v23165_v36 = vld [vmem:[%s27132_s1 + $0x20] sm:$0xf] }
 0x326   :  { %19288 = vmatmul.mubr.msk.f32.gmra.mrb[60].mxu0 %vm26_vm1, %v22724_v16  ;;  %v5147_v16 = vld [vmem:[#allocation2 + $0x50] sm:$0xff] }
 0x327   :  { %19290 = vmatprep.mubr.msk.f32.mxu0 %vm26_vm1, %v23151_v28 }
 0x32a   :  { %19291 = vmatmul.mubr.msk.f32.gmra.mrb[62].mxu0 %vm26_vm1, %v23157_v59 }
 0x32b   :  { %19295 = vmatprep.mubr.msk.f32.mxu0 %vm26_vm1, %v5144_v35  ;;  %v5199_v35 = vld [vmem:[#allocation2 + $0x2f0] sm:$0xff] }
 0x32e   :  { %19296 = vmatmul.mubr.msk.f32.vlgmr.msra.gmra.mrb[0].mxu0 %vm26_vm1, %v5145_v12  ;;  %v5200_v12 = vld [vmem:[#allocation2 + $0x300] sm:$0xff] }
 0x32f   :  { %19392 = vmatpush3.msk.msra.mxu0 %vm500_vm0, %v23021_v21  ;;  %19298 = vmatprep.mubr.msk.f32.mxu0 %vm26_vm1, %v5146_v31  ;;  %v5153_v21 = vld [vmem:[#allocation2 + $0x98] sm:$0xff]  ;;  %v5201_v31 = vld [vmem:[#allocation2 + $0x308] sm:$0xff] }
 0x330   :  { %19489 = vmatprep.subr.msk.mxu0 %vm500_vm0, %v23165_v36 }
 0x332   :  { %19299 = vmatmul.mubr.msk.f32.gmra.mrb[2].mxu0 %vm26_vm1, %v5147_v16  ;;  %v5202_v16 = vld [vmem:[#allocation2 + $0x318] sm:$0xff] }
 0x333   :  { %19301 = vmatprep.mubr.msk.f32.mxu0 %vm26_vm1, %v5148_v33  ;;  %v5203_v33 = vld [vmem:[#allocation2 + $0x320] sm:$0xff] }
 0x336   :  { %19302 = vmatmul.mubr.msk.f32.gmra.mrb[4].mxu0 %vm26_vm1, %v5149_v34  ;;  %v5206_v34 = vld [vmem:[#allocation2 + $0x348] sm:$0xff] }
 0x337   :  { %19304 = vmatprep.mubr.msk.f32.mxu0 %vm26_vm1, %v5150_v37  ;;  %v5207_v37 = vld [vmem:[#allocation2 + $0x350] sm:$0xff] }
 0x33a   :  { %19305 = vmatmul.mubr.msk.f32.gmra.mrb[6].mxu0 %vm26_vm1, %v5151_v39  ;;  %v5982_v39 = vld [vmem:[#allocation2 + $0x31] sm:$0xff] }
 0x33b   :  { %19307 = vmatprep.mubr.msk.f32.mxu0 %vm26_vm1, %v5152_v40  ;;  %v5983_v40 = vld [vmem:[#allocation2 + $0x39] sm:$0xff] }
 0x33e   :  { %19308 = vmatmul.mubr.msk.f32.gmra.mrb[8].mxu0 %vm26_vm1, %v5153_v21  ;;  %v5984_v21 = vld [vmem:[#allocation2 + $0x49] sm:$0xff] }
 0x33f   :  { %19310 = vmatprep.mubr.msk.f32.mxu0 %vm26_vm1, %v5154_v42  ;;  %v5986_v42 = vld [vmem:[#allocation2 + $0x61] sm:$0xff] }
 0x342   :  { %19311 = vmatmul.mubr.msk.f32.gmra.mrb[10].mxu0 %vm26_vm1, %v5155_v43  ;;  %v5988_v43 = vld [vmem:[#allocation2 + $0x79] sm:$0xff] }
 0x343   :  { %19313 = vmatprep.mubr.msk.f32.mxu0 %vm26_vm1, %v5156_v44  ;;  %v5989_v44 = vld [vmem:[#allocation2 + $0x81] sm:$0xff] }
 0x346   :  { %19314 = vmatmul.mubr.msk.f32.gmra.mrb[12].mxu0 %vm26_vm1, %v5157_v45  ;;  %v5990_v45 = vld [vmem:[#allocation2 + $0x91] sm:$0xff] }
 0x347   :  { %19316 = vmatprep.mubr.msk.f32.mxu0 %vm26_vm1, %v5158_v46  ;;  %v5992_v46 = vld [vmem:[#allocation2 + $0xa9] sm:$0xff] }
 0x34a   :  { %19317 = vmatmul.mubr.msk.f32.gmra.mrb[14].mxu0 %vm26_vm1, %v5159_v48  ;;  %v5993_v48 = vld [vmem:[#allocation2 + $0xb1] sm:$0xff] }
 0x34b   :  { %19319 = vmatprep.mubr.msk.f32.mxu0 %vm26_vm1, %v5160_v50  ;;  %v5994_v50 = vld [vmem:[#allocation2 + $0xc1] sm:$0xff] }
 0x34e   :  { %19320 = vmatmul.mubr.msk.f32.gmra.mrb[16].mxu0 %vm26_vm1, %v5161_v51  ;;  %v5995_v51 = vld [vmem:[#allocation2 + $0xc9] sm:$0xff] }
 0x34f   :  { %19322 = vmatprep.mubr.msk.f32.mxu0 %vm26_vm1, %v5162_v52  ;;  %v5996_v52 = vld [vmem:[#allocation2 + $0xd9] sm:$0xff] }
 0x352   :  { %19323 = vmatmul.mubr.msk.f32.gmra.mrb[18].mxu0 %vm26_vm1, %v5163_v54  ;;  %v5997_v54 = vld [vmem:[#allocation2 + $0xe1] sm:$0xff] }
 0x353   :  { %19325 = vmatprep.mubr.msk.f32.mxu0 %vm26_vm1, %v5164_v55  ;;  %v5998_v55 = vld [vmem:[#allocation2 + $0xf1] sm:$0xff] }
 0x356   :  { %19326 = vmatmul.mubr.msk.f32.gmra.mrb[20].mxu0 %vm26_vm1, %v5165_v57  ;;  %v5999_v57 = vld [vmem:[#allocation2 + $0xf9] sm:$0xff] }
 0x357   :  { %19328 = vmatprep.mubr.msk.f32.mxu0 %vm26_vm1, %v5166_v58  ;;  %v6000_v58 = vld [vmem:[#allocation2 + $0x109] sm:$0xff] }
 0x35a   :  { %19329 = vmatmul.mubr.msk.f32.gmra.mrb[22].mxu0 %vm26_vm1, %v5167_v60  ;;  %v6001_v60 = vld [vmem:[#allocation2 + $0x111] sm:$0xff] }
 0x35b   :  { %19331 = vmatprep.mubr.msk.f32.mxu0 %vm26_vm1, %v5168_v1  ;;  %v6002_v1 = vld [vmem:[#allocation2 + $0x121] sm:$0xff] }
 0x35e   :  { %19332 = vmatmul.mubr.msk.f32.gmra.mrb[24].mxu0 %vm26_vm1, %v5169_v3  ;;  %v6003_v3 = vld [vmem:[#allocation2 + $0x129] sm:$0xff] }
 0x35f   :  { %19334 = vmatprep.mubr.msk.f32.mxu0 %vm26_vm1, %v5170_v4  ;;  %v6004_v4 = vld [vmem:[#allocation2 + $0x139] sm:$0xff] }
 0x362   :  { %19335 = vmatmul.mubr.msk.f32.gmra.mrb[26].mxu0 %vm26_vm1, %v5171_v5  ;;  %v6005_v5 = vld [vmem:[#allocation2 + $0x141] sm:$0xff] }
 0x363   :  { %19337 = vmatprep.mubr.msk.f32.mxu0 %vm26_vm1, %v22793_v29  ;;  %v5180_v29 = vld [vmem:[#allocation2 + $0x210] sm:$0xff] }
 0x366   :  { %19338 = vmatmul.mubr.msk.f32.gmra.mrb[28].mxu0 %vm26_vm1, %v22799_v30  ;;  %v5181_v30 = vld [vmem:[#allocation2 + $0x218] sm:$0xff] }
 0x367   :  { %19340 = vmatprep.mubr.msk.f32.mxu0 %vm26_vm1, %v5174_v7  ;;  %v6006_v7 = vld [vmem:[#allocation2 + $0x151] sm:$0xff] }
 0x36a   :  { %19341 = vmatmul.mubr.msk.f32.gmra.mrb[30].mxu0 %vm26_vm1, %v5175_v8  ;;  %v6007_v8 = vld [vmem:[#allocation2 + $0x159] sm:$0xff] }
 0x36b   :  { %19343 = vmatprep.mubr.msk.f32.mxu0 %vm26_vm1, %v5176_v10  ;;  %v6008_v10 = vld [vmem:[#allocation2 + $0x169] sm:$0xff] }
 0x36e   :  { %19344 = vmatmul.mubr.msk.f32.gmra.mrb[32].mxu0 %vm26_vm1, %v5177_v11  ;;  %v6009_v11 = vld [vmem:[#allocation2 + $0x171] sm:$0xff] }
 0x36f   :  { %19346 = vmatprep.mubr.msk.f32.mxu0 %vm26_vm1, %v5178_v14  ;;  %v6012_v14 = vld [vmem:[#allocation2 + $0x199] sm:$0xff] }
 0x372   :  { %19347 = vmatmul.mubr.msk.f32.gmra.mrb[34].mxu0 %vm26_vm1, %v5179_v15  ;;  %v6013_v15 = vld [vmem:[#allocation2 + $0x1a1] sm:$0xff] }
 0x373   :  { %19349 = vmatprep.mubr.msk.f32.mxu0 %vm26_vm1, %v5180_v29  ;;  %v6014_v29 = vld [vmem:[#allocation2 + $0x1e1] sm:$0xff] }
 0x376   :  { %19350 = vmatmul.mubr.msk.f32.gmra.mrb[36].mxu0 %vm26_vm1, %v5181_v30  ;;  %v6015_v30 = vld [vmem:[#allocation2 + $0x1e9] sm:$0xff] }
 0x377   :  { %19352 = vmatprep.mubr.msk.f32.mxu0 %vm26_vm1, %v5182_v13  ;;  %v6016_v13 = vld [vmem:[#allocation2 + $0x1f9] sm:$0xff] }
 0x37a   :  { %19353 = vmatmul.mubr.msk.f32.gmra.mrb[38].mxu0 %vm26_vm1, %v5183_v32  ;;  %v6017_v32 = vld [vmem:[#allocation2 + $0x201] sm:$0xff] }
 0x37b   :  { %19355 = vmatprep.mubr.msk.f32.mxu0 %vm26_vm1, %v5184_v41  ;;  %v6020_v41 = vld [vmem:[#allocation2 + $0x229] sm:$0xff] }
 0x37e   :  { %19356 = vmatmul.mubr.msk.f32.gmra.mrb[40].mxu0 %vm26_vm1, %v5185_v56  ;;  %v6021_v56 = vld [vmem:[#allocation2 + $0x231] sm:$0xff] }
 0x37f   :  { %19358 = vmatprep.mubr.msk.f32.mxu0 %vm26_vm1, %v5186_v61  ;;  %v6022_v61 = vld [vmem:[#allocation2 + $0x241] sm:$0xff] }
 0x382   :  { %19359 = vmatmul.mubr.msk.f32.gmra.mrb[42].mxu0 %vm26_vm1, %v5187_v62  ;;  %v6023_v62 = vld [vmem:[#allocation2 + $0x249] sm:$0xff] }
 0x383   :  { %19361 = vmatprep.mubr.msk.f32.mxu0 %vm26_vm1, %v5188_v0  ;;  %v6024_v0 = vld [vmem:[#allocation2 + $0x259] sm:$0xff] }
 0x386   :  { %19362 = vmatmul.mubr.msk.f32.gmra.mrb[44].mxu0 %vm26_vm1, %v5189_v6  ;;  %v6025_v6 = vld [vmem:[#allocation2 + $0x261] sm:$0xff] }
 0x387   :  { %19364 = vmatprep.mubr.msk.f32.mxu0 %vm26_vm1, %v5190_v9  ;;  %v6026_v9 = vld [vmem:[#allocation2 + $0x271] sm:$0xff] }
 0x38a   :  { %19365 = vmatmul.mubr.msk.f32.gmra.mrb[46].mxu0 %vm26_vm1, %v5191_v18  ;;  %v6027_v18 = vld [vmem:[#allocation2 + $0x279] sm:$0xff] }
 0x38b   :  { %19367 = vmatprep.mubr.msk.f32.mxu0 %vm26_vm1, %v5192_v20  ;;  %v6028_v20 = vld [vmem:[#allocation2 + $0x289] sm:$0xff] }
 0x38e   :  { %19368 = vmatmul.mubr.msk.f32.gmra.mrb[48].mxu0 %vm26_vm1, %v5193_v22  ;;  %v6029_v22 = vld [vmem:[#allocation2 + $0x291] sm:$0xff] }
 0x38f   :  { %19370 = vmatprep.mubr.msk.f32.mxu0 %vm26_vm1, %v5194_v23  ;;  %v6030_v23 = vld [vmem:[#allocation2 + $0x2a1] sm:$0xff] }
 0x392   :  { %19371 = vmatmul.mubr.msk.f32.gmra.mrb[50].mxu0 %vm26_vm1, %v5195_v24  ;;  %v6031_v24 = vld [vmem:[#allocation2 + $0x2a9] sm:$0xff] }
 0x393   :  { %19373 = vmatprep.mubr.msk.f32.mxu0 %vm26_vm1, %v5196_v25  ;;  %v6032_v25 = vld [vmem:[#allocation2 + $0x2b9] sm:$0xff] }
 0x396   :  { %19374 = vmatmul.mubr.msk.f32.gmra.mrb[52].mxu0 %vm26_vm1, %v5197_v26  ;;  %v6033_v26 = vld [vmem:[#allocation2 + $0x2c1] sm:$0xff] }
 0x397   :  { %19376 = vmatprep.mubr.msk.f32.mxu0 %vm26_vm1, %v5198_v27  ;;  %v6034_v27 = vld [vmem:[#allocation2 + $0x2d1] sm:$0xff] }
 0x39a   :  { %19377 = vmatmul.mubr.msk.f32.gmra.mrb[54].mxu0 %vm26_vm1, %v5199_v35  ;;  %v6035_v35 = vld [vmem:[#allocation2 + $0x2d9] sm:$0xff] }
 0x39b   :  { %19379 = vmatprep.mubr.msk.f32.mxu0 %vm26_vm1, %v5200_v12  ;;  %v6036_v12 = vld [vmem:[#allocation2 + $0x2e9] sm:$0xff] }
 0x39e   :  { %19380 = vmatmul.mubr.msk.f32.gmra.mrb[56].mxu0 %vm26_vm1, %v5201_v31  ;;  %v6037_v31 = vld [vmem:[#allocation2 + $0x2f1] sm:$0xff] }
 0x39f   :  { %19382 = vmatprep.mubr.msk.f32.mxu0 %vm26_vm1, %v5202_v16  ;;  %v6038_v16 = vld [vmem:[#allocation2 + $0x301] sm:$0xff] }
 0x3a2   :  { %19383 = vmatmul.mubr.msk.f32.gmra.mrb[58].mxu0 %vm26_vm1, %v5203_v33  ;;  %v6039_v33 = vld [vmem:[#allocation2 + $0x309] sm:$0xff] }
 0x3a3   :  { %19385 = vmatprep.mubr.msk.f32.mxu0 %vm26_vm1, %v22861_v38  ;;  %v5985_v38 = vld [vmem:[#allocation2 + $0x51] sm:$0xff] }
 0x3a6   :  { %19386 = vmatmul.mubr.msk.f32.gmra.mrb[60].mxu0 %vm26_vm1, %v22867_v53  ;;  %v5987_v53 = vld [vmem:[#allocation2 + $0x69] sm:$0xff] }
 0x3a7   :  { %19388 = vmatprep.mubr.msk.f32.mxu0 %vm26_vm1, %v5206_v34  ;;  %v6040_v34 = vld [vmem:[#allocation2 + $0x319] sm:$0xff] }
 0x3aa   :  { %19389 = vmatmul.mubr.msk.f32.gmra.mrb[62].mxu0 %vm26_vm1, %v5207_v37  ;;  %v6041_v37 = vld [vmem:[#allocation2 + $0x321] sm:$0xff] }
 0x3ab   :  { %19393 = vmatprep.mubr.msk.f32.mxu0 %vm26_vm1, %v5982_v39  ;;  %v6044_v39 = vld [vmem:[#allocation2 + $0x349] sm:$0xff] }
 0x3ae   :  { %19394 = vmatmul.mubr.msk.f32.vlgmr.msra.gmra.mrb[0].mxu0 %vm26_vm1, %v5983_v40  ;;  %v6045_v40 = vld [vmem:[#allocation2 + $0x351] sm:$0xff] }
 0x3af   :  { %19490 = vmatpush3.msk.msra.mxu0 %vm500_vm0, %v23165_v36  ;;  %19396 = vmatprep.mubr.msk.f32.mxu0 %vm26_vm1, %v5984_v21  ;;  %v5991_v36 = vld [vmem:[#allocation2 + $0x99] sm:$0xff] }
 0x3b0   :  { %v6820_v21 = vld [vmem:[#allocation2 + $0x32] sm:$0xff] }
 0x3b2   :  { %19397 = vmatmul.mubr.msk.f32.gmra.mrb[2].mxu0 %vm26_vm1, %v5985_v38  ;;  %v6821_v38 = vld [vmem:[#allocation2 + $0x3a] sm:$0xff] }
 0x3b3   :  { %19399 = vmatprep.mubr.msk.f32.mxu0 %vm26_vm1, %v5986_v42  ;;  %v6822_v42 = vld [vmem:[#allocation2 + $0x4a] sm:$0xff] }
 0x3b6   :  { %19400 = vmatmul.mubr.msk.f32.gmra.mrb[4].mxu0 %vm26_vm1, %v5987_v53  ;;  %v6823_v53 = vld [vmem:[#allocation2 + $0x52] sm:$0xff] }
 0x3b7   :  { %19402 = vmatprep.mubr.msk.f32.mxu0 %vm26_vm1, %v5988_v43  ;;  %v6826_v43 = vld [vmem:[#allocation2 + $0x7a] sm:$0xff] }
 0x3ba   :  { %19403 = vmatmul.mubr.msk.f32.gmra.mrb[6].mxu0 %vm26_vm1, %v5989_v44  ;;  %v6827_v44 = vld [vmem:[#allocation2 + $0x82] sm:$0xff] }
 0x3bb   :  { %19405 = vmatprep.mubr.msk.f32.mxu0 %vm26_vm1, %v5990_v45  ;;  %v6828_v45 = vld [vmem:[#allocation2 + $0x92] sm:$0xff] }
 0x3be   :  { %19406 = vmatmul.mubr.msk.f32.gmra.mrb[8].mxu0 %vm26_vm1, %v5991_v36  ;;  %v6829_v36 = vld [vmem:[#allocation2 + $0x9a] sm:$0xff] }
 0x3bf   :  { %19408 = vmatprep.mubr.msk.f32.mxu0 %vm26_vm1, %v5992_v46  ;;  %v6830_v46 = vld [vmem:[#allocation2 + $0xaa] sm:$0xff] }
 0x3c2   :  { %19409 = vmatmul.mubr.msk.f32.gmra.mrb[10].mxu0 %vm26_vm1, %v5993_v48  ;;  %v6831_v48 = vld [vmem:[#allocation2 + $0xb2] sm:$0xff] }
 0x3c3   :  { %19411 = vmatprep.mubr.msk.f32.mxu0 %vm26_vm1, %v5994_v50  ;;  %v6832_v50 = vld [vmem:[#allocation2 + $0xc2] sm:$0xff] }
 0x3c6   :  { %19412 = vmatmul.mubr.msk.f32.gmra.mrb[12].mxu0 %vm26_vm1, %v5995_v51  ;;  %v6833_v51 = vld [vmem:[#allocation2 + $0xca] sm:$0xff] }
 0x3c7   :  { %19414 = vmatprep.mubr.msk.f32.mxu0 %vm26_vm1, %v5996_v52  ;;  %v6834_v52 = vld [vmem:[#allocation2 + $0xda] sm:$0xff] }
 0x3ca   :  { %19415 = vmatmul.mubr.msk.f32.gmra.mrb[14].mxu0 %vm26_vm1, %v5997_v54  ;;  %v6835_v54 = vld [vmem:[#allocation2 + $0xe2] sm:$0xff] }
 0x3cb   :  { %19417 = vmatprep.mubr.msk.f32.mxu0 %vm26_vm1, %v5998_v55  ;;  %v6836_v55 = vld [vmem:[#allocation2 + $0xf2] sm:$0xff] }
 0x3ce   :  { %19418 = vmatmul.mubr.msk.f32.gmra.mrb[16].mxu0 %vm26_vm1, %v5999_v57  ;;  %v6837_v57 = vld [vmem:[#allocation2 + $0xfa] sm:$0xff] }
 0x3cf   :  { %19420 = vmatprep.mubr.msk.f32.mxu0 %vm26_vm1, %v6000_v58  ;;  %v6838_v58 = vld [vmem:[#allocation2 + $0x10a] sm:$0xff] }
 0x3d2   :  { %19421 = vmatmul.mubr.msk.f32.gmra.mrb[18].mxu0 %vm26_vm1, %v6001_v60  ;;  %v6839_v60 = vld [vmem:[#allocation2 + $0x112] sm:$0xff] }
 0x3d3   :  { %19423 = vmatprep.mubr.msk.f32.mxu0 %vm26_vm1, %v6002_v1  ;;  %v6840_v1 = vld [vmem:[#allocation2 + $0x122] sm:$0xff] }
 0x3d6   :  { %19424 = vmatmul.mubr.msk.f32.gmra.mrb[20].mxu0 %vm26_vm1, %v6003_v3  ;;  %v6841_v3 = vld [vmem:[#allocation2 + $0x12a] sm:$0xff] }
 0x3d7   :  { %19426 = vmatprep.mubr.msk.f32.mxu0 %vm26_vm1, %v6004_v4  ;;  %v6842_v4 = vld [vmem:[#allocation2 + $0x13a] sm:$0xff] }
 0x3da   :  { %19427 = vmatmul.mubr.msk.f32.gmra.mrb[22].mxu0 %vm26_vm1, %v6005_v5  ;;  %v6843_v5 = vld [vmem:[#allocation2 + $0x142] sm:$0xff] }
 0x3db   :  { %19429 = vmatprep.mubr.msk.f32.mxu0 %vm26_vm1, %v6006_v7  ;;  %v6844_v7 = vld [vmem:[#allocation2 + $0x152] sm:$0xff] }
 0x3de   :  { %19430 = vmatmul.mubr.msk.f32.gmra.mrb[24].mxu0 %vm26_vm1, %v6007_v8  ;;  %v6845_v8 = vld [vmem:[#allocation2 + $0x15a] sm:$0xff] }
 0x3df   :  { %19432 = vmatprep.mubr.msk.f32.mxu0 %vm26_vm1, %v6008_v10  ;;  %v6846_v10 = vld [vmem:[#allocation2 + $0x16a] sm:$0xff] }
 0x3e2   :  { %19433 = vmatmul.mubr.msk.f32.gmra.mrb[26].mxu0 %vm26_vm1, %v6009_v11  ;;  %v6847_v11 = vld [vmem:[#allocation2 + $0x172] sm:$0xff] }
 0x3e3   :  { %19435 = vmatprep.mubr.msk.f32.mxu0 %vm26_vm1, %v22938_v47  ;;  %v6018_v47 = vld [vmem:[#allocation2 + $0x211] sm:$0xff] }
 0x3e6   :  { %19436 = vmatmul.mubr.msk.f32.gmra.mrb[28].mxu0 %vm26_vm1, %v22944_v49  ;;  %v6019_v49 = vld [vmem:[#allocation2 + $0x219] sm:$0xff] }
 0x3e7   :  { %19438 = vmatprep.mubr.msk.f32.mxu0 %vm26_vm1, %v6012_v14  ;;  %v6850_v14 = vld [vmem:[#allocation2 + $0x19a] sm:$0xff] }
 0x3ea   :  { %19439 = vmatmul.mubr.msk.f32.gmra.mrb[30].mxu0 %vm26_vm1, %v6013_v15  ;;  %v6851_v15 = vld [vmem:[#allocation2 + $0x1a2] sm:$0xff] }
 0x3eb   :  { %19441 = vmatprep.mubr.msk.f32.mxu0 %vm26_vm1, %v6014_v29  ;;  %v6852_v29 = vld [vmem:[#allocation2 + $0x1e2] sm:$0xff] }
 0x3ee   :  { %19442 = vmatmul.mubr.msk.f32.gmra.mrb[32].mxu0 %vm26_vm1, %v6015_v30  ;;  %v6853_v30 = vld [vmem:[#allocation2 + $0x1ea] sm:$0xff] }
 0x3ef   :  { %19444 = vmatprep.mubr.msk.f32.mxu0 %vm26_vm1, %v6016_v13  ;;  %v6854_v13 = vld [vmem:[#allocation2 + $0x1fa] sm:$0xff] }
 0x3f2   :  { %19445 = vmatmul.mubr.msk.f32.gmra.mrb[34].mxu0 %vm26_vm1, %v6017_v32  ;;  %v6855_v32 = vld [vmem:[#allocation2 + $0x202] sm:$0xff] }
 0x3f3   :  { %19447 = vmatprep.mubr.msk.f32.mxu0 %vm26_vm1, %v6018_v47  ;;  %v6858_v47 = vld [vmem:[#allocation2 + $0x22a] sm:$0xff] }
 0x3f6   :  { %19448 = vmatmul.mubr.msk.f32.gmra.mrb[36].mxu0 %vm26_vm1, %v6019_v49  ;;  %v6859_v49 = vld [vmem:[#allocation2 + $0x232] sm:$0xff] }
 0x3f7   :  { %19450 = vmatprep.mubr.msk.f32.mxu0 %vm26_vm1, %v6020_v41  ;;  %v6860_v41 = vld [vmem:[#allocation2 + $0x242] sm:$0xff] }
 0x3fa   :  { %19451 = vmatmul.mubr.msk.f32.gmra.mrb[38].mxu0 %vm26_vm1, %v6021_v56  ;;  %v6861_v56 = vld [vmem:[#allocation2 + $0x24a] sm:$0xff] }
 0x3fb   :  { %19453 = vmatprep.mubr.msk.f32.mxu0 %vm26_vm1, %v6022_v61  ;;  %v6862_v61 = vld [vmem:[#allocation2 + $0x25a] sm:$0xff] }
 0x3fe   :  { %19454 = vmatmul.mubr.msk.f32.gmra.mrb[40].mxu0 %vm26_vm1, %v6023_v62  ;;  %v6863_v62 = vld [vmem:[#allocation2 + $0x262] sm:$0xff] }
 0x3ff   :  { %19456 = vmatprep.mubr.msk.f32.mxu0 %vm26_vm1, %v6024_v0  ;;  %v6864_v0 = vld [vmem:[#allocation2 + $0x272] sm:$0xff] }
 0x402   :  { %19457 = vmatmul.mubr.msk.f32.gmra.mrb[42].mxu0 %vm26_vm1, %v6025_v6  ;;  %v6865_v6 = vld [vmem:[#allocation2 + $0x27a] sm:$0xff] }
 0x403   :  { %19459 = vmatprep.mubr.msk.f32.mxu0 %vm26_vm1, %v6026_v9  ;;  %v6866_v9 = vld [vmem:[#allocation2 + $0x28a] sm:$0xff] }
 0x406   :  { %19460 = vmatmul.mubr.msk.f32.gmra.mrb[44].mxu0 %vm26_vm1, %v6027_v18  ;;  %v6867_v18 = vld [vmem:[#allocation2 + $0x292] sm:$0xff] }
 0x407   :  { %19462 = vmatprep.mubr.msk.f32.mxu0 %vm26_vm1, %v6028_v20  ;;  %v6868_v20 = vld [vmem:[#allocation2 + $0x2a2] sm:$0xff] }
 0x40a   :  { %19463 = vmatmul.mubr.msk.f32.gmra.mrb[46].mxu0 %vm26_vm1, %v6029_v22  ;;  %v6869_v22 = vld [vmem:[#allocation2 + $0x2aa] sm:$0xff] }
 0x40b   :  { %19465 = vmatprep.mubr.msk.f32.mxu0 %vm26_vm1, %v6030_v23  ;;  %v6870_v23 = vld [vmem:[#allocation2 + $0x2ba] sm:$0xff] }
 0x40e   :  { %19466 = vmatmul.mubr.msk.f32.gmra.mrb[48].mxu0 %vm26_vm1, %v6031_v24  ;;  %v6871_v24 = vld [vmem:[#allocation2 + $0x2c2] sm:$0xff] }
 0x40f   :  { %19468 = vmatprep.mubr.msk.f32.mxu0 %vm26_vm1, %v6032_v25  ;;  %v6872_v25 = vld [vmem:[#allocation2 + $0x2d2] sm:$0xff] }
 0x412   :  { %19469 = vmatmul.mubr.msk.f32.gmra.mrb[50].mxu0 %vm26_vm1, %v6033_v26  ;;  %v6873_v26 = vld [vmem:[#allocation2 + $0x2da] sm:$0xff] }
 0x413   :  { %19471 = vmatprep.mubr.msk.f32.mxu0 %vm26_vm1, %v6034_v27  ;;  %v6874_v27 = vld [vmem:[#allocation2 + $0x2ea] sm:$0xff] }
 0x416   :  { %19472 = vmatmul.mubr.msk.f32.gmra.mrb[52].mxu0 %vm26_vm1, %v6035_v35  ;;  %v6875_v35 = vld [vmem:[#allocation2 + $0x2f2] sm:$0xff] }
 0x417   :  { %19474 = vmatprep.mubr.msk.f32.mxu0 %vm26_vm1, %v6036_v12  ;;  %v6876_v12 = vld [vmem:[#allocation2 + $0x302] sm:$0xff] }
 0x41a   :  { %19475 = vmatmul.mubr.msk.f32.gmra.mrb[54].mxu0 %vm26_vm1, %v6037_v31  ;;  %v6877_v31 = vld [vmem:[#allocation2 + $0x30a] sm:$0xff] }
 0x41b   :  { %19477 = vmatprep.mubr.msk.f32.mxu0 %vm26_vm1, %v6038_v16  ;;  %v6878_v16 = vld [vmem:[#allocation2 + $0x31a] sm:$0xff] }
 0x41e   :  { %19478 = vmatmul.mubr.msk.f32.gmra.mrb[56].mxu0 %vm26_vm1, %v6039_v33  ;;  %v6879_v33 = vld [vmem:[#allocation2 + $0x322] sm:$0xff] }
 0x41f   :  { %19480 = vmatprep.mubr.msk.f32.mxu0 %vm26_vm1, %v6040_v34  ;;  %v6882_v34 = vld [vmem:[#allocation2 + $0x34a] sm:$0xff] }
 0x422   :  { %19481 = vmatmul.mubr.msk.f32.gmra.mrb[58].mxu0 %vm26_vm1, %v6041_v37  ;;  %v6883_v37 = vld [vmem:[#allocation2 + $0x352] sm:$0xff] }
 0x423   :  { %19483 = vmatprep.mubr.msk.f32.mxu0 %vm26_vm1, %v23006_v17  ;;  %v6824_v17 = vld [vmem:[#allocation2 + $0x62] sm:$0xff] }
 0x426   :  { %19484 = vmatmul.mubr.msk.f32.gmra.mrb[60].mxu0 %vm26_vm1, %v23012_v19  ;;  %v6825_v19 = vld [vmem:[#allocation2 + $0x6a] sm:$0xff] }
 0x427   :  { %19486 = vmatprep.mubr.msk.f32.mxu0 %vm26_vm1, %v6044_v39 }
 0x42a   :  { %19487 = vmatmul.mubr.msk.f32.gmra.mrb[62].mxu0 %vm26_vm1, %v6045_v40 }
 0x42b   :  { %19491 = vmatprep.mubr.msk.f32.mxu0 %vm26_vm1, %v6820_v21 }
 0x42e   :  { %19492 = vmatmul.mubr.msk.f32.vlgmr.msra.gmra.mrb[0].mxu0 %vm26_vm1, %v6821_v38 }
 0x42f   :  { %19494 = vmatprep.mubr.msk.f32.mxu0 %vm26_vm1, %v6822_v42 }
 0x432   :  { %19495 = vmatmul.mubr.msk.f32.gmra.mrb[2].mxu0 %vm26_vm1, %v6823_v53 }
 0x433   :  { %19497 = vmatprep.mubr.msk.f32.mxu0 %vm26_vm1, %v6824_v17 }
 0x436   :  { %19498 = vmatmul.mubr.msk.f32.gmra.mrb[4].mxu0 %vm26_vm1, %v6825_v19 }
 0x437   :  { %19500 = vmatprep.mubr.msk.f32.mxu0 %vm26_vm1, %v6826_v43 }
 0x43a   :  { %19501 = vmatmul.mubr.msk.f32.gmra.mrb[6].mxu0 %vm26_vm1, %v6827_v44 }
 0x43b   :  { %19503 = vmatprep.mubr.msk.f32.mxu0 %vm26_vm1, %v6828_v45 }
 0x43e   :  { %19504 = vmatmul.mubr.msk.f32.gmra.mrb[8].mxu0 %vm26_vm1, %v6829_v36 }
 0x43f   :  { %19506 = vmatprep.mubr.msk.f32.mxu0 %vm26_vm1, %v6830_v46 }
 0x442   :  { %19507 = vmatmul.mubr.msk.f32.gmra.mrb[10].mxu0 %vm26_vm1, %v6831_v48 }
 0x443   :  { %19509 = vmatprep.mubr.msk.f32.mxu0 %vm26_vm1, %v6832_v50 }
 0x446   :  { %19510 = vmatmul.mubr.msk.f32.gmra.mrb[12].mxu0 %vm26_vm1, %v6833_v51 }
 0x447   :  { %19512 = vmatprep.mubr.msk.f32.mxu0 %vm26_vm1, %v6834_v52 }
 0x44a   :  { %19513 = vmatmul.mubr.msk.f32.gmra.mrb[14].mxu0 %vm26_vm1, %v6835_v54 }
 0x44b   :  { %19515 = vmatprep.mubr.msk.f32.mxu0 %vm26_vm1, %v6836_v55 }
 0x44e   :  { %19516 = vmatmul.mubr.msk.f32.gmra.mrb[16].mxu0 %vm26_vm1, %v6837_v57 }
 0x44f   :  { %19518 = vmatprep.mubr.msk.f32.mxu0 %vm26_vm1, %v6838_v58 }
 0x452   :  { %19519 = vmatmul.mubr.msk.f32.gmra.mrb[18].mxu0 %vm26_vm1, %v6839_v60 }
 0x453   :  { %19521 = vmatprep.mubr.msk.f32.mxu0 %vm26_vm1, %v6840_v1 }
 0x456   :  { %19522 = vmatmul.mubr.msk.f32.gmra.mrb[20].mxu0 %vm26_vm1, %v6841_v3 }
 0x457   :  { %19524 = vmatprep.mubr.msk.f32.mxu0 %vm26_vm1, %v6842_v4 }
 0x45a   :  { %19525 = vmatmul.mubr.msk.f32.gmra.mrb[22].mxu0 %vm26_vm1, %v6843_v5 }
 0x45b   :  { %19527 = vmatprep.mubr.msk.f32.mxu0 %vm26_vm1, %v6844_v7 }
 0x45e   :  { %19528 = vmatmul.mubr.msk.f32.gmra.mrb[24].mxu0 %vm26_vm1, %v6845_v8 }
 0x45f   :  { %19530 = vmatprep.mubr.msk.f32.mxu0 %vm26_vm1, %v6846_v10 }
 0x462   :  { %19531 = vmatmul.mubr.msk.f32.gmra.mrb[26].mxu0 %vm26_vm1, %v6847_v11 }
 0x463   :  { %19533 = vmatprep.mubr.msk.f32.mxu0 %vm26_vm1, %v23083_v63  ;;  %v6856_v63 = vld [vmem:[#allocation2 + $0x212] sm:$0xff] }
 0x466   :  { %19534 = vmatmul.mubr.msk.f32.gmra.mrb[28].mxu0 %vm26_vm1, %v23089_v2  ;;  %v6857_v2 = vld [vmem:[#allocation2 + $0x21a] sm:$0xff] }
 0x467   :  { %19536 = vmatprep.mubr.msk.f32.mxu0 %vm26_vm1, %v6850_v14 }
 0x46a   :  { %19537 = vmatmul.mubr.msk.f32.gmra.mrb[30].mxu0 %vm26_vm1, %v6851_v15 }
 0x46b   :  { %19539 = vmatprep.mubr.msk.f32.mxu0 %vm26_vm1, %v6852_v29 }
 0x46e   :  { %19540 = vmatmul.mubr.msk.f32.gmra.mrb[32].mxu0 %vm26_vm1, %v6853_v30 }
 0x46f   :  { %19542 = vmatprep.mubr.msk.f32.mxu0 %vm26_vm1, %v6854_v13 }
 0x472   :  { %19543 = vmatmul.mubr.msk.f32.gmra.mrb[34].mxu0 %vm26_vm1, %v6855_v32 }
 0x473   :  { %19545 = vmatprep.mubr.msk.f32.mxu0 %vm26_vm1, %v6856_v63 }
 0x476   :  { %19546 = vmatmul.mubr.msk.f32.gmra.mrb[36].mxu0 %vm26_vm1, %v6857_v2 }
 0x477   :  { %19548 = vmatprep.mubr.msk.f32.mxu0 %vm26_vm1, %v6858_v47 }
 0x47a   :  { %19549 = vmatmul.mubr.msk.f32.gmra.mrb[38].mxu0 %vm26_vm1, %v6859_v49 }
 0x47b   :  { %19551 = vmatprep.mubr.msk.f32.mxu0 %vm26_vm1, %v6860_v41 }
 0x47e   :  { %19552 = vmatmul.mubr.msk.f32.gmra.mrb[40].mxu0 %vm26_vm1, %v6861_v56 }
 0x47f   :  { %19554 = vmatprep.mubr.msk.f32.mxu0 %vm26_vm1, %v6862_v61 }
 0x482   :  { %19555 = vmatmul.mubr.msk.f32.gmra.mrb[42].mxu0 %vm26_vm1, %v6863_v62 }
 0x483   :  { %19557 = vmatprep.mubr.msk.f32.mxu0 %vm26_vm1, %v6864_v0 }
 0x486   :  { %19558 = vmatmul.mubr.msk.f32.gmra.mrb[44].mxu0 %vm26_vm1, %v6865_v6 }
 0x487   :  { %19560 = vmatprep.mubr.msk.f32.mxu0 %vm26_vm1, %v6866_v9 }
 0x48a   :  { %19561 = vmatmul.mubr.msk.f32.gmra.mrb[46].mxu0 %vm26_vm1, %v6867_v18 }
 0x48b   :  { %19563 = vmatprep.mubr.msk.f32.mxu0 %vm26_vm1, %v6868_v20 }
 0x48e   :  { %19564 = vmatmul.mubr.msk.f32.gmra.mrb[48].mxu0 %vm26_vm1, %v6869_v22 }
 0x48f   :  { %19566 = vmatprep.mubr.msk.f32.mxu0 %vm26_vm1, %v6870_v23 }
 0x492   :  { %19567 = vmatmul.mubr.msk.f32.gmra.mrb[50].mxu0 %vm26_vm1, %v6871_v24 }
 0x493   :  { %19569 = vmatprep.mubr.msk.f32.mxu0 %vm26_vm1, %v6872_v25 }
 0x496   :  { %19570 = vmatmul.mubr.msk.f32.gmra.mrb[52].mxu0 %vm26_vm1, %v6873_v26 }
 0x497   :  { %19572 = vmatprep.mubr.msk.f32.mxu0 %vm26_vm1, %v6874_v27 }
 0x49a   :  { %19573 = vmatmul.mubr.msk.f32.gmra.mrb[54].mxu0 %vm26_vm1, %v6875_v35 }
 0x49b   :  { %19575 = vmatprep.mubr.msk.f32.mxu0 %vm26_vm1, %v6876_v12 }
 0x49e   :  { %19576 = vmatmul.mubr.msk.f32.gmra.mrb[56].mxu0 %vm26_vm1, %v6877_v31 }
 0x49f   :  { %19578 = vmatprep.mubr.msk.f32.mxu0 %vm26_vm1, %v6878_v16 }
 0x4a2   :  { %19579 = vmatmul.mubr.msk.f32.gmra.mrb[58].mxu0 %vm26_vm1, %v6879_v33 }
 0x4a3   :  { %19581 = vmatprep.mubr.msk.f32.mxu0 %vm26_vm1, %v23151_v28 }
 0x4a6   :  { %19582 = vmatmul.mubr.msk.f32.gmra.mrb[60].mxu0 %vm26_vm1, %v23157_v59 }
 0x4a7   :  { %19584 = vmatprep.mubr.msk.f32.mxu0 %vm26_vm1, %v6882_v34 }
 0x4aa   :  { %19585 = vmatmul.mubr.msk.f32.gmra.mrb[62].mxu0 %vm26_vm1, %v6883_v37 }
 0x501   :  { %v23376_v39 = vpop.f32.mrb[0].mxu0 }
 0x502   :  { %27691 = vst [vmem:[#allocation4_spill] sm:$0xff] %v23376_v39  ;;  %v23378_v40 = vpop.f32.mrb[1].mxu0 }
 0x503   :  { %v7724_v21 = vadd.f32 %v23376_v39, %v23378_v40 }
 0x505   :  { %v23382_v38 = vpop.f32.mrb[2].mxu0 }
 0x506   :  { %27692 = vst [vmem:[#allocation5_spill] sm:$0xff] %v23382_v38  ;;  %v23384_v42 = vpop.f32.mrb[3].mxu0 }
 0x507   :  { %27693 = vst [vmem:[#allocation6_spill] sm:$0xff] %v23384_v42  ;;  %v7725_v28 = vadd.f32 %v7724_v21, %v23384_v42 }
 0x509   :  { %v7726_v59 = vadd.f32 %v23382_v38, %v7725_v28  ;;  %v23388_v53 = vpop.f32.mrb[4].mxu0 }
 0x50a   :  { %v23390_v17 = vpop.f32.mrb[5].mxu0 }
 0x50b   :  { %27694 = vst [vmem:[#allocation7_spill] sm:$0xff] %v23390_v17  ;;  %v7727_v19 = vadd.f32 %v7726_v59, %v23390_v17 }
 0x50d   :  { %v23393_v43 = vpop.f32.mrb[6].mxu0  ;;  %v7728_v44 = vadd.f32 %v23388_v53, %v7727_v19 }
 0x50e   :  { %v23396_v45 = vpop.f32.mrb[7].mxu0 }
 0x50f   :  { %v7729_v36 = vadd.f32 %v7728_v44, %v23396_v45 }
 0x511   :  { %v23399_v46 = vpop.f32.mrb[8].mxu0  ;;  %v7730_v48 = vadd.f32 %v23393_v43, %v7729_v36 }
 0x512   :  { %v23402_v50 = vpop.f32.mrb[9].mxu0 }
 0x513   :  { %v7731_v51 = vadd.f32 %v7730_v48, %v23402_v50 }
 0x515   :  { %v23405_v52 = vpop.f32.mrb[10].mxu0  ;;  %v7732_v54 = vadd.f32 %v23399_v46, %v7731_v51 }
 0x516   :  { %v23408_v55 = vpop.f32.mrb[11].mxu0 }
 0x517   :  { %v7733_v57 = vadd.f32 %v7732_v54, %v23408_v55 }
 0x519   :  { %v23411_v58 = vpop.f32.mrb[12].mxu0  ;;  %v7734_v60 = vadd.f32 %v23405_v52, %v7733_v57 }
 0x51a   :  { %v23414_v1 = vpop.f32.mrb[13].mxu0 }
 0x51b   :  { %v7735_v3 = vadd.f32 %v7734_v60, %v23414_v1 }
 0x51d   :  { %v23417_v4 = vpop.f32.mrb[14].mxu0  ;;  %v7736_v5 = vadd.f32 %v23411_v58, %v7735_v3 }
 0x51e   :  { %v23420_v7 = vpop.f32.mrb[15].mxu0 }
 0x51f   :  { %v7737_v8 = vadd.f32 %v7736_v5, %v23420_v7 }
 0x521   :  { %v23423_v10 = vpop.f32.mrb[16].mxu0  ;;  %v7738_v11 = vadd.f32 %v23417_v4, %v7737_v8 }
 0x522   :  { %v23426_v14 = vpop.f32.mrb[17].mxu0 }
 0x523   :  { %v7739_v15 = vadd.f32 %v7738_v11, %v23426_v14 }
 0x525   :  { %v23429_v29 = vpop.f32.mrb[18].mxu0  ;;  %v7740_v30 = vadd.f32 %v23423_v10, %v7739_v15 }
 0x526   :  { %v23432_v13 = vpop.f32.mrb[19].mxu0 }
 0x527   :  { %v7741_v32 = vadd.f32 %v7740_v30, %v23432_v13 }
 0x529   :  { %v23435_v63 = vpop.f32.mrb[20].mxu0  ;;  %v7742_v2 = vadd.f32 %v23429_v29, %v7741_v32 }
 0x52a   :  { %v23438_v47 = vpop.f32.mrb[21].mxu0 }
 0x52b   :  { %v7743_v49 = vadd.f32 %v7742_v2, %v23438_v47 }
 0x52d   :  { %v23441_v41 = vpop.f32.mrb[22].mxu0  ;;  %v7744_v56 = vadd.f32 %v23435_v63, %v7743_v49 }
 0x52e   :  { %v23444_v61 = vpop.f32.mrb[23].mxu0 }
 0x52f   :  { %v7745_v62 = vadd.f32 %v7744_v56, %v23444_v61 }
 0x531   :  { %v23447_v0 = vpop.f32.mrb[24].mxu0  ;;  %v7746_v6 = vadd.f32 %v23441_v41, %v7745_v62 }
 0x532   :  { %v23450_v9 = vpop.f32.mrb[25].mxu0 }
 0x533   :  { %v7747_v18 = vadd.f32 %v7746_v6, %v23450_v9 }
 0x535   :  { %v23453_v20 = vpop.f32.mrb[26].mxu0  ;;  %v7748_v22 = vadd.f32 %v23447_v0, %v7747_v18 }
 0x536   :  { %v23456_v23 = vpop.f32.mrb[27].mxu0 }
 0x537   :  { %v7749_v24 = vadd.f32 %v7748_v22, %v23456_v23 }
 0x539   :  { %v23459_v25 = vpop.f32.mrb[28].mxu0  ;;  %v7750_v26 = vadd.f32 %v23453_v20, %v7749_v24 }
 0x53a   :  { %v23462_v27 = vpop.f32.mrb[29].mxu0 }
 0x53b   :  { %v7751_v35 = vadd.f32 %v7750_v26, %v23462_v27 }
 0x53d   :  { %v23465_v12 = vpop.f32.mrb[30].mxu0  ;;  %v7752_v31 = vadd.f32 %v23459_v25, %v7751_v35 }
 0x53e   :  { %v23468_v16 = vpop.f32.mrb[31].mxu0 }
 0x53f   :  { %v7753_v33 = vadd.f32 %v7752_v31, %v23468_v16 }
 0x541   :  { %v23471_v34 = vpop.f32.mrb[32].mxu0  ;;  %v7754_v37 = vadd.f32 %v23465_v12, %v7753_v33 }
 0x542   :  { %v23474_v21 = vpop.f32.mrb[33].mxu0 }
 0x543   :  { %v7755_v28 = vadd.f32 %v7754_v37, %v23474_v21 }
 0x545   :  { %v23477_v59 = vpop.f32.mrb[34].mxu0  ;;  %v7756_v19 = vadd.f32 %v23471_v34, %v7755_v28 }
 0x546   :  { %v23480_v44 = vpop.f32.mrb[35].mxu0 }
 0x547   :  { %v7757_v36 = vadd.f32 %v7756_v19, %v23480_v44 }
 0x549   :  { %v23483_v48 = vpop.f32.mrb[36].mxu0  ;;  %v7758_v51 = vadd.f32 %v23477_v59, %v7757_v36 }
 0x54a   :  { %v23486_v54 = vpop.f32.mrb[37].mxu0 }
 0x54b   :  { %v7759_v57 = vadd.f32 %v7758_v51, %v23486_v54 }
 0x54d   :  { %v23489_v60 = vpop.f32.mrb[38].mxu0  ;;  %v7760_v3 = vadd.f32 %v23483_v48, %v7759_v57 }
 0x54e   :  { %v23492_v5 = vpop.f32.mrb[39].mxu0 }
 0x54f   :  { %v7761_v8 = vadd.f32 %v7760_v3, %v23492_v5 }
 0x551   :  { %v23495_v11 = vpop.f32.mrb[40].mxu0  ;;  %v7762_v15 = vadd.f32 %v23489_v60, %v7761_v8 }
 0x552   :  { %v23498_v30 = vpop.f32.mrb[41].mxu0 }
 0x553   :  { %v7763_v32 = vadd.f32 %v7762_v15, %v23498_v30 }
 0x555   :  { %v23501_v2 = vpop.f32.mrb[42].mxu0  ;;  %v7764_v49 = vadd.f32 %v23495_v11, %v7763_v32 }
 0x556   :  { %27695 = vst [vmem:[#allocation8_spill] sm:$0xff] %v23501_v2  ;;  %v23504_v56 = vpop.f32.mrb[43].mxu0 }
 0x557   :  { %27696 = vst [vmem:[#allocation9_spill] sm:$0xff] %v23504_v56  ;;  %v7765_v62 = vadd.f32 %v7764_v49, %v23504_v56 }
 0x559   :  { %v23507_v6 = vpop.f32.mrb[44].mxu0  ;;  %v7766_v18 = vadd.f32 %v23501_v2, %v7765_v62 }
 0x55a   :  { %27697 = vst [vmem:[#allocation10_spill] sm:$0xff] %v23507_v6  ;;  %v23510_v22 = vpop.f32.mrb[45].mxu0 }
 0x55b   :  { %27698 = vst [vmem:[#allocation11_spill] sm:$0xff] %v23510_v22  ;;  %v7767_v24 = vadd.f32 %v7766_v18, %v23510_v22 }
 0x55d   :  { %v23513_v26 = vpop.f32.mrb[46].mxu0  ;;  %v7768_v35 = vadd.f32 %v23507_v6, %v7767_v24 }
 0x55e   :  { %27699 = vst [vmem:[#allocation12_spill] sm:$0xff] %v23513_v26  ;;  %v23516_v31 = vpop.f32.mrb[47].mxu0 }
 0x55f   :  { %27700 = vst [vmem:[#allocation13_spill] sm:$0xff] %v23516_v31  ;;  %v7769_v33 = vadd.f32 %v7768_v35, %v23516_v31 }
 0x561   :  { %v23519_v37 = vpop.f32.mrb[48].mxu0  ;;  %v7770_v28 = vadd.f32 %v23513_v26, %v7769_v33 }
 0x562   :  { %27701 = vst [vmem:[#allocation14_spill] sm:$0xff] %v23519_v37  ;;  %v23522_v19 = vpop.f32.mrb[49].mxu0 }
 0x563   :  { %27702 = vst [vmem:[#allocation15_spill] sm:$0xff] %v23522_v19  ;;  %v7771_v36 = vadd.f32 %v7770_v28, %v23522_v19 }
 0x565   :  { %v23525_v51 = vpop.f32.mrb[50].mxu0  ;;  %v7772_v57 = vadd.f32 %v23519_v37, %v7771_v36 }
 0x566   :  { %27703 = vst [vmem:[#allocation16_spill] sm:$0xff] %v23525_v51  ;;  %v23528_v3 = vpop.f32.mrb[51].mxu0 }
 0x567   :  { %27704 = vst [vmem:[#allocation17_spill] sm:$0xff] %v23528_v3  ;;  %v7773_v8 = vadd.f32 %v7772_v57, %v23528_v3 }
 0x569   :  { %v23531_v15 = vpop.f32.mrb[52].mxu0  ;;  %v7774_v32 = vadd.f32 %v23525_v51, %v7773_v8 }
 0x56a   :  { %27705 = vst [vmem:[#allocation18_spill] sm:$0xff] %v23531_v15  ;;  %v23534_v49 = vpop.f32.mrb[53].mxu0 }
 0x56b   :  { %27706 = vst [vmem:[#allocation19_spill] sm:$0xff] %v23534_v49  ;;  %v7775_v62 = vadd.f32 %v7774_v32, %v23534_v49 }
 0x56d   :  { %v23537_v18 = vpop.f32.mrb[54].mxu0  ;;  %v7776_v24 = vadd.f32 %v23531_v15, %v7775_v62 }
 0x56e   :  { %27707 = vst [vmem:[#allocation20_spill] sm:$0xff] %v23537_v18  ;;  %v23540_v35 = vpop.f32.mrb[55].mxu0 }
 0x56f   :  { %27708 = vst [vmem:[#allocation21_spill] sm:$0xff] %v23540_v35  ;;  %v7777_v33 = vadd.f32 %v7776_v24, %v23540_v35 }
 0x571   :  { %v23543_v28 = vpop.f32.mrb[56].mxu0  ;;  %v7778_v36 = vadd.f32 %v23537_v18, %v7777_v33 }
 0x572   :  { %27709 = vst [vmem:[#allocation22_spill] sm:$0xff] %v23543_v28  ;;  %v23546_v57 = vpop.f32.mrb[57].mxu0 }
 0x573   :  { %27710 = vst [vmem:[#allocation23_spill] sm:$0xff] %v23546_v57  ;;  %v7779_v8 = vadd.f32 %v7778_v36, %v23546_v57 }
 0x575   :  { %v23549_v51 = vpop.f32.mrb[58].mxu0  ;;  %v7780_v32 = vadd.f32 %v23543_v28, %v7779_v8 }
 0x576   :  { %27711 = vst [vmem:[#allocation24_spill] sm:$0xff] %v23549_v51  ;;  %v23552_v49 = vpop.f32.mrb[59].mxu0 }
 0x577   :  { %27712 = vst [vmem:[#allocation25_spill] sm:$0xff] %v23552_v49  ;;  %v7781_v62 = vadd.f32 %v7780_v32, %v23552_v49 }
 0x579   :  { %v23555_v15 = vpop.f32.mrb[60].mxu0  ;;  %v7782_v24 = vadd.f32 %v23549_v51, %v7781_v62 }
 0x57a   :  { %27713 = vst [vmem:[#allocation26_spill] sm:$0xff] %v23555_v15  ;;  %v23558_v35 = vpop.f32.mrb[61].mxu0 }
 0x57b   :  { %27714 = vst [vmem:[#allocation27_spill] sm:$0xff] %v23558_v35  ;;  %v7783_v33 = vadd.f32 %v7782_v24, %v23558_v35 }
 0x57d   :  { %v23561_v18 = vpop.f32.mrb[62].mxu0  ;;  %v7784_v36 = vadd.f32 %v23555_v15, %v7783_v33 }
 0x57e   :  { %v23564_v57 = vpop.f32.mrb[63].mxu0 }
 0x57f   :  { %27715 = vst [vmem:[#allocation28_spill] sm:$0xff] %v23564_v57  ;;  %v7785_v8 = vadd.f32 %v7784_v36, %v23564_v57 }
 0x581   :  { %v7786_v28 = vadd.f32 %v23561_v18, %v7785_v8 }
 0x583   :  { %v7787_v3 = vrot.slane %v7786_v28, 4 }
 0x585   :  { %v7788_v32 = vadd.f32 %v7787_v3, %v7786_v28 }
 0x587   :  { %v7789_v49 = vrot.slane %v7788_v32, 2 }
 0x589   :  { %v7790_v37 = vadd.f32 %v7789_v49, %v7788_v32 }
 0x58b   :  { %v7791_v19 = vrot.slane %v7790_v37, 1 }
 0x58d   :  { %v7792_v62 = vadd.f32 %v7791_v19, %v7790_v37 }
 0x58f   :  { %v23568_v51 = vmul.f32 0.001953125, %v7792_v62 }
 0x591   :  { %v7794_v24 = vsub.f32 %v23378_v40, %v23568_v51  ;;  %v7795_v33 = vsub.f32 %v23376_v39, %v23568_v51  ;;  %v7796_v15 = vsub.f32 %v23384_v42, %v23568_v51  ;;  %v7797_v3 = vsub.f32 %v23382_v38, %v23568_v51 }
 0x592   :  { %v7798_v49 = vsub.f32 %v23390_v17, %v23568_v51  ;;  %v7799_v28 = vsub.f32 %v23388_v53, %v23568_v51  ;;  %v7800_v62 = vsub.f32 %v23396_v45, %v23568_v51  ;;  %v7802_v17 = vsub.f32 %v23402_v50, %v23568_v51 }
 0x593   :  { %v7858_v36 = vmul.f32 %v7794_v24, %v7794_v24  ;;  %v7859_v57 = vmul.f32 %v7795_v33, %v7795_v33  ;;  %v7860_v37 = vmul.f32 %v7796_v15, %v7796_v15  ;;  %v7861_v8 = vmul.f32 %v7797_v3, %v7797_v3 }
 0x594   :  { %v7862_v39 = vmul.f32 %v7798_v49, %v7798_v49  ;;  %v7801_v24 = vsub.f32 %v23393_v43, %v23568_v51  ;;  %v7863_v33 = vmul.f32 %v7799_v28, %v7799_v28  ;;  %v7864_v15 = vmul.f32 %v7800_v62, %v7800_v62 }
 0x595   :  { %v7922_v19 = vadd.f32 %v7859_v57, %v7858_v36  ;;  %v7803_v36 = vsub.f32 %v23399_v46, %v23568_v51  ;;  %v7866_v49 = vmul.f32 %v7802_v17, %v7802_v17 }
 0x596   :  { %v7865_v3 = vmul.f32 %v7801_v24, %v7801_v24 }
 0x597   :  { %v7923_v32 = vadd.f32 %v7922_v19, %v7860_v37  ;;  %v7804_v19 = vsub.f32 %v23408_v55, %v23568_v51  ;;  %v7867_v28 = vmul.f32 %v7803_v36, %v7803_v36 }
 0x599   :  { %v7924_v42 = vadd.f32 %v7923_v32, %v7861_v8  ;;  %v7805_v32 = vsub.f32 %v23405_v52, %v23568_v51  ;;  %v7868_v62 = vmul.f32 %v7804_v19, %v7804_v19 }
 0x59b   :  { %v7925_v38 = vadd.f32 %v7924_v42, %v7862_v39  ;;  %v7806_v42 = vsub.f32 %v23414_v1, %v23568_v51  ;;  %v7869_v24 = vmul.f32 %v7805_v32, %v7805_v32 }
 0x59d   :  { %v7926_v57 = vadd.f32 %v7925_v38, %v7863_v33  ;;  %v7807_v33 = vsub.f32 %v23411_v58, %v23568_v51  ;;  %v7870_v17 = vmul.f32 %v7806_v42, %v7806_v42 }
 0x59f   :  { %v7927_v37 = vadd.f32 %v7926_v57, %v7864_v15  ;;  %v7808_v57 = vsub.f32 %v23420_v7, %v23568_v51  ;;  %v7871_v36 = vmul.f32 %v7807_v33, %v7807_v33 }
 0x5a1   :  { %v7928_v8 = vadd.f32 %v7927_v37, %v7865_v3  ;;  %v7809_v37 = vsub.f32 %v23417_v4, %v23568_v51  ;;  %v7872_v19 = vmul.f32 %v7808_v57, %v7808_v57 }
 0x5a3   :  { %v7929_v39 = vadd.f32 %v7928_v8, %v7866_v49  ;;  %v7810_v8 = vsub.f32 %v23426_v14, %v23568_v51  ;;  %v7873_v32 = vmul.f32 %v7809_v37, %v7809_v37 }
 0x5a5   :  { %v7930_v38 = vadd.f32 %v7929_v39, %v7867_v28  ;;  %v7811_v39 = vsub.f32 %v23423_v10, %v23568_v51  ;;  %v7874_v42 = vmul.f32 %v7810_v8, %v7810_v8 }
 0x5a7   :  { %v7931_v15 = vadd.f32 %v7930_v38, %v7868_v62  ;;  %v7812_v38 = vsub.f32 %v23432_v13, %v23568_v51  ;;  %v7875_v33 = vmul.f32 %v7811_v39, %v7811_v39 }
 0x5a9   :  { %v7932_v3 = vadd.f32 %v7931_v15, %v7869_v24  ;;  %v7813_v15 = vsub.f32 %v23429_v29, %v23568_v51  ;;  %v7876_v57 = vmul.f32 %v7812_v38, %v7812_v38 }
 0x5ab   :  { %v7933_v49 = vadd.f32 %v7932_v3, %v7870_v17  ;;  %v7814_v3 = vsub.f32 %v23438_v47, %v23568_v51  ;;  %v7877_v37 = vmul.f32 %v7813_v15, %v7813_v15 }
 0x5ad   :  { %v7934_v28 = vadd.f32 %v7933_v49, %v7871_v36  ;;  %v7815_v49 = vsub.f32 %v23435_v63, %v23568_v51  ;;  %v7878_v8 = vmul.f32 %v7814_v3, %v7814_v3 }
 0x5af   :  { %v7935_v62 = vadd.f32 %v7934_v28, %v7872_v19  ;;  %v7816_v28 = vsub.f32 %v23444_v61, %v23568_v51  ;;  %v7879_v39 = vmul.f32 %v7815_v49, %v7815_v49 }
 0x5b1   :  { %v7936_v24 = vadd.f32 %v7935_v62, %v7873_v32  ;;  %v7817_v62 = vsub.f32 %v23441_v41, %v23568_v51  ;;  %v7880_v38 = vmul.f32 %v7816_v28, %v7816_v28 }
 0x5b3   :  { %v7937_v17 = vadd.f32 %v7936_v24, %v7874_v42  ;;  %v7818_v24 = vsub.f32 %v23450_v9, %v23568_v51  ;;  %v7881_v15 = vmul.f32 %v7817_v62, %v7817_v62 }
 0x5b5   :  { %v7938_v36 = vadd.f32 %v7937_v17, %v7875_v33  ;;  %v7819_v17 = vsub.f32 %v23447_v0, %v23568_v51  ;;  %v7882_v3 = vmul.f32 %v7818_v24, %v7818_v24 }
 0x5b7   :  { %v7939_v19 = vadd.f32 %v7938_v36, %v7876_v57  ;;  %v7820_v36 = vsub.f32 %v23456_v23, %v23568_v51  ;;  %v7883_v49 = vmul.f32 %v7819_v17, %v7819_v17 }
 0x5b9   :  { %v7940_v32 = vadd.f32 %v7939_v19, %v7877_v37  ;;  %v7821_v19 = vsub.f32 %v23453_v20, %v23568_v51  ;;  %v7884_v28 = vmul.f32 %v7820_v36, %v7820_v36 }
 0x5bb   :  { %v7941_v42 = vadd.f32 %v7940_v32, %v7878_v8  ;;  %v7822_v32 = vsub.f32 %v23462_v27, %v23568_v51  ;;  %v7885_v62 = vmul.f32 %v7821_v19, %v7821_v19 }
 0x5bd   :  { %v7942_v33 = vadd.f32 %v7941_v42, %v7879_v39  ;;  %v7823_v42 = vsub.f32 %v23459_v25, %v23568_v51  ;;  %v7886_v24 = vmul.f32 %v7822_v32, %v7822_v32 }
 0x5bf   :  { %v7943_v57 = vadd.f32 %v7942_v33, %v7880_v38  ;;  %v7824_v33 = vsub.f32 %v23468_v16, %v23568_v51  ;;  %v7887_v17 = vmul.f32 %v7823_v42, %v7823_v42 }
 0x5c1   :  { %v7944_v37 = vadd.f32 %v7943_v57, %v7881_v15  ;;  %v7825_v57 = vsub.f32 %v23465_v12, %v23568_v51  ;;  %v7888_v36 = vmul.f32 %v7824_v33, %v7824_v33 }
 0x5c3   :  { %v7945_v8 = vadd.f32 %v7944_v37, %v7882_v3  ;;  %v7826_v37 = vsub.f32 %v23474_v21, %v23568_v51  ;;  %v7889_v19 = vmul.f32 %v7825_v57, %v7825_v57 }
 0x5c5   :  { %v7946_v39 = vadd.f32 %v7945_v8, %v7883_v49  ;;  %v7827_v8 = vsub.f32 %v23471_v34, %v23568_v51  ;;  %v7890_v32 = vmul.f32 %v7826_v37, %v7826_v37 }
 0x5c7   :  { %v7947_v38 = vadd.f32 %v7946_v39, %v7884_v28  ;;  %v7828_v39 = vsub.f32 %v23480_v44, %v23568_v51  ;;  %v7891_v42 = vmul.f32 %v7827_v8, %v7827_v8 }
 0x5c9   :  { %v7948_v15 = vadd.f32 %v7947_v38, %v7885_v62  ;;  %v7829_v38 = vsub.f32 %v23477_v59, %v23568_v51  ;;  %v7892_v33 = vmul.f32 %v7828_v39, %v7828_v39 }
 0x5cb   :  { %v7949_v3 = vadd.f32 %v7948_v15, %v7886_v24  ;;  %v7830_v15 = vsub.f32 %v23486_v54, %v23568_v51  ;;  %v7893_v57 = vmul.f32 %v7829_v38, %v7829_v38 }
 0x5cd   :  { %v7950_v49 = vadd.f32 %v7949_v3, %v7887_v17  ;;  %v7831_v3 = vsub.f32 %v23483_v48, %v23568_v51  ;;  %v7894_v37 = vmul.f32 %v7830_v15, %v7830_v15 }
 0x5cf   :  { %v7951_v28 = vadd.f32 %v7950_v49, %v7888_v36  ;;  %v7832_v49 = vsub.f32 %v23492_v5, %v23568_v51  ;;  %v7895_v8 = vmul.f32 %v7831_v3, %v7831_v3  ;;  %v8327_v3 = vld [vmem:[%s27134_s2] sm:$0xf] }
 0x5d0   :  { %19587 = vmatprep.subr.msk.mxu1 %vm500_vm0, %v8327_v3 }
 0x5d1   :  { %v7952_v62 = vadd.f32 %v7951_v28, %v7889_v19  ;;  %v7833_v28 = vsub.f32 %v23489_v60, %v23568_v51  ;;  %v7896_v39 = vmul.f32 %v7832_v49, %v7832_v49  ;;  %19588 = vmatpush3.msk.msra.mxu1 %vm500_vm0, %v8327_v3 }
 0x5d3   :  { %v7953_v24 = vadd.f32 %v7952_v62, %v7890_v32  ;;  %v7834_v62 = vsub.f32 %v23498_v30, %v23568_v51  ;;  %v7897_v38 = vmul.f32 %v7833_v28, %v7833_v28  ;;  %v17007_v28 = vld [vmem:[%s27134_s2 + $0x4] sm:$0xf] }
 0x5d4   :  { %19685 = vmatprep.subr.msk.mxu1 %vm500_vm0, %v17007_v28 }
 0x5d5   :  { %v7954_v17 = vadd.f32 %v7953_v24, %v7891_v42  ;;  %v7835_v24 = vsub.f32 %v23495_v11, %v23568_v51  ;;  %v7898_v15 = vmul.f32 %v7834_v62, %v7834_v62 }
 0x5d7   :  { %v7955_v36 = vadd.f32 %v7954_v17, %v7892_v33  ;;  %v7836_v17 = vsub.f32 %v23504_v56, %v23568_v51 }
 0x5d9   :  { %v7956_v19 = vadd.f32 %v7955_v36, %v7893_v57  ;;  %v7837_v36 = vsub.f32 %v23501_v2, %v23568_v51  ;;  %v7900_v62 = vmul.f32 %v7836_v17, %v7836_v17  ;;  %v7841_v17 = vsub.f32 %v23513_v26, %v23568_v51 }
 0x5db   :  { %v7957_v32 = vadd.f32 %v7956_v19, %v7894_v37  ;;  %v7899_v37 = vmul.f32 %v7835_v24, %v7835_v24  ;;  %v8263_v19 = vld [vmem:[#allocation2] sm:$0xff]  ;;  %v7901_v24 = vmul.f32 %v7837_v36, %v7837_v36  ;;  %v27717_v36 = vld [vmem:[#allocation14_spill] sm:$0xff] }
 0x5dc   :  { %19589 = vmatprep.mubr.msk.f32.mxu1 %vm26_vm1, %v8263_v19 }
 0x5dd   :  { %v7958_v42 = vadd.f32 %v7957_v32, %v7895_v8  ;;  %v8264_v8 = vld [vmem:[#allocation2 + $0x8] sm:$0xff]  ;;  %v7838_v32 = vsub.f32 %v23510_v22, %v23568_v51 }
 0x5de   :  { %19590 = vmatmul.mubr.msk.f32.vlgmr.msra.gmra.mrb[0].mxu1 %vm26_vm1, %v8264_v8 }
 0x5df   :  { %v7959_v33 = vadd.f32 %v7958_v42, %v7896_v39  ;;  %v7839_v42 = vsub.f32 %v23507_v6, %v23568_v51  ;;  %19686 = vmatpush3.msk.msra.mxu1 %vm500_vm0, %v17007_v28  ;;  %v27718_v6 = vld [vmem:[#allocation17_spill] sm:$0xff] }
 0x5e1   :  { %v7960_v57 = vadd.f32 %v7959_v33, %v7897_v38  ;;  %v7840_v33 = vsub.f32 %v23516_v31, %v23568_v51  ;;  %v7903_v3 = vmul.f32 %v7839_v42, %v7839_v42  ;;  %v7844_v31 = vsub.f32 %v27718_v6, %v23568_v51 }
 0x5e3   :  { %v7961_v49 = vadd.f32 %v7960_v57, %v7898_v15  ;;  %v7902_v15 = vmul.f32 %v7838_v32, %v7838_v32  ;;  %v7904_v8 = vmul.f32 %v7840_v33, %v7840_v33  ;;  %v7908_v33 = vmul.f32 %v7844_v31, %v7844_v31 }
 0x5e5   :  { %v7962_v39 = vadd.f32 %v7961_v49, %v7899_v37  ;;  %v27716_v49 = vld [vmem:[#allocation15_spill] sm:$0xff] }
 0x5e6   :  { %v7842_v19 = vsub.f32 %v27716_v49, %v23568_v51 }
 0x5e7   :  { %v7963_v38 = vadd.f32 %v7962_v39, %v7900_v62  ;;  %v7843_v62 = vsub.f32 %v27717_v36, %v23568_v51  ;;  %v7905_v39 = vmul.f32 %v7841_v17, %v7841_v17 }
 0x5e8   :  { %v7906_v32 = vmul.f32 %v7842_v19, %v7842_v19 }
 0x5e9   :  { %v7964_v57 = vadd.f32 %v7963_v38, %v7901_v24  ;;  %v27719_v38 = vld [vmem:[#allocation16_spill] sm:$0xff]  ;;  %v7907_v42 = vmul.f32 %v7843_v62, %v7843_v62 }
 0x5ea   :  { %v7845_v26 = vsub.f32 %v27719_v38, %v23568_v51 }
 0x5eb   :  { %v7965_v37 = vadd.f32 %v7964_v57, %v7902_v15  ;;  %v27720_v57 = vld [vmem:[#allocation19_spill] sm:$0xff] }
 0x5ec   :  { %v7846_v49 = vsub.f32 %v27720_v57, %v23568_v51  ;;  %v7909_v17 = vmul.f32 %v7845_v26, %v7845_v26 }
 0x5ed   :  { %v7966_v22 = vadd.f32 %v7965_v37, %v7903_v3  ;;  %v27721_v37 = vld [vmem:[#allocation18_spill] sm:$0xff] }
 0x5ee   :  { %v7847_v36 = vsub.f32 %v27721_v37, %v23568_v51  ;;  %v7910_v19 = vmul.f32 %v7846_v49, %v7846_v49 }
 0x5ef   :  { %v7967_v28 = vadd.f32 %v7966_v22, %v7904_v8  ;;  %v27722_v8 = vld [vmem:[#allocation21_spill] sm:$0xff] }
 0x5f0   :  { %v7848_v6 = vsub.f32 %v27722_v8, %v23568_v51  ;;  %v7911_v62 = vmul.f32 %v7847_v36, %v7847_v36 }
 0x5f1   :  { %v7968_v24 = vadd.f32 %v7967_v28, %v7905_v39  ;;  %v27723_v28 = vld [vmem:[#allocation20_spill] sm:$0xff] }
 0x5f2   :  { %v7849_v38 = vsub.f32 %v27723_v28, %v23568_v51  ;;  %v7912_v31 = vmul.f32 %v7848_v6, %v7848_v6 }
 0x5f3   :  { %v7969_v15 = vadd.f32 %v7968_v24, %v7906_v32  ;;  %v27724_v24 = vld [vmem:[#allocation23_spill] sm:$0xff] }
 0x5f4   :  { %v7850_v57 = vsub.f32 %v27724_v24, %v23568_v51  ;;  %v7913_v26 = vmul.f32 %v7849_v38, %v7849_v38 }
 0x5f5   :  { %v7970_v3 = vadd.f32 %v7969_v15, %v7907_v42  ;;  %v27725_v15 = vld [vmem:[#allocation22_spill] sm:$0xff] }
 0x5f6   :  { %v7851_v37 = vsub.f32 %v27725_v15, %v23568_v51  ;;  %v7914_v49 = vmul.f32 %v7850_v57, %v7850_v57 }
 0x5f7   :  { %v7971_v22 = vadd.f32 %v7970_v3, %v7908_v33  ;;  %v27726_v3 = vld [vmem:[#allocation25_spill] sm:$0xff] }
 0x5f8   :  { %v7852_v8 = vsub.f32 %v27726_v3, %v23568_v51  ;;  %v7915_v36 = vmul.f32 %v7851_v37, %v7851_v37 }
 0x5f9   :  { %v7972_v39 = vadd.f32 %v7971_v22, %v7909_v17  ;;  %v27727_v22 = vld [vmem:[#allocation24_spill] sm:$0xff] }
 0x5fa   :  { %v7853_v28 = vsub.f32 %v27727_v22, %v23568_v51  ;;  %v7916_v6 = vmul.f32 %v7852_v8, %v7852_v8 }
 0x5fb   :  { %v7973_v32 = vadd.f32 %v7972_v39, %v7910_v19  ;;  %v7854_v39 = vsub.f32 %v23558_v35, %v23568_v51 }
 0x5fc   :  { %v7917_v38 = vmul.f32 %v7853_v28, %v7853_v28 }
 0x5fd   :  { %v7974_v42 = vadd.f32 %v7973_v32, %v7911_v62  ;;  %v27728_v32 = vld [vmem:[#allocation26_spill] sm:$0xff]  ;;  %v7918_v57 = vmul.f32 %v7854_v39, %v7854_v39  ;;  %v7997_v39 = vlaneseq }
 0x5fe   :  { %v7855_v15 = vsub.f32 %v27728_v32, %v23568_v51 }
 0x5ff   :  { %v7975_v33 = vadd.f32 %v7974_v42, %v7912_v31  ;;  %v27729_v42 = vld [vmem:[#allocation28_spill] sm:$0xff] }
 0x600   :  { %v7856_v3 = vsub.f32 %v27729_v42, %v23568_v51  ;;  %v7919_v37 = vmul.f32 %v7855_v15, %v7855_v15  ;;  %v7722_v15 = vld [vmem:[%s27135_s3] sm:$0x1] }
 0x601   :  { %v7976_v17 = vadd.f32 %v7975_v33, %v7913_v26  ;;  %v7857_v33 = vsub.f32 %v23561_v18, %v23568_v51 }
 0x603   :  { %v7977_v19 = vadd.f32 %v7976_v17, %v7914_v49  ;;  %v7920_v17 = vmul.f32 %v7856_v3, %v7856_v3  ;;  %v7921_v35 = vmul.f32 %v7857_v33, %v7857_v33 }
 0x605   :  { %v7978_v62 = vadd.f32 %v7977_v19, %v7915_v36 }
 0x607   :  { %v7979_v31 = vadd.f32 %v7978_v62, %v7916_v6 }
 0x609   :  { %v7980_v26 = vadd.f32 %v7979_v31, %v7917_v38  ;;  %v7998_v38 = vshrl.u32 %v7997_v39, 7 }
 0x60b   :  { %v7981_v49 = vadd.f32 %v7980_v26, %v7918_v57  ;;  %v23713_v3 = vsub.s32 0, %v7998_v38  ;;  %v27731_v26 = vld [vmem:[#allocation4_spill] sm:$0xff] }
 0x60d   :  { %v7982_v22 = vadd.f32 %v7981_v49, %v7919_v37  ;;  %27730 = vst [vmem:[#allocation29_spill] sm:$0xff] %v23713_v3  ;;  %v27732_v37 = vld [vmem:[#allocation6_spill] sm:$0xff] }
 0x60f   :  { %v7983_v8 = vadd.f32 %v7982_v22, %v7920_v17 }
 0x611   :  { %v7984_v36 = vadd.f32 %v7983_v8, %v7921_v35  ;;  %v7723_v35 = vld [vmem:[%s27136_s4] sm:$0x1]  ;;  %v27734_v8 = vld [vmem:[#allocation7_spill] sm:$0xff] }
 0x613   :  { %v7985_v19 = vrot.slane %v7984_v36, 4 }
 0x615   :  { %v7986_v24 = vadd.f32 %v7985_v19, %v7984_v36 }
 0x617   :  { %v7987_v32 = vrot.slane %v7986_v24, 2 }
 0x619   :  { %v7988_v28 = vadd.f32 %v7987_v32, %v7986_v24 }
 0x61b   :  { %v7989_v6 = vrot.slane %v7988_v28, 1 }
 0x61d   :  { %v7990_v62 = vadd.f32 %v7989_v6, %v7988_v28 }
 0x61f   :  { %v7991_v2 = vmul.f32 0.001953125, %v7990_v62 }
 0x621   :  { %v7992_v56 = vadd.f32 1e-05, %v7991_v2 }
 0x623   :  { %21494 = vrsqrt.f32 %v7992_v56 }
 0x62d   :  { %v21495_v31 = vpop.eup %21494 }
 0x62e   :  { %v7994_v22 = vmul.f32 %v21495_v31, %v7722_v15  ;;  %v27735_v15 = vld [vmem:[#allocation9_spill] sm:$0xff]  ;;  %v27736_v31 = vld [vmem:[#allocation8_spill] sm:$0xff] }
 0x630   :  { %v7995_v24 = vmul.f32 %v7994_v22, %v23568_v51  ;;  %v23720_v32 = vrot.slane %v7994_v22, %v23713_v3  ;;  %v27733_v51 = vld [vmem:[#allocation5_spill] sm:$0xff]  ;;  %v27737_v22 = vld [vmem:[#allocation11_spill] sm:$0xff] }
 0x632   :  { %v7996_v2 = vsub.f32 %v7723_v35, %v7995_v24  ;;  %v8063_v56 = vmul.f32 %v23720_v32, %v27729_v42  ;;  %v23726_v57 = vmul.f32 %v23720_v32, %v23378_v40  ;;  %v23730_v33 = vmul.f32 %v27731_v26, %v23720_v32  ;;  %v27738_v35 = vld [vmem:[#allocation10_spill] sm:$0xff]  ;;  %v27739_v24 = vld [vmem:[#allocation13_spill] sm:$0xff]  ;;  %v27741_v26 = vld [vmem:[#allocation15_spill] sm:$0xff] }
 0x633   :  { %v23734_v49 = vmul.f32 %v23720_v32, %v27732_v37  ;;  %v23738_v17 = vmul.f32 %v27733_v51, %v23720_v32  ;;  %v23742_v36 = vmul.f32 %v23720_v32, %v27734_v8  ;;  %v23746_v40 = vmul.f32 %v23388_v53, %v23720_v32  ;;  %v27742_v51 = vld [vmem:[#allocation14_spill] sm:$0xff] }
 0x634   :  { %v23749_v42 = vrot.slane %v7996_v2, %v23713_v3  ;;  %v23753_v19 = vmul.f32 %v23720_v32, %v23396_v45  ;;  %v23757_v28 = vmul.f32 %v23393_v43, %v23720_v32  ;;  %v23761_v6 = vmul.f32 %v23720_v32, %v23402_v50  ;;  %v27740_v2 = vld [vmem:[#allocation12_spill] sm:$0xff] }
 0x635   :  { %v23765_v62 = vmul.f32 %v23399_v46, %v23720_v32  ;;  %v23769_v53 = vmul.f32 %v23720_v32, %v23408_v55  ;;  %v23773_v45 = vmul.f32 %v23405_v52, %v23720_v32  ;;  %v23777_v43 = vmul.f32 %v23720_v32, %v23414_v1  ;;  %v27753_v3 = vld [vmem:[#allocation20_spill] sm:$0xff] }
 0x636   :  { %v8133_v39 = vadd.f32 %v23749_v42, %v8063_v56  ;;  %v23782_v50 = vmul.f32 %v23411_v58, %v23720_v32  ;;  %v23786_v46 = vmul.f32 %v23720_v32, %v23420_v7  ;;  %v23790_v55 = vmul.f32 %v23417_v4, %v23720_v32 }
 0x637   :  { %v23794_v52 = vmul.f32 %v23720_v32, %v23426_v14  ;;  %v23798_v1 = vmul.f32 %v23423_v10, %v23720_v32  ;;  %v23802_v58 = vmul.f32 %v23720_v32, %v23432_v13  ;;  %v23806_v7 = vmul.f32 %v23429_v29, %v23720_v32 }
 0x638   :  { %v8197_v38 = vmax.f32 %v8133_v39, 0.0  ;;  %v23810_v4 = vmul.f32 %v23720_v32, %v23438_v47  ;;  %v23814_v14 = vmul.f32 %v23435_v63, %v23720_v32  ;;  %v23818_v10 = vmul.f32 %v23720_v32, %v23444_v61  ;;  %v27743_v39 = vld [vmem:[#allocation17_spill] sm:$0xff] }
 0x639   :  { %v23822_v13 = vmul.f32 %v23441_v41, %v23720_v32  ;;  %v23826_v29 = vmul.f32 %v23720_v32, %v23450_v9  ;;  %v23830_v47 = vmul.f32 %v23447_v0, %v23720_v32  ;;  %v23834_v63 = vmul.f32 %v23720_v32, %v23456_v23 }
 0x63a   :  { %v23838_v61 = vmul.f32 %v23453_v20, %v23720_v32  ;;  %v23842_v41 = vmul.f32 %v23720_v32, %v23462_v27  ;;  %v23846_v9 = vmul.f32 %v23459_v25, %v23720_v32  ;;  %v23850_v0 = vmul.f32 %v23720_v32, %v23468_v16  ;;  %8261 = vst.msk [vmem:[#allocation2 + $0x331] sm:$0xff] %vm26_vm1, %v8197_v38 }
 0x63b   :  { %v23855_v23 = vmul.f32 %v23465_v12, %v23720_v32  ;;  %v23859_v20 = vmul.f32 %v23720_v32, %v23474_v21  ;;  %v23863_v27 = vmul.f32 %v23471_v34, %v23720_v32  ;;  %v23867_v25 = vmul.f32 %v23720_v32, %v23480_v44 }
 0x63c   :  { %v23871_v16 = vmul.f32 %v23477_v59, %v23720_v32  ;;  %v23875_v12 = vmul.f32 %v23720_v32, %v23486_v54  ;;  %v23879_v21 = vmul.f32 %v23483_v48, %v23720_v32  ;;  %v23883_v34 = vmul.f32 %v23720_v32, %v23492_v5 }
 0x63d   :  { %v23887_v44 = vmul.f32 %v23489_v60, %v23720_v32  ;;  %v23891_v59 = vmul.f32 %v23720_v32, %v23498_v30  ;;  %v23895_v54 = vmul.f32 %v23495_v11, %v23720_v32  ;;  %v23899_v48 = vmul.f32 %v23720_v32, %v27735_v15  ;;  %v27745_v15 = vld [vmem:[#allocation16_spill] sm:$0xff] }
 0x63e   :  { %v23903_v5 = vmul.f32 %v27736_v31, %v23720_v32  ;;  %v23907_v60 = vmul.f32 %v23720_v32, %v27737_v22  ;;  %v23911_v30 = vmul.f32 %v27738_v35, %v23720_v32  ;;  %v23915_v11 = vmul.f32 %v23720_v32, %v27739_v24  ;;  %v27747_v22 = vld [vmem:[#allocation19_spill] sm:$0xff]  ;;  %v27749_v24 = vld [vmem:[#allocation18_spill] sm:$0xff] }
 0x63f   :  { %v23919_v56 = vmul.f32 %v27740_v2, %v23720_v32  ;;  %v23923_v37 = vmul.f32 %v23720_v32, %v27741_v26  ;;  %v23927_v8 = vmul.f32 %v27742_v51, %v23720_v32  ;;  %v23931_v38 = vmul.f32 %v23720_v32, %v27743_v39  ;;  %v27751_v26 = vld [vmem:[#allocation21_spill] sm:$0xff] }
 0x640   :  { %v23935_v31 = vmul.f32 %v27745_v15, %v23720_v32  ;;  %v23939_v35 = vmul.f32 %v23720_v32, %v27747_v22  ;;  %v23943_v2 = vmul.f32 %v27749_v24, %v23720_v32  ;;  %v23947_v51 = vmul.f32 %v23720_v32, %v27751_v26 }
 0x641   :  { %27744 = vst [vmem:[#allocation30_spill] sm:$0xff] %v23931_v38  ;;  %v23951_v39 = vmul.f32 %v27753_v3, %v23720_v32  ;;  %v27755_v38 = vld [vmem:[#allocation23_spill] sm:$0xff] }
 0x642   :  { %27746 = vst [vmem:[#allocation31_spill] sm:$0xff] %v23935_v31  ;;  %27748 = vst [vmem:[#allocation32_spill] sm:$0xff] %v23939_v35  ;;  %v23955_v15 = vmul.f32 %v23720_v32, %v27755_v38  ;;  %v27756_v31 = vld [vmem:[#allocation22_spill] sm:$0xff]  ;;  %v27757_v35 = vld [vmem:[#allocation25_spill] sm:$0xff] }
 0x643   :  { %27750 = vst [vmem:[#allocation33_spill] sm:$0xff] %v23943_v2  ;;  %27752 = vst [vmem:[#allocation34_spill] sm:$0xff] %v23947_v51  ;;  %v23959_v22 = vmul.f32 %v27756_v31, %v23720_v32  ;;  %v23963_v24 = vmul.f32 %v23720_v32, %v27757_v35  ;;  %v27758_v2 = vld [vmem:[#allocation24_spill] sm:$0xff]  ;;  %v27759_v51 = vld [vmem:[#allocation27_spill] sm:$0xff]  ;;  %v23979_v31 = vmul.f32 %v23561_v18, %v23720_v32 }
 0x644   :  { %27754 = vst [vmem:[#allocation35_spill] sm:$0xff] %v23951_v39  ;;  %v23967_v26 = vmul.f32 %v27758_v2, %v23720_v32  ;;  %v23971_v3 = vmul.f32 %v23720_v32, %v27759_v51  ;;  %v27760_v39 = vld [vmem:[#allocation26_spill] sm:$0xff]  ;;  %v23983_v35 = vadd.f32 %v23749_v42, %v23726_v57  ;;  %v23987_v2 = vadd.f32 %v23749_v42, %v23730_v33 }
 0x645   :  { %v23975_v38 = vmul.f32 %v27760_v39, %v23720_v32  ;;  %v23991_v51 = vadd.f32 %v23749_v42, %v23734_v49  ;;  %v23995_v39 = vadd.f32 %v23749_v42, %v23738_v17  ;;  %v23999_v18 = vadd.f32 %v23749_v42, %v23742_v36 }
 0x646   :  { %v24003_v32 = vadd.f32 %v23749_v42, %v23746_v40  ;;  %v24007_v57 = vadd.f32 %v23749_v42, %v23753_v19  ;;  %v24011_v33 = vadd.f32 %v23749_v42, %v23757_v28  ;;  %v24015_v49 = vadd.f32 %v23749_v42, %v23761_v6 }
 0x647   :  { %v24019_v17 = vadd.f32 %v23749_v42, %v23765_v62  ;;  %v24023_v36 = vadd.f32 %v23749_v42, %v23769_v53  ;;  %v24027_v40 = vadd.f32 %v23749_v42, %v23773_v45  ;;  %v24031_v19 = vadd.f32 %v23749_v42, %v23777_v43 }
 0x648   :  { %v24035_v28 = vadd.f32 %v23749_v42, %v23782_v50  ;;  %v24039_v6 = vadd.f32 %v23749_v42, %v23786_v46  ;;  %v24043_v62 = vadd.f32 %v23749_v42, %v23790_v55  ;;  %v24047_v53 = vadd.f32 %v23749_v42, %v23794_v52 }
 0x649   :  { %v24051_v45 = vadd.f32 %v23749_v42, %v23798_v1  ;;  %v24055_v43 = vadd.f32 %v23749_v42, %v23802_v58  ;;  %v24059_v50 = vadd.f32 %v23749_v42, %v23806_v7  ;;  %v24063_v46 = vadd.f32 %v23749_v42, %v23810_v4 }
 0x64a   :  { %v24067_v55 = vadd.f32 %v23749_v42, %v23814_v14  ;;  %v24071_v52 = vadd.f32 %v23749_v42, %v23818_v10  ;;  %v24075_v1 = vadd.f32 %v23749_v42, %v23822_v13  ;;  %v24079_v58 = vadd.f32 %v23749_v42, %v23826_v29 }
 0x64b   :  { %v24083_v7 = vadd.f32 %v23749_v42, %v23830_v47  ;;  %v24087_v4 = vadd.f32 %v23749_v42, %v23834_v63  ;;  %v24091_v14 = vadd.f32 %v23749_v42, %v23838_v61  ;;  %v24095_v10 = vadd.f32 %v23749_v42, %v23842_v41 }
 0x64c   :  { %v24099_v13 = vadd.f32 %v23749_v42, %v23846_v9  ;;  %v24103_v29 = vadd.f32 %v23749_v42, %v23850_v0  ;;  %v24107_v47 = vadd.f32 %v23749_v42, %v23855_v23  ;;  %v24111_v63 = vadd.f32 %v23749_v42, %v23859_v20 }
 0x64d   :  { %v24115_v61 = vadd.f32 %v23749_v42, %v23863_v27  ;;  %v24119_v41 = vadd.f32 %v23749_v42, %v23867_v25  ;;  %v24123_v9 = vadd.f32 %v23749_v42, %v23871_v16  ;;  %v24127_v0 = vadd.f32 %v23749_v42, %v23875_v12 }
 0x64e   :  { %v24131_v23 = vadd.f32 %v23749_v42, %v23879_v21  ;;  %v24135_v20 = vadd.f32 %v23749_v42, %v23883_v34  ;;  %v24139_v27 = vadd.f32 %v23749_v42, %v23887_v44  ;;  %v24143_v25 = vadd.f32 %v23749_v42, %v23891_v59 }
 0x64f   :  { %v24147_v16 = vadd.f32 %v23749_v42, %v23895_v54  ;;  %v24151_v12 = vadd.f32 %v23749_v42, %v23899_v48  ;;  %v24155_v21 = vadd.f32 %v23749_v42, %v23903_v5  ;;  %v24159_v34 = vadd.f32 %v23749_v42, %v23907_v60  ;;  %v27766_v60 = vld [vmem:[#allocation30_spill] sm:$0xff] }
 0x650   :  { %v24163_v44 = vadd.f32 %v23749_v42, %v23911_v30  ;;  %v24167_v59 = vadd.f32 %v23749_v42, %v23915_v11  ;;  %v24171_v54 = vadd.f32 %v23749_v42, %v23919_v56  ;;  %v24175_v48 = vadd.f32 %v23749_v42, %v23923_v37 }
 0x651   :  { %v24179_v5 = vadd.f32 %v23749_v42, %v23927_v8  ;;  %v24183_v30 = vadd.f32 %v23749_v42, %v27766_v60 }
 0x652   :  { %27761 = vst [vmem:[#allocation36_spill] sm:$0xff] %v24163_v44  ;;  %27762 = vst [vmem:[#allocation37_spill] sm:$0xff] %v24167_v59  ;;  %v27767_v44 = vld [vmem:[#allocation31_spill] sm:$0xff]  ;;  %v27768_v59 = vld [vmem:[#allocation32_spill] sm:$0xff] }
 0x653   :  { %27763 = vst [vmem:[#allocation38_spill] sm:$0xff] %v24171_v54  ;;  %27764 = vst [vmem:[#allocation39_spill] sm:$0xff] %v24175_v48  ;;  %v24187_v11 = vadd.f32 %v23749_v42, %v27767_v44  ;;  %v24191_v56 = vadd.f32 %v23749_v42, %v27768_v59  ;;  %v27769_v54 = vld [vmem:[#allocation33_spill] sm:$0xff]  ;;  %v27770_v48 = vld [vmem:[#allocation34_spill] sm:$0xff]  ;;  %v24207_v44 = vadd.f32 %v23749_v42, %v23955_v15 }
 0x654   :  { %27765 = vst [vmem:[#allocation40_spill] sm:$0xff] %v24179_v5  ;;  %v24195_v37 = vadd.f32 %v23749_v42, %v27769_v54  ;;  %v24199_v8 = vadd.f32 %v23749_v42, %v27770_v48  ;;  %v27771_v5 = vld [vmem:[#allocation35_spill] sm:$0xff]  ;;  %v24211_v59 = vadd.f32 %v23749_v42, %v23959_v22  ;;  %v24215_v54 = vadd.f32 %v23749_v42, %v23963_v24 }
 0x655   :  { %v24203_v60 = vadd.f32 %v23749_v42, %v27771_v5  ;;  %v24219_v48 = vadd.f32 %v23749_v42, %v23967_v26  ;;  %v24223_v5 = vadd.f32 %v23749_v42, %v23971_v3  ;;  %v24227_v15 = vadd.f32 %v23749_v42, %v23975_v38 }
 0x656   :  { %27772 = vst [vmem:[#allocation41_spill] sm:$0xff] %v24211_v59  ;;  %27773 = vst [vmem:[#allocation42_spill] sm:$0xff] %v24215_v54  ;;  %v24231_v22 = vadd.f32 %v23749_v42, %v23979_v31  ;;  %v8135_v59 = vmax.f32 %v23983_v35, 0.0  ;;  %v8136_v24 = vmax.f32 %v23987_v2, 0.0  ;;  %v8137_v54 = vmax.f32 %v23991_v51, 0.0 }
 0x657   :  { %27774 = vst [vmem:[#allocation43_spill] sm:$0xff] %v24219_v48  ;;  %27775 = vst [vmem:[#allocation44_spill] sm:$0xff] %v24223_v5  ;;  %v8138_v26 = vmax.f32 %v23995_v39, 0.0  ;;  %v8139_v48 = vmax.f32 %v23999_v18, 0.0  ;;  %v8140_v3 = vmax.f32 %v24003_v32, 0.0  ;;  %v8141_v5 = vmax.f32 %v24007_v57, 0.0 }
 0x658   :  { %27776 = vst [vmem:[#allocation45_spill] sm:$0xff] %v24227_v15  ;;  %v8142_v38 = vmax.f32 %v24011_v33, 0.0  ;;  %v8143_v15 = vmax.f32 %v24015_v49, 0.0  ;;  %8199 = vst.msk [vmem:[#allocation2 + $0x19] sm:$0xff] %vm26_vm1, %v8135_v59  ;;  %v8144_v42 = vmax.f32 %v24019_v17, 0.0  ;;  %v8145_v31 = vmax.f32 %v24023_v36, 0.0 }
 0x659   :  { %v8146_v35 = vmax.f32 %v24027_v40, 0.0  ;;  %v8147_v2 = vmax.f32 %v24031_v19, 0.0  ;;  %8200 = vst.msk [vmem:[#allocation2 + $0x21] sm:$0xff] %vm26_vm1, %v8136_v24  ;;  %8201 = vst.msk [vmem:[#allocation2 + $0x31] sm:$0xff] %vm26_vm1, %v8137_v54  ;;  %v8148_v51 = vmax.f32 %v24035_v28, 0.0  ;;  %v8149_v39 = vmax.f32 %v24039_v6, 0.0 }
 0x65a   :  { %8202 = vst.msk [vmem:[#allocation2 + $0x39] sm:$0xff] %vm26_vm1, %v8138_v26  ;;  %8203 = vst.msk [vmem:[#allocation2 + $0x49] sm:$0xff] %vm26_vm1, %v8139_v48  ;;  %v8150_v18 = vmax.f32 %v24043_v62, 0.0  ;;  %v8151_v32 = vmax.f32 %v24047_v53, 0.0  ;;  %v24262_v57 = vld [vmem:[%s27134_s2 + $0x8] sm:$0xf] }
 0x65b   :  { %8204 = vst.msk [vmem:[#allocation2 + $0x51] sm:$0xff] %vm26_vm1, %v8140_v3  ;;  %8205 = vst.msk [vmem:[#allocation2 + $0x61] sm:$0xff] %vm26_vm1, %v8141_v5  ;;  %v8152_v33 = vmax.f32 %v24051_v45, 0.0  ;;  %v8153_v49 = vmax.f32 %v24055_v43, 0.0  ;;  %v8154_v17 = vmax.f32 %v24059_v50, 0.0  ;;  %v8155_v36 = vmax.f32 %v24063_v46, 0.0  ;;  %19783 = vmatprep.subr.msk.mxu1 %vm500_vm0, %v24262_v57 }
 0x65c   :  { %8206 = vst.msk [vmem:[#allocation2 + $0x69] sm:$0xff] %vm26_vm1, %v8142_v38  ;;  %8207 = vst.msk [vmem:[#allocation2 + $0x79] sm:$0xff] %vm26_vm1, %v8143_v15  ;;  %v8156_v40 = vmax.f32 %v24067_v55, 0.0  ;;  %v8157_v19 = vmax.f32 %v24071_v52, 0.0  ;;  %v8158_v28 = vmax.f32 %v24075_v1, 0.0  ;;  %v8159_v6 = vmax.f32 %v24079_v58, 0.0 }
 0x65d   :  { %8208 = vst.msk [vmem:[#allocation2 + $0x81] sm:$0xff] %vm26_vm1, %v8144_v42  ;;  %8209 = vst.msk [vmem:[#allocation2 + $0x91] sm:$0xff] %vm26_vm1, %v8145_v31  ;;  %v8160_v62 = vmax.f32 %v24083_v7, 0.0  ;;  %v8161_v53 = vmax.f32 %v24087_v4, 0.0  ;;  %v8162_v45 = vmax.f32 %v24091_v14, 0.0  ;;  %v8163_v43 = vmax.f32 %v24095_v10, 0.0 }
 0x65e   :  { %8210 = vst.msk [vmem:[#allocation2 + $0x99] sm:$0xff] %vm26_vm1, %v8146_v35  ;;  %8211 = vst.msk [vmem:[#allocation2 + $0xa9] sm:$0xff] %vm26_vm1, %v8147_v2  ;;  %v8164_v50 = vmax.f32 %v24099_v13, 0.0  ;;  %v8165_v46 = vmax.f32 %v24103_v29, 0.0  ;;  %v8166_v55 = vmax.f32 %v24107_v47, 0.0  ;;  %v8167_v52 = vmax.f32 %v24111_v63, 0.0 }
 0x65f   :  { %8212 = vst.msk [vmem:[#allocation2 + $0xb1] sm:$0xff] %vm26_vm1, %v8148_v51  ;;  %8213 = vst.msk [vmem:[#allocation2 + $0xc1] sm:$0xff] %vm26_vm1, %v8149_v39  ;;  %v8168_v1 = vmax.f32 %v24115_v61, 0.0  ;;  %v8169_v58 = vmax.f32 %v24119_v41, 0.0  ;;  %v8170_v7 = vmax.f32 %v24123_v9, 0.0  ;;  %v8171_v4 = vmax.f32 %v24127_v0, 0.0 }
 0x660   :  { %8214 = vst.msk [vmem:[#allocation2 + $0xc9] sm:$0xff] %vm26_vm1, %v8150_v18  ;;  %8215 = vst.msk [vmem:[#allocation2 + $0xd9] sm:$0xff] %vm26_vm1, %v8151_v32  ;;  %v24306_v14 = vld [vmem:[#allocation2 + $0x18] sm:$0xff]  ;;  %v8172_v10 = vmax.f32 %v24131_v23, 0.0  ;;  %v8173_v13 = vmax.f32 %v24135_v20, 0.0  ;;  %v8174_v29 = vmax.f32 %v24139_v27, 0.0 }
 0x661   :  { %8216 = vst.msk [vmem:[#allocation2 + $0xe1] sm:$0xff] %vm26_vm1, %v8152_v33  ;;  %8217 = vst.msk [vmem:[#allocation2 + $0xf1] sm:$0xff] %vm26_vm1, %v8153_v49  ;;  %v8175_v47 = vmax.f32 %v24143_v25, 0.0  ;;  %19592 = vmatprep.mubr.msk.f32.mxu1 %vm26_vm1, %v24306_v14  ;;  %v24318_v63 = vld [vmem:[#allocation2 + $0x20] sm:$0xff]  ;;  %v8176_v61 = vmax.f32 %v24147_v16, 0.0  ;;  %v8177_v41 = vmax.f32 %v24151_v12, 0.0 }
 0x662   :  { %8218 = vst.msk [vmem:[#allocation2 + $0xf9] sm:$0xff] %vm26_vm1, %v8154_v17  ;;  %8219 = vst.msk [vmem:[#allocation2 + $0x109] sm:$0xff] %vm26_vm1, %v8155_v36  ;;  %v8178_v9 = vmax.f32 %v24155_v21, 0.0  ;;  %v8179_v0 = vmax.f32 %v24159_v34, 0.0  ;;  %19593 = vmatmul.mubr.msk.f32.gmra.mrb[2].mxu1 %vm26_vm1, %v24318_v63  ;;  %v24330_v23 = vld [vmem:[#allocation2 + $0x30] sm:$0xff]  ;;  %v27777_v20 = vld [vmem:[#allocation36_spill] sm:$0xff] }
 0x663   :  { %8220 = vst.msk [vmem:[#allocation2 + $0x111] sm:$0xff] %vm26_vm1, %v8156_v40  ;;  %8221 = vst.msk [vmem:[#allocation2 + $0x121] sm:$0xff] %vm26_vm1, %v8157_v19  ;;  %v8180_v27 = vmax.f32 %v27777_v20, 0.0  ;;  %v27778_v25 = vld [vmem:[#allocation37_spill] sm:$0xff]  ;;  %v27779_v12 = vld [vmem:[#allocation38_spill] sm:$0xff]  ;;  %19595 = vmatprep.mubr.msk.f32.mxu1 %vm26_vm1, %v24330_v23  ;;  %v8185_v5 = vmax.f32 %v24183_v30, 0.0 }
 0x664   :  { %8222 = vst.msk [vmem:[#allocation2 + $0x129] sm:$0xff] %vm26_vm1, %v8158_v28  ;;  %8223 = vst.msk [vmem:[#allocation2 + $0x139] sm:$0xff] %vm26_vm1, %v8159_v6  ;;  %v8181_v16 = vmax.f32 %v27778_v25, 0.0  ;;  %v8182_v21 = vmax.f32 %v27779_v12, 0.0  ;;  %v27780_v34 = vld [vmem:[#allocation39_spill] sm:$0xff]  ;;  %v27781_v54 = vld [vmem:[#allocation40_spill] sm:$0xff] }
 0x665   :  { %8224 = vst.msk [vmem:[#allocation2 + $0x141] sm:$0xff] %vm26_vm1, %v8160_v62  ;;  %8225 = vst.msk [vmem:[#allocation2 + $0x151] sm:$0xff] %vm26_vm1, %v8161_v53  ;;  %v8183_v59 = vmax.f32 %v27780_v34, 0.0  ;;  %v8184_v48 = vmax.f32 %v27781_v54, 0.0  ;;  %v8186_v15 = vmax.f32 %v24187_v11, 0.0  ;;  %v8187_v24 = vmax.f32 %v24191_v56, 0.0 }
 0x666   :  { %8226 = vst.msk [vmem:[#allocation2 + $0x159] sm:$0xff] %vm26_vm1, %v8162_v45  ;;  %8227 = vst.msk [vmem:[#allocation2 + $0x169] sm:$0xff] %vm26_vm1, %v8163_v43  ;;  %v8188_v26 = vmax.f32 %v24195_v37, 0.0  ;;  %v8189_v3 = vmax.f32 %v24199_v8, 0.0  ;;  %v8190_v38 = vmax.f32 %v24203_v60, 0.0  ;;  %v8191_v30 = vmax.f32 %v24207_v44, 0.0 }
 0x667   :  { %8228 = vst.msk [vmem:[#allocation2 + $0x171] sm:$0xff] %vm26_vm1, %v8164_v50  ;;  %8229 = vst.msk [vmem:[#allocation2 + $0x181] sm:$0xff] %vm26_vm1, %v8165_v46  ;;  %v24358_v11 = vld [vmem:[#allocation2 + $0x38] sm:$0xff]  ;;  %v27782_v56 = vld [vmem:[#allocation41_spill] sm:$0xff]  ;;  %v8198_v18 = vmax.f32 %v24231_v22, 0.0 }
 0x668   :  { %8230 = vst.msk [vmem:[#allocation2 + $0x189] sm:$0xff] %vm26_vm1, %v8166_v55  ;;  %8231 = vst.msk [vmem:[#allocation2 + $0x1c9] sm:$0xff] %vm26_vm1, %v8167_v52  ;;  %v8192_v42 = vmax.f32 %v27782_v56, 0.0  ;;  %v27783_v31 = vld [vmem:[#allocation42_spill] sm:$0xff]  ;;  %v27784_v35 = vld [vmem:[#allocation43_spill] sm:$0xff]  ;;  %19596 = vmatmul.mubr.msk.f32.gmra.mrb[4].mxu1 %vm26_vm1, %v24358_v11 }
 0x669   :  { %8232 = vst.msk [vmem:[#allocation2 + $0x1d1] sm:$0xff] %vm26_vm1, %v8168_v1  ;;  %8233 = vst.msk [vmem:[#allocation2 + $0x1e1] sm:$0xff] %vm26_vm1, %v8169_v58  ;;  %v8193_v37 = vmax.f32 %v27783_v31, 0.0  ;;  %v8194_v8 = vmax.f32 %v27784_v35, 0.0  ;;  %v27785_v2 = vld [vmem:[#allocation44_spill] sm:$0xff]  ;;  %v24370_v44 = vld [vmem:[#allocation2 + $0x48] sm:$0xff] }
 0x66a   :  { %8234 = vst.msk [vmem:[#allocation2 + $0x1e9] sm:$0xff] %vm26_vm1, %v8170_v7  ;;  %8235 = vst.msk [vmem:[#allocation2 + $0x1f9] sm:$0xff] %vm26_vm1, %v8171_v4  ;;  %v8195_v60 = vmax.f32 %v27785_v2, 0.0  ;;  %v27786_v51 = vld [vmem:[#allocation45_spill] sm:$0xff]  ;;  %19598 = vmatprep.mubr.msk.f32.mxu1 %vm26_vm1, %v24370_v44  ;;  %v24386_v22 = vld [vmem:[#allocation2 + $0x50] sm:$0xff] }
 0x66b   :  { %8236 = vst.msk [vmem:[#allocation2 + $0x201] sm:$0xff] %vm26_vm1, %v8172_v10  ;;  %8237 = vst.msk [vmem:[#allocation2 + $0x211] sm:$0xff] %vm26_vm1, %v8173_v13  ;;  %v8196_v39 = vmax.f32 %v27786_v51, 0.0  ;;  %v24390_v32 = vld [vmem:[#allocation2 + $0x60] sm:$0xff]  ;;  %v24394_v33 = vld [vmem:[#allocation2 + $0x68] sm:$0xff] }
 0x66c   :  { %8238 = vst.msk [vmem:[#allocation2 + $0x219] sm:$0xff] %vm26_vm1, %v8174_v29  ;;  %8239 = vst.msk [vmem:[#allocation2 + $0x229] sm:$0xff] %vm26_vm1, %v8175_v47  ;;  %19599 = vmatmul.mubr.msk.f32.gmra.mrb[6].mxu1 %vm26_vm1, %v24386_v22  ;;  %v24398_v49 = vld [vmem:[#allocation2 + $0x78] sm:$0xff]  ;;  %v24402_v17 = vld [vmem:[#allocation2 + $0x80] sm:$0xff] }
 0x66d   :  { %8240 = vst.msk [vmem:[#allocation2 + $0x231] sm:$0xff] %vm26_vm1, %v8176_v61  ;;  %8241 = vst.msk [vmem:[#allocation2 + $0x241] sm:$0xff] %vm26_vm1, %v8177_v41  ;;  %19601 = vmatprep.mubr.msk.f32.mxu1 %vm26_vm1, %v24390_v32  ;;  %v24406_v36 = vld [vmem:[#allocation2 + $0x90] sm:$0xff]  ;;  %v24410_v40 = vld [vmem:[#allocation2 + $0x98] sm:$0xff] }
 0x66e   :  { %8242 = vst.msk [vmem:[#allocation2 + $0x249] sm:$0xff] %vm26_vm1, %v8178_v9  ;;  %8243 = vst.msk [vmem:[#allocation2 + $0x259] sm:$0xff] %vm26_vm1, %v8179_v0  ;;  %v24414_v19 = vld [vmem:[#allocation2 + $0xa8] sm:$0xff]  ;;  %v24418_v28 = vld [vmem:[#allocation2 + $0xb0] sm:$0xff] }
 0x66f   :  { %8244 = vst.msk [vmem:[#allocation2 + $0x261] sm:$0xff] %vm26_vm1, %v8180_v27  ;;  %8245 = vst.msk [vmem:[#allocation2 + $0x271] sm:$0xff] %vm26_vm1, %v8181_v16  ;;  %v24422_v6 = vld [vmem:[#allocation2 + $0xc0] sm:$0xff]  ;;  %v24426_v62 = vld [vmem:[#allocation2 + $0xc8] sm:$0xff] }
 0x670   :  { %8246 = vst.msk [vmem:[#allocation2 + $0x279] sm:$0xff] %vm26_vm1, %v8182_v21  ;;  %8247 = vst.msk [vmem:[#allocation2 + $0x289] sm:$0xff] %vm26_vm1, %v8183_v59  ;;  %19602 = vmatmul.mubr.msk.f32.gmra.mrb[8].mxu1 %vm26_vm1, %v24394_v33  ;;  %v24430_v53 = vld [vmem:[#allocation2 + $0xd8] sm:$0xff]  ;;  %v24434_v45 = vld [vmem:[#allocation2 + $0xe0] sm:$0xff] }
 0x671   :  { %8248 = vst.msk [vmem:[#allocation2 + $0x291] sm:$0xff] %vm26_vm1, %v8184_v48  ;;  %8249 = vst.msk [vmem:[#allocation2 + $0x2a1] sm:$0xff] %vm26_vm1, %v8185_v5  ;;  %19604 = vmatprep.mubr.msk.f32.mxu1 %vm26_vm1, %v24398_v49  ;;  %v24438_v43 = vld [vmem:[#allocation2 + $0xf0] sm:$0xff]  ;;  %v24442_v50 = vld [vmem:[#allocation2 + $0xf8] sm:$0xff] }
 0x672   :  { %8250 = vst.msk [vmem:[#allocation2 + $0x2a9] sm:$0xff] %vm26_vm1, %v8186_v15  ;;  %8251 = vst.msk [vmem:[#allocation2 + $0x2b9] sm:$0xff] %vm26_vm1, %v8187_v24  ;;  %v24446_v46 = vld [vmem:[#allocation2 + $0x108] sm:$0xff]  ;;  %v24450_v55 = vld [vmem:[#allocation2 + $0x110] sm:$0xff] }
 0x673   :  { %8252 = vst.msk [vmem:[#allocation2 + $0x2c1] sm:$0xff] %vm26_vm1, %v8188_v26  ;;  %8253 = vst.msk [vmem:[#allocation2 + $0x2d1] sm:$0xff] %vm26_vm1, %v8189_v3  ;;  %v24454_v52 = vld [vmem:[#allocation2 + $0x120] sm:$0xff]  ;;  %v24458_v1 = vld [vmem:[#allocation2 + $0x128] sm:$0xff] }
 0x674   :  { %8254 = vst.msk [vmem:[#allocation2 + $0x2d9] sm:$0xff] %vm26_vm1, %v8190_v38  ;;  %8255 = vst.msk [vmem:[#allocation2 + $0x2e9] sm:$0xff] %vm26_vm1, %v8191_v30  ;;  %19605 = vmatmul.mubr.msk.f32.gmra.mrb[10].mxu1 %vm26_vm1, %v24402_v17  ;;  %v24462_v58 = vld [vmem:[#allocation2 + $0x138] sm:$0xff]  ;;  %v24466_v7 = vld [vmem:[#allocation2 + $0x140] sm:$0xff] }
 0x675   :  { %8256 = vst.msk [vmem:[#allocation2 + $0x2f1] sm:$0xff] %vm26_vm1, %v8192_v42  ;;  %8257 = vst.msk [vmem:[#allocation2 + $0x301] sm:$0xff] %vm26_vm1, %v8193_v37  ;;  %19607 = vmatprep.mubr.msk.f32.mxu1 %vm26_vm1, %v24406_v36  ;;  %v24470_v4 = vld [vmem:[#allocation2 + $0x150] sm:$0xff]  ;;  %v24474_v10 = vld [vmem:[#allocation2 + $0x158] sm:$0xff] }
 0x676   :  { %8258 = vst.msk [vmem:[#allocation2 + $0x309] sm:$0xff] %vm26_vm1, %v8194_v8  ;;  %8259 = vst.msk [vmem:[#allocation2 + $0x319] sm:$0xff] %vm26_vm1, %v8195_v60  ;;  %v24478_v13 = vld [vmem:[#allocation2 + $0x168] sm:$0xff]  ;;  %v8295_v29 = vld [vmem:[#allocation2 + $0x1b0] sm:$0xff] }
 0x677   :  { %8260 = vst.msk [vmem:[#allocation2 + $0x321] sm:$0xff] %vm26_vm1, %v8196_v39  ;;  %8262 = vst.msk [vmem:[#allocation2 + $0x339] sm:$0xff] %vm26_vm1, %v8198_v18  ;;  %v24482_v47 = vld [vmem:[#allocation2 + $0x170] sm:$0xff]  ;;  %v8296_v61 = vld [vmem:[#allocation2 + $0x1b8] sm:$0xff] }
 0x678   :  { %19608 = vmatmul.mubr.msk.f32.gmra.mrb[12].mxu1 %vm26_vm1, %v24410_v40  ;;  %v24488_v41 = vld [vmem:[#allocation2 + $0x1c8] sm:$0xff]  ;;  %v24492_v9 = vld [vmem:[#allocation2 + $0x1d0] sm:$0xff]  ;;  %v24496_v0 = vld [vmem:[#allocation2 + $0x1e0] sm:$0xff] }
 0x679   :  { %19610 = vmatprep.mubr.msk.f32.mxu1 %vm26_vm1, %v24414_v19  ;;  %v24500_v20 = vld [vmem:[#allocation2 + $0x1e8] sm:$0xff]  ;;  %v24504_v27 = vld [vmem:[#allocation2 + $0x1f8] sm:$0xff]  ;;  %v24508_v25 = vld [vmem:[#allocation2 + $0x200] sm:$0xff] }
 0x67a   :  { %v24512_v16 = vld [vmem:[#allocation2 + $0x210] sm:$0xff]  ;;  %v24516_v12 = vld [vmem:[#allocation2 + $0x218] sm:$0xff]  ;;  %v24520_v21 = vld [vmem:[#allocation2 + $0x228] sm:$0xff] }
 0x67b   :  { %v24524_v34 = vld [vmem:[#allocation2 + $0x230] sm:$0xff]  ;;  %v24528_v59 = vld [vmem:[#allocation2 + $0x240] sm:$0xff]  ;;  %v24532_v54 = vld [vmem:[#allocation2 + $0x248] sm:$0xff] }
 0x67c   :  { %19611 = vmatmul.mubr.msk.f32.gmra.mrb[14].mxu1 %vm26_vm1, %v24418_v28  ;;  %v24536_v48 = vld [vmem:[#allocation2 + $0x258] sm:$0xff]  ;;  %v24540_v5 = vld [vmem:[#allocation2 + $0x260] sm:$0xff]  ;;  %v24544_v15 = vld [vmem:[#allocation2 + $0x270] sm:$0xff] }
 0x67d   :  { %19613 = vmatprep.mubr.msk.f32.mxu1 %vm26_vm1, %v24422_v6  ;;  %v24548_v24 = vld [vmem:[#allocation2 + $0x278] sm:$0xff]  ;;  %v24552_v26 = vld [vmem:[#allocation2 + $0x288] sm:$0xff]  ;;  %v24556_v3 = vld [vmem:[#allocation2 + $0x290] sm:$0xff] }
 0x67e   :  { %v24560_v38 = vld [vmem:[#allocation2 + $0x2a0] sm:$0xff]  ;;  %v24564_v30 = vld [vmem:[#allocation2 + $0x2a8] sm:$0xff]  ;;  %v24568_v56 = vld [vmem:[#allocation2 + $0x2b8] sm:$0xff] }
 0x67f   :  { %v24572_v42 = vld [vmem:[#allocation2 + $0x2c0] sm:$0xff]  ;;  %v24576_v31 = vld [vmem:[#allocation2 + $0x2d0] sm:$0xff]  ;;  %v24580_v37 = vld [vmem:[#allocation2 + $0x2d8] sm:$0xff] }
 0x680   :  { %19614 = vmatmul.mubr.msk.f32.gmra.mrb[16].mxu1 %vm26_vm1, %v24426_v62  ;;  %v24584_v35 = vld [vmem:[#allocation2 + $0x2e8] sm:$0xff]  ;;  %v24588_v8 = vld [vmem:[#allocation2 + $0x2f0] sm:$0xff]  ;;  %v24592_v2 = vld [vmem:[#allocation2 + $0x300] sm:$0xff] }
 0x681   :  { %19616 = vmatprep.mubr.msk.f32.mxu1 %vm26_vm1, %v24430_v53  ;;  %v24596_v60 = vld [vmem:[#allocation2 + $0x308] sm:$0xff]  ;;  %v24600_v51 = vld [vmem:[#allocation2 + $0x318] sm:$0xff]  ;;  %v24604_v18 = vld [vmem:[#allocation2 + $0x320] sm:$0xff] }
 0x682   :  { %27787 = vst [vmem:[#allocation46_spill] sm:$0xff] %v24596_v60  ;;  %27788 = vst [vmem:[#allocation47_spill] sm:$0xff] %v24600_v51  ;;  %v8972_v39 = vld [vmem:[#allocation2 + $0x1] sm:$0xff] }
 0x683   :  { %27789 = vst [vmem:[#allocation48_spill] sm:$0xff] %v24604_v18 }
 0x684   :  { %19617 = vmatmul.mubr.msk.f32.gmra.mrb[18].mxu1 %vm26_vm1, %v24434_v45 }
 0x685   :  { %19619 = vmatprep.mubr.msk.f32.mxu1 %vm26_vm1, %v24438_v43 }
 0x688   :  { %19620 = vmatmul.mubr.msk.f32.gmra.mrb[20].mxu1 %vm26_vm1, %v24442_v50 }
 0x689   :  { %19622 = vmatprep.mubr.msk.f32.mxu1 %vm26_vm1, %v24446_v46 }
 0x68c   :  { %19623 = vmatmul.mubr.msk.f32.gmra.mrb[22].mxu1 %vm26_vm1, %v24450_v55 }
 0x68d   :  { %19625 = vmatprep.mubr.msk.f32.mxu1 %vm26_vm1, %v24454_v52 }
 0x690   :  { %19626 = vmatmul.mubr.msk.f32.gmra.mrb[24].mxu1 %vm26_vm1, %v24458_v1 }
 0x691   :  { %19628 = vmatprep.mubr.msk.f32.mxu1 %vm26_vm1, %v24462_v58 }
 0x694   :  { %19629 = vmatmul.mubr.msk.f32.gmra.mrb[26].mxu1 %vm26_vm1, %v24466_v7 }
 0x695   :  { %19631 = vmatprep.mubr.msk.f32.mxu1 %vm26_vm1, %v24470_v4 }
 0x698   :  { %19632 = vmatmul.mubr.msk.f32.gmra.mrb[28].mxu1 %vm26_vm1, %v24474_v10 }
 0x699   :  { %19634 = vmatprep.mubr.msk.f32.mxu1 %vm26_vm1, %v24478_v13 }
 0x69c   :  { %19635 = vmatmul.mubr.msk.f32.gmra.mrb[30].mxu1 %vm26_vm1, %v24482_v47 }
 0x69d   :  { %19637 = vmatprep.mubr.msk.f32.mxu1 %vm26_vm1, %v8295_v29  ;;  %v8973_v29 = vld [vmem:[#allocation2 + $0x9] sm:$0xff] }
 0x6a0   :  { %19638 = vmatmul.mubr.msk.f32.gmra.mrb[32].mxu1 %vm26_vm1, %v8296_v61  ;;  %v24612_v61 = vld [vmem:[%s27134_s2 + $0xc] sm:$0xf] }
 0x6a1   :  { %19640 = vmatprep.mubr.msk.f32.mxu1 %vm26_vm1, %v24488_v41 }
 0x6a4   :  { %19641 = vmatmul.mubr.msk.f32.gmra.mrb[34].mxu1 %vm26_vm1, %v24492_v9 }
 0x6a5   :  { %19643 = vmatprep.mubr.msk.f32.mxu1 %vm26_vm1, %v24496_v0 }
 0x6a8   :  { %19644 = vmatmul.mubr.msk.f32.gmra.mrb[36].mxu1 %vm26_vm1, %v24500_v20 }
 0x6a9   :  { %19646 = vmatprep.mubr.msk.f32.mxu1 %vm26_vm1, %v24504_v27 }
 0x6ac   :  { %19647 = vmatmul.mubr.msk.f32.gmra.mrb[38].mxu1 %vm26_vm1, %v24508_v25 }
 0x6ad   :  { %19649 = vmatprep.mubr.msk.f32.mxu1 %vm26_vm1, %v24512_v16 }
 0x6b0   :  { %19650 = vmatmul.mubr.msk.f32.gmra.mrb[40].mxu1 %vm26_vm1, %v24516_v12 }
 0x6b1   :  { %19652 = vmatprep.mubr.msk.f32.mxu1 %vm26_vm1, %v24520_v21 }
 0x6b4   :  { %19653 = vmatmul.mubr.msk.f32.gmra.mrb[42].mxu1 %vm26_vm1, %v24524_v34 }
 0x6b5   :  { %19655 = vmatprep.mubr.msk.f32.mxu1 %vm26_vm1, %v24528_v59 }
 0x6b8   :  { %19656 = vmatmul.mubr.msk.f32.gmra.mrb[44].mxu1 %vm26_vm1, %v24532_v54 }
 0x6b9   :  { %19658 = vmatprep.mubr.msk.f32.mxu1 %vm26_vm1, %v24536_v48 }
 0x6bc   :  { %19659 = vmatmul.mubr.msk.f32.gmra.mrb[46].mxu1 %vm26_vm1, %v24540_v5 }
 0x6bd   :  { %19661 = vmatprep.mubr.msk.f32.mxu1 %vm26_vm1, %v24544_v15 }
 0x6c0   :  { %19662 = vmatmul.mubr.msk.f32.gmra.mrb[48].mxu1 %vm26_vm1, %v24548_v24 }
 0x6c1   :  { %19664 = vmatprep.mubr.msk.f32.mxu1 %vm26_vm1, %v24552_v26 }
 0x6c4   :  { %19665 = vmatmul.mubr.msk.f32.gmra.mrb[50].mxu1 %vm26_vm1, %v24556_v3 }
 0x6c5   :  { %19667 = vmatprep.mubr.msk.f32.mxu1 %vm26_vm1, %v24560_v38 }
 0x6c8   :  { %19668 = vmatmul.mubr.msk.f32.gmra.mrb[52].mxu1 %vm26_vm1, %v24564_v30 }
 0x6c9   :  { %19670 = vmatprep.mubr.msk.f32.mxu1 %vm26_vm1, %v24568_v56 }
 0x6cc   :  { %19671 = vmatmul.mubr.msk.f32.gmra.mrb[54].mxu1 %vm26_vm1, %v24572_v42 }
 0x6cd   :  { %19673 = vmatprep.mubr.msk.f32.mxu1 %vm26_vm1, %v24576_v31 }
 0x6d0   :  { %19674 = vmatmul.mubr.msk.f32.gmra.mrb[56].mxu1 %vm26_vm1, %v24580_v37 }
 0x6d1   :  { %19676 = vmatprep.mubr.msk.f32.mxu1 %vm26_vm1, %v24584_v35 }
 0x6d4   :  { %19677 = vmatmul.mubr.msk.f32.gmra.mrb[58].mxu1 %vm26_vm1, %v24588_v8 }
 0x6d5   :  { %19679 = vmatprep.mubr.msk.f32.mxu1 %vm26_vm1, %v24592_v2 }
 0x6d8   :  { %19680 = vmatmul.mubr.msk.f32.gmra.mrb[60].mxu1 %vm26_vm1, %v24596_v60  ;;  %v24615_v60 = vld [vmem:[#allocation2 + $0x19] sm:$0xff] }
 0x6d9   :  { %19682 = vmatprep.mubr.msk.f32.mxu1 %vm26_vm1, %v24600_v51  ;;  %27790 = vst [vmem:[#allocation49_spill] sm:$0xff] %v24615_v60  ;;  %v24735_v51 = vld [vmem:[#allocation2 + $0x171] sm:$0xff] }
 0x6da   :  { %27819 = vst [vmem:[#allocation78_spill] sm:$0xff] %v24735_v51 }
 0x6dc   :  { %19683 = vmatmul.mubr.msk.f32.gmra.mrb[62].mxu1 %vm26_vm1, %v24604_v18  ;;  %v24627_v18 = vld [vmem:[#allocation2 + $0x31] sm:$0xff] }
 0x6dd   :  { %19687 = vmatprep.mubr.msk.f32.mxu1 %vm26_vm1, %v8972_v39  ;;  %v24623_v39 = vld [vmem:[#allocation2 + $0x21] sm:$0xff]  ;;  %27792 = vst [vmem:[#allocation51_spill] sm:$0xff] %v24627_v18 }
 0x6de   :  { %27791 = vst [vmem:[#allocation50_spill] sm:$0xff] %v24623_v39 }
 0x6e0   :  { %19688 = vmatmul.mubr.msk.f32.vlgmr.msra.gmra.mrb[0].mxu1 %vm26_vm1, %v8973_v29  ;;  %v24631_v29 = vld [vmem:[#allocation2 + $0x39] sm:$0xff] }
 0x6e1   :  { %19784 = vmatpush3.msk.msra.mxu1 %vm500_vm0, %v24262_v57  ;;  %19690 = vmatprep.mubr.msk.f32.mxu1 %vm26_vm1, %v24615_v60  ;;  %27793 = vst [vmem:[#allocation52_spill] sm:$0xff] %v24631_v29  ;;  %v24635_v57 = vld [vmem:[#allocation2 + $0x49] sm:$0xff]  ;;  %v24639_v60 = vld [vmem:[#allocation2 + $0x51] sm:$0xff] }
 0x6e2   :  { %19881 = vmatprep.subr.msk.mxu1 %vm500_vm0, %v24612_v61  ;;  %27794 = vst [vmem:[#allocation53_spill] sm:$0xff] %v24635_v57  ;;  %27795 = vst [vmem:[#allocation54_spill] sm:$0xff] %v24639_v60 }
 0x6e4   :  { %19691 = vmatmul.mubr.msk.f32.gmra.mrb[2].mxu1 %vm26_vm1, %v24623_v39  ;;  %v24643_v39 = vld [vmem:[#allocation2 + $0x61] sm:$0xff] }
 0x6e5   :  { %19693 = vmatprep.mubr.msk.f32.mxu1 %vm26_vm1, %v24627_v18  ;;  %27796 = vst [vmem:[#allocation55_spill] sm:$0xff] %v24643_v39  ;;  %v24647_v18 = vld [vmem:[#allocation2 + $0x69] sm:$0xff] }
 0x6e6   :  { %27797 = vst [vmem:[#allocation56_spill] sm:$0xff] %v24647_v18 }
 0x6e8   :  { %19694 = vmatmul.mubr.msk.f32.gmra.mrb[4].mxu1 %vm26_vm1, %v24631_v29  ;;  %v24651_v29 = vld [vmem:[#allocation2 + $0x79] sm:$0xff] }
 0x6e9   :  { %19696 = vmatprep.mubr.msk.f32.mxu1 %vm26_vm1, %v24635_v57  ;;  %27798 = vst [vmem:[#allocation57_spill] sm:$0xff] %v24651_v29  ;;  %v24655_v57 = vld [vmem:[#allocation2 + $0x81] sm:$0xff] }
 0x6ea   :  { %27799 = vst [vmem:[#allocation58_spill] sm:$0xff] %v24655_v57 }
 0x6ec   :  { %19697 = vmatmul.mubr.msk.f32.gmra.mrb[6].mxu1 %vm26_vm1, %v24639_v60  ;;  %v24659_v60 = vld [vmem:[#allocation2 + $0x91] sm:$0xff] }
 0x6ed   :  { %19699 = vmatprep.mubr.msk.f32.mxu1 %vm26_vm1, %v24643_v39  ;;  %27800 = vst [vmem:[#allocation59_spill] sm:$0xff] %v24659_v60  ;;  %v24663_v39 = vld [vmem:[#allocation2 + $0x99] sm:$0xff] }
 0x6ee   :  { %27801 = vst [vmem:[#allocation60_spill] sm:$0xff] %v24663_v39 }
 0x6f0   :  { %19700 = vmatmul.mubr.msk.f32.gmra.mrb[8].mxu1 %vm26_vm1, %v24647_v18  ;;  %v24667_v18 = vld [vmem:[#allocation2 + $0xa9] sm:$0xff] }
 0x6f1   :  { %19702 = vmatprep.mubr.msk.f32.mxu1 %vm26_vm1, %v24651_v29  ;;  %27802 = vst [vmem:[#allocation61_spill] sm:$0xff] %v24667_v18  ;;  %v24671_v29 = vld [vmem:[#allocation2 + $0xb1] sm:$0xff] }
 0x6f2   :  { %27803 = vst [vmem:[#allocation62_spill] sm:$0xff] %v24671_v29 }
 0x6f4   :  { %19703 = vmatmul.mubr.msk.f32.gmra.mrb[10].mxu1 %vm26_vm1, %v24655_v57  ;;  %v24675_v57 = vld [vmem:[#allocation2 + $0xc1] sm:$0xff] }
 0x6f5   :  { %19705 = vmatprep.mubr.msk.f32.mxu1 %vm26_vm1, %v24659_v60  ;;  %27804 = vst [vmem:[#allocation63_spill] sm:$0xff] %v24675_v57  ;;  %v24679_v60 = vld [vmem:[#allocation2 + $0xc9] sm:$0xff] }
 0x6f6   :  { %27805 = vst [vmem:[#allocation64_spill] sm:$0xff] %v24679_v60 }
 0x6f8   :  { %19706 = vmatmul.mubr.msk.f32.gmra.mrb[12].mxu1 %vm26_vm1, %v24663_v39  ;;  %v24683_v39 = vld [vmem:[#allocation2 + $0xd9] sm:$0xff] }
 0x6f9   :  { %19708 = vmatprep.mubr.msk.f32.mxu1 %vm26_vm1, %v24667_v18  ;;  %27806 = vst [vmem:[#allocation65_spill] sm:$0xff] %v24683_v39  ;;  %v24687_v18 = vld [vmem:[#allocation2 + $0xe1] sm:$0xff] }
 0x6fa   :  { %27807 = vst [vmem:[#allocation66_spill] sm:$0xff] %v24687_v18 }
 0x6fc   :  { %19709 = vmatmul.mubr.msk.f32.gmra.mrb[14].mxu1 %vm26_vm1, %v24671_v29  ;;  %v24691_v29 = vld [vmem:[#allocation2 + $0xf1] sm:$0xff] }
 0x6fd   :  { %19711 = vmatprep.mubr.msk.f32.mxu1 %vm26_vm1, %v24675_v57  ;;  %27808 = vst [vmem:[#allocation67_spill] sm:$0xff] %v24691_v29  ;;  %v24695_v57 = vld [vmem:[#allocation2 + $0xf9] sm:$0xff] }
 0x6fe   :  { %27809 = vst [vmem:[#allocation68_spill] sm:$0xff] %v24695_v57 }
 0x700   :  { %19712 = vmatmul.mubr.msk.f32.gmra.mrb[16].mxu1 %vm26_vm1, %v24679_v60  ;;  %v24699_v60 = vld [vmem:[#allocation2 + $0x109] sm:$0xff] }
 0x701   :  { %19714 = vmatprep.mubr.msk.f32.mxu1 %vm26_vm1, %v24683_v39  ;;  %27810 = vst [vmem:[#allocation69_spill] sm:$0xff] %v24699_v60  ;;  %v24703_v39 = vld [vmem:[#allocation2 + $0x111] sm:$0xff] }
 0x702   :  { %27811 = vst [vmem:[#allocation70_spill] sm:$0xff] %v24703_v39 }
 0x704   :  { %19715 = vmatmul.mubr.msk.f32.gmra.mrb[18].mxu1 %vm26_vm1, %v24687_v18  ;;  %v24707_v18 = vld [vmem:[#allocation2 + $0x121] sm:$0xff] }
 0x705   :  { %19717 = vmatprep.mubr.msk.f32.mxu1 %vm26_vm1, %v24691_v29  ;;  %27812 = vst [vmem:[#allocation71_spill] sm:$0xff] %v24707_v18  ;;  %v24711_v29 = vld [vmem:[#allocation2 + $0x129] sm:$0xff] }
 0x706   :  { %27813 = vst [vmem:[#allocation72_spill] sm:$0xff] %v24711_v29 }
 0x708   :  { %19718 = vmatmul.mubr.msk.f32.gmra.mrb[20].mxu1 %vm26_vm1, %v24695_v57  ;;  %v24715_v57 = vld [vmem:[#allocation2 + $0x139] sm:$0xff] }
 0x709   :  { %19720 = vmatprep.mubr.msk.f32.mxu1 %vm26_vm1, %v24699_v60  ;;  %27814 = vst [vmem:[#allocation73_spill] sm:$0xff] %v24715_v57  ;;  %v24719_v60 = vld [vmem:[#allocation2 + $0x141] sm:$0xff] }
 0x70a   :  { %27815 = vst [vmem:[#allocation74_spill] sm:$0xff] %v24719_v60 }
 0x70c   :  { %19721 = vmatmul.mubr.msk.f32.gmra.mrb[22].mxu1 %vm26_vm1, %v24703_v39  ;;  %v24723_v39 = vld [vmem:[#allocation2 + $0x151] sm:$0xff] }
 0x70d   :  { %19723 = vmatprep.mubr.msk.f32.mxu1 %vm26_vm1, %v24707_v18  ;;  %27816 = vst [vmem:[#allocation75_spill] sm:$0xff] %v24723_v39  ;;  %v24727_v18 = vld [vmem:[#allocation2 + $0x159] sm:$0xff] }
 0x70e   :  { %27817 = vst [vmem:[#allocation76_spill] sm:$0xff] %v24727_v18 }
 0x710   :  { %19724 = vmatmul.mubr.msk.f32.gmra.mrb[24].mxu1 %vm26_vm1, %v24711_v29  ;;  %v24731_v29 = vld [vmem:[#allocation2 + $0x169] sm:$0xff] }
 0x711   :  { %19726 = vmatprep.mubr.msk.f32.mxu1 %vm26_vm1, %v24715_v57  ;;  %27818 = vst [vmem:[#allocation77_spill] sm:$0xff] %v24731_v29  ;;  %v9004_v57 = vld [vmem:[#allocation2 + $0x1b1] sm:$0xff] }
 0x714   :  { %19727 = vmatmul.mubr.msk.f32.gmra.mrb[26].mxu1 %vm26_vm1, %v24719_v60  ;;  %v9005_v60 = vld [vmem:[#allocation2 + $0x1b9] sm:$0xff] }
 0x715   :  { %19729 = vmatprep.mubr.msk.f32.mxu1 %vm26_vm1, %v24723_v39  ;;  %v24741_v39 = vld [vmem:[#allocation2 + $0x1c9] sm:$0xff] }
 0x716   :  { %27820 = vst [vmem:[#allocation79_spill] sm:$0xff] %v24741_v39 }
 0x718   :  { %19730 = vmatmul.mubr.msk.f32.gmra.mrb[28].mxu1 %vm26_vm1, %v24727_v18  ;;  %v24745_v18 = vld [vmem:[#allocation2 + $0x1d1] sm:$0xff] }
 0x719   :  { %19732 = vmatprep.mubr.msk.f32.mxu1 %vm26_vm1, %v24731_v29  ;;  %27821 = vst [vmem:[#allocation80_spill] sm:$0xff] %v24745_v18  ;;  %v24749_v29 = vld [vmem:[#allocation2 + $0x1e1] sm:$0xff] }
 0x71a   :  { %27822 = vst [vmem:[#allocation81_spill] sm:$0xff] %v24749_v29 }
 0x71c   :  { %19733 = vmatmul.mubr.msk.f32.gmra.mrb[30].mxu1 %vm26_vm1, %v24735_v51  ;;  %v24753_v51 = vld [vmem:[#allocation2 + $0x1e9] sm:$0xff] }
 0x71d   :  { %19735 = vmatprep.mubr.msk.f32.mxu1 %vm26_vm1, %v9004_v57  ;;  %27823 = vst [vmem:[#allocation82_spill] sm:$0xff] %v24753_v51  ;;  %v24761_v57 = vld [vmem:[#allocation2 + $0x201] sm:$0xff] }
 0x71e   :  { %27825 = vst [vmem:[#allocation84_spill] sm:$0xff] %v24761_v57 }
 0x720   :  { %19736 = vmatmul.mubr.msk.f32.gmra.mrb[32].mxu1 %vm26_vm1, %v9005_v60  ;;  %v24757_v60 = vld [vmem:[#allocation2 + $0x1f9] sm:$0xff] }
 0x721   :  { %19738 = vmatprep.mubr.msk.f32.mxu1 %vm26_vm1, %v24741_v39  ;;  %27824 = vst [vmem:[#allocation83_spill] sm:$0xff] %v24757_v60  ;;  %v24857_v39 = vld [vmem:[#allocation2 + $0x321] sm:$0xff] }
 0x722   :  { %27849 = vst [vmem:[#allocation108_spill] sm:$0xff] %v24857_v39 }
 0x724   :  { %19739 = vmatmul.mubr.msk.f32.gmra.mrb[34].mxu1 %vm26_vm1, %v24745_v18  ;;  %v24765_v18 = vld [vmem:[#allocation2 + $0x211] sm:$0xff] }
 0x725   :  { %19741 = vmatprep.mubr.msk.f32.mxu1 %vm26_vm1, %v24749_v29  ;;  %27826 = vst [vmem:[#allocation85_spill] sm:$0xff] %v24765_v18  ;;  %v24769_v29 = vld [vmem:[#allocation2 + $0x219] sm:$0xff] }
 0x726   :  { %27827 = vst [vmem:[#allocation86_spill] sm:$0xff] %v24769_v29 }
 0x728   :  { %19742 = vmatmul.mubr.msk.f32.gmra.mrb[36].mxu1 %vm26_vm1, %v24753_v51  ;;  %v24773_v51 = vld [vmem:[#allocation2 + $0x229] sm:$0xff] }
 0x729   :  { %19744 = vmatprep.mubr.msk.f32.mxu1 %vm26_vm1, %v24757_v60  ;;  %27828 = vst [vmem:[#allocation87_spill] sm:$0xff] %v24773_v51  ;;  %v24777_v60 = vld [vmem:[#allocation2 + $0x231] sm:$0xff] }
 0x72a   :  { %27829 = vst [vmem:[#allocation88_spill] sm:$0xff] %v24777_v60 }
 0x72c   :  { %19745 = vmatmul.mubr.msk.f32.gmra.mrb[38].mxu1 %vm26_vm1, %v24761_v57  ;;  %v24781_v57 = vld [vmem:[#allocation2 + $0x241] sm:$0xff] }
 0x72d   :  { %19747 = vmatprep.mubr.msk.f32.mxu1 %vm26_vm1, %v24765_v18  ;;  %27830 = vst [vmem:[#allocation89_spill] sm:$0xff] %v24781_v57  ;;  %v24785_v18 = vld [vmem:[#allocation2 + $0x249] sm:$0xff] }
 0x72e   :  { %27831 = vst [vmem:[#allocation90_spill] sm:$0xff] %v24785_v18 }
 0x730   :  { %19748 = vmatmul.mubr.msk.f32.gmra.mrb[40].mxu1 %vm26_vm1, %v24769_v29  ;;  %v24789_v29 = vld [vmem:[#allocation2 + $0x259] sm:$0xff] }
 0x731   :  { %19750 = vmatprep.mubr.msk.f32.mxu1 %vm26_vm1, %v24773_v51  ;;  %27832 = vst [vmem:[#allocation91_spill] sm:$0xff] %v24789_v29  ;;  %v24793_v51 = vld [vmem:[#allocation2 + $0x261] sm:$0xff] }
 0x732   :  { %27833 = vst [vmem:[#allocation92_spill] sm:$0xff] %v24793_v51 }
 0x734   :  { %19751 = vmatmul.mubr.msk.f32.gmra.mrb[42].mxu1 %vm26_vm1, %v24777_v60  ;;  %v24797_v60 = vld [vmem:[#allocation2 + $0x271] sm:$0xff] }
 0x735   :  { %19753 = vmatprep.mubr.msk.f32.mxu1 %vm26_vm1, %v24781_v57  ;;  %27834 = vst [vmem:[#allocation93_spill] sm:$0xff] %v24797_v60  ;;  %v24801_v57 = vld [vmem:[#allocation2 + $0x279] sm:$0xff] }
 0x736   :  { %27835 = vst [vmem:[#allocation94_spill] sm:$0xff] %v24801_v57 }
 0x738   :  { %19754 = vmatmul.mubr.msk.f32.gmra.mrb[44].mxu1 %vm26_vm1, %v24785_v18  ;;  %v24805_v18 = vld [vmem:[#allocation2 + $0x289] sm:$0xff] }
 0x739   :  { %19756 = vmatprep.mubr.msk.f32.mxu1 %vm26_vm1, %v24789_v29  ;;  %27836 = vst [vmem:[#allocation95_spill] sm:$0xff] %v24805_v18  ;;  %v24809_v29 = vld [vmem:[#allocation2 + $0x291] sm:$0xff] }
 0x73a   :  { %27837 = vst [vmem:[#allocation96_spill] sm:$0xff] %v24809_v29 }
 0x73c   :  { %19757 = vmatmul.mubr.msk.f32.gmra.mrb[46].mxu1 %vm26_vm1, %v24793_v51  ;;  %v24813_v51 = vld [vmem:[#allocation2 + $0x2a1] sm:$0xff] }
 0x73d   :  { %19759 = vmatprep.mubr.msk.f32.mxu1 %vm26_vm1, %v24797_v60  ;;  %27838 = vst [vmem:[#allocation97_spill] sm:$0xff] %v24813_v51  ;;  %v24817_v60 = vld [vmem:[#allocation2 + $0x2a9] sm:$0xff] }
 0x73e   :  { %27839 = vst [vmem:[#allocation98_spill] sm:$0xff] %v24817_v60 }
 0x740   :  { %19760 = vmatmul.mubr.msk.f32.gmra.mrb[48].mxu1 %vm26_vm1, %v24801_v57  ;;  %v24821_v57 = vld [vmem:[#allocation2 + $0x2b9] sm:$0xff] }
 0x741   :  { %19762 = vmatprep.mubr.msk.f32.mxu1 %vm26_vm1, %v24805_v18  ;;  %27840 = vst [vmem:[#allocation99_spill] sm:$0xff] %v24821_v57  ;;  %v24825_v18 = vld [vmem:[#allocation2 + $0x2c1] sm:$0xff] }
 0x742   :  { %27841 = vst [vmem:[#allocation100_spill] sm:$0xff] %v24825_v18 }
 0x744   :  { %19763 = vmatmul.mubr.msk.f32.gmra.mrb[50].mxu1 %vm26_vm1, %v24809_v29  ;;  %v24829_v29 = vld [vmem:[#allocation2 + $0x2d1] sm:$0xff] }
 0x745   :  { %19765 = vmatprep.mubr.msk.f32.mxu1 %vm26_vm1, %v24813_v51  ;;  %27842 = vst [vmem:[#allocation101_spill] sm:$0xff] %v24829_v29  ;;  %v24833_v51 = vld [vmem:[#allocation2 + $0x2d9] sm:$0xff] }
 0x746   :  { %27843 = vst [vmem:[#allocation102_spill] sm:$0xff] %v24833_v51 }
 0x748   :  { %19766 = vmatmul.mubr.msk.f32.gmra.mrb[52].mxu1 %vm26_vm1, %v24817_v60  ;;  %v24837_v60 = vld [vmem:[#allocation2 + $0x2e9] sm:$0xff] }
 0x749   :  { %19768 = vmatprep.mubr.msk.f32.mxu1 %vm26_vm1, %v24821_v57  ;;  %27844 = vst [vmem:[#allocation103_spill] sm:$0xff] %v24837_v60  ;;  %v24841_v57 = vld [vmem:[#allocation2 + $0x2f1] sm:$0xff] }
 0x74a   :  { %27845 = vst [vmem:[#allocation104_spill] sm:$0xff] %v24841_v57 }
 0x74c   :  { %19769 = vmatmul.mubr.msk.f32.gmra.mrb[54].mxu1 %vm26_vm1, %v24825_v18  ;;  %v24845_v18 = vld [vmem:[#allocation2 + $0x301] sm:$0xff] }
 0x74d   :  { %19771 = vmatprep.mubr.msk.f32.mxu1 %vm26_vm1, %v24829_v29  ;;  %27846 = vst [vmem:[#allocation105_spill] sm:$0xff] %v24845_v18  ;;  %v24849_v29 = vld [vmem:[#allocation2 + $0x309] sm:$0xff] }
 0x74e   :  { %27847 = vst [vmem:[#allocation106_spill] sm:$0xff] %v24849_v29 }
 0x750   :  { %19772 = vmatmul.mubr.msk.f32.gmra.mrb[56].mxu1 %vm26_vm1, %v24833_v51  ;;  %v24853_v51 = vld [vmem:[#allocation2 + $0x319] sm:$0xff] }
 0x751   :  { %19774 = vmatprep.mubr.msk.f32.mxu1 %vm26_vm1, %v24837_v60  ;;  %27848 = vst [vmem:[#allocation107_spill] sm:$0xff] %v24853_v51  ;;  %v9810_v60 = vld [vmem:[#allocation2 + $0x2] sm:$0xff] }
 0x754   :  { %19775 = vmatmul.mubr.msk.f32.gmra.mrb[58].mxu1 %vm26_vm1, %v24841_v57  ;;  %v9811_v57 = vld [vmem:[#allocation2 + $0xa] sm:$0xff] }
 0x755   :  { %19777 = vmatprep.mubr.msk.f32.mxu1 %vm26_vm1, %v24845_v18  ;;  %v24865_v18 = vld [vmem:[%s27134_s2 + $0x10] sm:$0xf] }
 0x758   :  { %19778 = vmatmul.mubr.msk.f32.gmra.mrb[60].mxu1 %vm26_vm1, %v24849_v29  ;;  %v24868_v29 = vld [vmem:[#allocation2 + $0x1a] sm:$0xff] }
 0x759   :  { %19780 = vmatprep.mubr.msk.f32.mxu1 %vm26_vm1, %v24853_v51  ;;  %27850 = vst [vmem:[#allocation109_spill] sm:$0xff] %v24868_v29  ;;  %v24988_v51 = vld [vmem:[#allocation2 + $0x172] sm:$0xff] }
 0x75a   :  { %27879 = vst [vmem:[#allocation18_spill] sm:$0xff] %v24988_v51 }
 0x75c   :  { %19781 = vmatmul.mubr.msk.f32.gmra.mrb[62].mxu1 %vm26_vm1, %v24857_v39  ;;  %v24880_v39 = vld [vmem:[#allocation2 + $0x32] sm:$0xff] }
 0x75d   :  { %19785 = vmatprep.mubr.msk.f32.mxu1 %vm26_vm1, %v9810_v60  ;;  %v24876_v60 = vld [vmem:[#allocation2 + $0x22] sm:$0xff]  ;;  %27852 = vst [vmem:[#allocation111_spill] sm:$0xff] %v24880_v39 }
 0x75e   :  { %27851 = vst [vmem:[#allocation110_spill] sm:$0xff] %v24876_v60 }
 0x760   :  { %19786 = vmatmul.mubr.msk.f32.vlgmr.msra.gmra.mrb[0].mxu1 %vm26_vm1, %v9811_v57  ;;  %v24884_v57 = vld [vmem:[#allocation2 + $0x3a] sm:$0xff] }
 0x761   :  { %19882 = vmatpush3.msk.msra.mxu1 %vm500_vm0, %v24612_v61  ;;  %19788 = vmatprep.mubr.msk.f32.mxu1 %vm26_vm1, %v24868_v29  ;;  %27853 = vst [vmem:[#allocation112_spill] sm:$0xff] %v24884_v57  ;;  %v24888_v61 = vld [vmem:[#allocation2 + $0x4a] sm:$0xff]  ;;  %v24892_v29 = vld [vmem:[#allocation2 + $0x52] sm:$0xff] }
 0x762   :  { %19979 = vmatprep.subr.msk.mxu1 %vm500_vm0, %v24865_v18  ;;  %27854 = vst [vmem:[#allocation113_spill] sm:$0xff] %v24888_v61  ;;  %27855 = vst [vmem:[#allocation114_spill] sm:$0xff] %v24892_v29 }
 0x764   :  { %19789 = vmatmul.mubr.msk.f32.gmra.mrb[2].mxu1 %vm26_vm1, %v24876_v60  ;;  %v24896_v60 = vld [vmem:[#allocation2 + $0x62] sm:$0xff] }
 0x765   :  { %19791 = vmatprep.mubr.msk.f32.mxu1 %vm26_vm1, %v24880_v39  ;;  %27856 = vst [vmem:[#allocation115_spill] sm:$0xff] %v24896_v60  ;;  %v24900_v39 = vld [vmem:[#allocation2 + $0x6a] sm:$0xff] }
 0x766   :  { %27857 = vst [vmem:[#allocation116_spill] sm:$0xff] %v24900_v39 }
 0x768   :  { %19792 = vmatmul.mubr.msk.f32.gmra.mrb[4].mxu1 %vm26_vm1, %v24884_v57  ;;  %v24904_v57 = vld [vmem:[#allocation2 + $0x7a] sm:$0xff] }
 0x769   :  { %19794 = vmatprep.mubr.msk.f32.mxu1 %vm26_vm1, %v24888_v61  ;;  %27858 = vst [vmem:[#allocation117_spill] sm:$0xff] %v24904_v57  ;;  %v24908_v61 = vld [vmem:[#allocation2 + $0x82] sm:$0xff] }
 0x76a   :  { %27859 = vst [vmem:[#allocation118_spill] sm:$0xff] %v24908_v61 }
 0x76c   :  { %19795 = vmatmul.mubr.msk.f32.gmra.mrb[6].mxu1 %vm26_vm1, %v24892_v29  ;;  %v24912_v29 = vld [vmem:[#allocation2 + $0x92] sm:$0xff] }
 0x76d   :  { %19797 = vmatprep.mubr.msk.f32.mxu1 %vm26_vm1, %v24896_v60  ;;  %27860 = vst [vmem:[#allocation119_spill] sm:$0xff] %v24912_v29  ;;  %v24916_v60 = vld [vmem:[#allocation2 + $0x9a] sm:$0xff] }
 0x76e   :  { %27861 = vst [vmem:[#allocation120_spill] sm:$0xff] %v24916_v60 }
 0x770   :  { %19798 = vmatmul.mubr.msk.f32.gmra.mrb[8].mxu1 %vm26_vm1, %v24900_v39  ;;  %v24920_v39 = vld [vmem:[#allocation2 + $0xaa] sm:$0xff] }
 0x771   :  { %19800 = vmatprep.mubr.msk.f32.mxu1 %vm26_vm1, %v24904_v57  ;;  %27862 = vst [vmem:[#allocation121_spill] sm:$0xff] %v24920_v39  ;;  %v24924_v57 = vld [vmem:[#allocation2 + $0xb2] sm:$0xff] }
 0x772   :  { %27863 = vst [vmem:[#allocation28_spill] sm:$0xff] %v24924_v57 }
 0x774   :  { %19801 = vmatmul.mubr.msk.f32.gmra.mrb[10].mxu1 %vm26_vm1, %v24908_v61  ;;  %v24928_v61 = vld [vmem:[#allocation2 + $0xc2] sm:$0xff] }
 0x775   :  { %19803 = vmatprep.mubr.msk.f32.mxu1 %vm26_vm1, %v24912_v29  ;;  %27864 = vst [vmem:[#allocation4_spill] sm:$0xff] %v24928_v61  ;;  %v24932_v29 = vld [vmem:[#allocation2 + $0xca] sm:$0xff] }
 0x776   :  { %27865 = vst [vmem:[#allocation6_spill] sm:$0xff] %v24932_v29 }
 0x778   :  { %19804 = vmatmul.mubr.msk.f32.gmra.mrb[12].mxu1 %vm26_vm1, %v24916_v60  ;;  %v24936_v60 = vld [vmem:[#allocation2 + $0xda] sm:$0xff] }
 0x779   :  { %19806 = vmatprep.mubr.msk.f32.mxu1 %vm26_vm1, %v24920_v39  ;;  %27866 = vst [vmem:[#allocation5_spill] sm:$0xff] %v24936_v60  ;;  %v24940_v39 = vld [vmem:[#allocation2 + $0xe2] sm:$0xff] }
 0x77a   :  { %27867 = vst [vmem:[#allocation7_spill] sm:$0xff] %v24940_v39 }
 0x77c   :  { %19807 = vmatmul.mubr.msk.f32.gmra.mrb[14].mxu1 %vm26_vm1, %v24924_v57  ;;  %v24944_v57 = vld [vmem:[#allocation2 + $0xf2] sm:$0xff] }
 0x77d   :  { %19809 = vmatprep.mubr.msk.f32.mxu1 %vm26_vm1, %v24928_v61  ;;  %27868 = vst [vmem:[#allocation9_spill] sm:$0xff] %v24944_v57  ;;  %v24948_v61 = vld [vmem:[#allocation2 + $0xfa] sm:$0xff] }
 0x77e   :  { %27869 = vst [vmem:[#allocation8_spill] sm:$0xff] %v24948_v61 }
 0x780   :  { %19810 = vmatmul.mubr.msk.f32.gmra.mrb[16].mxu1 %vm26_vm1, %v24932_v29  ;;  %v24952_v29 = vld [vmem:[#allocation2 + $0x10a] sm:$0xff] }
 0x781   :  { %19812 = vmatprep.mubr.msk.f32.mxu1 %vm26_vm1, %v24936_v60  ;;  %27870 = vst [vmem:[#allocation11_spill] sm:$0xff] %v24952_v29  ;;  %v24956_v60 = vld [vmem:[#allocation2 + $0x112] sm:$0xff] }
 0x782   :  { %27871 = vst [vmem:[#allocation10_spill] sm:$0xff] %v24956_v60 }
 0x784   :  { %19813 = vmatmul.mubr.msk.f32.gmra.mrb[18].mxu1 %vm26_vm1, %v24940_v39  ;;  %v24960_v39 = vld [vmem:[#allocation2 + $0x122] sm:$0xff] }
 0x785   :  { %19815 = vmatprep.mubr.msk.f32.mxu1 %vm26_vm1, %v24944_v57  ;;  %27872 = vst [vmem:[#allocation13_spill] sm:$0xff] %v24960_v39  ;;  %v24964_v57 = vld [vmem:[#allocation2 + $0x12a] sm:$0xff] }
 0x786   :  { %27873 = vst [vmem:[#allocation12_spill] sm:$0xff] %v24964_v57 }
 0x788   :  { %19816 = vmatmul.mubr.msk.f32.gmra.mrb[20].mxu1 %vm26_vm1, %v24948_v61  ;;  %v24968_v61 = vld [vmem:[#allocation2 + $0x13a] sm:$0xff] }
 0x789   :  { %19818 = vmatprep.mubr.msk.f32.mxu1 %vm26_vm1, %v24952_v29  ;;  %27874 = vst [vmem:[#allocation15_spill] sm:$0xff] %v24968_v61  ;;  %v24972_v29 = vld [vmem:[#allocation2 + $0x142] sm:$0xff] }
 0x78a   :  { %27875 = vst [vmem:[#allocation14_spill] sm:$0xff] %v24972_v29 }
 0x78c   :  { %19819 = vmatmul.mubr.msk.f32.gmra.mrb[22].mxu1 %vm26_vm1, %v24956_v60  ;;  %v24976_v60 = vld [vmem:[#allocation2 + $0x152] sm:$0xff] }
 0x78d   :  { %19821 = vmatprep.mubr.msk.f32.mxu1 %vm26_vm1, %v24960_v39  ;;  %27876 = vst [vmem:[#allocation17_spill] sm:$0xff] %v24976_v60  ;;  %v24980_v39 = vld [vmem:[#allocation2 + $0x15a] sm:$0xff] }
 0x78e   :  { %27877 = vst [vmem:[#allocation16_spill] sm:$0xff] %v24980_v39 }
 0x790   :  { %19822 = vmatmul.mubr.msk.f32.gmra.mrb[24].mxu1 %vm26_vm1, %v24964_v57  ;;  %v24984_v57 = vld [vmem:[#allocation2 + $0x16a] sm:$0xff] }
 0x791   :  { %19824 = vmatprep.mubr.msk.f32.mxu1 %vm26_vm1, %v24968_v61  ;;  %27878 = vst [vmem:[#allocation19_spill] sm:$0xff] %v24984_v57  ;;  %v9842_v61 = vld [vmem:[#allocation2 + $0x1b2] sm:$0xff] }
 0x794   :  { %19825 = vmatmul.mubr.msk.f32.gmra.mrb[26].mxu1 %vm26_vm1, %v24972_v29  ;;  %v9843_v29 = vld [vmem:[#allocation2 + $0x1ba] sm:$0xff] }
 0x795   :  { %19827 = vmatprep.mubr.msk.f32.mxu1 %vm26_vm1, %v24976_v60  ;;  %v24994_v60 = vld [vmem:[#allocation2 + $0x1ca] sm:$0xff] }
 0x798   :  { %19828 = vmatmul.mubr.msk.f32.gmra.mrb[28].mxu1 %vm26_vm1, %v24980_v39  ;;  %v24998_v39 = vld [vmem:[#allocation2 + $0x1d2] sm:$0xff] }
 0x799   :  { %19830 = vmatprep.mubr.msk.f32.mxu1 %vm26_vm1, %v24984_v57  ;;  %27880 = vst [vmem:[#allocation21_spill] sm:$0xff] %v24998_v39  ;;  %v25002_v57 = vld [vmem:[#allocation2 + $0x1e2] sm:$0xff] }
 0x79a   :  { %27881 = vst [vmem:[#allocation20_spill] sm:$0xff] %v25002_v57 }
 0x79c   :  { %19831 = vmatmul.mubr.msk.f32.gmra.mrb[30].mxu1 %vm26_vm1, %v24988_v51  ;;  %v25006_v51 = vld [vmem:[#allocation2 + $0x1ea] sm:$0xff] }
 0x79d   :  { %19833 = vmatprep.mubr.msk.f32.mxu1 %vm26_vm1, %v9842_v61  ;;  %27882 = vst [vmem:[#allocation23_spill] sm:$0xff] %v25006_v51  ;;  %v25014_v61 = vld [vmem:[#allocation2 + $0x202] sm:$0xff] }
 0x79e   :  { %27884 = vst [vmem:[#allocation25_spill] sm:$0xff] %v25014_v61 }
 0x7a0   :  { %19834 = vmatmul.mubr.msk.f32.gmra.mrb[32].mxu1 %vm26_vm1, %v9843_v29  ;;  %v25010_v29 = vld [vmem:[#allocation2 + $0x1fa] sm:$0xff] }
 0x7a1   :  { %19836 = vmatprep.mubr.msk.f32.mxu1 %vm26_vm1, %v24994_v60  ;;  %27883 = vst [vmem:[#allocation22_spill] sm:$0xff] %v25010_v29 }
 0x7a4   :  { %19837 = vmatmul.mubr.msk.f32.gmra.mrb[34].mxu1 %vm26_vm1, %v24998_v39  ;;  %v25018_v39 = vld [vmem:[#allocation2 + $0x212] sm:$0xff] }
 0x7a5   :  { %19839 = vmatprep.mubr.msk.f32.mxu1 %vm26_vm1, %v25002_v57  ;;  %27885 = vst [vmem:[#allocation24_spill] sm:$0xff] %v25018_v39  ;;  %v25022_v57 = vld [vmem:[#allocation2 + $0x21a] sm:$0xff] }
 0x7a6   :  { %27886 = vst [vmem:[#allocation27_spill] sm:$0xff] %v25022_v57 }
 0x7a8   :  { %19840 = vmatmul.mubr.msk.f32.gmra.mrb[36].mxu1 %vm26_vm1, %v25006_v51  ;;  %v25026_v51 = vld [vmem:[#allocation2 + $0x22a] sm:$0xff] }
 0x7a9   :  { %19842 = vmatprep.mubr.msk.f32.mxu1 %vm26_vm1, %v25010_v29  ;;  %27887 = vst [vmem:[#allocation26_spill] sm:$0xff] %v25026_v51  ;;  %v25030_v29 = vld [vmem:[#allocation2 + $0x232] sm:$0xff] }
 0x7aa   :  { %27888 = vst [vmem:[#allocation30_spill] sm:$0xff] %v25030_v29 }
 0x7ac   :  { %19843 = vmatmul.mubr.msk.f32.gmra.mrb[38].mxu1 %vm26_vm1, %v25014_v61  ;;  %v25034_v61 = vld [vmem:[#allocation2 + $0x242] sm:$0xff] }
 0x7ad   :  { %19845 = vmatprep.mubr.msk.f32.mxu1 %vm26_vm1, %v25018_v39  ;;  %27889 = vst [vmem:[#allocation31_spill] sm:$0xff] %v25034_v61  ;;  %v25038_v39 = vld [vmem:[#allocation2 + $0x24a] sm:$0xff] }
 0x7ae   :  { %27890 = vst [vmem:[#allocation32_spill] sm:$0xff] %v25038_v39 }
 0x7b0   :  { %19846 = vmatmul.mubr.msk.f32.gmra.mrb[40].mxu1 %vm26_vm1, %v25022_v57  ;;  %v25042_v57 = vld [vmem:[#allocation2 + $0x25a] sm:$0xff] }
 0x7b1   :  { %19848 = vmatprep.mubr.msk.f32.mxu1 %vm26_vm1, %v25026_v51  ;;  %27891 = vst [vmem:[#allocation33_spill] sm:$0xff] %v25042_v57  ;;  %v25046_v51 = vld [vmem:[#allocation2 + $0x262] sm:$0xff] }
 0x7b2   :  { %27892 = vst [vmem:[#allocation34_spill] sm:$0xff] %v25046_v51 }
 0x7b4   :  { %19849 = vmatmul.mubr.msk.f32.gmra.mrb[42].mxu1 %vm26_vm1, %v25030_v29  ;;  %v25050_v29 = vld [vmem:[#allocation2 + $0x272] sm:$0xff] }
 0x7b5   :  { %19851 = vmatprep.mubr.msk.f32.mxu1 %vm26_vm1, %v25034_v61  ;;  %27893 = vst [vmem:[#allocation35_spill] sm:$0xff] %v25050_v29  ;;  %v25054_v61 = vld [vmem:[#allocation2 + $0x27a] sm:$0xff] }
 0x7b6   :  { %27894 = vst [vmem:[#allocation36_spill] sm:$0xff] %v25054_v61 }
 0x7b8   :  { %19852 = vmatmul.mubr.msk.f32.gmra.mrb[44].mxu1 %vm26_vm1, %v25038_v39  ;;  %v25058_v39 = vld [vmem:[#allocation2 + $0x28a] sm:$0xff] }
 0x7b9   :  { %19854 = vmatprep.mubr.msk.f32.mxu1 %vm26_vm1, %v25042_v57  ;;  %27895 = vst [vmem:[#allocation37_spill] sm:$0xff] %v25058_v39  ;;  %v25062_v57 = vld [vmem:[#allocation2 + $0x292] sm:$0xff] }
 0x7ba   :  { %27896 = vst [vmem:[#allocation38_spill] sm:$0xff] %v25062_v57 }
 0x7bc   :  { %19855 = vmatmul.mubr.msk.f32.gmra.mrb[46].mxu1 %vm26_vm1, %v25046_v51  ;;  %v25066_v51 = vld [vmem:[#allocation2 + $0x2a2] sm:$0xff] }
 0x7bd   :  { %19857 = vmatprep.mubr.msk.f32.mxu1 %vm26_vm1, %v25050_v29  ;;  %27897 = vst [vmem:[#allocation39_spill] sm:$0xff] %v25066_v51  ;;  %v25070_v29 = vld [vmem:[#allocation2 + $0x2aa] sm:$0xff] }
 0x7be   :  { %27898 = vst [vmem:[#allocation40_spill] sm:$0xff] %v25070_v29 }
 0x7c0   :  { %19858 = vmatmul.mubr.msk.f32.gmra.mrb[48].mxu1 %vm26_vm1, %v25054_v61  ;;  %v25074_v61 = vld [vmem:[#allocation2 + $0x2ba] sm:$0xff] }
 0x7c1   :  { %19860 = vmatprep.mubr.msk.f32.mxu1 %vm26_vm1, %v25058_v39  ;;  %27899 = vst [vmem:[#allocation41_spill] sm:$0xff] %v25074_v61  ;;  %v25078_v39 = vld [vmem:[#allocation2 + $0x2c2] sm:$0xff] }
 0x7c2   :  { %27900 = vst [vmem:[#allocation42_spill] sm:$0xff] %v25078_v39 }
 0x7c4   :  { %19861 = vmatmul.mubr.msk.f32.gmra.mrb[50].mxu1 %vm26_vm1, %v25062_v57  ;;  %v25082_v57 = vld [vmem:[#allocation2 + $0x2d2] sm:$0xff] }
 0x7c5   :  { %19863 = vmatprep.mubr.msk.f32.mxu1 %vm26_vm1, %v25066_v51  ;;  %27901 = vst [vmem:[#allocation43_spill] sm:$0xff] %v25082_v57  ;;  %v25086_v51 = vld [vmem:[#allocation2 + $0x2da] sm:$0xff] }
 0x7c6   :  { %27902 = vst [vmem:[#allocation44_spill] sm:$0xff] %v25086_v51 }
 0x7c8   :  { %19864 = vmatmul.mubr.msk.f32.gmra.mrb[52].mxu1 %vm26_vm1, %v25070_v29  ;;  %v25090_v29 = vld [vmem:[#allocation2 + $0x2ea] sm:$0xff] }
 0x7c9   :  { %19866 = vmatprep.mubr.msk.f32.mxu1 %vm26_vm1, %v25074_v61  ;;  %27903 = vst [vmem:[#allocation45_spill] sm:$0xff] %v25090_v29  ;;  %v25094_v61 = vld [vmem:[#allocation2 + $0x2f2] sm:$0xff] }
 0x7cc   :  { %19867 = vmatmul.mubr.msk.f32.gmra.mrb[54].mxu1 %vm26_vm1, %v25078_v39  ;;  %v25098_v39 = vld [vmem:[#allocation2 + $0x302] sm:$0xff] }
 0x7cd   :  { %19869 = vmatprep.mubr.msk.f32.mxu1 %vm26_vm1, %v25082_v57  ;;  %27904 = vst [vmem:[#allocation122_spill] sm:$0xff] %v25098_v39  ;;  %v25102_v57 = vld [vmem:[#allocation2 + $0x30a] sm:$0xff] }
 0x7d0   :  { %19870 = vmatmul.mubr.msk.f32.gmra.mrb[56].mxu1 %vm26_vm1, %v25086_v51  ;;  %v25106_v51 = vld [vmem:[#allocation2 + $0x31a] sm:$0xff] }
 0x7d1   :  { %19872 = vmatprep.mubr.msk.f32.mxu1 %vm26_vm1, %v25090_v29  ;;  %v25110_v29 = vld [vmem:[#allocation2 + $0x322] sm:$0xff] }
 0x7d4   :  { %19873 = vmatmul.mubr.msk.f32.gmra.mrb[58].mxu1 %vm26_vm1, %v25094_v61 }
 0x7d5   :  { %19875 = vmatprep.mubr.msk.f32.mxu1 %vm26_vm1, %v25098_v39  ;;  %v25119_v39 = vld [vmem:[%s27134_s2 + $0x14] sm:$0xf] }
 0x7d8   :  { %19876 = vmatmul.mubr.msk.f32.gmra.mrb[60].mxu1 %vm26_vm1, %v25102_v57 }
 0x7d9   :  { %19878 = vmatprep.mubr.msk.f32.mxu1 %vm26_vm1, %v25106_v51 }
 0x7dc   :  { %19879 = vmatmul.mubr.msk.f32.gmra.mrb[62].mxu1 %vm26_vm1, %v25110_v29 }
 0x7dd   :  { %19883 = vmatprep.mubr.msk.f32.mxu1 %vm26_vm1, %v24306_v14  ;;  %v25183_v14 = vld [vmem:[#allocation2 + $0x180] sm:$0xff] }
 0x7e0   :  { %19884 = vmatmul.mubr.msk.f32.vlgmr.msra.gmra.mrb[0].mxu1 %vm26_vm1, %v24318_v63  ;;  %v25187_v63 = vld [vmem:[#allocation2 + $0x188] sm:$0xff] }
 0x7e1   :  { %19980 = vmatpush3.msk.msra.mxu1 %vm500_vm0, %v24865_v18  ;;  %19886 = vmatprep.mubr.msk.f32.mxu1 %vm26_vm1, %v24330_v23  ;;  %v27905_v23 = vld [vmem:[#allocation46_spill] sm:$0xff]  ;;  %v27955_v18 = vld [vmem:[#allocation96_spill] sm:$0xff] }
 0x7e2   :  { %20077 = vmatprep.subr.msk.mxu1 %vm500_vm0, %v25119_v39 }
 0x7e4   :  { %19887 = vmatmul.mubr.msk.f32.gmra.mrb[2].mxu1 %vm26_vm1, %v24358_v11  ;;  %v27906_v11 = vld [vmem:[#allocation47_spill] sm:$0xff] }
 0x7e5   :  { %19889 = vmatprep.mubr.msk.f32.mxu1 %vm26_vm1, %v24370_v44  ;;  %v27907_v44 = vld [vmem:[#allocation48_spill] sm:$0xff] }
 0x7e8   :  { %19890 = vmatmul.mubr.msk.f32.gmra.mrb[4].mxu1 %vm26_vm1, %v24386_v22  ;;  %v25251_v22 = vld [vmem:[#allocation2 + $0x330] sm:$0xff] }
 0x7e9   :  { %19892 = vmatprep.mubr.msk.f32.mxu1 %vm26_vm1, %v24390_v32  ;;  %v25255_v32 = vld [vmem:[#allocation2 + $0x338] sm:$0xff] }
 0x7ec   :  { %19893 = vmatmul.mubr.msk.f32.gmra.mrb[6].mxu1 %vm26_vm1, %v24394_v33  ;;  %v27908_v33 = vld [vmem:[#allocation49_spill] sm:$0xff] }
 0x7ed   :  { %19895 = vmatprep.mubr.msk.f32.mxu1 %vm26_vm1, %v24398_v49  ;;  %v25264_v49 = vld [vmem:[%s27134_s2 + $0x18] sm:$0xf] }
 0x7f0   :  { %19896 = vmatmul.mubr.msk.f32.gmra.mrb[8].mxu1 %vm26_vm1, %v24402_v17  ;;  %v27909_v17 = vld [vmem:[#allocation50_spill] sm:$0xff] }
 0x7f1   :  { %19898 = vmatprep.mubr.msk.f32.mxu1 %vm26_vm1, %v24406_v36  ;;  %v27910_v36 = vld [vmem:[#allocation51_spill] sm:$0xff] }
 0x7f4   :  { %19899 = vmatmul.mubr.msk.f32.gmra.mrb[10].mxu1 %vm26_vm1, %v24410_v40  ;;  %v27911_v40 = vld [vmem:[#allocation52_spill] sm:$0xff] }
 0x7f5   :  { %19901 = vmatprep.mubr.msk.f32.mxu1 %vm26_vm1, %v24414_v19  ;;  %v27912_v19 = vld [vmem:[#allocation53_spill] sm:$0xff] }
 0x7f8   :  { %19902 = vmatmul.mubr.msk.f32.gmra.mrb[12].mxu1 %vm26_vm1, %v24418_v28  ;;  %v27913_v28 = vld [vmem:[#allocation54_spill] sm:$0xff] }
 0x7f9   :  { %19904 = vmatprep.mubr.msk.f32.mxu1 %vm26_vm1, %v24422_v6  ;;  %v27914_v6 = vld [vmem:[#allocation55_spill] sm:$0xff] }
 0x7fc   :  { %19905 = vmatmul.mubr.msk.f32.gmra.mrb[14].mxu1 %vm26_vm1, %v24426_v62  ;;  %v27915_v62 = vld [vmem:[#allocation56_spill] sm:$0xff] }
 0x7fd   :  { %19907 = vmatprep.mubr.msk.f32.mxu1 %vm26_vm1, %v24430_v53  ;;  %v27916_v53 = vld [vmem:[#allocation57_spill] sm:$0xff] }
 0x800   :  { %19908 = vmatmul.mubr.msk.f32.gmra.mrb[16].mxu1 %vm26_vm1, %v24434_v45  ;;  %v27917_v45 = vld [vmem:[#allocation58_spill] sm:$0xff] }
 0x801   :  { %19910 = vmatprep.mubr.msk.f32.mxu1 %vm26_vm1, %v24438_v43  ;;  %v27918_v43 = vld [vmem:[#allocation59_spill] sm:$0xff] }
 0x804   :  { %19911 = vmatmul.mubr.msk.f32.gmra.mrb[18].mxu1 %vm26_vm1, %v24442_v50  ;;  %v27919_v50 = vld [vmem:[#allocation60_spill] sm:$0xff] }
 0x805   :  { %19913 = vmatprep.mubr.msk.f32.mxu1 %vm26_vm1, %v24446_v46  ;;  %v27920_v46 = vld [vmem:[#allocation61_spill] sm:$0xff] }
 0x808   :  { %19914 = vmatmul.mubr.msk.f32.gmra.mrb[20].mxu1 %vm26_vm1, %v24450_v55  ;;  %v27921_v55 = vld [vmem:[#allocation62_spill] sm:$0xff] }
 0x809   :  { %19916 = vmatprep.mubr.msk.f32.mxu1 %vm26_vm1, %v24454_v52  ;;  %v27922_v52 = vld [vmem:[#allocation63_spill] sm:$0xff] }
 0x80c   :  { %19917 = vmatmul.mubr.msk.f32.gmra.mrb[22].mxu1 %vm26_vm1, %v24458_v1  ;;  %v27923_v1 = vld [vmem:[#allocation64_spill] sm:$0xff] }
 0x80d   :  { %19919 = vmatprep.mubr.msk.f32.mxu1 %vm26_vm1, %v24462_v58  ;;  %v27924_v58 = vld [vmem:[#allocation65_spill] sm:$0xff] }
 0x810   :  { %19920 = vmatmul.mubr.msk.f32.gmra.mrb[24].mxu1 %vm26_vm1, %v24466_v7  ;;  %v27925_v7 = vld [vmem:[#allocation66_spill] sm:$0xff] }
 0x811   :  { %19922 = vmatprep.mubr.msk.f32.mxu1 %vm26_vm1, %v24470_v4  ;;  %v27926_v4 = vld [vmem:[#allocation67_spill] sm:$0xff] }
 0x814   :  { %19923 = vmatmul.mubr.msk.f32.gmra.mrb[26].mxu1 %vm26_vm1, %v24474_v10  ;;  %v27927_v10 = vld [vmem:[#allocation68_spill] sm:$0xff] }
 0x815   :  { %19925 = vmatprep.mubr.msk.f32.mxu1 %vm26_vm1, %v24478_v13  ;;  %v27928_v13 = vld [vmem:[#allocation69_spill] sm:$0xff] }
 0x818   :  { %19926 = vmatmul.mubr.msk.f32.gmra.mrb[28].mxu1 %vm26_vm1, %v24482_v47  ;;  %v27929_v47 = vld [vmem:[#allocation70_spill] sm:$0xff] }
 0x819   :  { %19928 = vmatprep.mubr.msk.f32.mxu1 %vm26_vm1, %v25183_v14 }
 0x81c   :  { %19929 = vmatmul.mubr.msk.f32.gmra.mrb[30].mxu1 %vm26_vm1, %v25187_v63 }
 0x81d   :  { %19931 = vmatprep.mubr.msk.f32.mxu1 %vm26_vm1, %v24488_v41  ;;  %v27930_v41 = vld [vmem:[#allocation71_spill] sm:$0xff] }
 0x820   :  { %19932 = vmatmul.mubr.msk.f32.gmra.mrb[32].mxu1 %vm26_vm1, %v24492_v9  ;;  %v27931_v9 = vld [vmem:[#allocation72_spill] sm:$0xff] }
 0x821   :  { %19934 = vmatprep.mubr.msk.f32.mxu1 %vm26_vm1, %v24496_v0  ;;  %v27932_v0 = vld [vmem:[#allocation73_spill] sm:$0xff] }
 0x824   :  { %19935 = vmatmul.mubr.msk.f32.gmra.mrb[34].mxu1 %vm26_vm1, %v24500_v20  ;;  %v27933_v20 = vld [vmem:[#allocation74_spill] sm:$0xff] }
 0x825   :  { %19937 = vmatprep.mubr.msk.f32.mxu1 %vm26_vm1, %v24504_v27  ;;  %v27934_v27 = vld [vmem:[#allocation75_spill] sm:$0xff] }
 0x828   :  { %19938 = vmatmul.mubr.msk.f32.gmra.mrb[36].mxu1 %vm26_vm1, %v24508_v25  ;;  %v27935_v25 = vld [vmem:[#allocation76_spill] sm:$0xff] }
 0x829   :  { %19940 = vmatprep.mubr.msk.f32.mxu1 %vm26_vm1, %v24512_v16  ;;  %v27936_v16 = vld [vmem:[#allocation77_spill] sm:$0xff] }
 0x82c   :  { %19941 = vmatmul.mubr.msk.f32.gmra.mrb[38].mxu1 %vm26_vm1, %v24516_v12  ;;  %v27937_v12 = vld [vmem:[#allocation78_spill] sm:$0xff] }
 0x82d   :  { %19943 = vmatprep.mubr.msk.f32.mxu1 %vm26_vm1, %v24520_v21  ;;  %v25328_v21 = vld [vmem:[#allocation2 + $0x181] sm:$0xff] }
 0x830   :  { %19944 = vmatmul.mubr.msk.f32.gmra.mrb[40].mxu1 %vm26_vm1, %v24524_v34  ;;  %v25332_v34 = vld [vmem:[#allocation2 + $0x189] sm:$0xff] }
 0x831   :  { %19946 = vmatprep.mubr.msk.f32.mxu1 %vm26_vm1, %v24528_v59  ;;  %v27938_v59 = vld [vmem:[#allocation79_spill] sm:$0xff] }
 0x834   :  { %19947 = vmatmul.mubr.msk.f32.gmra.mrb[42].mxu1 %vm26_vm1, %v24532_v54  ;;  %v27939_v54 = vld [vmem:[#allocation80_spill] sm:$0xff] }
 0x835   :  { %19949 = vmatprep.mubr.msk.f32.mxu1 %vm26_vm1, %v24536_v48  ;;  %v27940_v48 = vld [vmem:[#allocation81_spill] sm:$0xff] }
 0x838   :  { %19950 = vmatmul.mubr.msk.f32.gmra.mrb[44].mxu1 %vm26_vm1, %v24540_v5  ;;  %v27941_v5 = vld [vmem:[#allocation82_spill] sm:$0xff] }
 0x839   :  { %19952 = vmatprep.mubr.msk.f32.mxu1 %vm26_vm1, %v24544_v15  ;;  %v27942_v15 = vld [vmem:[#allocation83_spill] sm:$0xff] }
 0x83c   :  { %19953 = vmatmul.mubr.msk.f32.gmra.mrb[46].mxu1 %vm26_vm1, %v24548_v24  ;;  %v27943_v24 = vld [vmem:[#allocation84_spill] sm:$0xff] }
 0x83d   :  { %19955 = vmatprep.mubr.msk.f32.mxu1 %vm26_vm1, %v24552_v26  ;;  %v27944_v26 = vld [vmem:[#allocation85_spill] sm:$0xff] }
 0x840   :  { %19956 = vmatmul.mubr.msk.f32.gmra.mrb[48].mxu1 %vm26_vm1, %v24556_v3  ;;  %v27945_v3 = vld [vmem:[#allocation86_spill] sm:$0xff] }
 0x841   :  { %19958 = vmatprep.mubr.msk.f32.mxu1 %vm26_vm1, %v24560_v38  ;;  %v27946_v38 = vld [vmem:[#allocation87_spill] sm:$0xff] }
 0x844   :  { %19959 = vmatmul.mubr.msk.f32.gmra.mrb[50].mxu1 %vm26_vm1, %v24564_v30  ;;  %v27947_v30 = vld [vmem:[#allocation88_spill] sm:$0xff] }
 0x845   :  { %19961 = vmatprep.mubr.msk.f32.mxu1 %vm26_vm1, %v24568_v56  ;;  %v27948_v56 = vld [vmem:[#allocation89_spill] sm:$0xff] }
 0x848   :  { %19962 = vmatmul.mubr.msk.f32.gmra.mrb[52].mxu1 %vm26_vm1, %v24572_v42  ;;  %v27949_v42 = vld [vmem:[#allocation90_spill] sm:$0xff] }
 0x849   :  { %19964 = vmatprep.mubr.msk.f32.mxu1 %vm26_vm1, %v24576_v31  ;;  %v27950_v31 = vld [vmem:[#allocation91_spill] sm:$0xff] }
 0x84c   :  { %19965 = vmatmul.mubr.msk.f32.gmra.mrb[54].mxu1 %vm26_vm1, %v24580_v37  ;;  %v27951_v37 = vld [vmem:[#allocation92_spill] sm:$0xff] }
 0x84d   :  { %19967 = vmatprep.mubr.msk.f32.mxu1 %vm26_vm1, %v24584_v35  ;;  %v27952_v35 = vld [vmem:[#allocation93_spill] sm:$0xff] }
 0x850   :  { %19968 = vmatmul.mubr.msk.f32.gmra.mrb[56].mxu1 %vm26_vm1, %v24588_v8  ;;  %v27953_v8 = vld [vmem:[#allocation94_spill] sm:$0xff] }
 0x851   :  { %19970 = vmatprep.mubr.msk.f32.mxu1 %vm26_vm1, %v24592_v2  ;;  %v27954_v2 = vld [vmem:[#allocation95_spill] sm:$0xff] }
 0x854   :  { %19971 = vmatmul.mubr.msk.f32.gmra.mrb[58].mxu1 %vm26_vm1, %v27905_v23  ;;  %v27957_v23 = vld [vmem:[#allocation98_spill] sm:$0xff] }
 0x855   :  { %19973 = vmatprep.mubr.msk.f32.mxu1 %vm26_vm1, %v27906_v11  ;;  %v27958_v11 = vld [vmem:[#allocation99_spill] sm:$0xff] }
 0x858   :  { %19974 = vmatmul.mubr.msk.f32.gmra.mrb[60].mxu1 %vm26_vm1, %v27907_v44  ;;  %v27959_v44 = vld [vmem:[#allocation100_spill] sm:$0xff] }
 0x859   :  { %19976 = vmatprep.mubr.msk.f32.mxu1 %vm26_vm1, %v25251_v22 }
 0x85c   :  { %19977 = vmatmul.mubr.msk.f32.gmra.mrb[62].mxu1 %vm26_vm1, %v25255_v32 }
 0x85d   :  { %19981 = vmatprep.mubr.msk.f32.mxu1 %vm26_vm1, %v27908_v33  ;;  %v27960_v33 = vld [vmem:[#allocation101_spill] sm:$0xff] }
 0x860   :  { %19982 = vmatmul.mubr.msk.f32.vlgmr.msra.gmra.mrb[0].mxu1 %vm26_vm1, %v27909_v17  ;;  %v27961_v17 = vld [vmem:[#allocation102_spill] sm:$0xff] }
 0x861   :  { %20078 = vmatpush3.msk.msra.mxu1 %vm500_vm0, %v25119_v39  ;;  %19984 = vmatprep.mubr.msk.f32.mxu1 %vm26_vm1, %v27910_v36  ;;  %v27956_v39 = vld [vmem:[#allocation97_spill] sm:$0xff]  ;;  %v27962_v36 = vld [vmem:[#allocation103_spill] sm:$0xff] }
 0x862   :  { %20175 = vmatprep.subr.msk.mxu1 %vm500_vm0, %v25264_v49 }
 0x864   :  { %19985 = vmatmul.mubr.msk.f32.gmra.mrb[2].mxu1 %vm26_vm1, %v27911_v40  ;;  %v27963_v40 = vld [vmem:[#allocation104_spill] sm:$0xff] }
 0x865   :  { %19987 = vmatprep.mubr.msk.f32.mxu1 %vm26_vm1, %v27912_v19  ;;  %v27964_v19 = vld [vmem:[#allocation105_spill] sm:$0xff] }
 0x868   :  { %19988 = vmatmul.mubr.msk.f32.gmra.mrb[4].mxu1 %vm26_vm1, %v27913_v28  ;;  %v27965_v28 = vld [vmem:[#allocation106_spill] sm:$0xff] }
 0x869   :  { %19990 = vmatprep.mubr.msk.f32.mxu1 %vm26_vm1, %v27914_v6  ;;  %v27966_v6 = vld [vmem:[#allocation107_spill] sm:$0xff] }
 0x86c   :  { %19991 = vmatmul.mubr.msk.f32.gmra.mrb[6].mxu1 %vm26_vm1, %v27915_v62  ;;  %v27967_v62 = vld [vmem:[#allocation108_spill] sm:$0xff] }
 0x86d   :  { %19993 = vmatprep.mubr.msk.f32.mxu1 %vm26_vm1, %v27916_v53  ;;  %v25396_v53 = vld [vmem:[#allocation2 + $0x331] sm:$0xff] }
 0x870   :  { %19994 = vmatmul.mubr.msk.f32.gmra.mrb[8].mxu1 %vm26_vm1, %v27917_v45  ;;  %v25400_v45 = vld [vmem:[#allocation2 + $0x339] sm:$0xff] }
 0x871   :  { %19996 = vmatprep.mubr.msk.f32.mxu1 %vm26_vm1, %v27918_v43  ;;  %v27968_v43 = vld [vmem:[#allocation109_spill] sm:$0xff] }
 0x874   :  { %19997 = vmatmul.mubr.msk.f32.gmra.mrb[10].mxu1 %vm26_vm1, %v27919_v50  ;;  %v25409_v50 = vld [vmem:[%s27134_s2 + $0x1c] sm:$0xf] }
 0x875   :  { %19999 = vmatprep.mubr.msk.f32.mxu1 %vm26_vm1, %v27920_v46  ;;  %v27969_v46 = vld [vmem:[#allocation110_spill] sm:$0xff] }
 0x878   :  { %20000 = vmatmul.mubr.msk.f32.gmra.mrb[12].mxu1 %vm26_vm1, %v27921_v55  ;;  %v27970_v55 = vld [vmem:[#allocation111_spill] sm:$0xff] }
 0x879   :  { %20002 = vmatprep.mubr.msk.f32.mxu1 %vm26_vm1, %v27922_v52  ;;  %v27971_v52 = vld [vmem:[#allocation112_spill] sm:$0xff] }
 0x87c   :  { %20003 = vmatmul.mubr.msk.f32.gmra.mrb[14].mxu1 %vm26_vm1, %v27923_v1  ;;  %v27972_v1 = vld [vmem:[#allocation113_spill] sm:$0xff] }
 0x87d   :  { %20005 = vmatprep.mubr.msk.f32.mxu1 %vm26_vm1, %v27924_v58  ;;  %v27973_v58 = vld [vmem:[#allocation114_spill] sm:$0xff] }
 0x880   :  { %20006 = vmatmul.mubr.msk.f32.gmra.mrb[16].mxu1 %vm26_vm1, %v27925_v7  ;;  %v27974_v7 = vld [vmem:[#allocation115_spill] sm:$0xff] }
 0x881   :  { %20008 = vmatprep.mubr.msk.f32.mxu1 %vm26_vm1, %v27926_v4  ;;  %v27975_v4 = vld [vmem:[#allocation116_spill] sm:$0xff] }
 0x884   :  { %20009 = vmatmul.mubr.msk.f32.gmra.mrb[18].mxu1 %vm26_vm1, %v27927_v10  ;;  %v27977_v10 = vld [vmem:[#allocation118_spill] sm:$0xff] }
 0x885   :  { %20011 = vmatprep.mubr.msk.f32.mxu1 %vm26_vm1, %v27928_v13  ;;  %v27978_v13 = vld [vmem:[#allocation119_spill] sm:$0xff] }
 0x888   :  { %20012 = vmatmul.mubr.msk.f32.gmra.mrb[20].mxu1 %vm26_vm1, %v27929_v47  ;;  %v27979_v47 = vld [vmem:[#allocation120_spill] sm:$0xff] }
 0x889   :  { %20014 = vmatprep.mubr.msk.f32.mxu1 %vm26_vm1, %v27930_v41  ;;  %v27980_v41 = vld [vmem:[#allocation121_spill] sm:$0xff] }
 0x88c   :  { %20015 = vmatmul.mubr.msk.f32.gmra.mrb[22].mxu1 %vm26_vm1, %v27931_v9  ;;  %v27981_v9 = vld [vmem:[#allocation28_spill] sm:$0xff] }
 0x88d   :  { %20017 = vmatprep.mubr.msk.f32.mxu1 %vm26_vm1, %v27932_v0  ;;  %v27982_v0 = vld [vmem:[#allocation4_spill] sm:$0xff] }
 0x890   :  { %20018 = vmatmul.mubr.msk.f32.gmra.mrb[24].mxu1 %vm26_vm1, %v27933_v20  ;;  %v27983_v20 = vld [vmem:[#allocation6_spill] sm:$0xff] }
 0x891   :  { %20020 = vmatprep.mubr.msk.f32.mxu1 %vm26_vm1, %v27934_v27  ;;  %v27984_v27 = vld [vmem:[#allocation5_spill] sm:$0xff] }
 0x894   :  { %20021 = vmatmul.mubr.msk.f32.gmra.mrb[26].mxu1 %vm26_vm1, %v27935_v25  ;;  %v27985_v25 = vld [vmem:[#allocation7_spill] sm:$0xff] }
 0x895   :  { %20023 = vmatprep.mubr.msk.f32.mxu1 %vm26_vm1, %v27936_v16  ;;  %v27986_v16 = vld [vmem:[#allocation9_spill] sm:$0xff] }
 0x898   :  { %20024 = vmatmul.mubr.msk.f32.gmra.mrb[28].mxu1 %vm26_vm1, %v27937_v12  ;;  %v27987_v12 = vld [vmem:[#allocation8_spill] sm:$0xff] }
 0x899   :  { %20026 = vmatprep.mubr.msk.f32.mxu1 %vm26_vm1, %v25328_v21 }
 0x89c   :  { %20027 = vmatmul.mubr.msk.f32.gmra.mrb[30].mxu1 %vm26_vm1, %v25332_v34 }
 0x89d   :  { %20029 = vmatprep.mubr.msk.f32.mxu1 %vm26_vm1, %v27938_v59  ;;  %v27988_v59 = vld [vmem:[#allocation11_spill] sm:$0xff] }
 0x8a0   :  { %20030 = vmatmul.mubr.msk.f32.gmra.mrb[32].mxu1 %vm26_vm1, %v27939_v54  ;;  %v27989_v54 = vld [vmem:[#allocation10_spill] sm:$0xff] }
 0x8a1   :  { %20032 = vmatprep.mubr.msk.f32.mxu1 %vm26_vm1, %v27940_v48  ;;  %v27990_v48 = vld [vmem:[#allocation13_spill] sm:$0xff] }
 0x8a4   :  { %20033 = vmatmul.mubr.msk.f32.gmra.mrb[34].mxu1 %vm26_vm1, %v27941_v5  ;;  %v27991_v5 = vld [vmem:[#allocation12_spill] sm:$0xff] }
 0x8a5   :  { %20035 = vmatprep.mubr.msk.f32.mxu1 %vm26_vm1, %v27942_v15  ;;  %v27992_v15 = vld [vmem:[#allocation15_spill] sm:$0xff] }
 0x8a8   :  { %20036 = vmatmul.mubr.msk.f32.gmra.mrb[36].mxu1 %vm26_vm1, %v27943_v24  ;;  %v27993_v24 = vld [vmem:[#allocation14_spill] sm:$0xff] }
 0x8a9   :  { %20038 = vmatprep.mubr.msk.f32.mxu1 %vm26_vm1, %v27944_v26  ;;  %v27994_v26 = vld [vmem:[#allocation17_spill] sm:$0xff] }
 0x8ac   :  { %20039 = vmatmul.mubr.msk.f32.gmra.mrb[38].mxu1 %vm26_vm1, %v27945_v3  ;;  %v27995_v3 = vld [vmem:[#allocation16_spill] sm:$0xff] }
 0x8ad   :  { %20041 = vmatprep.mubr.msk.f32.mxu1 %vm26_vm1, %v27946_v38  ;;  %v27996_v38 = vld [vmem:[#allocation19_spill] sm:$0xff] }
 0x8b0   :  { %20042 = vmatmul.mubr.msk.f32.gmra.mrb[40].mxu1 %vm26_vm1, %v27947_v30  ;;  %v27997_v30 = vld [vmem:[#allocation18_spill] sm:$0xff] }
 0x8b1   :  { %20044 = vmatprep.mubr.msk.f32.mxu1 %vm26_vm1, %v27948_v56  ;;  %v25473_v56 = vld [vmem:[#allocation2 + $0x182] sm:$0xff] }
 0x8b4   :  { %20045 = vmatmul.mubr.msk.f32.gmra.mrb[42].mxu1 %vm26_vm1, %v27949_v42  ;;  %v25477_v42 = vld [vmem:[#allocation2 + $0x18a] sm:$0xff] }
 0x8b5   :  { %20047 = vmatprep.mubr.msk.f32.mxu1 %vm26_vm1, %v27950_v31  ;;  %v27998_v31 = vld [vmem:[#allocation21_spill] sm:$0xff] }
 0x8b8   :  { %20048 = vmatmul.mubr.msk.f32.gmra.mrb[44].mxu1 %vm26_vm1, %v27951_v37  ;;  %v27999_v37 = vld [vmem:[#allocation20_spill] sm:$0xff] }
 0x8b9   :  { %20050 = vmatprep.mubr.msk.f32.mxu1 %vm26_vm1, %v27952_v35  ;;  %v28000_v35 = vld [vmem:[#allocation23_spill] sm:$0xff] }
 0x8bc   :  { %20051 = vmatmul.mubr.msk.f32.gmra.mrb[46].mxu1 %vm26_vm1, %v27953_v8  ;;  %v28001_v8 = vld [vmem:[#allocation22_spill] sm:$0xff] }
 0x8bd   :  { %20053 = vmatprep.mubr.msk.f32.mxu1 %vm26_vm1, %v27954_v2  ;;  %v28002_v2 = vld [vmem:[#allocation25_spill] sm:$0xff] }
 0x8c0   :  { %20054 = vmatmul.mubr.msk.f32.gmra.mrb[48].mxu1 %vm26_vm1, %v27955_v18  ;;  %v28003_v18 = vld [vmem:[#allocation24_spill] sm:$0xff] }
 0x8c1   :  { %20056 = vmatprep.mubr.msk.f32.mxu1 %vm26_vm1, %v27956_v39  ;;  %v28004_v39 = vld [vmem:[#allocation27_spill] sm:$0xff] }
 0x8c4   :  { %20057 = vmatmul.mubr.msk.f32.gmra.mrb[50].mxu1 %vm26_vm1, %v27957_v23  ;;  %v28006_v23 = vld [vmem:[#allocation30_spill] sm:$0xff] }
 0x8c5   :  { %20059 = vmatprep.mubr.msk.f32.mxu1 %vm26_vm1, %v27958_v11  ;;  %v28007_v11 = vld [vmem:[#allocation31_spill] sm:$0xff] }
 0x8c8   :  { %20060 = vmatmul.mubr.msk.f32.gmra.mrb[52].mxu1 %vm26_vm1, %v27959_v44  ;;  %v28008_v44 = vld [vmem:[#allocation32_spill] sm:$0xff] }
 0x8c9   :  { %20062 = vmatprep.mubr.msk.f32.mxu1 %vm26_vm1, %v27960_v33  ;;  %v28009_v33 = vld [vmem:[#allocation33_spill] sm:$0xff] }
 0x8cc   :  { %20063 = vmatmul.mubr.msk.f32.gmra.mrb[54].mxu1 %vm26_vm1, %v27961_v17  ;;  %v28010_v17 = vld [vmem:[#allocation34_spill] sm:$0xff] }
 0x8cd   :  { %20065 = vmatprep.mubr.msk.f32.mxu1 %vm26_vm1, %v27962_v36  ;;  %v28011_v36 = vld [vmem:[#allocation35_spill] sm:$0xff] }
 0x8d0   :  { %20066 = vmatmul.mubr.msk.f32.gmra.mrb[56].mxu1 %vm26_vm1, %v27963_v40  ;;  %v28012_v40 = vld [vmem:[#allocation36_spill] sm:$0xff] }
 0x8d1   :  { %20068 = vmatprep.mubr.msk.f32.mxu1 %vm26_vm1, %v27964_v19  ;;  %v28013_v19 = vld [vmem:[#allocation37_spill] sm:$0xff] }
 0x8d4   :  { %20069 = vmatmul.mubr.msk.f32.gmra.mrb[58].mxu1 %vm26_vm1, %v27965_v28  ;;  %v28014_v28 = vld [vmem:[#allocation38_spill] sm:$0xff] }
 0x8d5   :  { %20071 = vmatprep.mubr.msk.f32.mxu1 %vm26_vm1, %v27966_v6  ;;  %v28015_v6 = vld [vmem:[#allocation39_spill] sm:$0xff] }
 0x8d8   :  { %20072 = vmatmul.mubr.msk.f32.gmra.mrb[60].mxu1 %vm26_vm1, %v27967_v62  ;;  %v28016_v62 = vld [vmem:[#allocation40_spill] sm:$0xff] }
 0x8d9   :  { %20074 = vmatprep.mubr.msk.f32.mxu1 %vm26_vm1, %v25396_v53 }
 0x8dc   :  { %20075 = vmatmul.mubr.msk.f32.gmra.mrb[62].mxu1 %vm26_vm1, %v25400_v45 }
 0x8dd   :  { %20079 = vmatprep.mubr.msk.f32.mxu1 %vm26_vm1, %v27968_v43  ;;  %v28017_v43 = vld [vmem:[#allocation41_spill] sm:$0xff] }
 0x8e0   :  { %20080 = vmatmul.mubr.msk.f32.vlgmr.msra.gmra.mrb[0].mxu1 %vm26_vm1, %v27969_v46  ;;  %v28018_v46 = vld [vmem:[#allocation42_spill] sm:$0xff] }
 0x8e1   :  { %20176 = vmatpush3.msk.msra.mxu1 %vm500_vm0, %v25264_v49  ;;  %20082 = vmatprep.mubr.msk.f32.mxu1 %vm26_vm1, %v27970_v55  ;;  %v27976_v49 = vld [vmem:[#allocation117_spill] sm:$0xff]  ;;  %v28019_v55 = vld [vmem:[#allocation43_spill] sm:$0xff] }
 0x8e2   :  { %20273 = vmatprep.subr.msk.mxu1 %vm500_vm0, %v25409_v50 }
 0x8e4   :  { %20083 = vmatmul.mubr.msk.f32.gmra.mrb[2].mxu1 %vm26_vm1, %v27971_v52  ;;  %v28020_v52 = vld [vmem:[#allocation44_spill] sm:$0xff] }
 0x8e5   :  { %20085 = vmatprep.mubr.msk.f32.mxu1 %vm26_vm1, %v27972_v1  ;;  %v28021_v1 = vld [vmem:[#allocation45_spill] sm:$0xff] }
 0x8e8   :  { %20086 = vmatmul.mubr.msk.f32.gmra.mrb[4].mxu1 %vm26_vm1, %v27973_v58  ;;  %v28022_v58 = vld [vmem:[#allocation122_spill] sm:$0xff] }
 0x8e9   :  { %20088 = vmatprep.mubr.msk.f32.mxu1 %vm26_vm1, %v27974_v7  ;;  %v25541_v7 = vld [vmem:[#allocation2 + $0x332] sm:$0xff] }
 0x8ec   :  { %20089 = vmatmul.mubr.msk.f32.gmra.mrb[6].mxu1 %vm26_vm1, %v27975_v4  ;;  %v25545_v4 = vld [vmem:[#allocation2 + $0x33a] sm:$0xff] }
 0x8ed   :  { %20091 = vmatprep.mubr.msk.f32.mxu1 %vm26_vm1, %v27976_v49  ;;  %v13165_v49 = vld [vmem:[#allocation2 + $0x50] sm:$0xff] }
 0x8f0   :  { %20092 = vmatmul.mubr.msk.f32.gmra.mrb[8].mxu1 %vm26_vm1, %v27977_v10  ;;  %v13166_v10 = vld [vmem:[#allocation2 + $0x60] sm:$0xff] }
 0x8f1   :  { %20094 = vmatprep.mubr.msk.f32.mxu1 %vm26_vm1, %v27978_v13  ;;  %v13167_v13 = vld [vmem:[#allocation2 + $0x68] sm:$0xff] }
 0x8f4   :  { %20095 = vmatmul.mubr.msk.f32.gmra.mrb[10].mxu1 %vm26_vm1, %v27979_v47  ;;  %v13168_v47 = vld [vmem:[#allocation2 + $0x78] sm:$0xff] }
 0x8f5   :  { %20097 = vmatprep.mubr.msk.f32.mxu1 %vm26_vm1, %v27980_v41  ;;  %v13169_v41 = vld [vmem:[#allocation2 + $0x80] sm:$0xff] }
 0x8f8   :  { %20098 = vmatmul.mubr.msk.f32.gmra.mrb[12].mxu1 %vm26_vm1, %v27981_v9  ;;  %v13171_v9 = vld [vmem:[#allocation2 + $0x98] sm:$0xff] }
 0x8f9   :  { %20100 = vmatprep.mubr.msk.f32.mxu1 %vm26_vm1, %v27982_v0  ;;  %v13172_v0 = vld [vmem:[#allocation2 + $0xa8] sm:$0xff] }
 0x8fc   :  { %20101 = vmatmul.mubr.msk.f32.gmra.mrb[14].mxu1 %vm26_vm1, %v27983_v20  ;;  %v13173_v20 = vld [vmem:[#allocation2 + $0xb0] sm:$0xff] }
 0x8fd   :  { %20103 = vmatprep.mubr.msk.f32.mxu1 %vm26_vm1, %v27984_v27  ;;  %v13174_v27 = vld [vmem:[#allocation2 + $0xc0] sm:$0xff] }
 0x900   :  { %20104 = vmatmul.mubr.msk.f32.gmra.mrb[16].mxu1 %vm26_vm1, %v27985_v25  ;;  %v13175_v25 = vld [vmem:[#allocation2 + $0xc8] sm:$0xff] }
 0x901   :  { %20106 = vmatprep.mubr.msk.f32.mxu1 %vm26_vm1, %v27986_v16  ;;  %v13176_v16 = vld [vmem:[#allocation2 + $0xd8] sm:$0xff] }
 0x904   :  { %20107 = vmatmul.mubr.msk.f32.gmra.mrb[18].mxu1 %vm26_vm1, %v27987_v12  ;;  %v13177_v12 = vld [vmem:[#allocation2 + $0xe0] sm:$0xff] }
 0x905   :  { %20109 = vmatprep.mubr.msk.f32.mxu1 %vm26_vm1, %v27988_v59  ;;  %v13178_v59 = vld [vmem:[#allocation2 + $0xf0] sm:$0xff] }
 0x908   :  { %20110 = vmatmul.mubr.msk.f32.gmra.mrb[20].mxu1 %vm26_vm1, %v27989_v54  ;;  %v13179_v54 = vld [vmem:[#allocation2 + $0xf8] sm:$0xff] }
 0x909   :  { %20112 = vmatprep.mubr.msk.f32.mxu1 %vm26_vm1, %v27990_v48  ;;  %v13180_v48 = vld [vmem:[#allocation2 + $0x108] sm:$0xff] }
 0x90c   :  { %20113 = vmatmul.mubr.msk.f32.gmra.mrb[22].mxu1 %vm26_vm1, %v27991_v5  ;;  %v13181_v5 = vld [vmem:[#allocation2 + $0x110] sm:$0xff] }
 0x90d   :  { %20115 = vmatprep.mubr.msk.f32.mxu1 %vm26_vm1, %v27992_v15  ;;  %v13182_v15 = vld [vmem:[#allocation2 + $0x120] sm:$0xff] }
 0x910   :  { %20116 = vmatmul.mubr.msk.f32.gmra.mrb[24].mxu1 %vm26_vm1, %v27993_v24  ;;  %v13183_v24 = vld [vmem:[#allocation2 + $0x128] sm:$0xff] }
 0x911   :  { %20118 = vmatprep.mubr.msk.f32.mxu1 %vm26_vm1, %v27994_v26  ;;  %v13184_v26 = vld [vmem:[#allocation2 + $0x138] sm:$0xff] }
 0x914   :  { %20119 = vmatmul.mubr.msk.f32.gmra.mrb[26].mxu1 %vm26_vm1, %v27995_v3  ;;  %v13185_v3 = vld [vmem:[#allocation2 + $0x140] sm:$0xff] }
 0x915   :  { %20121 = vmatprep.mubr.msk.f32.mxu1 %vm26_vm1, %v27996_v38  ;;  %v13186_v38 = vld [vmem:[#allocation2 + $0x150] sm:$0xff] }
 0x918   :  { %20122 = vmatmul.mubr.msk.f32.gmra.mrb[28].mxu1 %vm26_vm1, %v27997_v30  ;;  %v13187_v30 = vld [vmem:[#allocation2 + $0x158] sm:$0xff] }
 0x919   :  { %20124 = vmatprep.mubr.msk.f32.mxu1 %vm26_vm1, %v25473_v56 }
 0x91c   :  { %20125 = vmatmul.mubr.msk.f32.gmra.mrb[30].mxu1 %vm26_vm1, %v25477_v42 }
 0x91d   :  { %20127 = vmatprep.mubr.msk.f32.mxu1 %vm26_vm1, %v24994_v60  ;;  %v28005_v60 = vld [vmem:[#allocation26_spill] sm:$0xff] }
 0x920   :  { %20128 = vmatmul.mubr.msk.f32.gmra.mrb[32].mxu1 %vm26_vm1, %v27998_v31  ;;  %v13188_v31 = vld [vmem:[#allocation2 + $0x168] sm:$0xff] }
 0x921   :  { %20130 = vmatprep.mubr.msk.f32.mxu1 %vm26_vm1, %v27999_v37  ;;  %v13189_v37 = vld [vmem:[#allocation2 + $0x170] sm:$0xff] }
 0x924   :  { %20131 = vmatmul.mubr.msk.f32.gmra.mrb[34].mxu1 %vm26_vm1, %v28000_v35  ;;  %v13192_v35 = vld [vmem:[#allocation2 + $0x198] sm:$0xff] }
 0x925   :  { %20133 = vmatprep.mubr.msk.f32.mxu1 %vm26_vm1, %v28001_v8  ;;  %v13193_v8 = vld [vmem:[#allocation2 + $0x1a0] sm:$0xff] }
 0x928   :  { %20134 = vmatmul.mubr.msk.f32.gmra.mrb[36].mxu1 %vm26_vm1, %v28002_v2  ;;  %v13194_v2 = vld [vmem:[#allocation2 + $0x1e0] sm:$0xff] }
 0x929   :  { %20136 = vmatprep.mubr.msk.f32.mxu1 %vm26_vm1, %v28003_v18  ;;  %v13195_v18 = vld [vmem:[#allocation2 + $0x1e8] sm:$0xff] }
 0x92c   :  { %20137 = vmatmul.mubr.msk.f32.gmra.mrb[38].mxu1 %vm26_vm1, %v28004_v39  ;;  %v13196_v39 = vld [vmem:[#allocation2 + $0x1f8] sm:$0xff] }
 0x92d   :  { %20139 = vmatprep.mubr.msk.f32.mxu1 %vm26_vm1, %v28005_v60  ;;  %v13197_v60 = vld [vmem:[#allocation2 + $0x200] sm:$0xff] }
 0x930   :  { %20140 = vmatmul.mubr.msk.f32.gmra.mrb[40].mxu1 %vm26_vm1, %v28006_v23  ;;  %v13200_v23 = vld [vmem:[#allocation2 + $0x228] sm:$0xff] }
 0x931   :  { %20142 = vmatprep.mubr.msk.f32.mxu1 %vm26_vm1, %v28007_v11  ;;  %v13201_v11 = vld [vmem:[#allocation2 + $0x230] sm:$0xff] }
 0x934   :  { %20143 = vmatmul.mubr.msk.f32.gmra.mrb[42].mxu1 %vm26_vm1, %v28008_v44  ;;  %v13202_v44 = vld [vmem:[#allocation2 + $0x240] sm:$0xff] }
 0x935   :  { %20145 = vmatprep.mubr.msk.f32.mxu1 %vm26_vm1, %v28009_v33  ;;  %v13203_v33 = vld [vmem:[#allocation2 + $0x248] sm:$0xff] }
 0x938   :  { %20146 = vmatmul.mubr.msk.f32.gmra.mrb[44].mxu1 %vm26_vm1, %v28010_v17  ;;  %v13204_v17 = vld [vmem:[#allocation2 + $0x258] sm:$0xff] }
 0x939   :  { %20148 = vmatprep.mubr.msk.f32.mxu1 %vm26_vm1, %v28011_v36  ;;  %v13205_v36 = vld [vmem:[#allocation2 + $0x260] sm:$0xff] }
 0x93c   :  { %20149 = vmatmul.mubr.msk.f32.gmra.mrb[46].mxu1 %vm26_vm1, %v28012_v40  ;;  %v13206_v40 = vld [vmem:[#allocation2 + $0x270] sm:$0xff] }
 0x93d   :  { %20151 = vmatprep.mubr.msk.f32.mxu1 %vm26_vm1, %v28013_v19  ;;  %v13207_v19 = vld [vmem:[#allocation2 + $0x278] sm:$0xff] }
 0x940   :  { %20152 = vmatmul.mubr.msk.f32.gmra.mrb[48].mxu1 %vm26_vm1, %v28014_v28  ;;  %v13208_v28 = vld [vmem:[#allocation2 + $0x288] sm:$0xff] }
 0x941   :  { %20154 = vmatprep.mubr.msk.f32.mxu1 %vm26_vm1, %v28015_v6  ;;  %v13209_v6 = vld [vmem:[#allocation2 + $0x290] sm:$0xff] }
 0x944   :  { %20155 = vmatmul.mubr.msk.f32.gmra.mrb[50].mxu1 %vm26_vm1, %v28016_v62  ;;  %v13210_v62 = vld [vmem:[#allocation2 + $0x2a0] sm:$0xff] }
 0x945   :  { %20157 = vmatprep.mubr.msk.f32.mxu1 %vm26_vm1, %v28017_v43  ;;  %v13211_v43 = vld [vmem:[#allocation2 + $0x2a8] sm:$0xff] }
 0x948   :  { %20158 = vmatmul.mubr.msk.f32.gmra.mrb[52].mxu1 %vm26_vm1, %v28018_v46  ;;  %v13212_v46 = vld [vmem:[#allocation2 + $0x2b8] sm:$0xff] }
 0x949   :  { %20160 = vmatprep.mubr.msk.f32.mxu1 %vm26_vm1, %v28019_v55  ;;  %v13213_v55 = vld [vmem:[#allocation2 + $0x2c0] sm:$0xff] }
 0x94c   :  { %20161 = vmatmul.mubr.msk.f32.gmra.mrb[54].mxu1 %vm26_vm1, %v28020_v52  ;;  %v13214_v52 = vld [vmem:[#allocation2 + $0x2d0] sm:$0xff] }
 0x94d   :  { %20163 = vmatprep.mubr.msk.f32.mxu1 %vm26_vm1, %v28021_v1  ;;  %v13215_v1 = vld [vmem:[#allocation2 + $0x2d8] sm:$0xff] }
 0x950   :  { %20164 = vmatmul.mubr.msk.f32.gmra.mrb[56].mxu1 %vm26_vm1, %v25094_v61  ;;  %v13162_v61 = vld [vmem:[#allocation2 + $0x30] sm:$0xff] }
 0x951   :  { %20166 = vmatprep.mubr.msk.f32.mxu1 %vm26_vm1, %v28022_v58  ;;  %v13216_v58 = vld [vmem:[#allocation2 + $0x2e8] sm:$0xff] }
 0x954   :  { %20167 = vmatmul.mubr.msk.f32.gmra.mrb[58].mxu1 %vm26_vm1, %v25102_v57  ;;  %v13163_v57 = vld [vmem:[#allocation2 + $0x38] sm:$0xff] }
 0x955   :  { %20169 = vmatprep.mubr.msk.f32.mxu1 %vm26_vm1, %v25106_v51  ;;  %v25553_v51 = vld [vmem:[%s27134_s2 + $0x20] sm:$0xf] }
 0x958   :  { %20170 = vmatmul.mubr.msk.f32.gmra.mrb[60].mxu1 %vm26_vm1, %v25110_v29  ;;  %v13164_v29 = vld [vmem:[#allocation2 + $0x48] sm:$0xff] }
 0x959   :  { %20172 = vmatprep.mubr.msk.f32.mxu1 %vm26_vm1, %v25541_v7 }
 0x95c   :  { %20173 = vmatmul.mubr.msk.f32.gmra.mrb[62].mxu1 %vm26_vm1, %v25545_v4 }
 0x95d   :  { %20177 = vmatprep.mubr.msk.f32.mxu1 %vm26_vm1, %v13162_v61  ;;  %v13217_v61 = vld [vmem:[#allocation2 + $0x2f0] sm:$0xff] }
 0x960   :  { %20178 = vmatmul.mubr.msk.f32.vlgmr.msra.gmra.mrb[0].mxu1 %vm26_vm1, %v13163_v57  ;;  %v13218_v57 = vld [vmem:[#allocation2 + $0x300] sm:$0xff] }
 0x961   :  { %20274 = vmatpush3.msk.msra.mxu1 %vm500_vm0, %v25409_v50  ;;  %20180 = vmatprep.mubr.msk.f32.mxu1 %vm26_vm1, %v13164_v29  ;;  %v13170_v50 = vld [vmem:[#allocation2 + $0x90] sm:$0xff]  ;;  %v13219_v29 = vld [vmem:[#allocation2 + $0x308] sm:$0xff] }
 0x962   :  { %20371 = vmatprep.subr.msk.mxu1 %vm500_vm0, %v25553_v51 }
 0x964   :  { %20181 = vmatmul.mubr.msk.f32.gmra.mrb[2].mxu1 %vm26_vm1, %v13165_v49  ;;  %v13220_v49 = vld [vmem:[#allocation2 + $0x318] sm:$0xff] }
 0x965   :  { %20183 = vmatprep.mubr.msk.f32.mxu1 %vm26_vm1, %v13166_v10  ;;  %v13221_v10 = vld [vmem:[#allocation2 + $0x320] sm:$0xff] }
 0x968   :  { %20184 = vmatmul.mubr.msk.f32.gmra.mrb[4].mxu1 %vm26_vm1, %v13167_v13  ;;  %v13224_v13 = vld [vmem:[#allocation2 + $0x348] sm:$0xff] }
 0x969   :  { %20186 = vmatprep.mubr.msk.f32.mxu1 %vm26_vm1, %v13168_v47  ;;  %v13225_v47 = vld [vmem:[#allocation2 + $0x350] sm:$0xff] }
 0x96c   :  { %20187 = vmatmul.mubr.msk.f32.gmra.mrb[6].mxu1 %vm26_vm1, %v13169_v41  ;;  %v14000_v41 = vld [vmem:[#allocation2 + $0x31] sm:$0xff] }
 0x96d   :  { %20189 = vmatprep.mubr.msk.f32.mxu1 %vm26_vm1, %v13170_v50  ;;  %v14001_v50 = vld [vmem:[#allocation2 + $0x39] sm:$0xff] }
 0x970   :  { %20190 = vmatmul.mubr.msk.f32.gmra.mrb[8].mxu1 %vm26_vm1, %v13171_v9  ;;  %v14002_v9 = vld [vmem:[#allocation2 + $0x49] sm:$0xff] }
 0x971   :  { %20192 = vmatprep.mubr.msk.f32.mxu1 %vm26_vm1, %v13172_v0  ;;  %v14005_v0 = vld [vmem:[#allocation2 + $0x69] sm:$0xff] }
 0x974   :  { %20193 = vmatmul.mubr.msk.f32.gmra.mrb[10].mxu1 %vm26_vm1, %v13173_v20  ;;  %v14006_v20 = vld [vmem:[#allocation2 + $0x79] sm:$0xff] }
 0x975   :  { %20195 = vmatprep.mubr.msk.f32.mxu1 %vm26_vm1, %v13174_v27  ;;  %v14007_v27 = vld [vmem:[#allocation2 + $0x81] sm:$0xff] }
 0x978   :  { %20196 = vmatmul.mubr.msk.f32.gmra.mrb[12].mxu1 %vm26_vm1, %v13175_v25  ;;  %v14008_v25 = vld [vmem:[#allocation2 + $0x91] sm:$0xff] }
 0x979   :  { %20198 = vmatprep.mubr.msk.f32.mxu1 %vm26_vm1, %v13176_v16  ;;  %v14010_v16 = vld [vmem:[#allocation2 + $0xa9] sm:$0xff] }
 0x97c   :  { %20199 = vmatmul.mubr.msk.f32.gmra.mrb[14].mxu1 %vm26_vm1, %v13177_v12  ;;  %v14011_v12 = vld [vmem:[#allocation2 + $0xb1] sm:$0xff] }
 0x97d   :  { %20201 = vmatprep.mubr.msk.f32.mxu1 %vm26_vm1, %v13178_v59  ;;  %v14012_v59 = vld [vmem:[#allocation2 + $0xc1] sm:$0xff] }
 0x980   :  { %20202 = vmatmul.mubr.msk.f32.gmra.mrb[16].mxu1 %vm26_vm1, %v13179_v54  ;;  %v14013_v54 = vld [vmem:[#allocation2 + $0xc9] sm:$0xff] }
 0x981   :  { %20204 = vmatprep.mubr.msk.f32.mxu1 %vm26_vm1, %v13180_v48  ;;  %v14014_v48 = vld [vmem:[#allocation2 + $0xd9] sm:$0xff] }
 0x984   :  { %20205 = vmatmul.mubr.msk.f32.gmra.mrb[18].mxu1 %vm26_vm1, %v13181_v5  ;;  %v14015_v5 = vld [vmem:[#allocation2 + $0xe1] sm:$0xff] }
 0x985   :  { %20207 = vmatprep.mubr.msk.f32.mxu1 %vm26_vm1, %v13182_v15  ;;  %v14016_v15 = vld [vmem:[#allocation2 + $0xf1] sm:$0xff] }
 0x988   :  { %20208 = vmatmul.mubr.msk.f32.gmra.mrb[20].mxu1 %vm26_vm1, %v13183_v24  ;;  %v14017_v24 = vld [vmem:[#allocation2 + $0xf9] sm:$0xff] }
 0x989   :  { %20210 = vmatprep.mubr.msk.f32.mxu1 %vm26_vm1, %v13184_v26  ;;  %v14018_v26 = vld [vmem:[#allocation2 + $0x109] sm:$0xff] }
 0x98c   :  { %20211 = vmatmul.mubr.msk.f32.gmra.mrb[22].mxu1 %vm26_vm1, %v13185_v3  ;;  %v14019_v3 = vld [vmem:[#allocation2 + $0x111] sm:$0xff] }
 0x98d   :  { %20213 = vmatprep.mubr.msk.f32.mxu1 %vm26_vm1, %v13186_v38  ;;  %v14020_v38 = vld [vmem:[#allocation2 + $0x121] sm:$0xff] }
 0x990   :  { %20214 = vmatmul.mubr.msk.f32.gmra.mrb[24].mxu1 %vm26_vm1, %v13187_v30  ;;  %v14021_v30 = vld [vmem:[#allocation2 + $0x129] sm:$0xff] }
 0x991   :  { %20216 = vmatprep.mubr.msk.f32.mxu1 %vm26_vm1, %v13188_v31  ;;  %v14022_v31 = vld [vmem:[#allocation2 + $0x139] sm:$0xff] }
 0x994   :  { %20217 = vmatmul.mubr.msk.f32.gmra.mrb[26].mxu1 %vm26_vm1, %v13189_v37  ;;  %v14023_v37 = vld [vmem:[#allocation2 + $0x141] sm:$0xff] }
 0x995   :  { %20219 = vmatprep.mubr.msk.f32.mxu1 %vm26_vm1, %v25183_v14  ;;  %v13198_v14 = vld [vmem:[#allocation2 + $0x210] sm:$0xff] }
 0x998   :  { %20220 = vmatmul.mubr.msk.f32.gmra.mrb[28].mxu1 %vm26_vm1, %v25187_v63  ;;  %v13199_v63 = vld [vmem:[#allocation2 + $0x218] sm:$0xff] }
 0x999   :  { %20222 = vmatprep.mubr.msk.f32.mxu1 %vm26_vm1, %v13192_v35  ;;  %v14024_v35 = vld [vmem:[#allocation2 + $0x151] sm:$0xff] }
 0x99c   :  { %20223 = vmatmul.mubr.msk.f32.gmra.mrb[30].mxu1 %vm26_vm1, %v13193_v8  ;;  %v14025_v8 = vld [vmem:[#allocation2 + $0x159] sm:$0xff] }
 0x99d   :  { %20225 = vmatprep.mubr.msk.f32.mxu1 %vm26_vm1, %v13194_v2  ;;  %v14026_v2 = vld [vmem:[#allocation2 + $0x169] sm:$0xff] }
 0x9a0   :  { %20226 = vmatmul.mubr.msk.f32.gmra.mrb[32].mxu1 %vm26_vm1, %v13195_v18  ;;  %v14027_v18 = vld [vmem:[#allocation2 + $0x171] sm:$0xff] }
 0x9a1   :  { %20228 = vmatprep.mubr.msk.f32.mxu1 %vm26_vm1, %v13196_v39  ;;  %v14030_v39 = vld [vmem:[#allocation2 + $0x199] sm:$0xff] }
 0x9a4   :  { %20229 = vmatmul.mubr.msk.f32.gmra.mrb[34].mxu1 %vm26_vm1, %v13197_v60  ;;  %v14031_v60 = vld [vmem:[#allocation2 + $0x1a1] sm:$0xff] }
 0x9a5   :  { %20231 = vmatprep.mubr.msk.f32.mxu1 %vm26_vm1, %v13198_v14  ;;  %v14032_v14 = vld [vmem:[#allocation2 + $0x1e1] sm:$0xff] }
 0x9a8   :  { %20232 = vmatmul.mubr.msk.f32.gmra.mrb[36].mxu1 %vm26_vm1, %v13199_v63  ;;  %v14033_v63 = vld [vmem:[#allocation2 + $0x1e9] sm:$0xff] }
 0x9a9   :  { %20234 = vmatprep.mubr.msk.f32.mxu1 %vm26_vm1, %v13200_v23  ;;  %v14034_v23 = vld [vmem:[#allocation2 + $0x1f9] sm:$0xff] }
 0x9ac   :  { %20235 = vmatmul.mubr.msk.f32.gmra.mrb[38].mxu1 %vm26_vm1, %v13201_v11  ;;  %v14035_v11 = vld [vmem:[#allocation2 + $0x201] sm:$0xff] }
 0x9ad   :  { %20237 = vmatprep.mubr.msk.f32.mxu1 %vm26_vm1, %v13202_v44  ;;  %v14038_v44 = vld [vmem:[#allocation2 + $0x229] sm:$0xff] }
 0x9b0   :  { %20238 = vmatmul.mubr.msk.f32.gmra.mrb[40].mxu1 %vm26_vm1, %v13203_v33  ;;  %v14039_v33 = vld [vmem:[#allocation2 + $0x231] sm:$0xff] }
 0x9b1   :  { %20240 = vmatprep.mubr.msk.f32.mxu1 %vm26_vm1, %v13204_v17  ;;  %v14040_v17 = vld [vmem:[#allocation2 + $0x241] sm:$0xff] }
 0x9b4   :  { %20241 = vmatmul.mubr.msk.f32.gmra.mrb[42].mxu1 %vm26_vm1, %v13205_v36  ;;  %v14041_v36 = vld [vmem:[#allocation2 + $0x249] sm:$0xff] }
 0x9b5   :  { %20243 = vmatprep.mubr.msk.f32.mxu1 %vm26_vm1, %v13206_v40  ;;  %v14042_v40 = vld [vmem:[#allocation2 + $0x259] sm:$0xff] }
 0x9b8   :  { %20244 = vmatmul.mubr.msk.f32.gmra.mrb[44].mxu1 %vm26_vm1, %v13207_v19  ;;  %v14043_v19 = vld [vmem:[#allocation2 + $0x261] sm:$0xff] }
 0x9b9   :  { %20246 = vmatprep.mubr.msk.f32.mxu1 %vm26_vm1, %v13208_v28  ;;  %v14044_v28 = vld [vmem:[#allocation2 + $0x271] sm:$0xff] }
 0x9bc   :  { %20247 = vmatmul.mubr.msk.f32.gmra.mrb[46].mxu1 %vm26_vm1, %v13209_v6  ;;  %v14045_v6 = vld [vmem:[#allocation2 + $0x279] sm:$0xff] }
 0x9bd   :  { %20249 = vmatprep.mubr.msk.f32.mxu1 %vm26_vm1, %v13210_v62  ;;  %v14046_v62 = vld [vmem:[#allocation2 + $0x289] sm:$0xff] }
 0x9c0   :  { %20250 = vmatmul.mubr.msk.f32.gmra.mrb[48].mxu1 %vm26_vm1, %v13211_v43  ;;  %v14047_v43 = vld [vmem:[#allocation2 + $0x291] sm:$0xff] }
 0x9c1   :  { %20252 = vmatprep.mubr.msk.f32.mxu1 %vm26_vm1, %v13212_v46  ;;  %v14048_v46 = vld [vmem:[#allocation2 + $0x2a1] sm:$0xff] }
 0x9c4   :  { %20253 = vmatmul.mubr.msk.f32.gmra.mrb[50].mxu1 %vm26_vm1, %v13213_v55  ;;  %v14049_v55 = vld [vmem:[#allocation2 + $0x2a9] sm:$0xff] }
 0x9c5   :  { %20255 = vmatprep.mubr.msk.f32.mxu1 %vm26_vm1, %v13214_v52  ;;  %v14050_v52 = vld [vmem:[#allocation2 + $0x2b9] sm:$0xff] }
 0x9c8   :  { %20256 = vmatmul.mubr.msk.f32.gmra.mrb[52].mxu1 %vm26_vm1, %v13215_v1  ;;  %v14051_v1 = vld [vmem:[#allocation2 + $0x2c1] sm:$0xff] }
 0x9c9   :  { %20258 = vmatprep.mubr.msk.f32.mxu1 %vm26_vm1, %v13216_v58  ;;  %v14052_v58 = vld [vmem:[#allocation2 + $0x2d1] sm:$0xff] }
 0x9cc   :  { %20259 = vmatmul.mubr.msk.f32.gmra.mrb[54].mxu1 %vm26_vm1, %v13217_v61  ;;  %v14053_v61 = vld [vmem:[#allocation2 + $0x2d9] sm:$0xff] }
 0x9cd   :  { %20261 = vmatprep.mubr.msk.f32.mxu1 %vm26_vm1, %v13218_v57  ;;  %v14054_v57 = vld [vmem:[#allocation2 + $0x2e9] sm:$0xff] }
 0x9d0   :  { %20262 = vmatmul.mubr.msk.f32.gmra.mrb[56].mxu1 %vm26_vm1, %v13219_v29  ;;  %v14055_v29 = vld [vmem:[#allocation2 + $0x2f1] sm:$0xff] }
 0x9d1   :  { %20264 = vmatprep.mubr.msk.f32.mxu1 %vm26_vm1, %v13220_v49  ;;  %v14056_v49 = vld [vmem:[#allocation2 + $0x301] sm:$0xff] }
 0x9d4   :  { %20265 = vmatmul.mubr.msk.f32.gmra.mrb[58].mxu1 %vm26_vm1, %v13221_v10  ;;  %v14057_v10 = vld [vmem:[#allocation2 + $0x309] sm:$0xff] }
 0x9d5   :  { %20267 = vmatprep.mubr.msk.f32.mxu1 %vm26_vm1, %v25251_v22  ;;  %v14003_v22 = vld [vmem:[#allocation2 + $0x51] sm:$0xff] }
 0x9d8   :  { %20268 = vmatmul.mubr.msk.f32.gmra.mrb[60].mxu1 %vm26_vm1, %v25255_v32  ;;  %v14004_v32 = vld [vmem:[#allocation2 + $0x61] sm:$0xff] }
 0x9d9   :  { %20270 = vmatprep.mubr.msk.f32.mxu1 %vm26_vm1, %v13224_v13  ;;  %v14058_v13 = vld [vmem:[#allocation2 + $0x319] sm:$0xff] }
 0x9dc   :  { %20271 = vmatmul.mubr.msk.f32.gmra.mrb[62].mxu1 %vm26_vm1, %v13225_v47  ;;  %v14059_v47 = vld [vmem:[#allocation2 + $0x321] sm:$0xff] }
 0x9dd   :  { %20275 = vmatprep.mubr.msk.f32.mxu1 %vm26_vm1, %v14000_v41  ;;  %v14062_v41 = vld [vmem:[#allocation2 + $0x349] sm:$0xff] }
 0x9e0   :  { %20276 = vmatmul.mubr.msk.f32.vlgmr.msra.gmra.mrb[0].mxu1 %vm26_vm1, %v14001_v50  ;;  %v14063_v50 = vld [vmem:[#allocation2 + $0x351] sm:$0xff] }
 0x9e1   :  { %20372 = vmatpush3.msk.msra.mxu1 %vm500_vm0, %v25553_v51  ;;  %20278 = vmatprep.mubr.msk.f32.mxu1 %vm26_vm1, %v14002_v9  ;;  %v14009_v51 = vld [vmem:[#allocation2 + $0x99] sm:$0xff] }
 0x9e2   :  { %v14838_v9 = vld [vmem:[#allocation2 + $0x32] sm:$0xff] }
 0x9e4   :  { %20279 = vmatmul.mubr.msk.f32.gmra.mrb[2].mxu1 %vm26_vm1, %v14003_v22  ;;  %v14839_v22 = vld [vmem:[#allocation2 + $0x3a] sm:$0xff] }
 0x9e5   :  { %20281 = vmatprep.mubr.msk.f32.mxu1 %vm26_vm1, %v14004_v32  ;;  %v14840_v32 = vld [vmem:[#allocation2 + $0x4a] sm:$0xff] }
 0x9e8   :  { %20282 = vmatmul.mubr.msk.f32.gmra.mrb[4].mxu1 %vm26_vm1, %v14005_v0  ;;  %v14841_v0 = vld [vmem:[#allocation2 + $0x52] sm:$0xff] }
 0x9e9   :  { %20284 = vmatprep.mubr.msk.f32.mxu1 %vm26_vm1, %v14006_v20  ;;  %v14844_v20 = vld [vmem:[#allocation2 + $0x7a] sm:$0xff] }
 0x9ec   :  { %20285 = vmatmul.mubr.msk.f32.gmra.mrb[6].mxu1 %vm26_vm1, %v14007_v27  ;;  %v14845_v27 = vld [vmem:[#allocation2 + $0x82] sm:$0xff] }
 0x9ed   :  { %20287 = vmatprep.mubr.msk.f32.mxu1 %vm26_vm1, %v14008_v25  ;;  %v14846_v25 = vld [vmem:[#allocation2 + $0x92] sm:$0xff] }
 0x9f0   :  { %20288 = vmatmul.mubr.msk.f32.gmra.mrb[8].mxu1 %vm26_vm1, %v14009_v51  ;;  %v14847_v51 = vld [vmem:[#allocation2 + $0x9a] sm:$0xff] }
 0x9f1   :  { %20290 = vmatprep.mubr.msk.f32.mxu1 %vm26_vm1, %v14010_v16  ;;  %v14848_v16 = vld [vmem:[#allocation2 + $0xaa] sm:$0xff] }
 0x9f4   :  { %20291 = vmatmul.mubr.msk.f32.gmra.mrb[10].mxu1 %vm26_vm1, %v14011_v12  ;;  %v14849_v12 = vld [vmem:[#allocation2 + $0xb2] sm:$0xff] }
 0x9f5   :  { %20293 = vmatprep.mubr.msk.f32.mxu1 %vm26_vm1, %v14012_v59  ;;  %v14850_v59 = vld [vmem:[#allocation2 + $0xc2] sm:$0xff] }
 0x9f8   :  { %20294 = vmatmul.mubr.msk.f32.gmra.mrb[12].mxu1 %vm26_vm1, %v14013_v54  ;;  %v14851_v54 = vld [vmem:[#allocation2 + $0xca] sm:$0xff] }
 0x9f9   :  { %20296 = vmatprep.mubr.msk.f32.mxu1 %vm26_vm1, %v14014_v48  ;;  %v14852_v48 = vld [vmem:[#allocation2 + $0xda] sm:$0xff] }
 0x9fc   :  { %20297 = vmatmul.mubr.msk.f32.gmra.mrb[14].mxu1 %vm26_vm1, %v14015_v5  ;;  %v14853_v5 = vld [vmem:[#allocation2 + $0xe2] sm:$0xff] }
 0x9fd   :  { %20299 = vmatprep.mubr.msk.f32.mxu1 %vm26_vm1, %v14016_v15  ;;  %v14854_v15 = vld [vmem:[#allocation2 + $0xf2] sm:$0xff] }
 0xa00   :  { %20300 = vmatmul.mubr.msk.f32.gmra.mrb[16].mxu1 %vm26_vm1, %v14017_v24  ;;  %v14855_v24 = vld [vmem:[#allocation2 + $0xfa] sm:$0xff] }
 0xa01   :  { %20302 = vmatprep.mubr.msk.f32.mxu1 %vm26_vm1, %v14018_v26  ;;  %v14856_v26 = vld [vmem:[#allocation2 + $0x10a] sm:$0xff] }
 0xa04   :  { %20303 = vmatmul.mubr.msk.f32.gmra.mrb[18].mxu1 %vm26_vm1, %v14019_v3  ;;  %v14857_v3 = vld [vmem:[#allocation2 + $0x112] sm:$0xff] }
 0xa05   :  { %20305 = vmatprep.mubr.msk.f32.mxu1 %vm26_vm1, %v14020_v38  ;;  %v14858_v38 = vld [vmem:[#allocation2 + $0x122] sm:$0xff] }
 0xa08   :  { %20306 = vmatmul.mubr.msk.f32.gmra.mrb[20].mxu1 %vm26_vm1, %v14021_v30  ;;  %v14859_v30 = vld [vmem:[#allocation2 + $0x12a] sm:$0xff] }
 0xa09   :  { %20308 = vmatprep.mubr.msk.f32.mxu1 %vm26_vm1, %v14022_v31  ;;  %v14860_v31 = vld [vmem:[#allocation2 + $0x13a] sm:$0xff] }
 0xa0c   :  { %20309 = vmatmul.mubr.msk.f32.gmra.mrb[22].mxu1 %vm26_vm1, %v14023_v37  ;;  %v14861_v37 = vld [vmem:[#allocation2 + $0x142] sm:$0xff] }
 0xa0d   :  { %20311 = vmatprep.mubr.msk.f32.mxu1 %vm26_vm1, %v14024_v35  ;;  %v14862_v35 = vld [vmem:[#allocation2 + $0x152] sm:$0xff] }
 0xa10   :  { %20312 = vmatmul.mubr.msk.f32.gmra.mrb[24].mxu1 %vm26_vm1, %v14025_v8  ;;  %v14863_v8 = vld [vmem:[#allocation2 + $0x15a] sm:$0xff] }
 0xa11   :  { %20314 = vmatprep.mubr.msk.f32.mxu1 %vm26_vm1, %v14026_v2  ;;  %v14864_v2 = vld [vmem:[#allocation2 + $0x16a] sm:$0xff] }
 0xa14   :  { %20315 = vmatmul.mubr.msk.f32.gmra.mrb[26].mxu1 %vm26_vm1, %v14027_v18  ;;  %v14865_v18 = vld [vmem:[#allocation2 + $0x172] sm:$0xff] }
 0xa15   :  { %20317 = vmatprep.mubr.msk.f32.mxu1 %vm26_vm1, %v25328_v21  ;;  %v14036_v21 = vld [vmem:[#allocation2 + $0x211] sm:$0xff] }
 0xa18   :  { %20318 = vmatmul.mubr.msk.f32.gmra.mrb[28].mxu1 %vm26_vm1, %v25332_v34  ;;  %v14037_v34 = vld [vmem:[#allocation2 + $0x219] sm:$0xff] }
 0xa19   :  { %20320 = vmatprep.mubr.msk.f32.mxu1 %vm26_vm1, %v14030_v39  ;;  %v14868_v39 = vld [vmem:[#allocation2 + $0x19a] sm:$0xff] }
 0xa1c   :  { %20321 = vmatmul.mubr.msk.f32.gmra.mrb[30].mxu1 %vm26_vm1, %v14031_v60  ;;  %v14869_v60 = vld [vmem:[#allocation2 + $0x1a2] sm:$0xff] }
 0xa1d   :  { %20323 = vmatprep.mubr.msk.f32.mxu1 %vm26_vm1, %v14032_v14  ;;  %v14870_v14 = vld [vmem:[#allocation2 + $0x1e2] sm:$0xff] }
 0xa20   :  { %20324 = vmatmul.mubr.msk.f32.gmra.mrb[32].mxu1 %vm26_vm1, %v14033_v63  ;;  %v14871_v63 = vld [vmem:[#allocation2 + $0x1ea] sm:$0xff] }
 0xa21   :  { %20326 = vmatprep.mubr.msk.f32.mxu1 %vm26_vm1, %v14034_v23  ;;  %v14872_v23 = vld [vmem:[#allocation2 + $0x1fa] sm:$0xff] }
 0xa24   :  { %20327 = vmatmul.mubr.msk.f32.gmra.mrb[34].mxu1 %vm26_vm1, %v14035_v11  ;;  %v14873_v11 = vld [vmem:[#allocation2 + $0x202] sm:$0xff] }
 0xa25   :  { %20329 = vmatprep.mubr.msk.f32.mxu1 %vm26_vm1, %v14036_v21  ;;  %v14876_v21 = vld [vmem:[#allocation2 + $0x22a] sm:$0xff] }
 0xa28   :  { %20330 = vmatmul.mubr.msk.f32.gmra.mrb[36].mxu1 %vm26_vm1, %v14037_v34  ;;  %v14877_v34 = vld [vmem:[#allocation2 + $0x232] sm:$0xff] }
 0xa29   :  { %20332 = vmatprep.mubr.msk.f32.mxu1 %vm26_vm1, %v14038_v44  ;;  %v14878_v44 = vld [vmem:[#allocation2 + $0x242] sm:$0xff] }
 0xa2c   :  { %20333 = vmatmul.mubr.msk.f32.gmra.mrb[38].mxu1 %vm26_vm1, %v14039_v33  ;;  %v14879_v33 = vld [vmem:[#allocation2 + $0x24a] sm:$0xff] }
 0xa2d   :  { %20335 = vmatprep.mubr.msk.f32.mxu1 %vm26_vm1, %v14040_v17  ;;  %v14880_v17 = vld [vmem:[#allocation2 + $0x25a] sm:$0xff] }
 0xa30   :  { %20336 = vmatmul.mubr.msk.f32.gmra.mrb[40].mxu1 %vm26_vm1, %v14041_v36  ;;  %v14881_v36 = vld [vmem:[#allocation2 + $0x262] sm:$0xff] }
 0xa31   :  { %20338 = vmatprep.mubr.msk.f32.mxu1 %vm26_vm1, %v14042_v40  ;;  %v14882_v40 = vld [vmem:[#allocation2 + $0x272] sm:$0xff] }
 0xa34   :  { %20339 = vmatmul.mubr.msk.f32.gmra.mrb[42].mxu1 %vm26_vm1, %v14043_v19  ;;  %v14883_v19 = vld [vmem:[#allocation2 + $0x27a] sm:$0xff] }
 0xa35   :  { %20341 = vmatprep.mubr.msk.f32.mxu1 %vm26_vm1, %v14044_v28  ;;  %v14884_v28 = vld [vmem:[#allocation2 + $0x28a] sm:$0xff] }
 0xa38   :  { %20342 = vmatmul.mubr.msk.f32.gmra.mrb[44].mxu1 %vm26_vm1, %v14045_v6  ;;  %v14885_v6 = vld [vmem:[#allocation2 + $0x292] sm:$0xff] }
 0xa39   :  { %20344 = vmatprep.mubr.msk.f32.mxu1 %vm26_vm1, %v14046_v62  ;;  %v14886_v62 = vld [vmem:[#allocation2 + $0x2a2] sm:$0xff] }
 0xa3c   :  { %20345 = vmatmul.mubr.msk.f32.gmra.mrb[46].mxu1 %vm26_vm1, %v14047_v43  ;;  %v14887_v43 = vld [vmem:[#allocation2 + $0x2aa] sm:$0xff] }
 0xa3d   :  { %20347 = vmatprep.mubr.msk.f32.mxu1 %vm26_vm1, %v14048_v46  ;;  %v14888_v46 = vld [vmem:[#allocation2 + $0x2ba] sm:$0xff] }
 0xa40   :  { %20348 = vmatmul.mubr.msk.f32.gmra.mrb[48].mxu1 %vm26_vm1, %v14049_v55  ;;  %v14889_v55 = vld [vmem:[#allocation2 + $0x2c2] sm:$0xff] }
 0xa41   :  { %20350 = vmatprep.mubr.msk.f32.mxu1 %vm26_vm1, %v14050_v52  ;;  %v14890_v52 = vld [vmem:[#allocation2 + $0x2d2] sm:$0xff] }
 0xa44   :  { %20351 = vmatmul.mubr.msk.f32.gmra.mrb[50].mxu1 %vm26_vm1, %v14051_v1  ;;  %v14891_v1 = vld [vmem:[#allocation2 + $0x2da] sm:$0xff] }
 0xa45   :  { %20353 = vmatprep.mubr.msk.f32.mxu1 %vm26_vm1, %v14052_v58  ;;  %v14892_v58 = vld [vmem:[#allocation2 + $0x2ea] sm:$0xff] }
 0xa48   :  { %20354 = vmatmul.mubr.msk.f32.gmra.mrb[52].mxu1 %vm26_vm1, %v14053_v61  ;;  %v14893_v61 = vld [vmem:[#allocation2 + $0x2f2] sm:$0xff] }
 0xa49   :  { %20356 = vmatprep.mubr.msk.f32.mxu1 %vm26_vm1, %v14054_v57  ;;  %v14894_v57 = vld [vmem:[#allocation2 + $0x302] sm:$0xff] }
 0xa4c   :  { %20357 = vmatmul.mubr.msk.f32.gmra.mrb[54].mxu1 %vm26_vm1, %v14055_v29  ;;  %v14895_v29 = vld [vmem:[#allocation2 + $0x30a] sm:$0xff] }
 0xa4d   :  { %20359 = vmatprep.mubr.msk.f32.mxu1 %vm26_vm1, %v14056_v49  ;;  %v14896_v49 = vld [vmem:[#allocation2 + $0x31a] sm:$0xff] }
 0xa50   :  { %20360 = vmatmul.mubr.msk.f32.gmra.mrb[56].mxu1 %vm26_vm1, %v14057_v10  ;;  %v14897_v10 = vld [vmem:[#allocation2 + $0x322] sm:$0xff] }
 0xa51   :  { %20362 = vmatprep.mubr.msk.f32.mxu1 %vm26_vm1, %v14058_v13  ;;  %v14900_v13 = vld [vmem:[#allocation2 + $0x34a] sm:$0xff] }
 0xa54   :  { %20363 = vmatmul.mubr.msk.f32.gmra.mrb[58].mxu1 %vm26_vm1, %v14059_v47  ;;  %v14901_v47 = vld [vmem:[#allocation2 + $0x352] sm:$0xff] }
 0xa55   :  { %20365 = vmatprep.mubr.msk.f32.mxu1 %vm26_vm1, %v25396_v53  ;;  %v14842_v53 = vld [vmem:[#allocation2 + $0x62] sm:$0xff] }
 0xa58   :  { %20366 = vmatmul.mubr.msk.f32.gmra.mrb[60].mxu1 %vm26_vm1, %v25400_v45  ;;  %v14843_v45 = vld [vmem:[#allocation2 + $0x6a] sm:$0xff] }
 0xa59   :  { %20368 = vmatprep.mubr.msk.f32.mxu1 %vm26_vm1, %v14062_v41 }
 0xa5c   :  { %20369 = vmatmul.mubr.msk.f32.gmra.mrb[62].mxu1 %vm26_vm1, %v14063_v50 }
 0xa5d   :  { %20373 = vmatprep.mubr.msk.f32.mxu1 %vm26_vm1, %v14838_v9 }
 0xa60   :  { %20374 = vmatmul.mubr.msk.f32.vlgmr.msra.gmra.mrb[0].mxu1 %vm26_vm1, %v14839_v22 }
 0xa61   :  { %20376 = vmatprep.mubr.msk.f32.mxu1 %vm26_vm1, %v14840_v32 }
 0xa64   :  { %20377 = vmatmul.mubr.msk.f32.gmra.mrb[2].mxu1 %vm26_vm1, %v14841_v0 }
 0xa65   :  { %20379 = vmatprep.mubr.msk.f32.mxu1 %vm26_vm1, %v14842_v53 }
 0xa68   :  { %20380 = vmatmul.mubr.msk.f32.gmra.mrb[4].mxu1 %vm26_vm1, %v14843_v45 }
 0xa69   :  { %20382 = vmatprep.mubr.msk.f32.mxu1 %vm26_vm1, %v14844_v20 }
 0xa6c   :  { %20383 = vmatmul.mubr.msk.f32.gmra.mrb[6].mxu1 %vm26_vm1, %v14845_v27 }
 0xa6d   :  { %20385 = vmatprep.mubr.msk.f32.mxu1 %vm26_vm1, %v14846_v25 }
 0xa70   :  { %20386 = vmatmul.mubr.msk.f32.gmra.mrb[8].mxu1 %vm26_vm1, %v14847_v51 }
 0xa71   :  { %20388 = vmatprep.mubr.msk.f32.mxu1 %vm26_vm1, %v14848_v16 }
 0xa74   :  { %20389 = vmatmul.mubr.msk.f32.gmra.mrb[10].mxu1 %vm26_vm1, %v14849_v12 }
 0xa75   :  { %20391 = vmatprep.mubr.msk.f32.mxu1 %vm26_vm1, %v14850_v59 }
 0xa78   :  { %20392 = vmatmul.mubr.msk.f32.gmra.mrb[12].mxu1 %vm26_vm1, %v14851_v54 }
 0xa79   :  { %20394 = vmatprep.mubr.msk.f32.mxu1 %vm26_vm1, %v14852_v48 }
 0xa7c   :  { %20395 = vmatmul.mubr.msk.f32.gmra.mrb[14].mxu1 %vm26_vm1, %v14853_v5 }
 0xa7d   :  { %20397 = vmatprep.mubr.msk.f32.mxu1 %vm26_vm1, %v14854_v15 }
 0xa80   :  { %20398 = vmatmul.mubr.msk.f32.gmra.mrb[16].mxu1 %vm26_vm1, %v14855_v24 }
 0xa81   :  { %20400 = vmatprep.mubr.msk.f32.mxu1 %vm26_vm1, %v14856_v26 }
 0xa84   :  { %20401 = vmatmul.mubr.msk.f32.gmra.mrb[18].mxu1 %vm26_vm1, %v14857_v3 }
 0xa85   :  { %20403 = vmatprep.mubr.msk.f32.mxu1 %vm26_vm1, %v14858_v38 }
 0xa88   :  { %20404 = vmatmul.mubr.msk.f32.gmra.mrb[20].mxu1 %vm26_vm1, %v14859_v30 }
 0xa89   :  { %20406 = vmatprep.mubr.msk.f32.mxu1 %vm26_vm1, %v14860_v31 }
 0xa8c   :  { %20407 = vmatmul.mubr.msk.f32.gmra.mrb[22].mxu1 %vm26_vm1, %v14861_v37 }
 0xa8d   :  { %20409 = vmatprep.mubr.msk.f32.mxu1 %vm26_vm1, %v14862_v35 }
 0xa90   :  { %20410 = vmatmul.mubr.msk.f32.gmra.mrb[24].mxu1 %vm26_vm1, %v14863_v8 }
 0xa91   :  { %20412 = vmatprep.mubr.msk.f32.mxu1 %vm26_vm1, %v14864_v2 }
 0xa94   :  { %20413 = vmatmul.mubr.msk.f32.gmra.mrb[26].mxu1 %vm26_vm1, %v14865_v18 }
 0xa95   :  { %20415 = vmatprep.mubr.msk.f32.mxu1 %vm26_vm1, %v25473_v56  ;;  %v14874_v56 = vld [vmem:[#allocation2 + $0x212] sm:$0xff] }
 0xa98   :  { %20416 = vmatmul.mubr.msk.f32.gmra.mrb[28].mxu1 %vm26_vm1, %v25477_v42  ;;  %v14875_v42 = vld [vmem:[#allocation2 + $0x21a] sm:$0xff] }
 0xa99   :  { %20418 = vmatprep.mubr.msk.f32.mxu1 %vm26_vm1, %v14868_v39 }
 0xa9c   :  { %20419 = vmatmul.mubr.msk.f32.gmra.mrb[30].mxu1 %vm26_vm1, %v14869_v60 }
 0xa9d   :  { %20421 = vmatprep.mubr.msk.f32.mxu1 %vm26_vm1, %v14870_v14 }
 0xaa0   :  { %20422 = vmatmul.mubr.msk.f32.gmra.mrb[32].mxu1 %vm26_vm1, %v14871_v63 }
 0xaa1   :  { %20424 = vmatprep.mubr.msk.f32.mxu1 %vm26_vm1, %v14872_v23 }
 0xaa4   :  { %20425 = vmatmul.mubr.msk.f32.gmra.mrb[34].mxu1 %vm26_vm1, %v14873_v11 }
 0xaa5   :  { %20427 = vmatprep.mubr.msk.f32.mxu1 %vm26_vm1, %v14874_v56 }
 0xaa8   :  { %20428 = vmatmul.mubr.msk.f32.gmra.mrb[36].mxu1 %vm26_vm1, %v14875_v42 }
 0xaa9   :  { %20430 = vmatprep.mubr.msk.f32.mxu1 %vm26_vm1, %v14876_v21 }
 0xaac   :  { %20431 = vmatmul.mubr.msk.f32.gmra.mrb[38].mxu1 %vm26_vm1, %v14877_v34 }
 0xaad   :  { %20433 = vmatprep.mubr.msk.f32.mxu1 %vm26_vm1, %v14878_v44 }
 0xab0   :  { %20434 = vmatmul.mubr.msk.f32.gmra.mrb[40].mxu1 %vm26_vm1, %v14879_v33 }
 0xab1   :  { %20436 = vmatprep.mubr.msk.f32.mxu1 %vm26_vm1, %v14880_v17 }
 0xab4   :  { %20437 = vmatmul.mubr.msk.f32.gmra.mrb[42].mxu1 %vm26_vm1, %v14881_v36 }
 0xab5   :  { %20439 = vmatprep.mubr.msk.f32.mxu1 %vm26_vm1, %v14882_v40 }
 0xab8   :  { %20440 = vmatmul.mubr.msk.f32.gmra.mrb[44].mxu1 %vm26_vm1, %v14883_v19 }
 0xab9   :  { %20442 = vmatprep.mubr.msk.f32.mxu1 %vm26_vm1, %v14884_v28 }
 0xabc   :  { %20443 = vmatmul.mubr.msk.f32.gmra.mrb[46].mxu1 %vm26_vm1, %v14885_v6 }
 0xabd   :  { %20445 = vmatprep.mubr.msk.f32.mxu1 %vm26_vm1, %v14886_v62 }
 0xac0   :  { %20446 = vmatmul.mubr.msk.f32.gmra.mrb[48].mxu1 %vm26_vm1, %v14887_v43 }
 0xac1   :  { %20448 = vmatprep.mubr.msk.f32.mxu1 %vm26_vm1, %v14888_v46 }
 0xac4   :  { %20449 = vmatmul.mubr.msk.f32.gmra.mrb[50].mxu1 %vm26_vm1, %v14889_v55 }
 0xac5   :  { %20451 = vmatprep.mubr.msk.f32.mxu1 %vm26_vm1, %v14890_v52 }
 0xac8   :  { %20452 = vmatmul.mubr.msk.f32.gmra.mrb[52].mxu1 %vm26_vm1, %v14891_v1 }
 0xac9   :  { %20454 = vmatprep.mubr.msk.f32.mxu1 %vm26_vm1, %v14892_v58 }
 0xacc   :  { %20455 = vmatmul.mubr.msk.f32.gmra.mrb[54].mxu1 %vm26_vm1, %v14893_v61 }
 0xacd   :  { %20457 = vmatprep.mubr.msk.f32.mxu1 %vm26_vm1, %v14894_v57 }
 0xad0   :  { %20458 = vmatmul.mubr.msk.f32.gmra.mrb[56].mxu1 %vm26_vm1, %v14895_v29 }
 0xad1   :  { %20460 = vmatprep.mubr.msk.f32.mxu1 %vm26_vm1, %v14896_v49 }
 0xad4   :  { %20461 = vmatmul.mubr.msk.f32.gmra.mrb[58].mxu1 %vm26_vm1, %v14897_v10 }
 0xad5   :  { %20463 = vmatprep.mubr.msk.f32.mxu1 %vm26_vm1, %v25541_v7 }
 0xad8   :  { %20464 = vmatmul.mubr.msk.f32.gmra.mrb[60].mxu1 %vm26_vm1, %v25545_v4 }
 0xad9   :  { %20466 = vmatprep.mubr.msk.f32.mxu1 %vm26_vm1, %v14900_v13 }
 0xadc   :  { %20467 = vmatmul.mubr.msk.f32.gmra.mrb[62].mxu1 %vm26_vm1, %v14901_v47 }
 0xb33   :  { %v25764_v41 = vpop.f32.mrb[0].mxu1 }
 0xb34   :  { %28023 = vst [vmem:[#allocation46_spill] sm:$0xff] %v25764_v41  ;;  %v25766_v50 = vpop.f32.mrb[1].mxu1 }
 0xb35   :  { %v15742_v9 = vadd.f32 %v25764_v41, %v25766_v50 }
 0xb37   :  { %v25770_v22 = vpop.f32.mrb[2].mxu1 }
 0xb38   :  { %28024 = vst [vmem:[#allocation47_spill] sm:$0xff] %v25770_v22  ;;  %v25772_v32 = vpop.f32.mrb[3].mxu1 }
 0xb39   :  { %28025 = vst [vmem:[#allocation48_spill] sm:$0xff] %v25772_v32  ;;  %v15743_v7 = vadd.f32 %v15742_v9, %v25772_v32 }
 0xb3b   :  { %v15744_v4 = vadd.f32 %v25770_v22, %v15743_v7  ;;  %v25776_v0 = vpop.f32.mrb[4].mxu1 }
 0xb3c   :  { %v25778_v53 = vpop.f32.mrb[5].mxu1 }
 0xb3d   :  { %28026 = vst [vmem:[#allocation49_spill] sm:$0xff] %v25778_v53  ;;  %v15745_v45 = vadd.f32 %v15744_v4, %v25778_v53 }
 0xb3f   :  { %v25781_v20 = vpop.f32.mrb[6].mxu1  ;;  %v15746_v27 = vadd.f32 %v25776_v0, %v15745_v45 }
 0xb40   :  { %v25784_v25 = vpop.f32.mrb[7].mxu1 }
 0xb41   :  { %v15747_v51 = vadd.f32 %v15746_v27, %v25784_v25 }
 0xb43   :  { %v25787_v16 = vpop.f32.mrb[8].mxu1  ;;  %v15748_v12 = vadd.f32 %v25781_v20, %v15747_v51 }
 0xb44   :  { %v25790_v59 = vpop.f32.mrb[9].mxu1 }
 0xb45   :  { %v15749_v54 = vadd.f32 %v15748_v12, %v25790_v59 }
 0xb47   :  { %v25793_v48 = vpop.f32.mrb[10].mxu1  ;;  %v15750_v5 = vadd.f32 %v25787_v16, %v15749_v54 }
 0xb48   :  { %v25796_v15 = vpop.f32.mrb[11].mxu1 }
 0xb49   :  { %v15751_v24 = vadd.f32 %v15750_v5, %v25796_v15 }
 0xb4b   :  { %v25799_v26 = vpop.f32.mrb[12].mxu1  ;;  %v15752_v3 = vadd.f32 %v25793_v48, %v15751_v24 }
 0xb4c   :  { %v25802_v38 = vpop.f32.mrb[13].mxu1 }
 0xb4d   :  { %v15753_v30 = vadd.f32 %v15752_v3, %v25802_v38 }
 0xb4f   :  { %v25805_v31 = vpop.f32.mrb[14].mxu1  ;;  %v15754_v37 = vadd.f32 %v25799_v26, %v15753_v30 }
 0xb50   :  { %v25808_v35 = vpop.f32.mrb[15].mxu1 }
 0xb51   :  { %v15755_v8 = vadd.f32 %v15754_v37, %v25808_v35 }
 0xb53   :  { %v25811_v2 = vpop.f32.mrb[16].mxu1  ;;  %v15756_v18 = vadd.f32 %v25805_v31, %v15755_v8 }
 0xb54   :  { %v25814_v39 = vpop.f32.mrb[17].mxu1 }
 0xb55   :  { %v15757_v60 = vadd.f32 %v15756_v18, %v25814_v39 }
 0xb57   :  { %v25817_v14 = vpop.f32.mrb[18].mxu1  ;;  %v15758_v63 = vadd.f32 %v25811_v2, %v15757_v60 }
 0xb58   :  { %v25820_v23 = vpop.f32.mrb[19].mxu1 }
 0xb59   :  { %v15759_v11 = vadd.f32 %v15758_v63, %v25820_v23 }
 0xb5b   :  { %v25823_v56 = vpop.f32.mrb[20].mxu1  ;;  %v15760_v42 = vadd.f32 %v25817_v14, %v15759_v11 }
 0xb5c   :  { %v25826_v21 = vpop.f32.mrb[21].mxu1 }
 0xb5d   :  { %v15761_v34 = vadd.f32 %v15760_v42, %v25826_v21 }
 0xb5f   :  { %v25829_v44 = vpop.f32.mrb[22].mxu1  ;;  %v15762_v33 = vadd.f32 %v25823_v56, %v15761_v34 }
 0xb60   :  { %v25832_v17 = vpop.f32.mrb[23].mxu1 }
 0xb61   :  { %v15763_v36 = vadd.f32 %v15762_v33, %v25832_v17 }
 0xb63   :  { %v25835_v40 = vpop.f32.mrb[24].mxu1  ;;  %v15764_v19 = vadd.f32 %v25829_v44, %v15763_v36 }
 0xb64   :  { %v25838_v28 = vpop.f32.mrb[25].mxu1 }
 0xb65   :  { %v15765_v6 = vadd.f32 %v15764_v19, %v25838_v28 }
 0xb67   :  { %v25841_v62 = vpop.f32.mrb[26].mxu1  ;;  %v15766_v43 = vadd.f32 %v25835_v40, %v15765_v6 }
 0xb68   :  { %v25844_v46 = vpop.f32.mrb[27].mxu1 }
 0xb69   :  { %v15767_v55 = vadd.f32 %v15766_v43, %v25844_v46 }
 0xb6b   :  { %v25847_v52 = vpop.f32.mrb[28].mxu1  ;;  %v15768_v1 = vadd.f32 %v25841_v62, %v15767_v55 }
 0xb6c   :  { %v25850_v58 = vpop.f32.mrb[29].mxu1 }
 0xb6d   :  { %v15769_v61 = vadd.f32 %v15768_v1, %v25850_v58 }
 0xb6f   :  { %v25853_v57 = vpop.f32.mrb[30].mxu1  ;;  %v15770_v29 = vadd.f32 %v25847_v52, %v15769_v61 }
 0xb70   :  { %v25856_v49 = vpop.f32.mrb[31].mxu1 }
 0xb71   :  { %v15771_v10 = vadd.f32 %v15770_v29, %v25856_v49 }
 0xb73   :  { %v25859_v13 = vpop.f32.mrb[32].mxu1  ;;  %v15772_v47 = vadd.f32 %v25853_v57, %v15771_v10 }
 0xb74   :  { %v25862_v9 = vpop.f32.mrb[33].mxu1 }
 0xb75   :  { %v15773_v7 = vadd.f32 %v15772_v47, %v25862_v9 }
 0xb77   :  { %v25865_v4 = vpop.f32.mrb[34].mxu1  ;;  %v15774_v45 = vadd.f32 %v25859_v13, %v15773_v7 }
 0xb78   :  { %v25868_v27 = vpop.f32.mrb[35].mxu1 }
 0xb79   :  { %v15775_v51 = vadd.f32 %v15774_v45, %v25868_v27 }
 0xb7b   :  { %v25871_v12 = vpop.f32.mrb[36].mxu1  ;;  %v15776_v54 = vadd.f32 %v25865_v4, %v15775_v51 }
 0xb7c   :  { %v25874_v5 = vpop.f32.mrb[37].mxu1 }
 0xb7d   :  { %v15777_v24 = vadd.f32 %v15776_v54, %v25874_v5 }
 0xb7f   :  { %v25877_v3 = vpop.f32.mrb[38].mxu1  ;;  %v15778_v30 = vadd.f32 %v25871_v12, %v15777_v24 }
 0xb80   :  { %v25880_v37 = vpop.f32.mrb[39].mxu1 }
 0xb81   :  { %v15779_v8 = vadd.f32 %v15778_v30, %v25880_v37 }
 0xb83   :  { %v25883_v18 = vpop.f32.mrb[40].mxu1  ;;  %v15780_v60 = vadd.f32 %v25877_v3, %v15779_v8 }
 0xb84   :  { %v25886_v63 = vpop.f32.mrb[41].mxu1 }
 0xb85   :  { %v15781_v11 = vadd.f32 %v15780_v60, %v25886_v63 }
 0xb87   :  { %v25889_v42 = vpop.f32.mrb[42].mxu1  ;;  %v15782_v34 = vadd.f32 %v25883_v18, %v15781_v11 }
 0xb88   :  { %28027 = vst [vmem:[#allocation50_spill] sm:$0xff] %v25889_v42  ;;  %v25892_v33 = vpop.f32.mrb[43].mxu1 }
 0xb89   :  { %v15783_v36 = vadd.f32 %v15782_v34, %v25892_v33 }
 0xb8b   :  { %v25895_v19 = vpop.f32.mrb[44].mxu1  ;;  %v15784_v6 = vadd.f32 %v25889_v42, %v15783_v36 }
 0xb8c   :  { %28028 = vst [vmem:[#allocation51_spill] sm:$0xff] %v25895_v19  ;;  %v25898_v43 = vpop.f32.mrb[45].mxu1 }
 0xb8d   :  { %28029 = vst [vmem:[#allocation52_spill] sm:$0xff] %v25898_v43  ;;  %v15785_v55 = vadd.f32 %v15784_v6, %v25898_v43 }
 0xb8f   :  { %v25901_v1 = vpop.f32.mrb[46].mxu1  ;;  %v15786_v61 = vadd.f32 %v25895_v19, %v15785_v55 }
 0xb90   :  { %28030 = vst [vmem:[#allocation53_spill] sm:$0xff] %v25901_v1  ;;  %v25904_v29 = vpop.f32.mrb[47].mxu1 }
 0xb91   :  { %28031 = vst [vmem:[#allocation54_spill] sm:$0xff] %v25904_v29  ;;  %v15787_v10 = vadd.f32 %v15786_v61, %v25904_v29 }
 0xb93   :  { %v25907_v47 = vpop.f32.mrb[48].mxu1  ;;  %v15788_v7 = vadd.f32 %v25901_v1, %v15787_v10 }
 0xb94   :  { %28032 = vst [vmem:[#allocation55_spill] sm:$0xff] %v25907_v47  ;;  %v25910_v45 = vpop.f32.mrb[49].mxu1 }
 0xb95   :  { %28033 = vst [vmem:[#allocation56_spill] sm:$0xff] %v25910_v45  ;;  %v15789_v51 = vadd.f32 %v15788_v7, %v25910_v45 }
 0xb97   :  { %v25913_v54 = vpop.f32.mrb[50].mxu1  ;;  %v15790_v24 = vadd.f32 %v25907_v47, %v15789_v51 }
 0xb98   :  { %28034 = vst [vmem:[#allocation57_spill] sm:$0xff] %v25913_v54  ;;  %v25916_v30 = vpop.f32.mrb[51].mxu1 }
 0xb99   :  { %28035 = vst [vmem:[#allocation58_spill] sm:$0xff] %v25916_v30  ;;  %v15791_v8 = vadd.f32 %v15790_v24, %v25916_v30 }
 0xb9b   :  { %v25919_v60 = vpop.f32.mrb[52].mxu1  ;;  %v15792_v11 = vadd.f32 %v25913_v54, %v15791_v8 }
 0xb9c   :  { %28036 = vst [vmem:[#allocation59_spill] sm:$0xff] %v25919_v60  ;;  %v25922_v34 = vpop.f32.mrb[53].mxu1 }
 0xb9d   :  { %28037 = vst [vmem:[#allocation60_spill] sm:$0xff] %v25922_v34  ;;  %v15793_v36 = vadd.f32 %v15792_v11, %v25922_v34 }
 0xb9f   :  { %v25925_v6 = vpop.f32.mrb[54].mxu1  ;;  %v15794_v55 = vadd.f32 %v25919_v60, %v15793_v36 }
 0xba0   :  { %28038 = vst [vmem:[#allocation61_spill] sm:$0xff] %v25925_v6  ;;  %v25928_v61 = vpop.f32.mrb[55].mxu1 }
 0xba1   :  { %28039 = vst [vmem:[#allocation62_spill] sm:$0xff] %v25928_v61  ;;  %v15795_v10 = vadd.f32 %v15794_v55, %v25928_v61 }
 0xba3   :  { %v25931_v7 = vpop.f32.mrb[56].mxu1  ;;  %v15796_v51 = vadd.f32 %v25925_v6, %v15795_v10 }
 0xba4   :  { %28040 = vst [vmem:[#allocation63_spill] sm:$0xff] %v25931_v7  ;;  %v25934_v24 = vpop.f32.mrb[57].mxu1 }
 0xba5   :  { %28041 = vst [vmem:[#allocation64_spill] sm:$0xff] %v25934_v24  ;;  %v15797_v8 = vadd.f32 %v15796_v51, %v25934_v24 }
 0xba7   :  { %v25937_v54 = vpop.f32.mrb[58].mxu1  ;;  %v15798_v11 = vadd.f32 %v25931_v7, %v15797_v8 }
 0xba8   :  { %28042 = vst [vmem:[#allocation65_spill] sm:$0xff] %v25937_v54  ;;  %v25940_v34 = vpop.f32.mrb[59].mxu1 }
 0xba9   :  { %28043 = vst [vmem:[#allocation66_spill] sm:$0xff] %v25940_v34  ;;  %v15799_v36 = vadd.f32 %v15798_v11, %v25940_v34 }
 0xbab   :  { %v25943_v60 = vpop.f32.mrb[60].mxu1  ;;  %v15800_v55 = vadd.f32 %v25937_v54, %v15799_v36 }
 0xbac   :  { %28044 = vst [vmem:[#allocation67_spill] sm:$0xff] %v25943_v60  ;;  %v25946_v61 = vpop.f32.mrb[61].mxu1 }
 0xbad   :  { %28045 = vst [vmem:[#allocation68_spill] sm:$0xff] %v25946_v61  ;;  %v15801_v10 = vadd.f32 %v15800_v55, %v25946_v61 }
 0xbaf   :  { %v25949_v6 = vpop.f32.mrb[62].mxu1  ;;  %v15802_v51 = vadd.f32 %v25943_v60, %v15801_v10 }
 0xbb0   :  { %v25952_v24 = vpop.f32.mrb[63].mxu1 }
 0xbb1   :  { %28046 = vst [vmem:[#allocation69_spill] sm:$0xff] %v25952_v24  ;;  %v15803_v8 = vadd.f32 %v15802_v51, %v25952_v24 }
 0xbb3   :  { %v15804_v7 = vadd.f32 %v25949_v6, %v15803_v8 }
 0xbb5   :  { %v15805_v30 = vrot.slane %v15804_v7, 4 }
 0xbb7   :  { %v15806_v11 = vadd.f32 %v15805_v30, %v15804_v7 }
 0xbb9   :  { %v15807_v34 = vrot.slane %v15806_v11, 2 }
 0xbbb   :  { %v15808_v47 = vadd.f32 %v15807_v34, %v15806_v11 }
 0xbbd   :  { %v15809_v45 = vrot.slane %v15808_v47, 1 }
 0xbbf   :  { %v15810_v36 = vadd.f32 %v15809_v45, %v15808_v47 }
 0xbc1   :  { %v25956_v54 = vmul.f32 0.001953125, %v15810_v36 }
 0xbc3   :  { %v15812_v55 = vsub.f32 %v25766_v50, %v25956_v54  ;;  %v15813_v10 = vsub.f32 %v25764_v41, %v25956_v54  ;;  %v15814_v60 = vsub.f32 %v25772_v32, %v25956_v54  ;;  %v15815_v30 = vsub.f32 %v25770_v22, %v25956_v54 }
 0xbc4   :  { %v15816_v34 = vsub.f32 %v25778_v53, %v25956_v54  ;;  %v15817_v7 = vsub.f32 %v25776_v0, %v25956_v54  ;;  %v15818_v36 = vsub.f32 %v25784_v25, %v25956_v54  ;;  %v15820_v53 = vsub.f32 %v25790_v59, %v25956_v54 }
 0xbc5   :  { %v15876_v51 = vmul.f32 %v15812_v55, %v15812_v55  ;;  %v15877_v24 = vmul.f32 %v15813_v10, %v15813_v10  ;;  %v15878_v47 = vmul.f32 %v15814_v60, %v15814_v60  ;;  %v15879_v8 = vmul.f32 %v15815_v30, %v15815_v30 }
 0xbc6   :  { %v15880_v41 = vmul.f32 %v15816_v34, %v15816_v34  ;;  %v15819_v55 = vsub.f32 %v25781_v20, %v25956_v54  ;;  %v15881_v10 = vmul.f32 %v15817_v7, %v15817_v7  ;;  %v15882_v60 = vmul.f32 %v15818_v36, %v15818_v36 }
 0xbc7   :  { %v15940_v45 = vadd.f32 %v15877_v24, %v15876_v51  ;;  %v15821_v51 = vsub.f32 %v25787_v16, %v25956_v54  ;;  %v15884_v34 = vmul.f32 %v15820_v53, %v15820_v53 }
 0xbc8   :  { %v15883_v30 = vmul.f32 %v15819_v55, %v15819_v55 }
 0xbc9   :  { %v15941_v11 = vadd.f32 %v15940_v45, %v15878_v47  ;;  %v15822_v45 = vsub.f32 %v25796_v15, %v25956_v54  ;;  %v15885_v7 = vmul.f32 %v15821_v51, %v15821_v51 }
 0xbcb   :  { %v15942_v32 = vadd.f32 %v15941_v11, %v15879_v8  ;;  %v15823_v11 = vsub.f32 %v25793_v48, %v25956_v54  ;;  %v15886_v36 = vmul.f32 %v15822_v45, %v15822_v45 }
 0xbcd   :  { %v15943_v22 = vadd.f32 %v15942_v32, %v15880_v41  ;;  %v15824_v32 = vsub.f32 %v25802_v38, %v25956_v54  ;;  %v15887_v55 = vmul.f32 %v15823_v11, %v15823_v11 }
 0xbcf   :  { %v15944_v24 = vadd.f32 %v15943_v22, %v15881_v10  ;;  %v15825_v10 = vsub.f32 %v25799_v26, %v25956_v54  ;;  %v15888_v53 = vmul.f32 %v15824_v32, %v15824_v32 }
 0xbd1   :  { %v15945_v47 = vadd.f32 %v15944_v24, %v15882_v60  ;;  %v15826_v24 = vsub.f32 %v25808_v35, %v25956_v54  ;;  %v15889_v51 = vmul.f32 %v15825_v10, %v15825_v10 }
 0xbd3   :  { %v15946_v8 = vadd.f32 %v15945_v47, %v15883_v30  ;;  %v15827_v47 = vsub.f32 %v25805_v31, %v25956_v54  ;;  %v15890_v45 = vmul.f32 %v15826_v24, %v15826_v24 }
 0xbd5   :  { %v15947_v41 = vadd.f32 %v15946_v8, %v15884_v34  ;;  %v15828_v8 = vsub.f32 %v25814_v39, %v25956_v54  ;;  %v15891_v11 = vmul.f32 %v15827_v47, %v15827_v47 }
 0xbd7   :  { %v15948_v22 = vadd.f32 %v15947_v41, %v15885_v7  ;;  %v15829_v41 = vsub.f32 %v25811_v2, %v25956_v54  ;;  %v15892_v32 = vmul.f32 %v15828_v8, %v15828_v8 }
 0xbd9   :  { %v15949_v60 = vadd.f32 %v15948_v22, %v15886_v36  ;;  %v15830_v22 = vsub.f32 %v25820_v23, %v25956_v54  ;;  %v15893_v10 = vmul.f32 %v15829_v41, %v15829_v41 }
 0xbdb   :  { %v15950_v30 = vadd.f32 %v15949_v60, %v15887_v55  ;;  %v15831_v60 = vsub.f32 %v25817_v14, %v25956_v54  ;;  %v15894_v24 = vmul.f32 %v15830_v22, %v15830_v22 }
 0xbdd   :  { %v15951_v34 = vadd.f32 %v15950_v30, %v15888_v53  ;;  %v15832_v30 = vsub.f32 %v25826_v21, %v25956_v54  ;;  %v15895_v47 = vmul.f32 %v15831_v60, %v15831_v60 }
 0xbdf   :  { %v15952_v7 = vadd.f32 %v15951_v34, %v15889_v51  ;;  %v15833_v34 = vsub.f32 %v25823_v56, %v25956_v54  ;;  %v15896_v8 = vmul.f32 %v15832_v30, %v15832_v30 }
 0xbe1   :  { %v15953_v36 = vadd.f32 %v15952_v7, %v15890_v45  ;;  %v15834_v7 = vsub.f32 %v25832_v17, %v25956_v54  ;;  %v15897_v41 = vmul.f32 %v15833_v34, %v15833_v34 }
 0xbe3   :  { %v15954_v55 = vadd.f32 %v15953_v36, %v15891_v11  ;;  %v15835_v36 = vsub.f32 %v25829_v44, %v25956_v54  ;;  %v15898_v22 = vmul.f32 %v15834_v7, %v15834_v7 }
 0xbe5   :  { %v15955_v53 = vadd.f32 %v15954_v55, %v15892_v32  ;;  %v15836_v55 = vsub.f32 %v25838_v28, %v25956_v54  ;;  %v15899_v60 = vmul.f32 %v15835_v36, %v15835_v36 }
 0xbe7   :  { %v15956_v51 = vadd.f32 %v15955_v53, %v15893_v10  ;;  %v15837_v53 = vsub.f32 %v25835_v40, %v25956_v54  ;;  %v15900_v30 = vmul.f32 %v15836_v55, %v15836_v55 }
 0xbe9   :  { %v15957_v45 = vadd.f32 %v15956_v51, %v15894_v24  ;;  %v15838_v51 = vsub.f32 %v25844_v46, %v25956_v54  ;;  %v15901_v34 = vmul.f32 %v15837_v53, %v15837_v53 }
 0xbeb   :  { %v15958_v11 = vadd.f32 %v15957_v45, %v15895_v47  ;;  %v15839_v45 = vsub.f32 %v25841_v62, %v25956_v54  ;;  %v15902_v7 = vmul.f32 %v15838_v51, %v15838_v51 }
 0xbed   :  { %v15959_v32 = vadd.f32 %v15958_v11, %v15896_v8  ;;  %v15840_v11 = vsub.f32 %v25850_v58, %v25956_v54  ;;  %v15903_v36 = vmul.f32 %v15839_v45, %v15839_v45 }
 0xbef   :  { %v15960_v10 = vadd.f32 %v15959_v32, %v15897_v41  ;;  %v15841_v32 = vsub.f32 %v25847_v52, %v25956_v54  ;;  %v15904_v55 = vmul.f32 %v15840_v11, %v15840_v11 }
 0xbf1   :  { %v15961_v24 = vadd.f32 %v15960_v10, %v15898_v22  ;;  %v15842_v10 = vsub.f32 %v25856_v49, %v25956_v54  ;;  %v15905_v53 = vmul.f32 %v15841_v32, %v15841_v32 }
 0xbf3   :  { %v15962_v47 = vadd.f32 %v15961_v24, %v15899_v60  ;;  %v15843_v24 = vsub.f32 %v25853_v57, %v25956_v54  ;;  %v15906_v51 = vmul.f32 %v15842_v10, %v15842_v10 }
 0xbf5   :  { %v15963_v8 = vadd.f32 %v15962_v47, %v15900_v30  ;;  %v15844_v47 = vsub.f32 %v25862_v9, %v25956_v54  ;;  %v15907_v45 = vmul.f32 %v15843_v24, %v15843_v24 }
 0xbf7   :  { %v15964_v41 = vadd.f32 %v15963_v8, %v15901_v34  ;;  %v15845_v8 = vsub.f32 %v25859_v13, %v25956_v54  ;;  %v15908_v11 = vmul.f32 %v15844_v47, %v15844_v47 }
 0xbf9   :  { %v15965_v22 = vadd.f32 %v15964_v41, %v15902_v7  ;;  %v15846_v41 = vsub.f32 %v25868_v27, %v25956_v54  ;;  %v15909_v32 = vmul.f32 %v15845_v8, %v15845_v8 }
 0xbfb   :  { %v15966_v60 = vadd.f32 %v15965_v22, %v15903_v36  ;;  %v15847_v22 = vsub.f32 %v25865_v4, %v25956_v54  ;;  %v15910_v10 = vmul.f32 %v15846_v41, %v15846_v41 }
 0xbfd   :  { %v15967_v30 = vadd.f32 %v15966_v60, %v15904_v55  ;;  %v15848_v60 = vsub.f32 %v25874_v5, %v25956_v54  ;;  %v15911_v24 = vmul.f32 %v15847_v22, %v15847_v22 }
 0xbff   :  { %v15968_v34 = vadd.f32 %v15967_v30, %v15905_v53  ;;  %v15849_v30 = vsub.f32 %v25871_v12, %v25956_v54  ;;  %v15912_v47 = vmul.f32 %v15848_v60, %v15848_v60 }
 0xc01   :  { %v15969_v7 = vadd.f32 %v15968_v34, %v15906_v51  ;;  %v15850_v34 = vsub.f32 %v25880_v37, %v25956_v54  ;;  %v15913_v8 = vmul.f32 %v15849_v30, %v15849_v30 }
 0xc03   :  { %v15970_v36 = vadd.f32 %v15969_v7, %v15907_v45  ;;  %v15851_v7 = vsub.f32 %v25877_v3, %v25956_v54  ;;  %v15914_v41 = vmul.f32 %v15850_v34, %v15850_v34 }
 0xc05   :  { %v15971_v55 = vadd.f32 %v15970_v36, %v15908_v11  ;;  %v15852_v36 = vsub.f32 %v25886_v63, %v25956_v54  ;;  %v15915_v22 = vmul.f32 %v15851_v7, %v15851_v7 }
 0xc07   :  { %v15972_v53 = vadd.f32 %v15971_v55, %v15909_v32  ;;  %v15853_v55 = vsub.f32 %v25883_v18, %v25956_v54  ;;  %v15916_v60 = vmul.f32 %v15852_v36, %v15852_v36 }
 0xc09   :  { %v15973_v51 = vadd.f32 %v15972_v53, %v15910_v10  ;;  %v15854_v53 = vsub.f32 %v25892_v33, %v25956_v54  ;;  %v15917_v30 = vmul.f32 %v15853_v55, %v15853_v55 }
 0xc0b   :  { %v15974_v45 = vadd.f32 %v15973_v51, %v15911_v24  ;;  %v15855_v51 = vsub.f32 %v25889_v42, %v25956_v54  ;;  %v15918_v34 = vmul.f32 %v15854_v53, %v15854_v53 }
 0xc0d   :  { %v15975_v11 = vadd.f32 %v15974_v45, %v15912_v47  ;;  %v15856_v45 = vsub.f32 %v25898_v43, %v25956_v54  ;;  %v15919_v7 = vmul.f32 %v15855_v51, %v15855_v51 }
 0xc0f   :  { %v15976_v32 = vadd.f32 %v15975_v11, %v15913_v8  ;;  %v15857_v11 = vsub.f32 %v25895_v19, %v25956_v54  ;;  %v15920_v36 = vmul.f32 %v15856_v45, %v15856_v45 }
 0xc11   :  { %v15977_v10 = vadd.f32 %v15976_v32, %v15914_v41  ;;  %v15858_v32 = vsub.f32 %v25904_v29, %v25956_v54  ;;  %v15921_v55 = vmul.f32 %v15857_v11, %v15857_v11 }
 0xc13   :  { %v15978_v24 = vadd.f32 %v15977_v10, %v15915_v22  ;;  %v15859_v10 = vsub.f32 %v25901_v1, %v25956_v54  ;;  %v15922_v53 = vmul.f32 %v15858_v32, %v15858_v32 }
 0xc15   :  { %v15979_v47 = vadd.f32 %v15978_v24, %v15916_v60  ;;  %v28047_v24 = vld [vmem:[#allocation56_spill] sm:$0xff]  ;;  %v15923_v51 = vmul.f32 %v15859_v10, %v15859_v10 }
 0xc16   :  { %v15860_v43 = vsub.f32 %v28047_v24, %v25956_v54 }
 0xc17   :  { %v15980_v8 = vadd.f32 %v15979_v47, %v15917_v30  ;;  %v28048_v47 = vld [vmem:[#allocation55_spill] sm:$0xff] }
 0xc18   :  { %v15861_v19 = vsub.f32 %v28048_v47, %v25956_v54  ;;  %v15924_v45 = vmul.f32 %v15860_v43, %v15860_v43 }
 0xc19   :  { %v15981_v41 = vadd.f32 %v15980_v8, %v15918_v34  ;;  %v28049_v8 = vld [vmem:[#allocation58_spill] sm:$0xff] }
 0xc1a   :  { %v15862_v29 = vsub.f32 %v28049_v8, %v25956_v54  ;;  %v15925_v11 = vmul.f32 %v15861_v19, %v15861_v19 }
 0xc1b   :  { %v15982_v22 = vadd.f32 %v15981_v41, %v15919_v7  ;;  %v28050_v41 = vld [vmem:[#allocation57_spill] sm:$0xff] }
 0xc1c   :  { %v15863_v1 = vsub.f32 %v28050_v41, %v25956_v54  ;;  %v15926_v32 = vmul.f32 %v15862_v29, %v15862_v29 }
 0xc1d   :  { %v15983_v60 = vadd.f32 %v15982_v22, %v15920_v36  ;;  %v28051_v22 = vld [vmem:[#allocation60_spill] sm:$0xff] }
 0xc1e   :  { %v15864_v24 = vsub.f32 %v28051_v22, %v25956_v54  ;;  %v15927_v10 = vmul.f32 %v15863_v1, %v15863_v1 }
 0xc1f   :  { %v15984_v30 = vadd.f32 %v15983_v60, %v15921_v55  ;;  %v28052_v60 = vld [vmem:[#allocation59_spill] sm:$0xff] }
 0xc20   :  { %v15865_v47 = vsub.f32 %v28052_v60, %v25956_v54  ;;  %v15928_v43 = vmul.f32 %v15864_v24, %v15864_v24 }
 0xc21   :  { %v15985_v34 = vadd.f32 %v15984_v30, %v15922_v53  ;;  %v28053_v30 = vld [vmem:[#allocation62_spill] sm:$0xff] }
 0xc22   :  { %v15866_v8 = vsub.f32 %v28053_v30, %v25956_v54  ;;  %v15929_v19 = vmul.f32 %v15865_v47, %v15865_v47 }
 0xc23   :  { %v15986_v7 = vadd.f32 %v15985_v34, %v15923_v51  ;;  %v28054_v34 = vld [vmem:[#allocation61_spill] sm:$0xff] }
 0xc24   :  { %v15867_v41 = vsub.f32 %v28054_v34, %v25956_v54  ;;  %v15930_v29 = vmul.f32 %v15866_v8, %v15866_v8 }
 0xc25   :  { %v15987_v36 = vadd.f32 %v15986_v7, %v15924_v45  ;;  %v28055_v7 = vld [vmem:[#allocation64_spill] sm:$0xff] }
 0xc26   :  { %v15868_v22 = vsub.f32 %v28055_v7, %v25956_v54  ;;  %v15931_v1 = vmul.f32 %v15867_v41, %v15867_v41 }
 0xc27   :  { %v15988_v55 = vadd.f32 %v15987_v36, %v15925_v11  ;;  %v28056_v36 = vld [vmem:[#allocation63_spill] sm:$0xff] }
 0xc28   :  { %v15869_v60 = vsub.f32 %v28056_v36, %v25956_v54  ;;  %v15932_v24 = vmul.f32 %v15868_v22, %v15868_v22 }
 0xc29   :  { %v15989_v53 = vadd.f32 %v15988_v55, %v15926_v32  ;;  %v28057_v55 = vld [vmem:[#allocation66_spill] sm:$0xff] }
 0xc2a   :  { %v15870_v30 = vsub.f32 %v28057_v55, %v25956_v54  ;;  %v15933_v47 = vmul.f32 %v15869_v60, %v15869_v60 }
 0xc2b   :  { %v15990_v51 = vadd.f32 %v15989_v53, %v15927_v10  ;;  %v28058_v53 = vld [vmem:[#allocation65_spill] sm:$0xff] }
 0xc2c   :  { %v15871_v34 = vsub.f32 %v28058_v53, %v25956_v54  ;;  %v15934_v8 = vmul.f32 %v15870_v30, %v15870_v30 }
 0xc2d   :  { %v15991_v45 = vadd.f32 %v15990_v51, %v15928_v43  ;;  %v15872_v51 = vsub.f32 %v25946_v61, %v25956_v54 }
 0xc2e   :  { %v15935_v41 = vmul.f32 %v15871_v34, %v15871_v34 }
 0xc2f   :  { %v15992_v11 = vadd.f32 %v15991_v45, %v15929_v19  ;;  %v28059_v45 = vld [vmem:[#allocation67_spill] sm:$0xff]  ;;  %v15936_v22 = vmul.f32 %v15872_v51, %v15872_v51  ;;  %v15740_v51 = vld [vmem:[%s27137_s5] sm:$0x1] }
 0xc30   :  { %v15873_v36 = vsub.f32 %v28059_v45, %v25956_v54 }
 0xc31   :  { %v15993_v32 = vadd.f32 %v15992_v11, %v15930_v29  ;;  %v28060_v11 = vld [vmem:[#allocation69_spill] sm:$0xff] }
 0xc32   :  { %v15874_v55 = vsub.f32 %v28060_v11, %v25956_v54  ;;  %v15937_v60 = vmul.f32 %v15873_v36, %v15873_v36 }
 0xc33   :  { %v15994_v10 = vadd.f32 %v15993_v32, %v15931_v1  ;;  %v15875_v32 = vsub.f32 %v25949_v6, %v25956_v54 }
 0xc35   :  { %v15995_v43 = vadd.f32 %v15994_v10, %v15932_v24  ;;  %v15938_v10 = vmul.f32 %v15874_v55, %v15874_v55  ;;  %v15939_v61 = vmul.f32 %v15875_v32, %v15875_v32  ;;  %v26092_v55 = vld [vmem:[%s27138_s6] sm:$0x1] }
 0xc37   :  { %v15996_v19 = vadd.f32 %v15995_v43, %v15933_v47 }
 0xc39   :  { %v15997_v29 = vadd.f32 %v15996_v19, %v15934_v8 }
 0xc3b   :  { %v15998_v1 = vadd.f32 %v15997_v29, %v15935_v41  ;;  %v28062_v29 = vld [vmem:[#allocation46_spill] sm:$0xff] }
 0xc3d   :  { %v15999_v24 = vadd.f32 %v15998_v1, %v15936_v22  ;;  %v28063_v22 = vld [vmem:[#allocation48_spill] sm:$0xff] }
 0xc3f   :  { %v16000_v53 = vadd.f32 %v15999_v24, %v15937_v60  ;;  %v28065_v60 = vld [vmem:[#allocation49_spill] sm:$0xff] }
 0xc41   :  { %v16001_v30 = vadd.f32 %v16000_v53, %v15938_v10 }
 0xc43   :  { %v16002_v47 = vadd.f32 %v16001_v30, %v15939_v61 }
 0xc45   :  { %v16003_v43 = vrot.slane %v16002_v47, 4 }
 0xc47   :  { %v16004_v7 = vadd.f32 %v16003_v43, %v16002_v47 }
 0xc49   :  { %v16005_v45 = vrot.slane %v16004_v7, 2 }
 0xc4b   :  { %v16006_v34 = vadd.f32 %v16005_v45, %v16004_v7  ;;  %v28061_v7 = vld [vmem:[#allocation29_spill] sm:$0xff] }
 0xc4d   :  { %v16007_v8 = vrot.slane %v16006_v34, 1 }
 0xc4f   :  { %v16008_v19 = vadd.f32 %v16007_v8, %v16006_v34  ;;  %v28066_v34 = vld [vmem:[#allocation50_spill] sm:$0xff]  ;;  %v28067_v8 = vld [vmem:[#allocation52_spill] sm:$0xff] }
 0xc51   :  { %v16009_v42 = vmul.f32 0.001953125, %v16008_v19  ;;  %v28068_v19 = vld [vmem:[#allocation51_spill] sm:$0xff] }
 0xc53   :  { %v16010_v11 = vadd.f32 1e-05, %v16009_v42  ;;  %v28081_v42 = vld [vmem:[#allocation59_spill] sm:$0xff] }
 0xc55   :  { %21496 = vrsqrt.f32 %v16010_v11 }
 0xc5f   :  { %v21497_v36 = vpop.eup %21496 }
 0xc60   :  { %v16012_v41 = vmul.f32 %v21497_v36, %v15740_v51  ;;  %v28069_v51 = vld [vmem:[#allocation54_spill] sm:$0xff]  ;;  %v28070_v36 = vld [vmem:[#allocation53_spill] sm:$0xff] }
 0xc62   :  { %v26095_v61 = vmul.f32 %v16012_v41, %v25956_v54  ;;  %v26098_v53 = vrot.slane %v16012_v41, %v28061_v7  ;;  %v28064_v54 = vld [vmem:[#allocation47_spill] sm:$0xff]  ;;  %v28071_v41 = vld [vmem:[#allocation56_spill] sm:$0xff] }
 0xc64   :  { %v26104_v45 = vmul.f32 %v26098_v53, %v25766_v50  ;;  %v26108_v11 = vmul.f32 %v28062_v29, %v26098_v53  ;;  %v26112_v1 = vmul.f32 %v26098_v53, %v28063_v22  ;;  %v26116_v32 = vmul.f32 %v28064_v54, %v26098_v53  ;;  %v28073_v22 = vld [vmem:[#allocation55_spill] sm:$0xff] }
 0xc65   :  { %v26120_v24 = vmul.f32 %v26098_v53, %v28065_v60  ;;  %v26124_v50 = vmul.f32 %v25776_v0, %v26098_v53  ;;  %v26128_v10 = vmul.f32 %v26098_v53, %v25784_v25  ;;  %v26132_v30 = vmul.f32 %v25781_v20, %v26098_v53  ;;  %v28075_v60 = vld [vmem:[#allocation58_spill] sm:$0xff] }
 0xc66   :  { %v26136_v47 = vmul.f32 %v26098_v53, %v25790_v59  ;;  %v26140_v43 = vmul.f32 %v25787_v16, %v26098_v53  ;;  %v26144_v0 = vmul.f32 %v26098_v53, %v25796_v15  ;;  %v26148_v25 = vmul.f32 %v25793_v48, %v26098_v53 }
 0xc67   :  { %v26152_v20 = vmul.f32 %v26098_v53, %v25802_v38  ;;  %v26156_v59 = vmul.f32 %v25799_v26, %v26098_v53  ;;  %v26160_v16 = vmul.f32 %v26098_v53, %v25808_v35  ;;  %v26164_v15 = vmul.f32 %v25805_v31, %v26098_v53 }
 0xc68   :  { %v26168_v48 = vmul.f32 %v26098_v53, %v25814_v39  ;;  %v26172_v38 = vmul.f32 %v25811_v2, %v26098_v53  ;;  %v26176_v26 = vmul.f32 %v26098_v53, %v25820_v23  ;;  %v26180_v35 = vmul.f32 %v25817_v14, %v26098_v53 }
 0xc69   :  { %v26184_v31 = vmul.f32 %v26098_v53, %v25826_v21  ;;  %v26188_v39 = vmul.f32 %v25823_v56, %v26098_v53  ;;  %v26192_v2 = vmul.f32 %v26098_v53, %v25832_v17  ;;  %v26196_v23 = vmul.f32 %v25829_v44, %v26098_v53 }
 0xc6a   :  { %v26200_v14 = vmul.f32 %v26098_v53, %v25838_v28  ;;  %v26204_v21 = vmul.f32 %v25835_v40, %v26098_v53  ;;  %v26208_v56 = vmul.f32 %v26098_v53, %v25844_v46  ;;  %v26212_v17 = vmul.f32 %v25841_v62, %v26098_v53 }
 0xc6b   :  { %v26216_v44 = vmul.f32 %v26098_v53, %v25850_v58  ;;  %v26220_v28 = vmul.f32 %v25847_v52, %v26098_v53  ;;  %v26224_v40 = vmul.f32 %v26098_v53, %v25856_v49  ;;  %v26228_v46 = vmul.f32 %v25853_v57, %v26098_v53 }
 0xc6c   :  { %v26232_v62 = vmul.f32 %v26098_v53, %v25862_v9  ;;  %v26236_v58 = vmul.f32 %v25859_v13, %v26098_v53  ;;  %v26240_v52 = vmul.f32 %v26098_v53, %v25868_v27  ;;  %v26244_v49 = vmul.f32 %v25865_v4, %v26098_v53 }
 0xc6d   :  { %v26248_v57 = vmul.f32 %v26098_v53, %v25874_v5  ;;  %v26252_v9 = vmul.f32 %v25871_v12, %v26098_v53  ;;  %v26256_v13 = vmul.f32 %v26098_v53, %v25880_v37  ;;  %v26260_v27 = vmul.f32 %v25877_v3, %v26098_v53 }
 0xc6e   :  { %v26264_v4 = vmul.f32 %v26098_v53, %v25886_v63  ;;  %v26268_v5 = vmul.f32 %v25883_v18, %v26098_v53  ;;  %v26272_v12 = vmul.f32 %v26098_v53, %v25892_v33  ;;  %v26276_v37 = vmul.f32 %v28066_v34, %v26098_v53 }
 0xc6f   :  { %v26280_v3 = vmul.f32 %v26098_v53, %v28067_v8  ;;  %v26284_v63 = vmul.f32 %v28068_v19, %v26098_v53  ;;  %v26288_v18 = vmul.f32 %v26098_v53, %v28069_v51  ;;  %v26292_v33 = vmul.f32 %v28070_v36, %v26098_v53  ;;  %v28077_v8 = vld [vmem:[#allocation57_spill] sm:$0xff]  ;;  %v28079_v51 = vld [vmem:[#allocation60_spill] sm:$0xff] }
 0xc70   :  { %v26296_v29 = vmul.f32 %v26098_v53, %v28071_v41  ;;  %v26300_v54 = vmul.f32 %v28073_v22, %v26098_v53  ;;  %v26304_v34 = vmul.f32 %v26098_v53, %v28075_v60  ;;  %v26308_v19 = vmul.f32 %v28077_v8, %v26098_v53 }
 0xc71   :  { %v26312_v36 = vmul.f32 %v26098_v53, %v28079_v51  ;;  %v26316_v41 = vmul.f32 %v28081_v42, %v26098_v53 }
 0xc72   :  { %28072 = vst [vmem:[#allocation70_spill] sm:$0xff] %v26296_v29  ;;  %28074 = vst [vmem:[#allocation71_spill] sm:$0xff] %v26300_v54  ;;  %v28083_v29 = vld [vmem:[#allocation62_spill] sm:$0xff]  ;;  %v28085_v54 = vld [vmem:[#allocation61_spill] sm:$0xff] }
 0xc73   :  { %28076 = vst [vmem:[#allocation72_spill] sm:$0xff] %v26304_v34  ;;  %28078 = vst [vmem:[#allocation73_spill] sm:$0xff] %v26308_v19  ;;  %v26320_v22 = vmul.f32 %v26098_v53, %v28083_v29  ;;  %v26324_v60 = vmul.f32 %v28085_v54, %v26098_v53  ;;  %v28087_v34 = vld [vmem:[#allocation64_spill] sm:$0xff]  ;;  %v28089_v19 = vld [vmem:[#allocation63_spill] sm:$0xff] }
 0xc74   :  { %28080 = vst [vmem:[#allocation74_spill] sm:$0xff] %v26312_v36  ;;  %28082 = vst [vmem:[#allocation75_spill] sm:$0xff] %v26316_v41  ;;  %v26328_v8 = vmul.f32 %v26098_v53, %v28087_v34  ;;  %v26332_v51 = vmul.f32 %v28089_v19, %v26098_v53  ;;  %v28090_v36 = vld [vmem:[#allocation66_spill] sm:$0xff]  ;;  %v28091_v41 = vld [vmem:[#allocation65_spill] sm:$0xff] }
 0xc75   :  { %28084 = vst [vmem:[#allocation76_spill] sm:$0xff] %v26320_v22  ;;  %28086 = vst [vmem:[#allocation77_spill] sm:$0xff] %v26324_v60  ;;  %v26336_v42 = vmul.f32 %v26098_v53, %v28090_v36  ;;  %v26340_v29 = vmul.f32 %v28091_v41, %v26098_v53  ;;  %v28093_v22 = vld [vmem:[#allocation68_spill] sm:$0xff]  ;;  %v28094_v60 = vld [vmem:[#allocation67_spill] sm:$0xff]  ;;  %v26356_v36 = vmul.f32 %v25949_v6, %v26098_v53 }
 0xc76   :  { %28088 = vst [vmem:[#allocation78_spill] sm:$0xff] %v26328_v8  ;;  %v26344_v54 = vmul.f32 %v26098_v53, %v28093_v22  ;;  %v26348_v34 = vmul.f32 %v28094_v60, %v26098_v53  ;;  %v28095_v8 = vld [vmem:[#allocation69_spill] sm:$0xff]  ;;  %v28096_v41 = vsub.f32 %v26092_v55, %v26095_v61 }
 0xc77   :  { %28092 = vst [vmem:[#allocation79_spill] sm:$0xff] %v26340_v29  ;;  %v26352_v19 = vmul.f32 %v26098_v53, %v28095_v8 }
 0xc78   :  { %v26362_v29 = vrot.slane %v28096_v41, %v28061_v7 }
 0xc7a   :  { %v26366_v22 = vadd.f32 %v26362_v29, %v26104_v45  ;;  %v26370_v60 = vadd.f32 %v26362_v29, %v26108_v11  ;;  %v26374_v8 = vadd.f32 %v26362_v29, %v26112_v1  ;;  %v26378_v6 = vadd.f32 %v26362_v29, %v26116_v32  ;;  %v28116_v41 = vld [vmem:[#allocation72_spill] sm:$0xff] }
 0xc7b   :  { %v26382_v55 = vadd.f32 %v26362_v29, %v26120_v24  ;;  %v26386_v61 = vadd.f32 %v26362_v29, %v26124_v50  ;;  %v26390_v7 = vadd.f32 %v26362_v29, %v26128_v10  ;;  %v26394_v53 = vadd.f32 %v26362_v29, %v26132_v30 }
 0xc7c   :  { %v26398_v45 = vadd.f32 %v26362_v29, %v26136_v47  ;;  %v26402_v11 = vadd.f32 %v26362_v29, %v26140_v43  ;;  %v26406_v1 = vadd.f32 %v26362_v29, %v26144_v0  ;;  %v26410_v32 = vadd.f32 %v26362_v29, %v26148_v25 }
 0xc7d   :  { %v26414_v24 = vadd.f32 %v26362_v29, %v26152_v20  ;;  %v26418_v50 = vadd.f32 %v26362_v29, %v26156_v59  ;;  %v26422_v10 = vadd.f32 %v26362_v29, %v26160_v16  ;;  %v26426_v30 = vadd.f32 %v26362_v29, %v26164_v15 }
 0xc7e   :  { %v26430_v47 = vadd.f32 %v26362_v29, %v26168_v48  ;;  %v26434_v43 = vadd.f32 %v26362_v29, %v26172_v38  ;;  %v26438_v0 = vadd.f32 %v26362_v29, %v26176_v26  ;;  %v26442_v25 = vadd.f32 %v26362_v29, %v26180_v35 }
 0xc7f   :  { %v26446_v20 = vadd.f32 %v26362_v29, %v26184_v31  ;;  %v26450_v59 = vadd.f32 %v26362_v29, %v26188_v39  ;;  %v26454_v16 = vadd.f32 %v26362_v29, %v26192_v2  ;;  %v26458_v15 = vadd.f32 %v26362_v29, %v26196_v23 }
 0xc80   :  { %v26462_v48 = vadd.f32 %v26362_v29, %v26200_v14  ;;  %v26466_v38 = vadd.f32 %v26362_v29, %v26204_v21  ;;  %v26470_v26 = vadd.f32 %v26362_v29, %v26208_v56  ;;  %v26474_v35 = vadd.f32 %v26362_v29, %v26212_v17 }
 0xc81   :  { %v26478_v31 = vadd.f32 %v26362_v29, %v26216_v44  ;;  %v26482_v39 = vadd.f32 %v26362_v29, %v26220_v28  ;;  %v26486_v2 = vadd.f32 %v26362_v29, %v26224_v40  ;;  %v26490_v23 = vadd.f32 %v26362_v29, %v26228_v46 }
 0xc82   :  { %v26494_v14 = vadd.f32 %v26362_v29, %v26232_v62  ;;  %v26498_v21 = vadd.f32 %v26362_v29, %v26236_v58  ;;  %v26502_v56 = vadd.f32 %v26362_v29, %v26240_v52  ;;  %v26506_v17 = vadd.f32 %v26362_v29, %v26244_v49 }
 0xc83   :  { %v26510_v44 = vadd.f32 %v26362_v29, %v26248_v57  ;;  %v26514_v28 = vadd.f32 %v26362_v29, %v26252_v9  ;;  %v26518_v40 = vadd.f32 %v26362_v29, %v26256_v13  ;;  %v26522_v46 = vadd.f32 %v26362_v29, %v26260_v27 }
 0xc84   :  { %28097 = vst [vmem:[#allocation80_spill] sm:$0xff] %v26498_v21  ;;  %28098 = vst [vmem:[#allocation81_spill] sm:$0xff] %v26502_v56  ;;  %v26526_v62 = vadd.f32 %v26362_v29, %v26264_v4  ;;  %v26530_v58 = vadd.f32 %v26362_v29, %v26268_v5  ;;  %v26534_v52 = vadd.f32 %v26362_v29, %v26272_v12  ;;  %v16153_v4 = vld [vmem:[%s27133_s0] sm:$0xff]  ;;  %v16154_v5 = vld [vmem:[%s27133_s0 + $0x8] sm:$0xff] }
 0xc85   :  { %28099 = vst [vmem:[#allocation82_spill] sm:$0xff] %v26506_v17  ;;  %28100 = vst [vmem:[#allocation83_spill] sm:$0xff] %v26510_v44  ;;  %v26538_v49 = vadd.f32 %v26362_v29, %v26276_v37  ;;  %v26542_v57 = vadd.f32 %v26362_v29, %v26280_v3  ;;  %v26546_v9 = vadd.f32 %v26362_v29, %v26284_v63  ;;  %v16155_v12 = vld [vmem:[%s27133_s0 + $0x10] sm:$0xff]  ;;  %v16156_v37 = vld [vmem:[%s27133_s0 + $0x18] sm:$0xff] }
 0xc86   :  { %28101 = vst [vmem:[#allocation84_spill] sm:$0xff] %v26514_v28  ;;  %28102 = vst [vmem:[#allocation85_spill] sm:$0xff] %v26518_v40  ;;  %v26550_v13 = vadd.f32 %v26362_v29, %v26288_v18  ;;  %v26554_v27 = vadd.f32 %v26362_v29, %v26292_v33  ;;  %v28112_v3 = vld [vmem:[#allocation70_spill] sm:$0xff]  ;;  %v28114_v18 = vld [vmem:[#allocation71_spill] sm:$0xff]  ;;  %v16219_v28 = vadd.f32 %v16155_v12, %v26374_v8 }
 0xc87   :  { %28103 = vst [vmem:[#allocation86_spill] sm:$0xff] %v26522_v46  ;;  %28104 = vst [vmem:[#allocation87_spill] sm:$0xff] %v26526_v62  ;;  %v26570_v63 = vadd.f32 %v26362_v29, %v28112_v3  ;;  %v26574_v33 = vadd.f32 %v26362_v29, %v28114_v18  ;;  %v16158_v3 = vld [vmem:[%s27133_s0 + $0x28] sm:$0xff]  ;;  %v16159_v18 = vld [vmem:[%s27133_s0 + $0x30] sm:$0xff]  ;;  %v16220_v44 = vadd.f32 %v16156_v37, %v26378_v6 }
 0xc88   :  { %28105 = vst [vmem:[#allocation88_spill] sm:$0xff] %v26530_v58  ;;  %28106 = vst [vmem:[#allocation89_spill] sm:$0xff] %v26534_v52  ;;  %v28126_v52 = vld [vmem:[#allocation77_spill] sm:$0xff]  ;;  %v16161_v62 = vld [vmem:[%s27133_s0 + $0x40] sm:$0xff]  ;;  %v16222_v8 = vadd.f32 %v16158_v3, %v26386_v61  ;;  %v16223_v6 = vadd.f32 %v16159_v18, %v26390_v7 }
 0xc89   :  { %28107 = vst [vmem:[#allocation90_spill] sm:$0xff] %v26538_v49  ;;  %28108 = vst [vmem:[#allocation91_spill] sm:$0xff] %v26542_v57  ;;  %v16157_v57 = vld [vmem:[%s27133_s0 + $0x20] sm:$0xff]  ;;  %v26610_v58 = vadd.f32 %v26362_v29, %v28126_v52  ;;  %v16178_v56 = vld [vmem:[%s27133_s0 + $0xc8] sm:$0xff]  ;;  %v16225_v61 = vadd.f32 %v16161_v62, %v26398_v45 }
 0xc8a   :  { %28109 = vst [vmem:[#allocation92_spill] sm:$0xff] %v26546_v9  ;;  %28110 = vst [vmem:[#allocation93_spill] sm:$0xff] %v26550_v13  ;;  %v28118_v13 = vld [vmem:[#allocation73_spill] sm:$0xff]  ;;  %v16165_v40 = vld [vmem:[%s27133_s0 + $0x60] sm:$0xff] }
 0xc8b   :  { %28111 = vst [vmem:[#allocation94_spill] sm:$0xff] %v26554_v27  ;;  %28113 = vst [vmem:[#allocation95_spill] sm:$0xff] %v26570_v63  ;;  %v26578_v27 = vadd.f32 %v26362_v29, %v28116_v41  ;;  %v26582_v9 = vadd.f32 %v26362_v29, %v28118_v13  ;;  %v16160_v41 = vld [vmem:[%s27133_s0 + $0x38] sm:$0xff]  ;;  %v28124_v63 = vld [vmem:[#allocation76_spill] sm:$0xff] }
 0xc8c   :  { %28115 = vst [vmem:[#allocation96_spill] sm:$0xff] %v26574_v33  ;;  %v26606_v49 = vadd.f32 %v26362_v29, %v28124_v63  ;;  %28127 = vst [vmem:[#allocation102_spill] sm:$0xff] %v26610_v58  ;;  %v16164_v63 = vld [vmem:[%s27133_s0 + $0x58] sm:$0xff]  ;;  %v26630_v58 = vadd.f32 %v26362_v29, %v26332_v51  ;;  %v16167_v51 = vld [vmem:[%s27133_s0 + $0x70] sm:$0xff] }
 0xc8d   :  { %28117 = vst [vmem:[#allocation97_spill] sm:$0xff] %v26578_v27  ;;  %28119 = vst [vmem:[#allocation98_spill] sm:$0xff] %v26582_v9  ;;  %v28120_v27 = vld [vmem:[#allocation74_spill] sm:$0xff]  ;;  %v28122_v9 = vld [vmem:[#allocation75_spill] sm:$0xff] }
 0xc8e   :  { %v26598_v13 = vadd.f32 %v26362_v29, %v28120_v27  ;;  %v26602_v33 = vadd.f32 %v26362_v29, %v28122_v9  ;;  %28125 = vst [vmem:[#allocation101_spill] sm:$0xff] %v26606_v49  ;;  %v16162_v27 = vld [vmem:[%s27133_s0 + $0x48] sm:$0xff]  ;;  %v16163_v9 = vld [vmem:[%s27133_s0 + $0x50] sm:$0xff]  ;;  %28130 = vst [vmem:[#allocation104_spill] sm:$0xff] %v26630_v58  ;;  %v26666_v58 = vadd.f32 %v26362_v29, %v26356_v36 }
 0xc8f   :  { %v28128_v49 = vld [vmem:[#allocation78_spill] sm:$0xff]  ;;  %v16174_v36 = vld [vmem:[%s27133_s0 + $0xa8] sm:$0xff]  ;;  %v16177_v17 = vld [vmem:[%s27133_s0 + $0xc0] sm:$0xff]  ;;  %v16226_v7 = vadd.f32 %v16162_v27, %v26402_v11  ;;  %16283 = vst.msk [vmem:[%s27139_s7 + $0x10] sm:$0xff] %vm26_vm1, %v16219_v28  ;;  %v16229_v28 = vadd.f32 %v16165_v40, %v26414_v24 }
 0xc90   :  { %28121 = vst [vmem:[#allocation99_spill] sm:$0xff] %v26598_v13  ;;  %28123 = vst [vmem:[#allocation100_spill] sm:$0xff] %v26602_v33  ;;  %v26626_v52 = vadd.f32 %v26362_v29, %v28128_v49  ;;  %v26634_v33 = vadd.f32 %v26362_v29, %v26336_v42  ;;  %v28132_v13 = vld [vmem:[#allocation79_spill] sm:$0xff]  ;;  %v16166_v49 = vld [vmem:[%s27133_s0 + $0x68] sm:$0xff]  ;;  %v16238_v27 = vadd.f32 %v16174_v36, %v26450_v59 }
 0xc91   :  { %v26638_v46 = vadd.f32 %v26362_v29, %v28132_v13  ;;  %v16168_v42 = vld [vmem:[%s27133_s0 + $0x78] sm:$0xff]  ;;  %v26654_v13 = vadd.f32 %v26362_v29, %v26344_v54  ;;  %28137 = vst [vmem:[#allocation110_spill] sm:$0xff] %v26666_v58  ;;  %v16170_v54 = vld [vmem:[%s27133_s0 + $0x88] sm:$0xff]  ;;  %v16175_v58 = vld [vmem:[%s27133_s0 + $0xb0] sm:$0xff] }
 0xc92   :  { %28129 = vst [vmem:[#allocation103_spill] sm:$0xff] %v26626_v52  ;;  %28131 = vst [vmem:[#allocation105_spill] sm:$0xff] %v26634_v33  ;;  %v26662_v33 = vadd.f32 %v26362_v29, %v26352_v19  ;;  %v16169_v52 = vld [vmem:[%s27133_s0 + $0x80] sm:$0xff]  ;;  %v16172_v19 = vld [vmem:[%s27133_s0 + $0x98] sm:$0xff]  ;;  %v16232_v62 = vadd.f32 %v16168_v42, %v26426_v30  ;;  %v16234_v3 = vadd.f32 %v16170_v54, %v26434_v43 }
 0xc93   :  { %28133 = vst [vmem:[#allocation106_spill] sm:$0xff] %v26638_v46  ;;  %28134 = vst [vmem:[#allocation107_spill] sm:$0xff] %v26654_v13  ;;  %v26658_v46 = vadd.f32 %v26362_v29, %v26348_v34  ;;  %v16171_v34 = vld [vmem:[%s27133_s0 + $0x90] sm:$0xff]  ;;  %v16173_v29 = vld [vmem:[%s27133_s0 + $0xa0] sm:$0xff]  ;;  %v16218_v13 = vadd.f32 %v16154_v5, %v26370_v60  ;;  %v16221_v60 = vadd.f32 %v16157_v57, %v26382_v55 }
 0xc94   :  { %28136 = vst [vmem:[#allocation109_spill] sm:$0xff] %v26662_v33  ;;  %v16176_v33 = vld [vmem:[%s27133_s0 + $0xb8] sm:$0xff]  ;;  %v16179_v21 = vld [vmem:[%s27133_s0 + $0xd0] sm:$0xff]  ;;  %v16181_v5 = vld [vmem:[%s27133_s0 + $0xe0] sm:$0xff]  ;;  %v16228_v57 = vadd.f32 %v16164_v63, %v26410_v32  ;;  %v16233_v40 = vadd.f32 %v16169_v52, %v26430_v47  ;;  %v16235_v18 = vadd.f32 %v16171_v34, %v26438_v0 }
 0xc95   :  { %28135 = vst [vmem:[#allocation108_spill] sm:$0xff] %v26658_v46  ;;  %v16217_v46 = vadd.f32 %v16153_v4, %v26366_v22  ;;  %v16180_v22 = vld [vmem:[%s27133_s0 + $0xd8] sm:$0xff]  ;;  %v16224_v4 = vadd.f32 %v16160_v41, %v26394_v53  ;;  %v16182_v12 = vld [vmem:[%s27133_s0 + $0xe8] sm:$0xff]  ;;  %v16183_v37 = vld [vmem:[%s27133_s0 + $0xf0] sm:$0xff]  ;;  %v16227_v53 = vadd.f32 %v16163_v9, %v26406_v1  ;;  %v16236_v41 = vadd.f32 %v16172_v19, %v26442_v25 }
 0xc96   :  { %v16184_v55 = vld [vmem:[%s27133_s0 + $0xf8] sm:$0xff]  ;;  %16282 = vst.msk [vmem:[%s27139_s7 + $0x8] sm:$0xff] %vm26_vm1, %v16218_v13  ;;  %16284 = vst.msk [vmem:[%s27139_s7 + $0x18] sm:$0xff] %vm26_vm1, %v16220_v44  ;;  %v16185_v45 = vld [vmem:[%s27133_s0 + $0x100] sm:$0xff]  ;;  %v16230_v44 = vadd.f32 %v16166_v49, %v26418_v50  ;;  %v16237_v25 = vadd.f32 %v16173_v29, %v26446_v20  ;;  %v16239_v9 = vadd.f32 %v16175_v58, %v26454_v16 }
 0xc97   :  { %16281 = vst.msk [vmem:[%s27139_s7] sm:$0xff] %vm26_vm1, %v16217_v46  ;;  %v16186_v11 = vld [vmem:[%s27133_s0 + $0x108] sm:$0xff]  ;;  %v16187_v1 = vld [vmem:[%s27133_s0 + $0x110] sm:$0xff]  ;;  %v16188_v32 = vld [vmem:[%s27133_s0 + $0x118] sm:$0xff]  ;;  %v16231_v46 = vadd.f32 %v16167_v51, %v26422_v10  ;;  %v16240_v63 = vadd.f32 %v16176_v33, %v26458_v15  ;;  %v16241_v15 = vadd.f32 %v16177_v17, %v26462_v48  ;;  %v16242_v58 = vadd.f32 %v16178_v56, %v26466_v38 }
 0xc98   :  { %16285 = vst.msk [vmem:[%s27139_s7 + $0x20] sm:$0xff] %vm26_vm1, %v16221_v60  ;;  %16286 = vst.msk [vmem:[%s27139_s7 + $0x28] sm:$0xff] %vm26_vm1, %v16222_v8  ;;  %v16189_v24 = vld [vmem:[%s27133_s0 + $0x120] sm:$0xff]  ;;  %v16190_v50 = vld [vmem:[%s27133_s0 + $0x128] sm:$0xff]  ;;  %v16243_v33 = vadd.f32 %v16179_v21, %v26470_v26  ;;  %v16244_v52 = vadd.f32 %v16180_v22, %v26474_v35  ;;  %v16245_v35 = vadd.f32 %v16181_v5, %v26478_v31 }
 0xc99   :  { %16287 = vst.msk [vmem:[%s27139_s7 + $0x30] sm:$0xff] %vm26_vm1, %v16223_v6  ;;  %16288 = vst.msk [vmem:[%s27139_s7 + $0x38] sm:$0xff] %vm26_vm1, %v16224_v4  ;;  %v16191_v10 = vld [vmem:[%s27133_s0 + $0x130] sm:$0xff]  ;;  %v16192_v30 = vld [vmem:[%s27133_s0 + $0x138] sm:$0xff]  ;;  %v16246_v21 = vadd.f32 %v16182_v12, %v26482_v39  ;;  %v16247_v56 = vadd.f32 %v16183_v37, %v26486_v2  ;;  %v16248_v17 = vadd.f32 %v16184_v55, %v26490_v23 }
 0xc9a   :  { %16289 = vst.msk [vmem:[%s27139_s7 + $0x40] sm:$0xff] %vm26_vm1, %v16225_v61  ;;  %16290 = vst.msk [vmem:[%s27139_s7 + $0x48] sm:$0xff] %vm26_vm1, %v16226_v7  ;;  %v16193_v47 = vld [vmem:[%s27133_s0 + $0x140] sm:$0xff]  ;;  %v16194_v43 = vld [vmem:[%s27133_s0 + $0x148] sm:$0xff]  ;;  %v16249_v23 = vadd.f32 %v16185_v45, %v26494_v14 }
 0xc9b   :  { %16291 = vst.msk [vmem:[%s27139_s7 + $0x50] sm:$0xff] %vm26_vm1, %v16227_v53  ;;  %16292 = vst.msk [vmem:[%s27139_s7 + $0x58] sm:$0xff] %vm26_vm1, %v16228_v57  ;;  %v16195_v0 = vld [vmem:[%s27133_s0 + $0x150] sm:$0xff]  ;;  %v16196_v20 = vld [vmem:[%s27133_s0 + $0x158] sm:$0xff] }
 0xc9c   :  { %16293 = vst.msk [vmem:[%s27139_s7 + $0x60] sm:$0xff] %vm26_vm1, %v16229_v28  ;;  %16294 = vst.msk [vmem:[%s27139_s7 + $0x68] sm:$0xff] %vm26_vm1, %v16230_v44  ;;  %v16197_v59 = vld [vmem:[%s27133_s0 + $0x160] sm:$0xff]  ;;  %v16198_v16 = vld [vmem:[%s27133_s0 + $0x168] sm:$0xff] }
 0xc9d   :  { %16295 = vst.msk [vmem:[%s27139_s7 + $0x70] sm:$0xff] %vm26_vm1, %v16231_v46  ;;  %16296 = vst.msk [vmem:[%s27139_s7 + $0x78] sm:$0xff] %vm26_vm1, %v16232_v62  ;;  %v16199_v48 = vld [vmem:[%s27133_s0 + $0x170] sm:$0xff]  ;;  %v16200_v38 = vld [vmem:[%s27133_s0 + $0x178] sm:$0xff] }
 0xc9e   :  { %16297 = vst.msk [vmem:[%s27139_s7 + $0x80] sm:$0xff] %vm26_vm1, %v16233_v40  ;;  %16298 = vst.msk [vmem:[%s27139_s7 + $0x88] sm:$0xff] %vm26_vm1, %v16234_v3  ;;  %v16201_v26 = vld [vmem:[%s27133_s0 + $0x180] sm:$0xff]  ;;  %v16202_v31 = vld [vmem:[%s27133_s0 + $0x188] sm:$0xff] }
 0xc9f   :  { %16299 = vst.msk [vmem:[%s27139_s7 + $0x90] sm:$0xff] %vm26_vm1, %v16235_v18  ;;  %16300 = vst.msk [vmem:[%s27139_s7 + $0x98] sm:$0xff] %vm26_vm1, %v16236_v41  ;;  %v16203_v39 = vld [vmem:[%s27133_s0 + $0x190] sm:$0xff]  ;;  %v16204_v2 = vld [vmem:[%s27133_s0 + $0x198] sm:$0xff] }
 0xca0   :  { %16301 = vst.msk [vmem:[%s27139_s7 + $0xa0] sm:$0xff] %vm26_vm1, %v16237_v25  ;;  %16302 = vst.msk [vmem:[%s27139_s7 + $0xa8] sm:$0xff] %vm26_vm1, %v16238_v27  ;;  %v28138_v49 = vld [vmem:[#allocation80_spill] sm:$0xff]  ;;  %v28139_v42 = vld [vmem:[#allocation81_spill] sm:$0xff] }
 0xca1   :  { %16303 = vst.msk [vmem:[%s27139_s7 + $0xb0] sm:$0xff] %vm26_vm1, %v16239_v9  ;;  %16304 = vst.msk [vmem:[%s27139_s7 + $0xb8] sm:$0xff] %vm26_vm1, %v16240_v63  ;;  %v16250_v51 = vadd.f32 %v16186_v11, %v28138_v49  ;;  %v16251_v13 = vadd.f32 %v16187_v1, %v28139_v42  ;;  %v28140_v54 = vld [vmem:[#allocation82_spill] sm:$0xff]  ;;  %v16205_v14 = vld [vmem:[%s27133_s0 + $0x1a0] sm:$0xff] }
 0xca2   :  { %v16252_v34 = vadd.f32 %v16188_v32, %v28140_v54  ;;  %16305 = vst.msk [vmem:[%s27139_s7 + $0xc0] sm:$0xff] %vm26_vm1, %v16241_v15  ;;  %16306 = vst.msk [vmem:[%s27139_s7 + $0xc8] sm:$0xff] %vm26_vm1, %v16242_v58  ;;  %v16206_v19 = vld [vmem:[%s27133_s0 + $0x1a8] sm:$0xff]  ;;  %v16207_v29 = vld [vmem:[%s27133_s0 + $0x1b0] sm:$0xff] }
 0xca3   :  { %16307 = vst.msk [vmem:[%s27139_s7 + $0xd0] sm:$0xff] %vm26_vm1, %v16243_v33  ;;  %16308 = vst.msk [vmem:[%s27139_s7 + $0xd8] sm:$0xff] %vm26_vm1, %v16244_v52  ;;  %v28141_v36 = vld [vmem:[#allocation83_spill] sm:$0xff]  ;;  %v28142_v60 = vld [vmem:[#allocation84_spill] sm:$0xff] }
 0xca4   :  { %v16253_v22 = vadd.f32 %v16189_v24, %v28141_v36  ;;  %v16254_v8 = vadd.f32 %v16190_v50, %v28142_v60  ;;  %v28143_v6 = vld [vmem:[#allocation85_spill] sm:$0xff]  ;;  %v28144_v5 = vld [vmem:[#allocation86_spill] sm:$0xff]  ;;  %16309 = vst.msk [vmem:[%s27139_s7 + $0xe0] sm:$0xff] %vm26_vm1, %v16245_v35  ;;  %16310 = vst.msk [vmem:[%s27139_s7 + $0xe8] sm:$0xff] %vm26_vm1, %v16246_v21 }
 0xca5   :  { %v16255_v4 = vadd.f32 %v16191_v10, %v28143_v6  ;;  %v16256_v12 = vadd.f32 %v16192_v30, %v28144_v5  ;;  %16311 = vst.msk [vmem:[%s27139_s7 + $0xf0] sm:$0xff] %vm26_vm1, %v16247_v56  ;;  %16312 = vst.msk [vmem:[%s27139_s7 + $0xf8] sm:$0xff] %vm26_vm1, %v16248_v17  ;;  %v16208_v37 = vld [vmem:[%s27133_s0 + $0x1b8] sm:$0xff]  ;;  %v16209_v55 = vld [vmem:[%s27133_s0 + $0x1c0] sm:$0xff] }
 0xca6   :  { %v16210_v61 = vld [vmem:[%s27133_s0 + $0x1c8] sm:$0xff]  ;;  %v28145_v7 = vld [vmem:[#allocation87_spill] sm:$0xff]  ;;  %v28146_v57 = vld [vmem:[#allocation88_spill] sm:$0xff]  ;;  %16313 = vst.msk [vmem:[%s27139_s7 + $0x100] sm:$0xff] %vm26_vm1, %v16249_v23 }
 0xca7   :  { %v16257_v53 = vadd.f32 %v16193_v47, %v28145_v7  ;;  %v16258_v45 = vadd.f32 %v16194_v43, %v28146_v57  ;;  %v28147_v11 = vld [vmem:[#allocation89_spill] sm:$0xff]  ;;  %v28148_v32 = vld [vmem:[#allocation90_spill] sm:$0xff]  ;;  %16314 = vst.msk [vmem:[%s27139_s7 + $0x108] sm:$0xff] %vm26_vm1, %v16250_v51  ;;  %16315 = vst.msk [vmem:[%s27139_s7 + $0x110] sm:$0xff] %vm26_vm1, %v16251_v13 }
 0xca8   :  { %v16259_v1 = vadd.f32 %v16195_v0, %v28147_v11  ;;  %v16260_v28 = vadd.f32 %v16196_v20, %v28148_v32  ;;  %16316 = vst.msk [vmem:[%s27139_s7 + $0x118] sm:$0xff] %vm26_vm1, %v16252_v34  ;;  %v16211_v44 = vld [vmem:[%s27133_s0 + $0x1d0] sm:$0xff]  ;;  %v16212_v46 = vld [vmem:[%s27133_s0 + $0x1d8] sm:$0xff]  ;;  %v16213_v62 = vld [vmem:[%s27133_s0 + $0x1e0] sm:$0xff] }
 0xca9   :  { %v28149_v24 = vld [vmem:[#allocation91_spill] sm:$0xff]  ;;  %v28150_v10 = vld [vmem:[#allocation92_spill] sm:$0xff]  ;;  %v28151_v40 = vld [vmem:[#allocation93_spill] sm:$0xff]  ;;  %16317 = vst.msk [vmem:[%s27139_s7 + $0x120] sm:$0xff] %vm26_vm1, %v16253_v22 }
 0xcaa   :  { %v16261_v50 = vadd.f32 %v16197_v59, %v28149_v24  ;;  %v16262_v30 = vadd.f32 %v16198_v16, %v28150_v10  ;;  %v16263_v3 = vadd.f32 %v16199_v48, %v28151_v40  ;;  %v28152_v18 = vld [vmem:[#allocation94_spill] sm:$0xff]  ;;  %16318 = vst.msk [vmem:[%s27139_s7 + $0x128] sm:$0xff] %vm26_vm1, %v16254_v8  ;;  %16319 = vst.msk [vmem:[%s27139_s7 + $0x130] sm:$0xff] %vm26_vm1, %v16255_v4  ;;  %v16214_v47 = vld [vmem:[%s27133_s0 + $0x1e8] sm:$0xff] }
 0xcab   :  { %v16264_v41 = vadd.f32 %v16200_v38, %v28152_v18  ;;  %16320 = vst.msk [vmem:[%s27139_s7 + $0x138] sm:$0xff] %vm26_vm1, %v16256_v12  ;;  %v16215_v43 = vld [vmem:[%s27133_s0 + $0x1f0] sm:$0xff]  ;;  %v16216_v0 = vld [vmem:[%s27133_s0 + $0x1f8] sm:$0xff]  ;;  %v28154_v9 = vld [vmem:[#allocation96_spill] sm:$0xff] }
 0xcac   :  { %v28153_v25 = vld [vmem:[#allocation95_spill] sm:$0xff]  ;;  %v16266_v63 = vadd.f32 %v16202_v31, %v28154_v9  ;;  %v28155_v20 = vld [vmem:[#allocation97_spill] sm:$0xff]  ;;  %v28156_v16 = vld [vmem:[#allocation98_spill] sm:$0xff]  ;;  %16321 = vst.msk [vmem:[%s27139_s7 + $0x140] sm:$0xff] %vm26_vm1, %v16257_v53 }
 0xcad   :  { %v16265_v27 = vadd.f32 %v16201_v26, %v28153_v25  ;;  %v16267_v59 = vadd.f32 %v16203_v39, %v28155_v20  ;;  %v16268_v15 = vadd.f32 %v16204_v2, %v28156_v16  ;;  %16322 = vst.msk [vmem:[%s27139_s7 + $0x148] sm:$0xff] %vm26_vm1, %v16258_v45  ;;  %16323 = vst.msk [vmem:[%s27139_s7 + $0x150] sm:$0xff] %vm26_vm1, %v16259_v1  ;;  %v28157_v58 = vld [vmem:[#allocation99_spill] sm:$0xff]  ;;  %v28158_v52 = vld [vmem:[#allocation100_spill] sm:$0xff] }
 0xcae   :  { %16324 = vst.msk [vmem:[%s27139_s7 + $0x158] sm:$0xff] %vm26_vm1, %v16260_v28  ;;  %v16269_v33 = vadd.f32 %v16205_v14, %v28157_v58  ;;  %v16270_v48 = vadd.f32 %v16206_v19, %v28158_v52  ;;  %v28159_v38 = vld [vmem:[#allocation101_spill] sm:$0xff]  ;;  %v28160_v35 = vld [vmem:[#allocation102_spill] sm:$0xff]  ;;  %16325 = vst.msk [vmem:[%s27139_s7 + $0x160] sm:$0xff] %vm26_vm1, %v16261_v50 }
 0xcaf   :  { %v16271_v26 = vadd.f32 %v16207_v29, %v28159_v38  ;;  %v16272_v21 = vadd.f32 %v16208_v37, %v28160_v35  ;;  %16326 = vst.msk [vmem:[%s27139_s7 + $0x168] sm:$0xff] %vm26_vm1, %v16262_v30  ;;  %16327 = vst.msk [vmem:[%s27139_s7 + $0x170] sm:$0xff] %vm26_vm1, %v16263_v3  ;;  %v28161_v56 = vld [vmem:[#allocation103_spill] sm:$0xff]  ;;  %v28162_v31 = vld [vmem:[#allocation104_spill] sm:$0xff] }
 0xcb0   :  { %16328 = vst.msk [vmem:[%s27139_s7 + $0x178] sm:$0xff] %vm26_vm1, %v16264_v41  ;;  %v16273_v17 = vadd.f32 %v16209_v55, %v28161_v56  ;;  %v16274_v39 = vadd.f32 %v16210_v61, %v28162_v31  ;;  %v28163_v2 = vld [vmem:[#allocation105_spill] sm:$0xff]  ;;  %v28164_v49 = vld [vmem:[#allocation106_spill] sm:$0xff]  ;;  %16329 = vst.msk [vmem:[%s27139_s7 + $0x180] sm:$0xff] %vm26_vm1, %v16265_v27 }
 0xcb1   :  { %v16275_v23 = vadd.f32 %v16211_v44, %v28163_v2  ;;  %v16276_v51 = vadd.f32 %v16212_v46, %v28164_v49  ;;  %16330 = vst.msk [vmem:[%s27139_s7 + $0x188] sm:$0xff] %vm26_vm1, %v16266_v63  ;;  %16331 = vst.msk [vmem:[%s27139_s7 + $0x190] sm:$0xff] %vm26_vm1, %v16267_v59  ;;  %v28165_v42 = vld [vmem:[#allocation107_spill] sm:$0xff]  ;;  %v28166_v54 = vld [vmem:[#allocation108_spill] sm:$0xff] }
 0xcb2   :  { %16332 = vst.msk [vmem:[%s27139_s7 + $0x198] sm:$0xff] %vm26_vm1, %v16268_v15  ;;  %v16277_v13 = vadd.f32 %v16213_v62, %v28165_v42  ;;  %v16278_v34 = vadd.f32 %v16214_v47, %v28166_v54  ;;  %v28167_v14 = vld [vmem:[#allocation109_spill] sm:$0xff]  ;;  %v28168_v29 = vld [vmem:[#allocation110_spill] sm:$0xff]  ;;  %16333 = vst.msk [vmem:[%s27139_s7 + $0x1a0] sm:$0xff] %vm26_vm1, %v16269_v33 }
 0xcb3   :  { %v16279_v19 = vadd.f32 %v16215_v43, %v28167_v14  ;;  %v16280_v36 = vadd.f32 %v16216_v0, %v28168_v29  ;;  %16334 = vst.msk [vmem:[%s27139_s7 + $0x1a8] sm:$0xff] %vm26_vm1, %v16270_v48  ;;  %16335 = vst.msk [vmem:[%s27139_s7 + $0x1b0] sm:$0xff] %vm26_vm1, %v16271_v26 }
 0xcb4   :  { %16336 = vst.msk [vmem:[%s27139_s7 + $0x1b8] sm:$0xff] %vm26_vm1, %v16272_v21  ;;  %16337 = vst.msk [vmem:[%s27139_s7 + $0x1c0] sm:$0xff] %vm26_vm1, %v16273_v17 }
 0xcb5   :  { %16338 = vst.msk [vmem:[%s27139_s7 + $0x1c8] sm:$0xff] %vm26_vm1, %v16274_v39  ;;  %16339 = vst.msk [vmem:[%s27139_s7 + $0x1d0] sm:$0xff] %vm26_vm1, %v16275_v23 }
 0xcb6   :  { %16340 = vst.msk [vmem:[%s27139_s7 + $0x1d8] sm:$0xff] %vm26_vm1, %v16276_v51  ;;  %16341 = vst.msk [vmem:[%s27139_s7 + $0x1e0] sm:$0xff] %vm26_vm1, %v16277_v13 }
 0xcb7   :  { %16342 = vst.msk [vmem:[%s27139_s7 + $0x1e8] sm:$0xff] %vm26_vm1, %v16278_v34  ;;  %16343 = vst.msk [vmem:[%s27139_s7 + $0x1f0] sm:$0xff] %vm26_vm1, %v16279_v19 }
 0xcb8   :  { %16344 = vst.msk [vmem:[%s27139_s7 + $0x1f8] sm:$0xff] %vm26_vm1, %v16280_v36 }

</bundles_post_ra>
